<compile_context>
chip_gen: v6e
topology: v6e:2x2x1
jax: 0.10.0
libtpu: 0.0.40
codegen_flags: <defaults>
</compile_context>

<pallas_src>
import numpy as np
import jax
import jax.numpy as jnp
from jax import lax
from jax.experimental import pallas as pl
from jax.experimental.pallas import tpu as pltpu


# ----------------------- db2 wavelet filters (pywt constants, baked in) -----------------------
_DB2_DEC_LO = np.array([-0.12940952255092145, 0.22414386804185735,
                        0.836516303737469, 0.48296291314469025], np.float64)
_DB2_DEC_HI = np.array([-0.48296291314469025, 0.836516303737469,
                        -0.22414386804185735, -0.12940952255092145], np.float64)
_DB2_REC_LO = np.array([0.48296291314469025, 0.836516303737469,
                        0.22414386804185735, -0.12940952255092145], np.float64)
_DB2_REC_HI = np.array([-0.12940952255092145, -0.22414386804185735,
                        0.836516303737469, -0.48296291314469025], np.float64)

# 1-D factors of the separable db2 analysis (dec, reversed) / synthesis (rec) filters.
_DLO = [float(v) for v in _DB2_DEC_LO[::-1]]
_DHI = [float(v) for v in _DB2_DEC_HI[::-1]]
_RLO = [float(v) for v in _DB2_REC_LO]
_RHI = [float(v) for v in _DB2_REC_HI]

# Polyphase taps of the stride-2 conv_transpose (IWT): output parity r reads
# subband index m+di with filter index fi.
_T_PAR = {0: ((0, 1), (-1, 3)), 1: ((1, 0), (0, 2))}
# Distinct (row-parity, row-offset) sources used by the polyphase 3x3 cv1 (th = -1,0,1,2).
_ROW_KEYS = [(1, -1), (0, 0), (1, 0), (0, 1)]


def _parity(t):
    p = t % 2
    return p, (t - p) // 2


def create_db2_wavelet_filters():
    """Matches create_wavelet_filter('db2', ...) from the PyTorch reference."""
    dlo, dhi = _DB2_DEC_LO[::-1], _DB2_DEC_HI[::-1]
    dec_f = np.stack([np.outer(dlo, dlo), np.outer(dhi, dlo),
                      np.outer(dlo, dhi), np.outer(dhi, dhi)]).astype(np.float32)
    rlo, rhi = _DB2_REC_LO, _DB2_REC_HI                # reversed-then-flipped == identity
    rec_f = np.stack([np.outer(rlo, rlo), np.outer(rhi, rlo),
                      np.outer(rlo, rhi), np.outer(rhi, rhi)]).astype(np.float32)
    return dec_f, rec_f                                # each (4, 4, 4), indexed [k, u, v]


# ------------------------------- host-side (numpy) weight folding -----------------------------
def _fold_bn_np(gamma, beta, mean, var, eps=1e-5):
    gamma, beta, mean, var = (np.asarray(a, np.float64) for a in (gamma, beta, mean, var))
    s = gamma / np.sqrt(var + eps)
    return s.astype(np.float32), (beta - mean * s).astype(np.float32)


def _tile_np(v, reps):
    """(C,) per-channel vector -> (reps*C,) so flat lane index j*C + c reads v[c]."""
    return np.tile(np.asarray(v, np.float32), reps)


def _conv3_band_matrix_np(w, W):
    """w: (3,3,Cin,Cout).  Returns (3*W*Cin, W*Cout): merged-K banded matrix for a
    3x3 'same' conv in lane-flattened layout; boundary taps are clipped (zero pad)."""
    _, _, Cin, Cout = w.shape
    m = np.zeros((3 * W * Cin, W * Cout), np.float32)
    for kh in range(3):
        for kw in range(3):
            for j in range(W):
                jc = j + kw - 1
                if 0 <= jc < W:
                    r0 = kh * W * Cin + jc * Cin
                    m[r0:r0 + Cin, j * Cout:(j + 1) * Cout] += w[kh, kw]
    return m


def _cv1_polyphase_matrix_np(w, W2):
    """w: (3,3,Cin,Cout).  Returns (8*W2*Cin, 4*W2*Cout): maps the concatenation of
    the 8 polyphase input row-sources to all 4 cv1 output parities in ONE matmul."""
    _, _, Cin, Cout = w.shape
    L = W2 * Cout
    key_index = {}
    for i, (a, qh) in enumerate(_ROW_KEYS):
        for b in range(2):
            key_index[(a, qh, b)] = i * 2 + b
    m = np.zeros((8 * W2 * Cin, 4 * L), np.float32)
    for r in range(2):
        for s in range(2):
            p = 2 * r + s
            for kh in range(3):
                a, qh = _parity(r + kh - 1)
                for kw in range(3):
                    b, qw = _parity(s + kw - 1)
                    blk = key_index[(a, qh, b)]
                    for j in range(W2):
                        jc = j + qw
                        if 0 <= jc < W2:
                            r0 = blk * W2 * Cin + jc * Cin
                            c0 = p * L + j * Cout
                            m[r0:r0 + Cin, c0:c0 + Cout] += w[kh, kw]
    return m


def _const_spec(block_shape, index_map):
    """Grid-invariant operand: request a single VMEM buffer (no double-buffering)."""
    try:
        return pl.BlockSpec(block_shape, index_map, pipeline_mode=pl.Buffered(1))
    except (AttributeError, TypeError):   # fall back if pipeline_mode unsupported
        return pl.BlockSpec(block_shape, index_map)


# ------------------------------------ in-kernel helpers ---------------------------------------
def _silu(y):
    # exp + approx reciprocal both land on the EUP slot (free next to VALU work).
    return y * pl.reciprocal(1.0 + jnp.exp(-y), approx=True)


# ------------------- fused plain Bottleneck kernel (cv2 is a Conv block) -----------------------
def _make_plain_kernel(H, W, C1, Cm, C2, add):
    def kernel(xp_ref, m1_ref, s1_ref, b1_ref, m2_ref, s2_ref, b2_ref, o_ref):
        xp = xp_ref[0]                                             # (H+2, W*C1) f32
        # cv1: single merged-K bf16 MXU matmul over the 3 kh row taps
        xcat = jnp.concatenate(
            [xp[kh:kh + H, :].astype(jnp.bfloat16) for kh in range(3)], axis=1)
        h = _silu(jnp.dot(xcat, m1_ref[...], preferred_element_type=jnp.float32)
                  * s1_ref[0] + b1_ref[0])                         # (H, W*Cm)
        # cv2: same trick; column boundaries are folded into m2, rows need 2 zero rows
        zrow = jnp.zeros((1, W * Cm), jnp.float32)
        hp = jnp.concatenate([zrow, h, zrow], axis=0)              # (H+2, W*Cm)
        hcat = jnp.concatenate(
            [hp[kh:kh + H, :].astype(jnp.bfloat16) for kh in range(3)], axis=1)
        y = _silu(jnp.dot(hcat, m2_ref[...], preferred_element_type=jnp.float32)
                  * s2_ref[0] + b2_ref[0])                         # (H, W*C2)
        if add:
            y = y + xp[1:1 + H, :]                                 # residual (C1 == C2)
        o_ref[0] = y                                               # lane-dense store
    return kernel


def _forward_plain(x, p):
    """x: (B, H, W, C1) NHWC.  Returns (B, H, W, C2) NHWC."""
    B, H, W, C1 = x.shape
    c1p, c2p = p['cv1'], p['cv2']
    Cm = int(np.asarray(c1p['w']).shape[0])
    C2 = int(np.asarray(c2p['w']).shape[0])
    add = p['add']

    # host numpy weight folding -> bf16 banded matrices for the MXU
    w1 = np.transpose(np.asarray(c1p['w'], np.float32), (2, 3, 1, 0))     # (3,3,C1,Cm)
    w2 = np.transpose(np.asarray(c2p['w'], np.float32), (2, 3, 1, 0))     # (3,3,Cm,C2)
    s1, b1 = _fold_bn_np(c1p['gamma'], c1p['beta'], c1p['mean'], c1p['var'])
    s2, b2 = _fold_bn_np(c2p['gamma'], c2p['beta'], c2p['mean'], c2p['var'])
    m1 = jnp.asarray(_conv3_band_matrix_np(w1, W), jnp.bfloat16)          # (3*W*C1, W*Cm)
    m2 = jnp.asarray(_conv3_band_matrix_np(w2, W), jnp.bfloat16)          # (3*W*Cm, W*C2)
    s1t = jnp.asarray(_tile_np(s1, W).reshape(1, W * Cm))
    b1t = jnp.asarray(_tile_np(b1, W).reshape(1, W * Cm))
    s2t = jnp.asarray(_tile_np(s2, W).reshape(1, W * C2))
    b2t = jnp.asarray(_tile_np(b2, W).reshape(1, W * C2))

    # rows padded by 1 (column boundaries are handled inside the band matrices)
    xp = jnp.pad(x, ((0, 0), (1, 1), (0, 0), (0, 0))).reshape(B, H + 2, W * C1)

    out = pl.pallas_call(
        _make_plain_kernel(H, W, C1, Cm, C2, add),
        out_shape=jax.ShapeDtypeStruct((B, H, W * C2), jnp.float32),
        grid=(B,),
        in_specs=[
            pl.BlockSpec((1, H + 2, W * C1), lambda i: (i, 0, 0)),
            _const_spec((3 * W * C1, W * Cm), lambda i: (0, 0)),
            _const_spec((1, W * Cm), lambda i: (0, 0)),
            _const_spec((1, W * Cm), lambda i: (0, 0)),
            _const_spec((3 * W * Cm, W * C2), lambda i: (0, 0)),
            _const_spec((1, W * C2), lambda i: (0, 0)),
            _const_spec((1, W * C2), lambda i: (0, 0)),
        ],
        out_specs=pl.BlockSpec((1, H, W * C2), lambda i: (i, 0, 0)),
        compiler_params=pltpu.CompilerParams(
            dimension_semantics=("parallel",),
            vmem_limit_bytes=32 * 1024 * 1024),
    )(xp, m1, s1t, b1t, m2, s2t, b2t)
    return out.reshape(B, H, W, C2)


# ------------------ fused WT Bottleneck kernel (cv2 is WTConv2d, wt_levels=1) ------------------
def _make_wt_kernel(H2, W2, C1, C, add):
    L = W2 * C

    def kernel(xpar_ref, m1_ref, s1_ref, b1_ref, basew_ref, baseb_ref, dww_ref,
               o_ref, hp_ref, xw_ref, xt_ref):
        # Zero the haloed scratch planes every step (cheap; megacore-safe — no
        # reliance on program_id==0 running on every core).  Interiors follow.
        hp_ref[...] = jnp.zeros_like(hp_ref)
        xw_ref[...] = jnp.zeros_like(xw_ref)
        xt_ref[...] = jnp.zeros_like(xt_ref)

        # ---- cv1 (3x3 conv + BN + SiLU): ONE merged-K bf16 MXU matmul producing
        #      all 4 output parities (K = 8*W2*C1, N = 4*W2*C).
        srcs = []
        for (a, qh) in _ROW_KEYS:
            for b in range(2):
                srcs.append(
                    xpar_ref[0, 2 * a + b, 1 + qh:1 + qh + H2, :].astype(jnp.bfloat16))
        xcat = jnp.concatenate(srcs, axis=1)
        hcat = _silu(jnp.dot(xcat, m1_ref[...], preferred_element_type=jnp.float32)
                     * s1_ref[0] + b1_ref[0])                      # (H2, 4L)
        for p in range(4):
            hp_ref[p, 1:1 + H2, C:C + L] = hcat[:, p * L:(p + 1) * L]

        # ---- db2 analysis (stride 2, pad 1), separable + polyphase.
        #      Horizontal (column-filter) pass, per row parity:
        P = {}
        for fname, fv in (("lo", _DLO), ("hi", _DHI)):
            for a in range(2):
                acc = None
                for v in range(4):
                    b, qw = _parity(v - 1)
                    t = hp_ref[2 * a + b, :, (1 + qw) * C:(1 + qw) * C + L] * fv[v]
                    acc = t if acc is None else acc + t
                P[(fname, a)] = acc                                # (H2+2, L)
        #      Vertical (row-filter) pass -> 4 subbands:
        UF = (_DLO, _DHI, _DLO, _DHI)
        VF = ("lo", "lo", "hi", "hi")
        for k in range(4):
            acc = None
            for u in range(4):
                a, qh = _parity(u - 1)
                t = P[(VF[k], a)][1 + qh:1 + qh + H2, :] * UF[k][u]
                acc = t if acc is None else acc + t
            xw_ref[k, 2:2 + H2, 2 * C:2 * C + L] = acc

        # ---- learned depthwise 5x5 per subband (wavelet_scale folded into dww) ----
        for k in range(4):
            acc = None
            for u in range(5):
                for v in range(5):
                    t = xw_ref[k, u:u + H2, v * C:v * C + L] * dww_ref[k * 25 + u * 5 + v]
                    acc = t if acc is None else acc + t
            xt_ref[k, 1:1 + H2, C:C + L] = acc

        # ---- inverse wavelet transform (stride-2 conv_transpose), separable.
        #      Horizontal pass, grouped by each subband's row filter (rlo / rhi):
        BF = (_RLO, _RLO, _RHI, _RHI)                              # column filter per subband
        G = {}
        for s in range(2):
            glo = None
            ghi = None
            for k in range(4):
                hk = None
                for (dj, fj) in _T_PAR[s]:
                    t = xt_ref[k, :, (1 + dj) * C:(1 + dj) * C + L] * BF[k][fj]
                    hk = t if hk is None else hk + t
                if k in (0, 2):
                    glo = hk if glo is None else glo + hk
                else:
                    ghi = hk if ghi is None else ghi + hk
            G[("lo", s)] = glo
            G[("hi", s)] = ghi                                     # (H2+2, L)

        #      Vertical IWT pass + base depthwise 5x5 + bias + shortcut, per parity:
        outs = []
        for r in range(2):
            for s in range(2):
                acc = None
                for (di, fi) in _T_PAR[r]:
                    t = (G[("lo", s)][1 + di:1 + di + H2, :] * _RLO[fi]
                         + G[("hi", s)][1 + di:1 + di + H2, :] * _RHI[fi])
                    acc = t if acc is None else acc + t
                # base path: depthwise 5x5 on h (base_scale folded into weights)
                for u in range(5):
                    a, qh = _parity(r + u - 2)
                    for v in range(5):
                        b, qw = _parity(s + v - 2)
                        acc = acc + (hp_ref[2 * a + b, 1 + qh:1 + qh + H2,
                                            (1 + qw) * C:(1 + qw) * C + L]
                                     * basew_ref[u * 5 + v])
                acc = acc + baseb_ref[0]
                if add:
                    acc = acc + xpar_ref[0, 2 * r + s, 1:1 + H2, :]   # C1 == C here
                outs.append(acc)
        o_ref[0] = jnp.concatenate(outs, axis=-1)                  # (H2, 4L), lane-dense
    return kernel


def _forward_wt(x, p):
    """x: (B, H, W, C1) NHWC.  Returns (B, H, W, C) NHWC (WTConv2d requires c_ == c2)."""
    B, H, W, C1 = x.shape
    assert H % 2 == 0 and W % 2 == 0  # TODO(synk): odd-spatial F.pad path of WTConv2d
    H2, W2 = H // 2, W // 2
    c1p, c2p = p['cv1'], p['cv2']
    C = int(np.asarray(c1p['w']).shape[0])     # mid channels == out channels in WT config
    add = p['add']
    L = W2 * C

    # host numpy weight folding
    w1 = np.transpose(np.asarray(c1p['w'], np.float32), (2, 3, 1, 0))     # (3,3,C1,C)
    s1, b1 = _fold_bn_np(c1p['gamma'], c1p['beta'], c1p['mean'], c1p['var'])
    m1 = jnp.asarray(_cv1_polyphase_matrix_np(w1, W2), jnp.bfloat16)      # (8*W2*C1, 4L)
    s1c = jnp.asarray(_tile_np(s1, 4 * W2).reshape(1, 4 * L))
    b1c = jnp.asarray(_tile_np(b1, 4 * W2).reshape(1, 4 * L))

    bw = np.asarray(c2p['base_w'], np.float32)[:, 0]                      # (C,5,5)
    bsc = np.asarray(c2p['base_scale'], np.float32)
    basew = jnp.asarray(np.stack([_tile_np(bw[:, u, v] * bsc, W2)
                                  for u in range(5) for v in range(5)]))  # (25, L)
    baseb = jnp.asarray(_tile_np(np.asarray(c2p['base_b'], np.float32) * bsc,
                                 W2).reshape(1, L))

    dw = np.asarray(c2p['dw_w'], np.float32)[:, 0].reshape(C, 4, 5, 5).transpose(1, 0, 2, 3)
    wsc = np.asarray(c2p['dw_scale'], np.float32).reshape(C, 4).T         # (4, C)
    dww = jnp.asarray(np.stack([_tile_np(dw[k, :, u, v] * wsc[k], W2)
                                for k in range(4) for u in range(5) for v in range(5)]))

    # space-to-depth of x with a 1-polyphase-row halo; columns need no halo
    # (column boundary taps are clipped inside the cv1 matrix).
    # plane p = 2a+b holds x[2(m-1)+a, 2n+b, :].
    xpad = jnp.pad(x, ((0, 0), (2, 2), (0, 0), (0, 0)))
    planes = [xpad[:, a::2, b::2, :] for a in range(2) for b in range(2)]
    xpar = jnp.stack(planes, axis=1).reshape(B, 4, H2 + 2, W2 * C1)

    out = pl.pallas_call(
        _make_wt_kernel(H2, W2, C1, C, add),
        out_shape=jax.ShapeDtypeStruct((B, H2, 4 * L), jnp.float32),
        grid=(B,),
        in_specs=[
            pl.BlockSpec((1, 4, H2 + 2, W2 * C1), lambda i: (i, 0, 0, 0)),
            _const_spec((8 * W2 * C1, 4 * L), lambda i: (0, 0)),
            _const_spec((1, 4 * L), lambda i: (0, 0)),
            _const_spec((1, 4 * L), lambda i: (0, 0)),
            _const_spec((25, L), lambda i: (0, 0)),
            _const_spec((1, L), lambda i: (0, 0)),
            _const_spec((100, L), lambda i: (0, 0)),
        ],
        out_specs=pl.BlockSpec((1, H2, 4 * L), lambda i: (i, 0, 0)),
        scratch_shapes=[
            pltpu.VMEM((4, H2 + 2, (W2 + 2) * C), jnp.float32),   # zero-haloed h parities
            pltpu.VMEM((4, H2 + 4, (W2 + 4) * C), jnp.float32),   # zero-haloed subbands
            pltpu.VMEM((4, H2 + 2, (W2 + 2) * C), jnp.float32),   # zero-haloed conv'd subbands
        ],
        compiler_params=pltpu.CompilerParams(
            dimension_semantics=("parallel",),
            vmem_limit_bytes=32 * 1024 * 1024),
    )(xpar, m1, s1c, b1c, basew, baseb, dww)

    # parity-blocked (B, H2, [p=2r+s, j, c]) -> NHWC (XLA layout glue only).
    # TODO(synk): fuse via in-kernel C-granular lane interleave + stride-2 row stores.
    y = out.reshape(B, H2, 2, 2, W2, C).transpose(0, 1, 2, 4, 3, 5).reshape(B, H, W, C)
    return y


# ---------------------------------------- Bottleneck -------------------------------------------
def init_bottleneck_params(key, c1, c2, shortcut=True, g=1, k=(3, 3), e=0.5):
    assert g == 1  # TODO(synk): grouped cv2 Conv (g > 1) not implemented
    c_ = int(c2 * e)
    ks = jax.random.split(key, 10)
    p = {'add': bool(shortcut and c1 == c2), 'use_wt': (c_ == c2)}
    # cv1 = Conv(c1, c_, k[0], 1): conv weight + BatchNorm stats (eval-mode semantics)
    p['cv1'] = dict(
        w=jax.random.normal(ks[0], (c_, c1, k[0], k[0]), jnp.float32) * 0.2,
        gamma=1.0 + 0.1 * jax.random.normal(ks[1], (c_,), jnp.float32),
        beta=0.1 * jax.random.normal(ks[2], (c_,), jnp.float32),
        mean=0.1 * jax.random.normal(ks[3], (c_,), jnp.float32),
        var=1.0 + 0.1 * jax.random.uniform(ks[4], (c_,), jnp.float32),
    )
    if p['use_wt']:
        dec_f, rec_f = create_db2_wavelet_filters()
        p['cv2'] = dict(
            base_w=jax.random.normal(ks[5], (c2, 1, 5, 5), jnp.float32) * 0.2,
            base_b=0.1 * jax.random.normal(ks[6], (c2,), jnp.float32),
            base_scale=jnp.ones((c2,), jnp.float32),          # _ScaleModule init_scale=1.0
            dw_w=jax.random.normal(ks[7], (c2 * 4, 1, 5, 5), jnp.float32) * 0.2,
            dw_scale=jnp.full((c2 * 4,), 0.1, jnp.float32),   # _ScaleModule init_scale=0.1
            dec_f=dec_f, rec_f=rec_f,
        )
    else:
        p['cv2'] = dict(
            w=jax.random.normal(ks[5], (c2, c_, k[1], k[1]), jnp.float32) * 0.2,
            gamma=1.0 + 0.1 * jax.random.normal(ks[6], (c2,), jnp.float32),
            beta=0.1 * jax.random.normal(ks[7], (c2,), jnp.float32),
            mean=0.1 * jax.random.normal(ks[8], (c2,), jnp.float32),
            var=1.0 + 0.1 * jax.random.uniform(ks[9], (c2,), jnp.float32),
        )
    return p


def bottleneck_forward_pallas(x_nhwc, p):
    """NHWC in, NHWC out (layout kept end-to-end; no wrapper transposes)."""
    x = x_nhwc.astype(jnp.float32)
    return _forward_wt(x, p) if p['use_wt'] else _forward_plain(x, p)


# ------------------------------- pure-JAX (lax) reference for checking --------------------------
def _ref_conv_bn_silu(x, w, gamma, beta, mean, var, eps=1e-5):
    # Dense 3x3 conv evaluated with bf16 operands + f32 accumulation, matching the
    # kernel's explicit-bf16 MXU matmuls (the perf-review-mandated precision).
    pad = w.shape[-1] // 2
    y = lax.conv_general_dilated(x.astype(jnp.bfloat16), w.astype(jnp.bfloat16),
                                 (1, 1), [(pad, pad), (pad, pad)],
                                 dimension_numbers=('NCHW', 'OIHW', 'NCHW'),
                                 preferred_element_type=jnp.float32)
    s = gamma / jnp.sqrt(var + eps)
    y = y * s[None, :, None, None] + (beta - mean * s)[None, :, None, None]
    return y * jax.nn.sigmoid(y)


def _ref_dw_conv_scale(x, w, bias, scale):
    C = x.shape[1]
    pad = w.shape[-1] // 2
    y = lax.conv_general_dilated(x, w, (1, 1), [(pad, pad), (pad, pad)],
                                 feature_group_count=C,
                                 dimension_numbers=('NCHW', 'OIHW', 'NCHW'),
                                 precision=lax.Precision.HIGHEST)
    return (y + bias[None, :, None, None]) * scale[None, :, None, None]


def _ref_wtconv(x, p):
    B, C, H, W = x.shape
    dec_f = jnp.asarray(p['dec_f'])
    rec_f = jnp.asarray(p['rec_f'])
    wt_filt = jnp.tile(dec_f, (C, 1, 1))[:, None]                  # (4C,1,4,4), ch = c*4+k
    xw = lax.conv_general_dilated(x, wt_filt, (2, 2), [(1, 1), (1, 1)],
                                  feature_group_count=C,
                                  dimension_numbers=('NCHW', 'OIHW', 'NCHW'),
                                  precision=lax.Precision.HIGHEST)  # (B,4C,H/2,W/2)
    xt = _ref_dw_conv_scale(xw, p['dw_w'], jnp.zeros((4 * C,), jnp.float32), p['dw_scale'])
    # conv_transpose2d(stride=2, padding=1, groups=C) via lhs_dilation + flipped filters
    w_eq = jnp.tile(rec_f[:, ::-1, ::-1][None], (C, 1, 1, 1))       # (C,4,4,4)
    x_tag = lax.conv_general_dilated(xt, w_eq, (1, 1), [(2, 2), (2, 2)],
                                     lhs_dilation=(2, 2), feature_group_count=C,
                                     dimension_numbers=('NCHW', 'OIHW', 'NCHW'),
                                     precision=lax.Precision.HIGHEST)[:, :, :H, :W]
    base = _ref_dw_conv_scale(x, p['base_w'], p['base_b'], p['base_scale'])
    return base + x_tag


def bottleneck_forward_ref(x, p):
    c1p = p['cv1']
    h = _ref_conv_bn_silu(x, c1p['w'], c1p['gamma'], c1p['beta'], c1p['mean'], c1p['var'])
    if p['use_wt']:
        y = _ref_wtconv(h, p['cv2'])
    else:
        c2p = p['cv2']
        y = _ref_conv_bn_silu(h, c2p['w'], c2p['gamma'], c2p['beta'], c2p['mean'], c2p['var'])
    return x + y if p['add'] else y


# --------------------------------------------- main --------------------------------------------
if __name__ == "__main__":
    key = jax.random.PRNGKey(0)
    kx, kp1, kp2 = jax.random.split(key, 3)
    B, C, H, W = 2, 8, 16, 16          # W*C = 128 -> lane-dense output stores
    x_nhwc = jax.random.normal(kx, (B, H, W, C), jnp.float32)
    x_nchw = jnp.transpose(x_nhwc, (0, 3, 1, 2))   # reference (test harness) only

    # Tolerance covers summation-order differences of the bf16 MXU matmuls
    # (reference uses the same bf16 operand precision) and the approx-reciprocal SiLU.
    rtol = atol = 3e-2

    # Config A: e=1.0 -> c_ == c2 -> cv2 is WTConv2d (wavelet path) + residual shortcut.
    pA = init_bottleneck_params(kp1, C, C, shortcut=True, g=1, k=(3, 3), e=1.0)
    outA = jax.block_until_ready(bottleneck_forward_pallas(x_nhwc, pA))
    refA = jnp.transpose(bottleneck_forward_ref(x_nchw, pA), (0, 2, 3, 1))
    np.testing.assert_allclose(np.asarray(outA), np.asarray(refA), rtol=rtol, atol=atol)

    # Config B: default e=0.5 -> cv2 is a plain Conv block + residual shortcut.
    pB = init_bottleneck_params(kp2, C, C, shortcut=True, g=1, k=(3, 3), e=0.5)
    outB = jax.block_until_ready(bottleneck_forward_pallas(x_nhwc, pB))
    refB = jnp.transpose(bottleneck_forward_ref(x_nchw, pB), (0, 2, 3, 1))
    np.testing.assert_allclose(np.asarray(outB), np.asarray(refB), rtol=rtol, atol=atol)

    assert outA.shape == (B, H, W, C) and outB.shape == (B, H, W, C)
    print("KERNEL_OK")
</pallas_src>

<mosaic_0001>
module attributes {stable_mosaic.version = 11 : i64} {
  func.func @kernel(%arg0: i32, %arg1: memref<1x4x10x64xf32, #tpu.memory_space<vmem>>, %arg2: memref<512x256xbf16, #tpu.memory_space<vmem>>, %arg3: memref<1x256xf32, #tpu.memory_space<vmem>>, %arg4: memref<1x256xf32, #tpu.memory_space<vmem>>, %arg5: memref<25x64xf32, #tpu.memory_space<vmem>>, %arg6: memref<1x64xf32, #tpu.memory_space<vmem>>, %arg7: memref<100x64xf32, #tpu.memory_space<vmem>>, %arg8: memref<1x8x256xf32, #tpu.memory_space<vmem>>, %arg9: memref<4x10x80xf32, #tpu.memory_space<vmem>>, %arg10: memref<4x12x96xf32, #tpu.memory_space<vmem>>, %arg11: memref<4x10x80xf32, #tpu.memory_space<vmem>>) attributes {dimension_semantics = [#tpu.dimension_semantics<parallel>], iteration_bounds = array<i64: 2>, scalar_prefetch = 0 : i64, scratch_operands = 3 : i64, tpu.core_type = #tpu.core_type<tc>, window_params = [{transform_indices = @transform_0, window_bounds = array<i64: 1, 4, 10, 64>}, {pipeline_mode = #tpu.pipeline_mode<synchronous>, transform_indices = @transform_1, window_bounds = array<i64: 512, 256>}, {pipeline_mode = #tpu.pipeline_mode<synchronous>, transform_indices = @transform_2, window_bounds = array<i64: 1, 256>}, {pipeline_mode = #tpu.pipeline_mode<synchronous>, transform_indices = @transform_3, window_bounds = array<i64: 1, 256>}, {pipeline_mode = #tpu.pipeline_mode<synchronous>, transform_indices = @transform_4, window_bounds = array<i64: 25, 64>}, {pipeline_mode = #tpu.pipeline_mode<synchronous>, transform_indices = @transform_5, window_bounds = array<i64: 1, 64>}, {pipeline_mode = #tpu.pipeline_mode<synchronous>, transform_indices = @transform_6, window_bounds = array<i64: 100, 64>}, {transform_indices = @transform_7, window_bounds = array<i64: 1, 8, 256>}]} {
    %cst = arith.constant 0.000000e+00 : f32
    %0 = vector.broadcast %cst : f32 to vector<4x10x80xf32>
    %c0 = arith.constant 0 : index
    %c0_0 = arith.constant 0 : index
    %c0_1 = arith.constant 0 : index
    %1 = vector.load %arg9[%c0, %c0_0, %c0_1] : memref<4x10x80xf32, #tpu.memory_space<vmem>>, vector<4x10x80xf32>
    tpu.vector_store %arg9[%c0, %c0_0, %c0_1], %0 {strides = array<i32>} : memref<4x10x80xf32, #tpu.memory_space<vmem>>, vector<4x10x80xf32>,
    %cst_2 = arith.constant 0.000000e+00 : f32
    %2 = vector.broadcast %cst_2 : f32 to vector<4x12x96xf32>
    %c0_3 = arith.constant 0 : index
    %c0_4 = arith.constant 0 : index
    %c0_5 = arith.constant 0 : index
    %3 = vector.load %arg10[%c0_3, %c0_4, %c0_5] : memref<4x12x96xf32, #tpu.memory_space<vmem>>, vector<4x12x96xf32>
    tpu.vector_store %arg10[%c0_3, %c0_4, %c0_5], %2 {strides = array<i32>} : memref<4x12x96xf32, #tpu.memory_space<vmem>>, vector<4x12x96xf32>,
    %cst_6 = arith.constant 0.000000e+00 : f32
    %4 = vector.broadcast %cst_6 : f32 to vector<4x10x80xf32>
    %c0_7 = arith.constant 0 : index
    %c0_8 = arith.constant 0 : index
    %c0_9 = arith.constant 0 : index
    %5 = vector.load %arg11[%c0_7, %c0_8, %c0_9] : memref<4x10x80xf32, #tpu.memory_space<vmem>>, vector<4x10x80xf32>
    tpu.vector_store %arg11[%c0_7, %c0_8, %c0_9], %4 {strides = array<i32>} : memref<4x10x80xf32, #tpu.memory_space<vmem>>, vector<4x10x80xf32>,
    %c0_10 = arith.constant 0 : index
    %c2 = arith.constant 2 : index
    %c0_11 = arith.constant 0 : index
    %c0_12 = arith.constant 0 : index
    %6 = vector.load %arg1[%c0_10, %c2, %c0_11, %c0_12] : memref<1x4x10x64xf32, #tpu.memory_space<vmem>>, vector<1x1x8x64xf32>
    %7 = vector.shape_cast %6 : vector<1x1x8x64xf32> to vector<8x64xf32>
    %8 = arith.truncf %7 : vector<8x64xf32> to vector<8x64xbf16>
    %c0_13 = arith.constant 0 : index
    %c3 = arith.constant 3 : index
    %c0_14 = arith.constant 0 : index
    %c0_15 = arith.constant 0 : index
    %9 = vector.load %arg1[%c0_13, %c3, %c0_14, %c0_15] : memref<1x4x10x64xf32, #tpu.memory_space<vmem>>, vector<1x1x8x64xf32>
    %10 = vector.shape_cast %9 : vector<1x1x8x64xf32> to vector<8x64xf32>
    %11 = arith.truncf %10 : vector<8x64xf32> to vector<8x64xbf16>
    %c0_16 = arith.constant 0 : index
    %c0_17 = arith.constant 0 : index
    %c1 = arith.constant 1 : index
    %c0_18 = arith.constant 0 : index
    %12 = vector.load %arg1[%c0_16, %c0_17, %c1, %c0_18] : memref<1x4x10x64xf32, #tpu.memory_space<vmem>>, vector<1x1x8x64xf32>
    %13 = vector.shape_cast %12 : vector<1x1x8x64xf32> to vector<8x64xf32>
    %14 = arith.truncf %13 : vector<8x64xf32> to vector<8x64xbf16>
    %c0_19 = arith.constant 0 : index
    %c1_20 = arith.constant 1 : index
    %c1_21 = arith.constant 1 : index
    %c0_22 = arith.constant 0 : index
    %15 = vector.load %arg1[%c0_19, %c1_20, %c1_21, %c0_22] : memref<1x4x10x64xf32, #tpu.memory_space<vmem>>, vector<1x1x8x64xf32>
    %16 = vector.shape_cast %15 : vector<1x1x8x64xf32> to vector<8x64xf32>
    %17 = arith.truncf %16 : vector<8x64xf32> to vector<8x64xbf16>
    %c0_23 = arith.constant 0 : index
    %c2_24 = arith.constant 2 : index
    %c1_25 = arith.constant 1 : index
    %c0_26 = arith.constant 0 : index
    %18 = vector.load %arg1[%c0_23, %c2_24, %c1_25, %c0_26] : memref<1x4x10x64xf32, #tpu.memory_space<vmem>>, vector<1x1x8x64xf32>
    %19 = vector.shape_cast %18 : vector<1x1x8x64xf32> to vector<8x64xf32>
    %20 = arith.truncf %19 : vector<8x64xf32> to vector<8x64xbf16>
    %c0_27 = arith.constant 0 : index
    %c3_28 = arith.constant 3 : index
    %c1_29 = arith.constant 1 : index
    %c0_30 = arith.constant 0 : index
    %21 = vector.load %arg1[%c0_27, %c3_28, %c1_29, %c0_30] : memref<1x4x10x64xf32, #tpu.memory_space<vmem>>, vector<1x1x8x64xf32>
    %22 = vector.shape_cast %21 : vector<1x1x8x64xf32> to vector<8x64xf32>
    %23 = arith.truncf %22 : vector<8x64xf32> to vector<8x64xbf16>
    %c0_31 = arith.constant 0 : index
    %c0_32 = arith.constant 0 : index
    %c2_33 = arith.constant 2 : index
    %c0_34 = arith.constant 0 : index
    %24 = vector.load %arg1[%c0_31, %c0_32, %c2_33, %c0_34] : memref<1x4x10x64xf32, #tpu.memory_space<vmem>>, vector<1x1x8x64xf32>
    %25 = vector.shape_cast %24 : vector<1x1x8x64xf32> to vector<8x64xf32>
    %26 = arith.truncf %25 : vector<8x64xf32> to vector<8x64xbf16>
    %c0_35 = arith.constant 0 : index
    %c1_36 = arith.constant 1 : index
    %c2_37 = arith.constant 2 : index
    %c0_38 = arith.constant 0 : index
    %27 = vector.load %arg1[%c0_35, %c1_36, %c2_37, %c0_38] : memref<1x4x10x64xf32, #tpu.memory_space<vmem>>, vector<1x1x8x64xf32>
    %28 = vector.shape_cast %27 : vector<1x1x8x64xf32> to vector<8x64xf32>
    %29 = arith.truncf %28 : vector<8x64xf32> to vector<8x64xbf16>
    %30 = tpu.concatenate %8, %11, %14, %17, %20, %23, %26, %29 in 1 : vector<8x64xbf16>, vector<8x64xbf16>, vector<8x64xbf16>, vector<8x64xbf16>, vector<8x64xbf16>, vector<8x64xbf16>, vector<8x64xbf16>, vector<8x64xbf16> -> vector<8x512xbf16>
    %c0_39 = arith.constant 0 : index
    %c0_40 = arith.constant 0 : index
    %31 = vector.load %arg2[%c0_39, %c0_40] : memref<512x256xbf16, #tpu.memory_space<vmem>>, vector<512x256xbf16>
    %cst_41 = arith.constant dense<0.000000e+00> : vector<8x256xf32>
    %32 = tpu.matmul %30, %31, %cst_41 {dimension_numbers = #tpu.dot_dimension_numbers<[1], [0], [0], [1], [0, 0, 1, 1], [], []>} : vector<8x512xbf16>, vector<512x256xbf16>, vector<8x256xf32> -> vector<8x256xf32>
    %c0_42 = arith.constant 0 : index
    %c0_43 = arith.constant 0 : index
    %33 = vector.load %arg3[%c0_42, %c0_43] : memref<1x256xf32, #tpu.memory_space<vmem>>, vector<1x256xf32>
    %34 = vector.shape_cast %33 : vector<1x256xf32> to vector<256xf32>
    %35 = vector.shape_cast %34 : vector<256xf32> to vector<1x256xf32>
    %36 = vector.broadcast %35 : vector<1x256xf32> to vector<8x256xf32>
    %37 = arith.mulf %32, %36 : vector<8x256xf32>
    %c0_44 = arith.constant 0 : index
    %c0_45 = arith.constant 0 : index
    %38 = vector.load %arg4[%c0_44, %c0_45] : memref<1x256xf32, #tpu.memory_space<vmem>>, vector<1x256xf32>
    %39 = vector.shape_cast %38 : vector<1x256xf32> to vector<256xf32>
    %40 = vector.shape_cast %39 : vector<256xf32> to vector<1x256xf32>
    %41 = vector.broadcast %40 : vector<1x256xf32> to vector<8x256xf32>
    %42 = arith.addf %37, %41 : vector<8x256xf32>
    %cst_46 = arith.constant 0.000000e+00 : f32
    %43 = vector.broadcast %cst_46 : f32 to vector<8x256xf32>
    %44 = arith.subf %43, %42 : vector<8x256xf32>
    %45 = math.exp %44 : vector<8x256xf32>
    %cst_47 = arith.constant 1.000000e+00 : f32
    %46 = vector.broadcast %cst_47 : f32 to vector<8x256xf32>
    %47 = arith.addf %46, %45 : vector<8x256xf32>
    %48 = tpu.reciprocal %47 {approx = true} : vector<8x256xf32> -> vector<8x256xf32>
    %49 = arith.mulf %42, %48 : vector<8x256xf32>
    %50 = vector.extract_strided_slice %49 {offsets = [0, 0], sizes = [8, 64], strides = [1, 1]} : vector<8x256xf32> to vector<8x64xf32>
    %c0_48 = arith.constant 0 : index
    %c1_49 = arith.constant 1 : index
    %c8 = arith.constant 8 : index
    %51 = vector.load %arg9[%c0_48, %c1_49, %c8] : memref<4x10x80xf32, #tpu.memory_space<vmem>>, vector<1x8x64xf32>
    %52 = vector.shape_cast %51 : vector<1x8x64xf32> to vector<8x64xf32>
    %53 = vector.shape_cast %50 : vector<8x64xf32> to vector<1x8x64xf32>
    tpu.vector_store %arg9[%c0_48, %c1_49, %c8], %53 {strides = array<i32>} : memref<4x10x80xf32, #tpu.memory_space<vmem>>, vector<1x8x64xf32>,
    %54 = vector.extract_strided_slice %49 {offsets = [0, 64], sizes = [8, 64], strides = [1, 1]} : vector<8x256xf32> to vector<8x64xf32>
    %c1_50 = arith.constant 1 : index
    %c1_51 = arith.constant 1 : index
    %c8_52 = arith.constant 8 : index
    %55 = vector.load %arg9[%c1_50, %c1_51, %c8_52] : memref<4x10x80xf32, #tpu.memory_space<vmem>>, vector<1x8x64xf32>
    %56 = vector.shape_cast %55 : vector<1x8x64xf32> to vector<8x64xf32>
    %57 = vector.shape_cast %54 : vector<8x64xf32> to vector<1x8x64xf32>
    tpu.vector_store %arg9[%c1_50, %c1_51, %c8_52], %57 {strides = array<i32>} : memref<4x10x80xf32, #tpu.memory_space<vmem>>, vector<1x8x64xf32>,
    %58 = vector.extract_strided_slice %49 {offsets = [0, 128], sizes = [8, 64], strides = [1, 1]} : vector<8x256xf32> to vector<8x64xf32>
    %c2_53 = arith.constant 2 : index
    %c1_54 = arith.constant 1 : index
    %c8_55 = arith.constant 8 : index
    %59 = vector.load %arg9[%c2_53, %c1_54, %c8_55] : memref<4x10x80xf32, #tpu.memory_space<vmem>>, vector<1x8x64xf32>
    %60 = vector.shape_cast %59 : vector<1x8x64xf32> to vector<8x64xf32>
    %61 = vector.shape_cast %58 : vector<8x64xf32> to vector<1x8x64xf32>
    tpu.vector_store %arg9[%c2_53, %c1_54, %c8_55], %61 {strides = array<i32>} : memref<4x10x80xf32, #tpu.memory_space<vmem>>, vector<1x8x64xf32>,
    %62 = vector.extract_strided_slice %49 {offsets = [0, 192], sizes = [8, 64], strides = [1, 1]} : vector<8x256xf32> to vector<8x64xf32>
    %c3_56 = arith.constant 3 : index
    %c1_57 = arith.constant 1 : index
    %c8_58 = arith.constant 8 : index
    %63 = vector.load %arg9[%c3_56, %c1_57, %c8_58] : memref<4x10x80xf32, #tpu.memory_space<vmem>>, vector<1x8x64xf32>
    %64 = vector.shape_cast %63 : vector<1x8x64xf32> to vector<8x64xf32>
    %65 = vector.shape_cast %62 : vector<8x64xf32> to vector<1x8x64xf32>
    tpu.vector_store %arg9[%c3_56, %c1_57, %c8_58], %65 {strides = array<i32>} : memref<4x10x80xf32, #tpu.memory_space<vmem>>, vector<1x8x64xf32>,
    %c1_59 = arith.constant 1 : index
    %c0_60 = arith.constant 0 : index
    %c0_61 = arith.constant 0 : index
    %66 = vector.load %arg9[%c1_59, %c0_60, %c0_61] : memref<4x10x80xf32, #tpu.memory_space<vmem>>, vector<1x10x64xf32>
    %67 = vector.shape_cast %66 : vector<1x10x64xf32> to vector<10x64xf32>
    %cst_62 = arith.constant 0.482962906 : f32
    %68 = vector.broadcast %cst_62 : f32 to vector<10x64xf32>
    %69 = arith.mulf %67, %68 : vector<10x64xf32>
    %c0_63 = arith.constant 0 : index
    %c0_64 = arith.constant 0 : index
    %c8_65 = arith.constant 8 : index
    %70 = vector.load %arg9[%c0_63, %c0_64, %c8_65] : memref<4x10x80xf32, #tpu.memory_space<vmem>>, vector<1x10x64xf32>
    %71 = vector.shape_cast %70 : vector<1x10x64xf32> to vector<10x64xf32>
    %cst_66 = arith.constant 0.83651632 : f32
    %72 = vector.broadcast %cst_66 : f32 to vector<10x64xf32>
    %73 = arith.mulf %71, %72 : vector<10x64xf32>
    %74 = arith.addf %69, %73 : vector<10x64xf32>
    %c1_67 = arith.constant 1 : index
    %c0_68 = arith.constant 0 : index
    %c8_69 = arith.constant 8 : index
    %75 = vector.load %arg9[%c1_67, %c0_68, %c8_69] : memref<4x10x80xf32, #tpu.memory_space<vmem>>, vector<1x10x64xf32>
    %76 = vector.shape_cast %75 : vector<1x10x64xf32> to vector<10x64xf32>
    %cst_70 = arith.constant 0.224143863 : f32
    %77 = vector.broadcast %cst_70 : f32 to vector<10x64xf32>
    %78 = arith.mulf %76, %77 : vector<10x64xf32>
    %79 = arith.addf %74, %78 : vector<10x64xf32>
    %c0_71 = arith.constant 0 : index
    %c0_72 = arith.constant 0 : index
    %c16 = arith.constant 16 : index
    %80 = vector.load %arg9[%c0_71, %c0_72, %c16] : memref<4x10x80xf32, #tpu.memory_space<vmem>>, vector<1x10x64xf32>
    %81 = vector.shape_cast %80 : vector<1x10x64xf32> to vector<10x64xf32>
    %cst_73 = arith.constant -0.129409522 : f32
    %82 = vector.broadcast %cst_73 : f32 to vector<10x64xf32>
    %83 = arith.mulf %81, %82 : vector<10x64xf32>
    %84 = arith.addf %79, %83 : vector<10x64xf32>
    %c3_74 = arith.constant 3 : index
    %c0_75 = arith.constant 0 : index
    %c0_76 = arith.constant 0 : index
    %85 = vector.load %arg9[%c3_74, %c0_75, %c0_76] : memref<4x10x80xf32, #tpu.memory_space<vmem>>, vector<1x10x64xf32>
    %86 = vector.shape_cast %85 : vector<1x10x64xf32> to vector<10x64xf32>
    %cst_77 = arith.constant 0.482962906 : f32
    %87 = vector.broadcast %cst_77 : f32 to vector<10x64xf32>
    %88 = arith.mulf %86, %87 : vector<10x64xf32>
    %c2_78 = arith.constant 2 : index
    %c0_79 = arith.constant 0 : index
    %c8_80 = arith.constant 8 : index
    %89 = vector.load %arg9[%c2_78, %c0_79, %c8_80] : memref<4x10x80xf32, #tpu.memory_space<vmem>>, vector<1x10x64xf32>
    %90 = vector.shape_cast %89 : vector<1x10x64xf32> to vector<10x64xf32>
    %cst_81 = arith.constant 0.83651632 : f32
    %91 = vector.broadcast %cst_81 : f32 to vector<10x64xf32>
    %92 = arith.mulf %90, %91 : vector<10x64xf32>
    %93 = arith.addf %88, %92 : vector<10x64xf32>
    %c3_82 = arith.constant 3 : index
    %c0_83 = arith.constant 0 : index
    %c8_84 = arith.constant 8 : index
    %94 = vector.load %arg9[%c3_82, %c0_83, %c8_84] : memref<4x10x80xf32, #tpu.memory_space<vmem>>, vector<1x10x64xf32>
    %95 = vector.shape_cast %94 : vector<1x10x64xf32> to vector<10x64xf32>
    %cst_85 = arith.constant 0.224143863 : f32
    %96 = vector.broadcast %cst_85 : f32 to vector<10x64xf32>
    %97 = arith.mulf %95, %96 : vector<10x64xf32>
    %98 = arith.addf %93, %97 : vector<10x64xf32>
    %c2_86 = arith.constant 2 : index
    %c0_87 = arith.constant 0 : index
    %c16_88 = arith.constant 16 : index
    %99 = vector.load %arg9[%c2_86, %c0_87, %c16_88] : memref<4x10x80xf32, #tpu.memory_space<vmem>>, vector<1x10x64xf32>
    %100 = vector.shape_cast %99 : vector<1x10x64xf32> to vector<10x64xf32>
    %cst_89 = arith.constant -0.129409522 : f32
    %101 = vector.broadcast %cst_89 : f32 to vector<10x64xf32>
    %102 = arith.mulf %100, %101 : vector<10x64xf32>
    %103 = arith.addf %98, %102 : vector<10x64xf32>
    %c1_90 = arith.constant 1 : index
    %c0_91 = arith.constant 0 : index
    %c0_92 = arith.constant 0 : index
    %104 = vector.load %arg9[%c1_90, %c0_91, %c0_92] : memref<4x10x80xf32, #tpu.memory_space<vmem>>, vector<1x10x64xf32>
    %105 = vector.shape_cast %104 : vector<1x10x64xf32> to vector<10x64xf32>
    %cst_93 = arith.constant -0.129409522 : f32
    %106 = vector.broadcast %cst_93 : f32 to vector<10x64xf32>
    %107 = arith.mulf %105, %106 : vector<10x64xf32>
    %c0_94 = arith.constant 0 : index
    %c0_95 = arith.constant 0 : index
    %c8_96 = arith.constant 8 : index
    %108 = vector.load %arg9[%c0_94, %c0_95, %c8_96] : memref<4x10x80xf32, #tpu.memory_space<vmem>>, vector<1x10x64xf32>
    %109 = vector.shape_cast %108 : vector<1x10x64xf32> to vector<10x64xf32>
    %cst_97 = arith.constant -0.224143863 : f32
    %110 = vector.broadcast %cst_97 : f32 to vector<10x64xf32>
    %111 = arith.mulf %109, %110 : vector<10x64xf32>
    %112 = arith.addf %107, %111 : vector<10x64xf32>
    %c1_98 = arith.constant 1 : index
    %c0_99 = arith.constant 0 : index
    %c8_100 = arith.constant 8 : index
    %113 = vector.load %arg9[%c1_98, %c0_99, %c8_100] : memref<4x10x80xf32, #tpu.memory_space<vmem>>, vector<1x10x64xf32>
    %114 = vector.shape_cast %113 : vector<1x10x64xf32> to vector<10x64xf32>
    %cst_101 = arith.constant 0.83651632 : f32
    %115 = vector.broadcast %cst_101 : f32 to vector<10x64xf32>
    %116 = arith.mulf %114, %115 : vector<10x64xf32>
    %117 = arith.addf %112, %116 : vector<10x64xf32>
    %c0_102 = arith.constant 0 : index
    %c0_103 = arith.constant 0 : index
    %c16_104 = arith.constant 16 : index
    %118 = vector.load %arg9[%c0_102, %c0_103, %c16_104] : memref<4x10x80xf32, #tpu.memory_space<vmem>>, vector<1x10x64xf32>
    %119 = vector.shape_cast %118 : vector<1x10x64xf32> to vector<10x64xf32>
    %cst_105 = arith.constant -0.482962906 : f32
    %120 = vector.broadcast %cst_105 : f32 to vector<10x64xf32>
    %121 = arith.mulf %119, %120 : vector<10x64xf32>
    %122 = arith.addf %117, %121 : vector<10x64xf32>
    %c3_106 = arith.constant 3 : index
    %c0_107 = arith.constant 0 : index
    %c0_108 = arith.constant 0 : index
    %123 = vector.load %arg9[%c3_106, %c0_107, %c0_108] : memref<4x10x80xf32, #tpu.memory_space<vmem>>, vector<1x10x64xf32>
    %124 = vector.shape_cast %123 : vector<1x10x64xf32> to vector<10x64xf32>
    %cst_109 = arith.constant -0.129409522 : f32
    %125 = vector.broadcast %cst_109 : f32 to vector<10x64xf32>
    %126 = arith.mulf %124, %125 : vector<10x64xf32>
    %c2_110 = arith.constant 2 : index
    %c0_111 = arith.constant 0 : index
    %c8_112 = arith.constant 8 : index
    %127 = vector.load %arg9[%c2_110, %c0_111, %c8_112] : memref<4x10x80xf32, #tpu.memory_space<vmem>>, vector<1x10x64xf32>
    %128 = vector.shape_cast %127 : vector<1x10x64xf32> to vector<10x64xf32>
    %cst_113 = arith.constant -0.224143863 : f32
    %129 = vector.broadcast %cst_113 : f32 to vector<10x64xf32>
    %130 = arith.mulf %128, %129 : vector<10x64xf32>
    %131 = arith.addf %126, %130 : vector<10x64xf32>
    %c3_114 = arith.constant 3 : index
    %c0_115 = arith.constant 0 : index
    %c8_116 = arith.constant 8 : index
    %132 = vector.load %arg9[%c3_114, %c0_115, %c8_116] : memref<4x10x80xf32, #tpu.memory_space<vmem>>, vector<1x10x64xf32>
    %133 = vector.shape_cast %132 : vector<1x10x64xf32> to vector<10x64xf32>
    %cst_117 = arith.constant 0.83651632 : f32
    %134 = vector.broadcast %cst_117 : f32 to vector<10x64xf32>
    %135 = arith.mulf %133, %134 : vector<10x64xf32>
    %136 = arith.addf %131, %135 : vector<10x64xf32>
    %c2_118 = arith.constant 2 : index
    %c0_119 = arith.constant 0 : index
    %c16_120 = arith.constant 16 : index
    %137 = vector.load %arg9[%c2_118, %c0_119, %c16_120] : memref<4x10x80xf32, #tpu.memory_space<vmem>>, vector<1x10x64xf32>
    %138 = vector.shape_cast %137 : vector<1x10x64xf32> to vector<10x64xf32>
    %cst_121 = arith.constant -0.482962906 : f32
    %139 = vector.broadcast %cst_121 : f32 to vector<10x64xf32>
    %140 = arith.mulf %138, %139 : vector<10x64xf32>
    %141 = arith.addf %136, %140 : vector<10x64xf32>
    %142 = vector.extract_strided_slice %103 {offsets = [0, 0], sizes = [8, 64], strides = [1, 1]} : vector<10x64xf32> to vector<8x64xf32>
    %cst_122 = arith.constant 0.482962906 : f32
    %143 = vector.broadcast %cst_122 : f32 to vector<8x64xf32>
    %144 = arith.mulf %142, %143 : vector<8x64xf32>
    %145 = vector.extract_strided_slice %84 {offsets = [1, 0], sizes = [8, 64], strides = [1, 1]} : vector<10x64xf32> to vector<8x64xf32>
    %cst_123 = arith.constant 0.83651632 : f32
    %146 = vector.broadcast %cst_123 : f32 to vector<8x64xf32>
    %147 = arith.mulf %145, %146 : vector<8x64xf32>
    %148 = arith.addf %144, %147 : vector<8x64xf32>
    %149 = vector.extract_strided_slice %103 {offsets = [1, 0], sizes = [8, 64], strides = [1, 1]} : vector<10x64xf32> to vector<8x64xf32>
    %cst_124 = arith.constant 0.224143863 : f32
    %150 = vector.broadcast %cst_124 : f32 to vector<8x64xf32>
    %151 = arith.mulf %149, %150 : vector<8x64xf32>
    %152 = arith.addf %148, %151 : vector<8x64xf32>
    %153 = vector.extract_strided_slice %84 {offsets = [2, 0], sizes = [8, 64], strides = [1, 1]} : vector<10x64xf32> to vector<8x64xf32>
    %cst_125 = arith.constant -0.129409522 : f32
    %154 = vector.broadcast %cst_125 : f32 to vector<8x64xf32>
    %155 = arith.mulf %153, %154 : vector<8x64xf32>
    %156 = arith.addf %152, %155 : vector<8x64xf32>
    %c0_126 = arith.constant 0 : index
    %c2_127 = arith.constant 2 : index
    %c16_128 = arith.constant 16 : index
    %157 = vector.load %arg10[%c0_126, %c2_127, %c16_128] : memref<4x12x96xf32, #tpu.memory_space<vmem>>, vector<1x8x64xf32>
    %158 = vector.shape_cast %157 : vector<1x8x64xf32> to vector<8x64xf32>
    %159 = vector.shape_cast %156 : vector<8x64xf32> to vector<1x8x64xf32>
    tpu.vector_store %arg10[%c0_126, %c2_127, %c16_128], %159 {strides = array<i32>} : memref<4x12x96xf32, #tpu.memory_space<vmem>>, vector<1x8x64xf32>,
    %160 = vector.extract_strided_slice %103 {offsets = [0, 0], sizes = [8, 64], strides = [1, 1]} : vector<10x64xf32> to vector<8x64xf32>
    %cst_129 = arith.constant -0.129409522 : f32
    %161 = vector.broadcast %cst_129 : f32 to vector<8x64xf32>
    %162 = arith.mulf %160, %161 : vector<8x64xf32>
    %163 = vector.extract_strided_slice %84 {offsets = [1, 0], sizes = [8, 64], strides = [1, 1]} : vector<10x64xf32> to vector<8x64xf32>
    %cst_130 = arith.constant -0.224143863 : f32
    %164 = vector.broadcast %cst_130 : f32 to vector<8x64xf32>
    %165 = arith.mulf %163, %164 : vector<8x64xf32>
    %166 = arith.addf %162, %165 : vector<8x64xf32>
    %167 = vector.extract_strided_slice %103 {offsets = [1, 0], sizes = [8, 64], strides = [1, 1]} : vector<10x64xf32> to vector<8x64xf32>
    %cst_131 = arith.constant 0.83651632 : f32
    %168 = vector.broadcast %cst_131 : f32 to vector<8x64xf32>
    %169 = arith.mulf %167, %168 : vector<8x64xf32>
    %170 = arith.addf %166, %169 : vector<8x64xf32>
    %171 = vector.extract_strided_slice %84 {offsets = [2, 0], sizes = [8, 64], strides = [1, 1]} : vector<10x64xf32> to vector<8x64xf32>
    %cst_132 = arith.constant -0.482962906 : f32
    %172 = vector.broadcast %cst_132 : f32 to vector<8x64xf32>
    %173 = arith.mulf %171, %172 : vector<8x64xf32>
    %174 = arith.addf %170, %173 : vector<8x64xf32>
    %c1_133 = arith.constant 1 : index
    %c2_134 = arith.constant 2 : index
    %c16_135 = arith.constant 16 : index
    %175 = vector.load %arg10[%c1_133, %c2_134, %c16_135] : memref<4x12x96xf32, #tpu.memory_space<vmem>>, vector<1x8x64xf32>
    %176 = vector.shape_cast %175 : vector<1x8x64xf32> to vector<8x64xf32>
    %177 = vector.shape_cast %174 : vector<8x64xf32> to vector<1x8x64xf32>
    tpu.vector_store %arg10[%c1_133, %c2_134, %c16_135], %177 {strides = array<i32>} : memref<4x12x96xf32, #tpu.memory_space<vmem>>, vector<1x8x64xf32>,
    %178 = vector.extract_strided_slice %141 {offsets = [0, 0], sizes = [8, 64], strides = [1, 1]} : vector<10x64xf32> to vector<8x64xf32>
    %cst_136 = arith.constant 0.482962906 : f32
    %179 = vector.broadcast %cst_136 : f32 to vector<8x64xf32>
    %180 = arith.mulf %178, %179 : vector<8x64xf32>
    %181 = vector.extract_strided_slice %122 {offsets = [1, 0], sizes = [8, 64], strides = [1, 1]} : vector<10x64xf32> to vector<8x64xf32>
    %cst_137 = arith.constant 0.83651632 : f32
    %182 = vector.broadcast %cst_137 : f32 to vector<8x64xf32>
    %183 = arith.mulf %181, %182 : vector<8x64xf32>
    %184 = arith.addf %180, %183 : vector<8x64xf32>
    %185 = vector.extract_strided_slice %141 {offsets = [1, 0], sizes = [8, 64], strides = [1, 1]} : vector<10x64xf32> to vector<8x64xf32>
    %cst_138 = arith.constant 0.224143863 : f32
    %186 = vector.broadcast %cst_138 : f32 to vector<8x64xf32>
    %187 = arith.mulf %185, %186 : vector<8x64xf32>
    %188 = arith.addf %184, %187 : vector<8x64xf32>
    %189 = vector.extract_strided_slice %122 {offsets = [2, 0], sizes = [8, 64], strides = [1, 1]} : vector<10x64xf32> to vector<8x64xf32>
    %cst_139 = arith.constant -0.129409522 : f32
    %190 = vector.broadcast %cst_139 : f32 to vector<8x64xf32>
    %191 = arith.mulf %189, %190 : vector<8x64xf32>
    %192 = arith.addf %188, %191 : vector<8x64xf32>
    %c2_140 = arith.constant 2 : index
    %c2_141 = arith.constant 2 : index
    %c16_142 = arith.constant 16 : index
    %193 = vector.load %arg10[%c2_140, %c2_141, %c16_142] : memref<4x12x96xf32, #tpu.memory_space<vmem>>, vector<1x8x64xf32>
    %194 = vector.shape_cast %193 : vector<1x8x64xf32> to vector<8x64xf32>
    %195 = vector.shape_cast %192 : vector<8x64xf32> to vector<1x8x64xf32>
    tpu.vector_store %arg10[%c2_140, %c2_141, %c16_142], %195 {strides = array<i32>} : memref<4x12x96xf32, #tpu.memory_space<vmem>>, vector<1x8x64xf32>,
    %196 = vector.extract_strided_slice %141 {offsets = [0, 0], sizes = [8, 64], strides = [1, 1]} : vector<10x64xf32> to vector<8x64xf32>
    %cst_143 = arith.constant -0.129409522 : f32
    %197 = vector.broadcast %cst_143 : f32 to vector<8x64xf32>
    %198 = arith.mulf %196, %197 : vector<8x64xf32>
    %199 = vector.extract_strided_slice %122 {offsets = [1, 0], sizes = [8, 64], strides = [1, 1]} : vector<10x64xf32> to vector<8x64xf32>
    %cst_144 = arith.constant -0.224143863 : f32
    %200 = vector.broadcast %cst_144 : f32 to vector<8x64xf32>
    %201 = arith.mulf %199, %200 : vector<8x64xf32>
    %202 = arith.addf %198, %201 : vector<8x64xf32>
    %203 = vector.extract_strided_slice %141 {offsets = [1, 0], sizes = [8, 64], strides = [1, 1]} : vector<10x64xf32> to vector<8x64xf32>
    %cst_145 = arith.constant 0.83651632 : f32
    %204 = vector.broadcast %cst_145 : f32 to vector<8x64xf32>
    %205 = arith.mulf %203, %204 : vector<8x64xf32>
    %206 = arith.addf %202, %205 : vector<8x64xf32>
    %207 = vector.extract_strided_slice %122 {offsets = [2, 0], sizes = [8, 64], strides = [1, 1]} : vector<10x64xf32> to vector<8x64xf32>
    %cst_146 = arith.constant -0.482962906 : f32
    %208 = vector.broadcast %cst_146 : f32 to vector<8x64xf32>
    %209 = arith.mulf %207, %208 : vector<8x64xf32>
    %210 = arith.addf %206, %209 : vector<8x64xf32>
    %c3_147 = arith.constant 3 : index
    %c2_148 = arith.constant 2 : index
    %c16_149 = arith.constant 16 : index
    %211 = vector.load %arg10[%c3_147, %c2_148, %c16_149] : memref<4x12x96xf32, #tpu.memory_space<vmem>>, vector<1x8x64xf32>
    %212 = vector.shape_cast %211 : vector<1x8x64xf32> to vector<8x64xf32>
    %213 = vector.shape_cast %210 : vector<8x64xf32> to vector<1x8x64xf32>
    tpu.vector_store %arg10[%c3_147, %c2_148, %c16_149], %213 {strides = array<i32>} : memref<4x12x96xf32, #tpu.memory_space<vmem>>, vector<1x8x64xf32>,
    %c0_150 = arith.constant 0 : index
    %c0_151 = arith.constant 0 : index
    %c0_152 = arith.constant 0 : index
    %214 = vector.load %arg10[%c0_150, %c0_151, %c0_152] : memref<4x12x96xf32, #tpu.memory_space<vmem>>, vector<1x8x64xf32>
    %215 = vector.shape_cast %214 : vector<1x8x64xf32> to vector<8x64xf32>
    %c0_153 = arith.constant 0 : index
    %c0_154 = arith.constant 0 : index
    %216 = vector.load %arg7[%c0_153, %c0_154] : memref<100x64xf32, #tpu.memory_space<vmem>>, vector<1x64xf32>
    %217 = vector.shape_cast %216 : vector<1x64xf32> to vector<64xf32>
    %218 = vector.shape_cast %217 : vector<64xf32> to vector<1x64xf32>
    %219 = vector.broadcast %218 : vector<1x64xf32> to vector<8x64xf32>
    %220 = arith.mulf %215, %219 : vector<8x64xf32>
    %c0_155 = arith.constant 0 : index
    %c0_156 = arith.constant 0 : index
    %c8_157 = arith.constant 8 : index
    %221 = vector.load %arg10[%c0_155, %c0_156, %c8_157] : memref<4x12x96xf32, #tpu.memory_space<vmem>>, vector<1x8x64xf32>
    %222 = vector.shape_cast %221 : vector<1x8x64xf32> to vector<8x64xf32>
    %c1_158 = arith.constant 1 : index
    %c0_159 = arith.constant 0 : index
    %223 = vector.load %arg7[%c1_158, %c0_159] : memref<100x64xf32, #tpu.memory_space<vmem>>, vector<1x64xf32>
    %224 = vector.shape_cast %223 : vector<1x64xf32> to vector<64xf32>
    %225 = vector.shape_cast %224 : vector<64xf32> to vector<1x64xf32>
    %226 = vector.broadcast %225 : vector<1x64xf32> to vector<8x64xf32>
    %227 = arith.mulf %222, %226 : vector<8x64xf32>
    %228 = arith.addf %220, %227 : vector<8x64xf32>
    %c0_160 = arith.constant 0 : index
    %c0_161 = arith.constant 0 : index
    %c16_162 = arith.constant 16 : index
    %229 = vector.load %arg10[%c0_160, %c0_161, %c16_162] : memref<4x12x96xf32, #tpu.memory_space<vmem>>, vector<1x8x64xf32>
    %230 = vector.shape_cast %229 : vector<1x8x64xf32> to vector<8x64xf32>
    %c2_163 = arith.constant 2 : index
    %c0_164 = arith.constant 0 : index
    %231 = vector.load %arg7[%c2_163, %c0_164] : memref<100x64xf32, #tpu.memory_space<vmem>>, vector<1x64xf32>
    %232 = vector.shape_cast %231 : vector<1x64xf32> to vector<64xf32>
    %233 = vector.shape_cast %232 : vector<64xf32> to vector<1x64xf32>
    %234 = vector.broadcast %233 : vector<1x64xf32> to vector<8x64xf32>
    %235 = arith.mulf %230, %234 : vector<8x64xf32>
    %236 = arith.addf %228, %235 : vector<8x64xf32>
    %c0_165 = arith.constant 0 : index
    %c0_166 = arith.constant 0 : index
    %c24 = arith.constant 24 : index
    %237 = vector.load %arg10[%c0_165, %c0_166, %c24] : memref<4x12x96xf32, #tpu.memory_space<vmem>>, vector<1x8x64xf32>
    %238 = vector.shape_cast %237 : vector<1x8x64xf32> to vector<8x64xf32>
    %c3_167 = arith.constant 3 : index
    %c0_168 = arith.constant 0 : index
    %239 = vector.load %arg7[%c3_167, %c0_168] : memref<100x64xf32, #tpu.memory_space<vmem>>, vector<1x64xf32>
    %240 = vector.shape_cast %239 : vector<1x64xf32> to vector<64xf32>
    %241 = vector.shape_cast %240 : vector<64xf32> to vector<1x64xf32>
    %242 = vector.broadcast %241 : vector<1x64xf32> to vector<8x64xf32>
    %243 = arith.mulf %238, %242 : vector<8x64xf32>
    %244 = arith.addf %236, %243 : vector<8x64xf32>
    %c0_169 = arith.constant 0 : index
    %c0_170 = arith.constant 0 : index
    %c32 = arith.constant 32 : index
    %245 = vector.load %arg10[%c0_169, %c0_170, %c32] : memref<4x12x96xf32, #tpu.memory_space<vmem>>, vector<1x8x64xf32>
    %246 = vector.shape_cast %245 : vector<1x8x64xf32> to vector<8x64xf32>
    %c4 = arith.constant 4 : index
    %c0_171 = arith.constant 0 : index
    %247 = vector.load %arg7[%c4, %c0_171] : memref<100x64xf32, #tpu.memory_space<vmem>>, vector<1x64xf32>
    %248 = vector.shape_cast %247 : vector<1x64xf32> to vector<64xf32>
    %249 = vector.shape_cast %248 : vector<64xf32> to vector<1x64xf32>
    %250 = vector.broadcast %249 : vector<1x64xf32> to vector<8x64xf32>
    %251 = arith.mulf %246, %250 : vector<8x64xf32>
    %252 = arith.addf %244, %251 : vector<8x64xf32>
    %c0_172 = arith.constant 0 : index
    %c1_173 = arith.constant 1 : index
    %c0_174 = arith.constant 0 : index
    %253 = vector.load %arg10[%c0_172, %c1_173, %c0_174] : memref<4x12x96xf32, #tpu.memory_space<vmem>>, vector<1x8x64xf32>
    %254 = vector.shape_cast %253 : vector<1x8x64xf32> to vector<8x64xf32>
    %c5 = arith.constant 5 : index
    %c0_175 = arith.constant 0 : index
    %255 = vector.load %arg7[%c5, %c0_175] : memref<100x64xf32, #tpu.memory_space<vmem>>, vector<1x64xf32>
    %256 = vector.shape_cast %255 : vector<1x64xf32> to vector<64xf32>
    %257 = vector.shape_cast %256 : vector<64xf32> to vector<1x64xf32>
    %258 = vector.broadcast %257 : vector<1x64xf32> to vector<8x64xf32>
    %259 = arith.mulf %254, %258 : vector<8x64xf32>
    %260 = arith.addf %252, %259 : vector<8x64xf32>
    %c0_176 = arith.constant 0 : index
    %c1_177 = arith.constant 1 : index
    %c8_178 = arith.constant 8 : index
    %261 = vector.load %arg10[%c0_176, %c1_177, %c8_178] : memref<4x12x96xf32, #tpu.memory_space<vmem>>, vector<1x8x64xf32>
    %262 = vector.shape_cast %261 : vector<1x8x64xf32> to vector<8x64xf32>
    %c6 = arith.constant 6 : index
    %c0_179 = arith.constant 0 : index
    %263 = vector.load %arg7[%c6, %c0_179] : memref<100x64xf32, #tpu.memory_space<vmem>>, vector<1x64xf32>
    %264 = vector.shape_cast %263 : vector<1x64xf32> to vector<64xf32>
    %265 = vector.shape_cast %264 : vector<64xf32> to vector<1x64xf32>
    %266 = vector.broadcast %265 : vector<1x64xf32> to vector<8x64xf32>
    %267 = arith.mulf %262, %266 : vector<8x64xf32>
    %268 = arith.addf %260, %267 : vector<8x64xf32>
    %c0_180 = arith.constant 0 : index
    %c1_181 = arith.constant 1 : index
    %c16_182 = arith.constant 16 : index
    %269 = vector.load %arg10[%c0_180, %c1_181, %c16_182] : memref<4x12x96xf32, #tpu.memory_space<vmem>>, vector<1x8x64xf32>
    %270 = vector.shape_cast %269 : vector<1x8x64xf32> to vector<8x64xf32>
    %c7 = arith.constant 7 : index
    %c0_183 = arith.constant 0 : index
    %271 = vector.load %arg7[%c7, %c0_183] : memref<100x64xf32, #tpu.memory_space<vmem>>, vector<1x64xf32>
    %272 = vector.shape_cast %271 : vector<1x64xf32> to vector<64xf32>
    %273 = vector.shape_cast %272 : vector<64xf32> to vector<1x64xf32>
    %274 = vector.broadcast %273 : vector<1x64xf32> to vector<8x64xf32>
    %275 = arith.mulf %270, %274 : vector<8x64xf32>
    %276 = arith.addf %268, %275 : vector<8x64xf32>
    %c0_184 = arith.constant 0 : index
    %c1_185 = arith.constant 1 : index
    %c24_186 = arith.constant 24 : index
    %277 = vector.load %arg10[%c0_184, %c1_185, %c24_186] : memref<4x12x96xf32, #tpu.memory_space<vmem>>, vector<1x8x64xf32>
    %278 = vector.shape_cast %277 : vector<1x8x64xf32> to vector<8x64xf32>
    %c8_187 = arith.constant 8 : index
    %c0_188 = arith.constant 0 : index
    %279 = vector.load %arg7[%c8_187, %c0_188] : memref<100x64xf32, #tpu.memory_space<vmem>>, vector<1x64xf32>
    %280 = vector.shape_cast %279 : vector<1x64xf32> to vector<64xf32>
    %281 = vector.shape_cast %280 : vector<64xf32> to vector<1x64xf32>
    %282 = vector.broadcast %281 : vector<1x64xf32> to vector<8x64xf32>
    %283 = arith.mulf %278, %282 : vector<8x64xf32>
    %284 = arith.addf %276, %283 : vector<8x64xf32>
    %c0_189 = arith.constant 0 : index
    %c1_190 = arith.constant 1 : index
    %c32_191 = arith.constant 32 : index
    %285 = vector.load %arg10[%c0_189, %c1_190, %c32_191] : memref<4x12x96xf32, #tpu.memory_space<vmem>>, vector<1x8x64xf32>
    %286 = vector.shape_cast %285 : vector<1x8x64xf32> to vector<8x64xf32>
    %c9 = arith.constant 9 : index
    %c0_192 = arith.constant 0 : index
    %287 = vector.load %arg7[%c9, %c0_192] : memref<100x64xf32, #tpu.memory_space<vmem>>, vector<1x64xf32>
    %288 = vector.shape_cast %287 : vector<1x64xf32> to vector<64xf32>
    %289 = vector.shape_cast %288 : vector<64xf32> to vector<1x64xf32>
    %290 = vector.broadcast %289 : vector<1x64xf32> to vector<8x64xf32>
    %291 = arith.mulf %286, %290 : vector<8x64xf32>
    %292 = arith.addf %284, %291 : vector<8x64xf32>
    %c0_193 = arith.constant 0 : index
    %c2_194 = arith.constant 2 : index
    %c0_195 = arith.constant 0 : index
    %293 = vector.load %arg10[%c0_193, %c2_194, %c0_195] : memref<4x12x96xf32, #tpu.memory_space<vmem>>, vector<1x8x64xf32>
    %294 = vector.shape_cast %293 : vector<1x8x64xf32> to vector<8x64xf32>
    %c10 = arith.constant 10 : index
    %c0_196 = arith.constant 0 : index
    %295 = vector.load %arg7[%c10, %c0_196] : memref<100x64xf32, #tpu.memory_space<vmem>>, vector<1x64xf32>
    %296 = vector.shape_cast %295 : vector<1x64xf32> to vector<64xf32>
    %297 = vector.shape_cast %296 : vector<64xf32> to vector<1x64xf32>
    %298 = vector.broadcast %297 : vector<1x64xf32> to vector<8x64xf32>
    %299 = arith.mulf %294, %298 : vector<8x64xf32>
    %300 = arith.addf %292, %299 : vector<8x64xf32>
    %c0_197 = arith.constant 0 : index
    %c2_198 = arith.constant 2 : index
    %c8_199 = arith.constant 8 : index
    %301 = vector.load %arg10[%c0_197, %c2_198, %c8_199] : memref<4x12x96xf32, #tpu.memory_space<vmem>>, vector<1x8x64xf32>
    %302 = vector.shape_cast %301 : vector<1x8x64xf32> to vector<8x64xf32>
    %c11 = arith.constant 11 : index
    %c0_200 = arith.constant 0 : index
    %303 = vector.load %arg7[%c11, %c0_200] : memref<100x64xf32, #tpu.memory_space<vmem>>, vector<1x64xf32>
    %304 = vector.shape_cast %303 : vector<1x64xf32> to vector<64xf32>
    %305 = vector.shape_cast %304 : vector<64xf32> to vector<1x64xf32>
    %306 = vector.broadcast %305 : vector<1x64xf32> to vector<8x64xf32>
    %307 = arith.mulf %302, %306 : vector<8x64xf32>
    %308 = arith.addf %300, %307 : vector<8x64xf32>
    %c0_201 = arith.constant 0 : index
    %c2_202 = arith.constant 2 : index
    %c16_203 = arith.constant 16 : index
    %309 = vector.load %arg10[%c0_201, %c2_202, %c16_203] : memref<4x12x96xf32, #tpu.memory_space<vmem>>, vector<1x8x64xf32>
    %310 = vector.shape_cast %309 : vector<1x8x64xf32> to vector<8x64xf32>
    %c12 = arith.constant 12 : index
    %c0_204 = arith.constant 0 : index
    %311 = vector.load %arg7[%c12, %c0_204] : memref<100x64xf32, #tpu.memory_space<vmem>>, vector<1x64xf32>
    %312 = vector.shape_cast %311 : vector<1x64xf32> to vector<64xf32>
    %313 = vector.shape_cast %312 : vector<64xf32> to vector<1x64xf32>
    %314 = vector.broadcast %313 : vector<1x64xf32> to vector<8x64xf32>
    %315 = arith.mulf %310, %314 : vector<8x64xf32>
    %316 = arith.addf %308, %315 : vector<8x64xf32>
    %c0_205 = arith.constant 0 : index
    %c2_206 = arith.constant 2 : index
    %c24_207 = arith.constant 24 : index
    %317 = vector.load %arg10[%c0_205, %c2_206, %c24_207] : memref<4x12x96xf32, #tpu.memory_space<vmem>>, vector<1x8x64xf32>
    %318 = vector.shape_cast %317 : vector<1x8x64xf32> to vector<8x64xf32>
    %c13 = arith.constant 13 : index
    %c0_208 = arith.constant 0 : index
    %319 = vector.load %arg7[%c13, %c0_208] : memref<100x64xf32, #tpu.memory_space<vmem>>, vector<1x64xf32>
    %320 = vector.shape_cast %319 : vector<1x64xf32> to vector<64xf32>
    %321 = vector.shape_cast %320 : vector<64xf32> to vector<1x64xf32>
    %322 = vector.broadcast %321 : vector<1x64xf32> to vector<8x64xf32>
    %323 = arith.mulf %318, %322 : vector<8x64xf32>
    %324 = arith.addf %316, %323 : vector<8x64xf32>
    %c0_209 = arith.constant 0 : index
    %c2_210 = arith.constant 2 : index
    %c32_211 = arith.constant 32 : index
    %325 = vector.load %arg10[%c0_209, %c2_210, %c32_211] : memref<4x12x96xf32, #tpu.memory_space<vmem>>, vector<1x8x64xf32>
    %326 = vector.shape_cast %325 : vector<1x8x64xf32> to vector<8x64xf32>
    %c14 = arith.constant 14 : index
    %c0_212 = arith.constant 0 : index
    %327 = vector.load %arg7[%c14, %c0_212] : memref<100x64xf32, #tpu.memory_space<vmem>>, vector<1x64xf32>
    %328 = vector.shape_cast %327 : vector<1x64xf32> to vector<64xf32>
    %329 = vector.shape_cast %328 : vector<64xf32> to vector<1x64xf32>
    %330 = vector.broadcast %329 : vector<1x64xf32> to vector<8x64xf32>
    %331 = arith.mulf %326, %330 : vector<8x64xf32>
    %332 = arith.addf %324, %331 : vector<8x64xf32>
    %c0_213 = arith.constant 0 : index
    %c3_214 = arith.constant 3 : index
    %c0_215 = arith.constant 0 : index
    %333 = vector.load %arg10[%c0_213, %c3_214, %c0_215] : memref<4x12x96xf32, #tpu.memory_space<vmem>>, vector<1x8x64xf32>
    %334 = vector.shape_cast %333 : vector<1x8x64xf32> to vector<8x64xf32>
    %c15 = arith.constant 15 : index
    %c0_216 = arith.constant 0 : index
    %335 = vector.load %arg7[%c15, %c0_216] : memref<100x64xf32, #tpu.memory_space<vmem>>, vector<1x64xf32>
    %336 = vector.shape_cast %335 : vector<1x64xf32> to vector<64xf32>
    %337 = vector.shape_cast %336 : vector<64xf32> to vector<1x64xf32>
    %338 = vector.broadcast %337 : vector<1x64xf32> to vector<8x64xf32>
    %339 = arith.mulf %334, %338 : vector<8x64xf32>
    %340 = arith.addf %332, %339 : vector<8x64xf32>
    %c0_217 = arith.constant 0 : index
    %c3_218 = arith.constant 3 : index
    %c8_219 = arith.constant 8 : index
    %341 = vector.load %arg10[%c0_217, %c3_218, %c8_219] : memref<4x12x96xf32, #tpu.memory_space<vmem>>, vector<1x8x64xf32>
    %342 = vector.shape_cast %341 : vector<1x8x64xf32> to vector<8x64xf32>
    %c16_220 = arith.constant 16 : index
    %c0_221 = arith.constant 0 : index
    %343 = vector.load %arg7[%c16_220, %c0_221] : memref<100x64xf32, #tpu.memory_space<vmem>>, vector<1x64xf32>
    %344 = vector.shape_cast %343 : vector<1x64xf32> to vector<64xf32>
    %345 = vector.shape_cast %344 : vector<64xf32> to vector<1x64xf32>
    %346 = vector.broadcast %345 : vector<1x64xf32> to vector<8x64xf32>
    %347 = arith.mulf %342, %346 : vector<8x64xf32>
    %348 = arith.addf %340, %347 : vector<8x64xf32>
    %c0_222 = arith.constant 0 : index
    %c3_223 = arith.constant 3 : index
    %c16_224 = arith.constant 16 : index
    %349 = vector.load %arg10[%c0_222, %c3_223, %c16_224] : memref<4x12x96xf32, #tpu.memory_space<vmem>>, vector<1x8x64xf32>
    %350 = vector.shape_cast %349 : vector<1x8x64xf32> to vector<8x64xf32>
    %c17 = arith.constant 17 : index
    %c0_225 = arith.constant 0 : index
    %351 = vector.load %arg7[%c17, %c0_225] : memref<100x64xf32, #tpu.memory_space<vmem>>, vector<1x64xf32>
    %352 = vector.shape_cast %351 : vector<1x64xf32> to vector<64xf32>
    %353 = vector.shape_cast %352 : vector<64xf32> to vector<1x64xf32>
    %354 = vector.broadcast %353 : vector<1x64xf32> to vector<8x64xf32>
    %355 = arith.mulf %350, %354 : vector<8x64xf32>
    %356 = arith.addf %348, %355 : vector<8x64xf32>
    %c0_226 = arith.constant 0 : index
    %c3_227 = arith.constant 3 : index
    %c24_228 = arith.constant 24 : index
    %357 = vector.load %arg10[%c0_226, %c3_227, %c24_228] : memref<4x12x96xf32, #tpu.memory_space<vmem>>, vector<1x8x64xf32>
    %358 = vector.shape_cast %357 : vector<1x8x64xf32> to vector<8x64xf32>
    %c18 = arith.constant 18 : index
    %c0_229 = arith.constant 0 : index
    %359 = vector.load %arg7[%c18, %c0_229] : memref<100x64xf32, #tpu.memory_space<vmem>>, vector<1x64xf32>
    %360 = vector.shape_cast %359 : vector<1x64xf32> to vector<64xf32>
    %361 = vector.shape_cast %360 : vector<64xf32> to vector<1x64xf32>
    %362 = vector.broadcast %361 : vector<1x64xf32> to vector<8x64xf32>
    %363 = arith.mulf %358, %362 : vector<8x64xf32>
    %364 = arith.addf %356, %363 : vector<8x64xf32>
    %c0_230 = arith.constant 0 : index
    %c3_231 = arith.constant 3 : index
    %c32_232 = arith.constant 32 : index
    %365 = vector.load %arg10[%c0_230, %c3_231, %c32_232] : memref<4x12x96xf32, #tpu.memory_space<vmem>>, vector<1x8x64xf32>
    %366 = vector.shape_cast %365 : vector<1x8x64xf32> to vector<8x64xf32>
    %c19 = arith.constant 19 : index
    %c0_233 = arith.constant 0 : index
    %367 = vector.load %arg7[%c19, %c0_233] : memref<100x64xf32, #tpu.memory_space<vmem>>, vector<1x64xf32>
    %368 = vector.shape_cast %367 : vector<1x64xf32> to vector<64xf32>
    %369 = vector.shape_cast %368 : vector<64xf32> to vector<1x64xf32>
    %370 = vector.broadcast %369 : vector<1x64xf32> to vector<8x64xf32>
    %371 = arith.mulf %366, %370 : vector<8x64xf32>
    %372 = arith.addf %364, %371 : vector<8x64xf32>
    %c0_234 = arith.constant 0 : index
    %c4_235 = arith.constant 4 : index
    %c0_236 = arith.constant 0 : index
    %373 = vector.load %arg10[%c0_234, %c4_235, %c0_236] : memref<4x12x96xf32, #tpu.memory_space<vmem>>, vector<1x8x64xf32>
    %374 = vector.shape_cast %373 : vector<1x8x64xf32> to vector<8x64xf32>
    %c20 = arith.constant 20 : index
    %c0_237 = arith.constant 0 : index
    %375 = vector.load %arg7[%c20, %c0_237] : memref<100x64xf32, #tpu.memory_space<vmem>>, vector<1x64xf32>
    %376 = vector.shape_cast %375 : vector<1x64xf32> to vector<64xf32>
    %377 = vector.shape_cast %376 : vector<64xf32> to vector<1x64xf32>
    %378 = vector.broadcast %377 : vector<1x64xf32> to vector<8x64xf32>
    %379 = arith.mulf %374, %378 : vector<8x64xf32>
    %380 = arith.addf %372, %379 : vector<8x64xf32>
    %c0_238 = arith.constant 0 : index
    %c4_239 = arith.constant 4 : index
    %c8_240 = arith.constant 8 : index
    %381 = vector.load %arg10[%c0_238, %c4_239, %c8_240] : memref<4x12x96xf32, #tpu.memory_space<vmem>>, vector<1x8x64xf32>
    %382 = vector.shape_cast %381 : vector<1x8x64xf32> to vector<8x64xf32>
    %c21 = arith.constant 21 : index
    %c0_241 = arith.constant 0 : index
    %383 = vector.load %arg7[%c21, %c0_241] : memref<100x64xf32, #tpu.memory_space<vmem>>, vector<1x64xf32>
    %384 = vector.shape_cast %383 : vector<1x64xf32> to vector<64xf32>
    %385 = vector.shape_cast %384 : vector<64xf32> to vector<1x64xf32>
    %386 = vector.broadcast %385 : vector<1x64xf32> to vector<8x64xf32>
    %387 = arith.mulf %382, %386 : vector<8x64xf32>
    %388 = arith.addf %380, %387 : vector<8x64xf32>
    %c0_242 = arith.constant 0 : index
    %c4_243 = arith.constant 4 : index
    %c16_244 = arith.constant 16 : index
    %389 = vector.load %arg10[%c0_242, %c4_243, %c16_244] : memref<4x12x96xf32, #tpu.memory_space<vmem>>, vector<1x8x64xf32>
    %390 = vector.shape_cast %389 : vector<1x8x64xf32> to vector<8x64xf32>
    %c22 = arith.constant 22 : index
    %c0_245 = arith.constant 0 : index
    %391 = vector.load %arg7[%c22, %c0_245] : memref<100x64xf32, #tpu.memory_space<vmem>>, vector<1x64xf32>
    %392 = vector.shape_cast %391 : vector<1x64xf32> to vector<64xf32>
    %393 = vector.shape_cast %392 : vector<64xf32> to vector<1x64xf32>
    %394 = vector.broadcast %393 : vector<1x64xf32> to vector<8x64xf32>
    %395 = arith.mulf %390, %394 : vector<8x64xf32>
    %396 = arith.addf %388, %395 : vector<8x64xf32>
    %c0_246 = arith.constant 0 : index
    %c4_247 = arith.constant 4 : index
    %c24_248 = arith.constant 24 : index
    %397 = vector.load %arg10[%c0_246, %c4_247, %c24_248] : memref<4x12x96xf32, #tpu.memory_space<vmem>>, vector<1x8x64xf32>
    %398 = vector.shape_cast %397 : vector<1x8x64xf32> to vector<8x64xf32>
    %c23 = arith.constant 23 : index
    %c0_249 = arith.constant 0 : index
    %399 = vector.load %arg7[%c23, %c0_249] : memref<100x64xf32, #tpu.memory_space<vmem>>, vector<1x64xf32>
    %400 = vector.shape_cast %399 : vector<1x64xf32> to vector<64xf32>
    %401 = vector.shape_cast %400 : vector<64xf32> to vector<1x64xf32>
    %402 = vector.broadcast %401 : vector<1x64xf32> to vector<8x64xf32>
    %403 = arith.mulf %398, %402 : vector<8x64xf32>
    %404 = arith.addf %396, %403 : vector<8x64xf32>
    %c0_250 = arith.constant 0 : index
    %c4_251 = arith.constant 4 : index
    %c32_252 = arith.constant 32 : index
    %405 = vector.load %arg10[%c0_250, %c4_251, %c32_252] : memref<4x12x96xf32, #tpu.memory_space<vmem>>, vector<1x8x64xf32>
    %406 = vector.shape_cast %405 : vector<1x8x64xf32> to vector<8x64xf32>
    %c24_253 = arith.constant 24 : index
    %c0_254 = arith.constant 0 : index
    %407 = vector.load %arg7[%c24_253, %c0_254] : memref<100x64xf32, #tpu.memory_space<vmem>>, vector<1x64xf32>
    %408 = vector.shape_cast %407 : vector<1x64xf32> to vector<64xf32>
    %409 = vector.shape_cast %408 : vector<64xf32> to vector<1x64xf32>
    %410 = vector.broadcast %409 : vector<1x64xf32> to vector<8x64xf32>
    %411 = arith.mulf %406, %410 : vector<8x64xf32>
    %412 = arith.addf %404, %411 : vector<8x64xf32>
    %c0_255 = arith.constant 0 : index
    %c1_256 = arith.constant 1 : index
    %c8_257 = arith.constant 8 : index
    %413 = vector.load %arg11[%c0_255, %c1_256, %c8_257] : memref<4x10x80xf32, #tpu.memory_space<vmem>>, vector<1x8x64xf32>
    %414 = vector.shape_cast %413 : vector<1x8x64xf32> to vector<8x64xf32>
    %415 = vector.shape_cast %412 : vector<8x64xf32> to vector<1x8x64xf32>
    tpu.vector_store %arg11[%c0_255, %c1_256, %c8_257], %415 {strides = array<i32>} : memref<4x10x80xf32, #tpu.memory_space<vmem>>, vector<1x8x64xf32>,
    %c1_258 = arith.constant 1 : index
    %c0_259 = arith.constant 0 : index
    %c0_260 = arith.constant 0 : index
    %416 = vector.load %arg10[%c1_258, %c0_259, %c0_260] : memref<4x12x96xf32, #tpu.memory_space<vmem>>, vector<1x8x64xf32>
    %417 = vector.shape_cast %416 : vector<1x8x64xf32> to vector<8x64xf32>
    %c25 = arith.constant 25 : index
    %c0_261 = arith.constant 0 : index
    %418 = vector.load %arg7[%c25, %c0_261] : memref<100x64xf32, #tpu.memory_space<vmem>>, vector<1x64xf32>
    %419 = vector.shape_cast %418 : vector<1x64xf32> to vector<64xf32>
    %420 = vector.shape_cast %419 : vector<64xf32> to vector<1x64xf32>
    %421 = vector.broadcast %420 : vector<1x64xf32> to vector<8x64xf32>
    %422 = arith.mulf %417, %421 : vector<8x64xf32>
    %c1_262 = arith.constant 1 : index
    %c0_263 = arith.constant 0 : index
    %c8_264 = arith.constant 8 : index
    %423 = vector.load %arg10[%c1_262, %c0_263, %c8_264] : memref<4x12x96xf32, #tpu.memory_space<vmem>>, vector<1x8x64xf32>
    %424 = vector.shape_cast %423 : vector<1x8x64xf32> to vector<8x64xf32>
    %c26 = arith.constant 26 : index
    %c0_265 = arith.constant 0 : index
    %425 = vector.load %arg7[%c26, %c0_265] : memref<100x64xf32, #tpu.memory_space<vmem>>, vector<1x64xf32>
    %426 = vector.shape_cast %425 : vector<1x64xf32> to vector<64xf32>
    %427 = vector.shape_cast %426 : vector<64xf32> to vector<1x64xf32>
    %428 = vector.broadcast %427 : vector<1x64xf32> to vector<8x64xf32>
    %429 = arith.mulf %424, %428 : vector<8x64xf32>
    %430 = arith.addf %422, %429 : vector<8x64xf32>
    %c1_266 = arith.constant 1 : index
    %c0_267 = arith.constant 0 : index
    %c16_268 = arith.constant 16 : index
    %431 = vector.load %arg10[%c1_266, %c0_267, %c16_268] : memref<4x12x96xf32, #tpu.memory_space<vmem>>, vector<1x8x64xf32>
    %432 = vector.shape_cast %431 : vector<1x8x64xf32> to vector<8x64xf32>
    %c27 = arith.constant 27 : index
    %c0_269 = arith.constant 0 : index
    %433 = vector.load %arg7[%c27, %c0_269] : memref<100x64xf32, #tpu.memory_space<vmem>>, vector<1x64xf32>
    %434 = vector.shape_cast %433 : vector<1x64xf32> to vector<64xf32>
    %435 = vector.shape_cast %434 : vector<64xf32> to vector<1x64xf32>
    %436 = vector.broadcast %435 : vector<1x64xf32> to vector<8x64xf32>
    %437 = arith.mulf %432, %436 : vector<8x64xf32>
    %438 = arith.addf %430, %437 : vector<8x64xf32>
    %c1_270 = arith.constant 1 : index
    %c0_271 = arith.constant 0 : index
    %c24_272 = arith.constant 24 : index
    %439 = vector.load %arg10[%c1_270, %c0_271, %c24_272] : memref<4x12x96xf32, #tpu.memory_space<vmem>>, vector<1x8x64xf32>
    %440 = vector.shape_cast %439 : vector<1x8x64xf32> to vector<8x64xf32>
    %c28 = arith.constant 28 : index
    %c0_273 = arith.constant 0 : index
    %441 = vector.load %arg7[%c28, %c0_273] : memref<100x64xf32, #tpu.memory_space<vmem>>, vector<1x64xf32>
    %442 = vector.shape_cast %441 : vector<1x64xf32> to vector<64xf32>
    %443 = vector.shape_cast %442 : vector<64xf32> to vector<1x64xf32>
    %444 = vector.broadcast %443 : vector<1x64xf32> to vector<8x64xf32>
    %445 = arith.mulf %440, %444 : vector<8x64xf32>
    %446 = arith.addf %438, %445 : vector<8x64xf32>
    %c1_274 = arith.constant 1 : index
    %c0_275 = arith.constant 0 : index
    %c32_276 = arith.constant 32 : index
    %447 = vector.load %arg10[%c1_274, %c0_275, %c32_276] : memref<4x12x96xf32, #tpu.memory_space<vmem>>, vector<1x8x64xf32>
    %448 = vector.shape_cast %447 : vector<1x8x64xf32> to vector<8x64xf32>
    %c29 = arith.constant 29 : index
    %c0_277 = arith.constant 0 : index
    %449 = vector.load %arg7[%c29, %c0_277] : memref<100x64xf32, #tpu.memory_space<vmem>>, vector<1x64xf32>
    %450 = vector.shape_cast %449 : vector<1x64xf32> to vector<64xf32>
    %451 = vector.shape_cast %450 : vector<64xf32> to vector<1x64xf32>
    %452 = vector.broadcast %451 : vector<1x64xf32> to vector<8x64xf32>
    %453 = arith.mulf %448, %452 : vector<8x64xf32>
    %454 = arith.addf %446, %453 : vector<8x64xf32>
    %c1_278 = arith.constant 1 : index
    %c1_279 = arith.constant 1 : index
    %c0_280 = arith.constant 0 : index
    %455 = vector.load %arg10[%c1_278, %c1_279, %c0_280] : memref<4x12x96xf32, #tpu.memory_space<vmem>>, vector<1x8x64xf32>
    %456 = vector.shape_cast %455 : vector<1x8x64xf32> to vector<8x64xf32>
    %c30 = arith.constant 30 : index
    %c0_281 = arith.constant 0 : index
    %457 = vector.load %arg7[%c30, %c0_281] : memref<100x64xf32, #tpu.memory_space<vmem>>, vector<1x64xf32>
    %458 = vector.shape_cast %457 : vector<1x64xf32> to vector<64xf32>
    %459 = vector.shape_cast %458 : vector<64xf32> to vector<1x64xf32>
    %460 = vector.broadcast %459 : vector<1x64xf32> to vector<8x64xf32>
    %461 = arith.mulf %456, %460 : vector<8x64xf32>
    %462 = arith.addf %454, %461 : vector<8x64xf32>
    %c1_282 = arith.constant 1 : index
    %c1_283 = arith.constant 1 : index
    %c8_284 = arith.constant 8 : index
    %463 = vector.load %arg10[%c1_282, %c1_283, %c8_284] : memref<4x12x96xf32, #tpu.memory_space<vmem>>, vector<1x8x64xf32>
    %464 = vector.shape_cast %463 : vector<1x8x64xf32> to vector<8x64xf32>
    %c31 = arith.constant 31 : index
    %c0_285 = arith.constant 0 : index
    %465 = vector.load %arg7[%c31, %c0_285] : memref<100x64xf32, #tpu.memory_space<vmem>>, vector<1x64xf32>
    %466 = vector.shape_cast %465 : vector<1x64xf32> to vector<64xf32>
    %467 = vector.shape_cast %466 : vector<64xf32> to vector<1x64xf32>
    %468 = vector.broadcast %467 : vector<1x64xf32> to vector<8x64xf32>
    %469 = arith.mulf %464, %468 : vector<8x64xf32>
    %470 = arith.addf %462, %469 : vector<8x64xf32>
    %c1_286 = arith.constant 1 : index
    %c1_287 = arith.constant 1 : index
    %c16_288 = arith.constant 16 : index
    %471 = vector.load %arg10[%c1_286, %c1_287, %c16_288] : memref<4x12x96xf32, #tpu.memory_space<vmem>>, vector<1x8x64xf32>
    %472 = vector.shape_cast %471 : vector<1x8x64xf32> to vector<8x64xf32>
    %c32_289 = arith.constant 32 : index
    %c0_290 = arith.constant 0 : index
    %473 = vector.load %arg7[%c32_289, %c0_290] : memref<100x64xf32, #tpu.memory_space<vmem>>, vector<1x64xf32>
    %474 = vector.shape_cast %473 : vector<1x64xf32> to vector<64xf32>
    %475 = vector.shape_cast %474 : vector<64xf32> to vector<1x64xf32>
    %476 = vector.broadcast %475 : vector<1x64xf32> to vector<8x64xf32>
    %477 = arith.mulf %472, %476 : vector<8x64xf32>
    %478 = arith.addf %470, %477 : vector<8x64xf32>
    %c1_291 = arith.constant 1 : index
    %c1_292 = arith.constant 1 : index
    %c24_293 = arith.constant 24 : index
    %479 = vector.load %arg10[%c1_291, %c1_292, %c24_293] : memref<4x12x96xf32, #tpu.memory_space<vmem>>, vector<1x8x64xf32>
    %480 = vector.shape_cast %479 : vector<1x8x64xf32> to vector<8x64xf32>
    %c33 = arith.constant 33 : index
    %c0_294 = arith.constant 0 : index
    %481 = vector.load %arg7[%c33, %c0_294] : memref<100x64xf32, #tpu.memory_space<vmem>>, vector<1x64xf32>
    %482 = vector.shape_cast %481 : vector<1x64xf32> to vector<64xf32>
    %483 = vector.shape_cast %482 : vector<64xf32> to vector<1x64xf32>
    %484 = vector.broadcast %483 : vector<1x64xf32> to vector<8x64xf32>
    %485 = arith.mulf %480, %484 : vector<8x64xf32>
    %486 = arith.addf %478, %485 : vector<8x64xf32>
    %c1_295 = arith.constant 1 : index
    %c1_296 = arith.constant 1 : index
    %c32_297 = arith.constant 32 : index
    %487 = vector.load %arg10[%c1_295, %c1_296, %c32_297] : memref<4x12x96xf32, #tpu.memory_space<vmem>>, vector<1x8x64xf32>
    %488 = vector.shape_cast %487 : vector<1x8x64xf32> to vector<8x64xf32>
    %c34 = arith.constant 34 : index
    %c0_298 = arith.constant 0 : index
    %489 = vector.load %arg7[%c34, %c0_298] : memref<100x64xf32, #tpu.memory_space<vmem>>, vector<1x64xf32>
    %490 = vector.shape_cast %489 : vector<1x64xf32> to vector<64xf32>
    %491 = vector.shape_cast %490 : vector<64xf32> to vector<1x64xf32>
    %492 = vector.broadcast %491 : vector<1x64xf32> to vector<8x64xf32>
    %493 = arith.mulf %488, %492 : vector<8x64xf32>
    %494 = arith.addf %486, %493 : vector<8x64xf32>
    %c1_299 = arith.constant 1 : index
    %c2_300 = arith.constant 2 : index
    %c0_301 = arith.constant 0 : index
    %495 = vector.load %arg10[%c1_299, %c2_300, %c0_301] : memref<4x12x96xf32, #tpu.memory_space<vmem>>, vector<1x8x64xf32>
    %496 = vector.shape_cast %495 : vector<1x8x64xf32> to vector<8x64xf32>
    %c35 = arith.constant 35 : index
    %c0_302 = arith.constant 0 : index
    %497 = vector.load %arg7[%c35, %c0_302] : memref<100x64xf32, #tpu.memory_space<vmem>>, vector<1x64xf32>
    %498 = vector.shape_cast %497 : vector<1x64xf32> to vector<64xf32>
    %499 = vector.shape_cast %498 : vector<64xf32> to vector<1x64xf32>
    %500 = vector.broadcast %499 : vector<1x64xf32> to vector<8x64xf32>
    %501 = arith.mulf %496, %500 : vector<8x64xf32>
    %502 = arith.addf %494, %501 : vector<8x64xf32>
    %c1_303 = arith.constant 1 : index
    %c2_304 = arith.constant 2 : index
    %c8_305 = arith.constant 8 : index
    %503 = vector.load %arg10[%c1_303, %c2_304, %c8_305] : memref<4x12x96xf32, #tpu.memory_space<vmem>>, vector<1x8x64xf32>
    %504 = vector.shape_cast %503 : vector<1x8x64xf32> to vector<8x64xf32>
    %c36 = arith.constant 36 : index
    %c0_306 = arith.constant 0 : index
    %505 = vector.load %arg7[%c36, %c0_306] : memref<100x64xf32, #tpu.memory_space<vmem>>, vector<1x64xf32>
    %506 = vector.shape_cast %505 : vector<1x64xf32> to vector<64xf32>
    %507 = vector.shape_cast %506 : vector<64xf32> to vector<1x64xf32>
    %508 = vector.broadcast %507 : vector<1x64xf32> to vector<8x64xf32>
    %509 = arith.mulf %504, %508 : vector<8x64xf32>
    %510 = arith.addf %502, %509 : vector<8x64xf32>
    %c1_307 = arith.constant 1 : index
    %c2_308 = arith.constant 2 : index
    %c16_309 = arith.constant 16 : index
    %511 = vector.load %arg10[%c1_307, %c2_308, %c16_309] : memref<4x12x96xf32, #tpu.memory_space<vmem>>, vector<1x8x64xf32>
    %512 = vector.shape_cast %511 : vector<1x8x64xf32> to vector<8x64xf32>
    %c37 = arith.constant 37 : index
    %c0_310 = arith.constant 0 : index
    %513 = vector.load %arg7[%c37, %c0_310] : memref<100x64xf32, #tpu.memory_space<vmem>>, vector<1x64xf32>
    %514 = vector.shape_cast %513 : vector<1x64xf32> to vector<64xf32>
    %515 = vector.shape_cast %514 : vector<64xf32> to vector<1x64xf32>
    %516 = vector.broadcast %515 : vector<1x64xf32> to vector<8x64xf32>
    %517 = arith.mulf %512, %516 : vector<8x64xf32>
    %518 = arith.addf %510, %517 : vector<8x64xf32>
    %c1_311 = arith.constant 1 : index
    %c2_312 = arith.constant 2 : index
    %c24_313 = arith.constant 24 : index
    %519 = vector.load %arg10[%c1_311, %c2_312, %c24_313] : memref<4x12x96xf32, #tpu.memory_space<vmem>>, vector<1x8x64xf32>
    %520 = vector.shape_cast %519 : vector<1x8x64xf32> to vector<8x64xf32>
    %c38 = arith.constant 38 : index
    %c0_314 = arith.constant 0 : index
    %521 = vector.load %arg7[%c38, %c0_314] : memref<100x64xf32, #tpu.memory_space<vmem>>, vector<1x64xf32>
    %522 = vector.shape_cast %521 : vector<1x64xf32> to vector<64xf32>
    %523 = vector.shape_cast %522 : vector<64xf32> to vector<1x64xf32>
    %524 = vector.broadcast %523 : vector<1x64xf32> to vector<8x64xf32>
    %525 = arith.mulf %520, %524 : vector<8x64xf32>
    %526 = arith.addf %518, %525 : vector<8x64xf32>
    %c1_315 = arith.constant 1 : index
    %c2_316 = arith.constant 2 : index
    %c32_317 = arith.constant 32 : index
    %527 = vector.load %arg10[%c1_315, %c2_316, %c32_317] : memref<4x12x96xf32, #tpu.memory_space<vmem>>, vector<1x8x64xf32>
    %528 = vector.shape_cast %527 : vector<1x8x64xf32> to vector<8x64xf32>
    %c39 = arith.constant 39 : index
    %c0_318 = arith.constant 0 : index
    %529 = vector.load %arg7[%c39, %c0_318] : memref<100x64xf32, #tpu.memory_space<vmem>>, vector<1x64xf32>
    %530 = vector.shape_cast %529 : vector<1x64xf32> to vector<64xf32>
    %531 = vector.shape_cast %530 : vector<64xf32> to vector<1x64xf32>
    %532 = vector.broadcast %531 : vector<1x64xf32> to vector<8x64xf32>
    %533 = arith.mulf %528, %532 : vector<8x64xf32>
    %534 = arith.addf %526, %533 : vector<8x64xf32>
    %c1_319 = arith.constant 1 : index
    %c3_320 = arith.constant 3 : index
    %c0_321 = arith.constant 0 : index
    %535 = vector.load %arg10[%c1_319, %c3_320, %c0_321] : memref<4x12x96xf32, #tpu.memory_space<vmem>>, vector<1x8x64xf32>
    %536 = vector.shape_cast %535 : vector<1x8x64xf32> to vector<8x64xf32>
    %c40 = arith.constant 40 : index
    %c0_322 = arith.constant 0 : index
    %537 = vector.load %arg7[%c40, %c0_322] : memref<100x64xf32, #tpu.memory_space<vmem>>, vector<1x64xf32>
    %538 = vector.shape_cast %537 : vector<1x64xf32> to vector<64xf32>
    %539 = vector.shape_cast %538 : vector<64xf32> to vector<1x64xf32>
    %540 = vector.broadcast %539 : vector<1x64xf32> to vector<8x64xf32>
    %541 = arith.mulf %536, %540 : vector<8x64xf32>
    %542 = arith.addf %534, %541 : vector<8x64xf32>
    %c1_323 = arith.constant 1 : index
    %c3_324 = arith.constant 3 : index
    %c8_325 = arith.constant 8 : index
    %543 = vector.load %arg10[%c1_323, %c3_324, %c8_325] : memref<4x12x96xf32, #tpu.memory_space<vmem>>, vector<1x8x64xf32>
    %544 = vector.shape_cast %543 : vector<1x8x64xf32> to vector<8x64xf32>
    %c41 = arith.constant 41 : index
    %c0_326 = arith.constant 0 : index
    %545 = vector.load %arg7[%c41, %c0_326] : memref<100x64xf32, #tpu.memory_space<vmem>>, vector<1x64xf32>
    %546 = vector.shape_cast %545 : vector<1x64xf32> to vector<64xf32>
    %547 = vector.shape_cast %546 : vector<64xf32> to vector<1x64xf32>
    %548 = vector.broadcast %547 : vector<1x64xf32> to vector<8x64xf32>
    %549 = arith.mulf %544, %548 : vector<8x64xf32>
    %550 = arith.addf %542, %549 : vector<8x64xf32>
    %c1_327 = arith.constant 1 : index
    %c3_328 = arith.constant 3 : index
    %c16_329 = arith.constant 16 : index
    %551 = vector.load %arg10[%c1_327, %c3_328, %c16_329] : memref<4x12x96xf32, #tpu.memory_space<vmem>>, vector<1x8x64xf32>
    %552 = vector.shape_cast %551 : vector<1x8x64xf32> to vector<8x64xf32>
    %c42 = arith.constant 42 : index
    %c0_330 = arith.constant 0 : index
    %553 = vector.load %arg7[%c42, %c0_330] : memref<100x64xf32, #tpu.memory_space<vmem>>, vector<1x64xf32>
    %554 = vector.shape_cast %553 : vector<1x64xf32> to vector<64xf32>
    %555 = vector.shape_cast %554 : vector<64xf32> to vector<1x64xf32>
    %556 = vector.broadcast %555 : vector<1x64xf32> to vector<8x64xf32>
    %557 = arith.mulf %552, %556 : vector<8x64xf32>
    %558 = arith.addf %550, %557 : vector<8x64xf32>
    %c1_331 = arith.constant 1 : index
    %c3_332 = arith.constant 3 : index
    %c24_333 = arith.constant 24 : index
    %559 = vector.load %arg10[%c1_331, %c3_332, %c24_333] : memref<4x12x96xf32, #tpu.memory_space<vmem>>, vector<1x8x64xf32>
    %560 = vector.shape_cast %559 : vector<1x8x64xf32> to vector<8x64xf32>
    %c43 = arith.constant 43 : index
    %c0_334 = arith.constant 0 : index
    %561 = vector.load %arg7[%c43, %c0_334] : memref<100x64xf32, #tpu.memory_space<vmem>>, vector<1x64xf32>
    %562 = vector.shape_cast %561 : vector<1x64xf32> to vector<64xf32>
    %563 = vector.shape_cast %562 : vector<64xf32> to vector<1x64xf32>
    %564 = vector.broadcast %563 : vector<1x64xf32> to vector<8x64xf32>
    %565 = arith.mulf %560, %564 : vector<8x64xf32>
    %566 = arith.addf %558, %565 : vector<8x64xf32>
    %c1_335 = arith.constant 1 : index
    %c3_336 = arith.constant 3 : index
    %c32_337 = arith.constant 32 : index
    %567 = vector.load %arg10[%c1_335, %c3_336, %c32_337] : memref<4x12x96xf32, #tpu.memory_space<vmem>>, vector<1x8x64xf32>
    %568 = vector.shape_cast %567 : vector<1x8x64xf32> to vector<8x64xf32>
    %c44 = arith.constant 44 : index
    %c0_338 = arith.constant 0 : index
    %569 = vector.load %arg7[%c44, %c0_338] : memref<100x64xf32, #tpu.memory_space<vmem>>, vector<1x64xf32>
    %570 = vector.shape_cast %569 : vector<1x64xf32> to vector<64xf32>
    %571 = vector.shape_cast %570 : vector<64xf32> to vector<1x64xf32>
    %572 = vector.broadcast %571 : vector<1x64xf32> to vector<8x64xf32>
    %573 = arith.mulf %568, %572 : vector<8x64xf32>
    %574 = arith.addf %566, %573 : vector<8x64xf32>
    %c1_339 = arith.constant 1 : index
    %c4_340 = arith.constant 4 : index
    %c0_341 = arith.constant 0 : index
    %575 = vector.load %arg10[%c1_339, %c4_340, %c0_341] : memref<4x12x96xf32, #tpu.memory_space<vmem>>, vector<1x8x64xf32>
    %576 = vector.shape_cast %575 : vector<1x8x64xf32> to vector<8x64xf32>
    %c45 = arith.constant 45 : index
    %c0_342 = arith.constant 0 : index
    %577 = vector.load %arg7[%c45, %c0_342] : memref<100x64xf32, #tpu.memory_space<vmem>>, vector<1x64xf32>
    %578 = vector.shape_cast %577 : vector<1x64xf32> to vector<64xf32>
    %579 = vector.shape_cast %578 : vector<64xf32> to vector<1x64xf32>
    %580 = vector.broadcast %579 : vector<1x64xf32> to vector<8x64xf32>
    %581 = arith.mulf %576, %580 : vector<8x64xf32>
    %582 = arith.addf %574, %581 : vector<8x64xf32>
    %c1_343 = arith.constant 1 : index
    %c4_344 = arith.constant 4 : index
    %c8_345 = arith.constant 8 : index
    %583 = vector.load %arg10[%c1_343, %c4_344, %c8_345] : memref<4x12x96xf32, #tpu.memory_space<vmem>>, vector<1x8x64xf32>
    %584 = vector.shape_cast %583 : vector<1x8x64xf32> to vector<8x64xf32>
    %c46 = arith.constant 46 : index
    %c0_346 = arith.constant 0 : index
    %585 = vector.load %arg7[%c46, %c0_346] : memref<100x64xf32, #tpu.memory_space<vmem>>, vector<1x64xf32>
    %586 = vector.shape_cast %585 : vector<1x64xf32> to vector<64xf32>
    %587 = vector.shape_cast %586 : vector<64xf32> to vector<1x64xf32>
    %588 = vector.broadcast %587 : vector<1x64xf32> to vector<8x64xf32>
    %589 = arith.mulf %584, %588 : vector<8x64xf32>
    %590 = arith.addf %582, %589 : vector<8x64xf32>
    %c1_347 = arith.constant 1 : index
    %c4_348 = arith.constant 4 : index
    %c16_349 = arith.constant 16 : index
    %591 = vector.load %arg10[%c1_347, %c4_348, %c16_349] : memref<4x12x96xf32, #tpu.memory_space<vmem>>, vector<1x8x64xf32>
    %592 = vector.shape_cast %591 : vector<1x8x64xf32> to vector<8x64xf32>
    %c47 = arith.constant 47 : index
    %c0_350 = arith.constant 0 : index
    %593 = vector.load %arg7[%c47, %c0_350] : memref<100x64xf32, #tpu.memory_space<vmem>>, vector<1x64xf32>
    %594 = vector.shape_cast %593 : vector<1x64xf32> to vector<64xf32>
    %595 = vector.shape_cast %594 : vector<64xf32> to vector<1x64xf32>
    %596 = vector.broadcast %595 : vector<1x64xf32> to vector<8x64xf32>
    %597 = arith.mulf %592, %596 : vector<8x64xf32>
    %598 = arith.addf %590, %597 : vector<8x64xf32>
    %c1_351 = arith.constant 1 : index
    %c4_352 = arith.constant 4 : index
    %c24_353 = arith.constant 24 : index
    %599 = vector.load %arg10[%c1_351, %c4_352, %c24_353] : memref<4x12x96xf32, #tpu.memory_space<vmem>>, vector<1x8x64xf32>
    %600 = vector.shape_cast %599 : vector<1x8x64xf32> to vector<8x64xf32>
    %c48 = arith.constant 48 : index
    %c0_354 = arith.constant 0 : index
    %601 = vector.load %arg7[%c48, %c0_354] : memref<100x64xf32, #tpu.memory_space<vmem>>, vector<1x64xf32>
    %602 = vector.shape_cast %601 : vector<1x64xf32> to vector<64xf32>
    %603 = vector.shape_cast %602 : vector<64xf32> to vector<1x64xf32>
    %604 = vector.broadcast %603 : vector<1x64xf32> to vector<8x64xf32>
    %605 = arith.mulf %600, %604 : vector<8x64xf32>
    %606 = arith.addf %598, %605 : vector<8x64xf32>
    %c1_355 = arith.constant 1 : index
    %c4_356 = arith.constant 4 : index
    %c32_357 = arith.constant 32 : index
    %607 = vector.load %arg10[%c1_355, %c4_356, %c32_357] : memref<4x12x96xf32, #tpu.memory_space<vmem>>, vector<1x8x64xf32>
    %608 = vector.shape_cast %607 : vector<1x8x64xf32> to vector<8x64xf32>
    %c49 = arith.constant 49 : index
    %c0_358 = arith.constant 0 : index
    %609 = vector.load %arg7[%c49, %c0_358] : memref<100x64xf32, #tpu.memory_space<vmem>>, vector<1x64xf32>
    %610 = vector.shape_cast %609 : vector<1x64xf32> to vector<64xf32>
    %611 = vector.shape_cast %610 : vector<64xf32> to vector<1x64xf32>
    %612 = vector.broadcast %611 : vector<1x64xf32> to vector<8x64xf32>
    %613 = arith.mulf %608, %612 : vector<8x64xf32>
    %614 = arith.addf %606, %613 : vector<8x64xf32>
    %c1_359 = arith.constant 1 : index
    %c1_360 = arith.constant 1 : index
    %c8_361 = arith.constant 8 : index
    %615 = vector.load %arg11[%c1_359, %c1_360, %c8_361] : memref<4x10x80xf32, #tpu.memory_space<vmem>>, vector<1x8x64xf32>
    %616 = vector.shape_cast %615 : vector<1x8x64xf32> to vector<8x64xf32>
    %617 = vector.shape_cast %614 : vector<8x64xf32> to vector<1x8x64xf32>
    tpu.vector_store %arg11[%c1_359, %c1_360, %c8_361], %617 {strides = array<i32>} : memref<4x10x80xf32, #tpu.memory_space<vmem>>, vector<1x8x64xf32>,
    %c2_362 = arith.constant 2 : index
    %c0_363 = arith.constant 0 : index
    %c0_364 = arith.constant 0 : index
    %618 = vector.load %arg10[%c2_362, %c0_363, %c0_364] : memref<4x12x96xf32, #tpu.memory_space<vmem>>, vector<1x8x64xf32>
    %619 = vector.shape_cast %618 : vector<1x8x64xf32> to vector<8x64xf32>
    %c50 = arith.constant 50 : index
    %c0_365 = arith.constant 0 : index
    %620 = vector.load %arg7[%c50, %c0_365] : memref<100x64xf32, #tpu.memory_space<vmem>>, vector<1x64xf32>
    %621 = vector.shape_cast %620 : vector<1x64xf32> to vector<64xf32>
    %622 = vector.shape_cast %621 : vector<64xf32> to vector<1x64xf32>
    %623 = vector.broadcast %622 : vector<1x64xf32> to vector<8x64xf32>
    %624 = arith.mulf %619, %623 : vector<8x64xf32>
    %c2_366 = arith.constant 2 : index
    %c0_367 = arith.constant 0 : index
    %c8_368 = arith.constant 8 : index
    %625 = vector.load %arg10[%c2_366, %c0_367, %c8_368] : memref<4x12x96xf32, #tpu.memory_space<vmem>>, vector<1x8x64xf32>
    %626 = vector.shape_cast %625 : vector<1x8x64xf32> to vector<8x64xf32>
    %c51 = arith.constant 51 : index
    %c0_369 = arith.constant 0 : index
    %627 = vector.load %arg7[%c51, %c0_369] : memref<100x64xf32, #tpu.memory_space<vmem>>, vector<1x64xf32>
    %628 = vector.shape_cast %627 : vector<1x64xf32> to vector<64xf32>
    %629 = vector.shape_cast %628 : vector<64xf32> to vector<1x64xf32>
    %630 = vector.broadcast %629 : vector<1x64xf32> to vector<8x64xf32>
    %631 = arith.mulf %626, %630 : vector<8x64xf32>
    %632 = arith.addf %624, %631 : vector<8x64xf32>
    %c2_370 = arith.constant 2 : index
    %c0_371 = arith.constant 0 : index
    %c16_372 = arith.constant 16 : index
    %633 = vector.load %arg10[%c2_370, %c0_371, %c16_372] : memref<4x12x96xf32, #tpu.memory_space<vmem>>, vector<1x8x64xf32>
    %634 = vector.shape_cast %633 : vector<1x8x64xf32> to vector<8x64xf32>
    %c52 = arith.constant 52 : index
    %c0_373 = arith.constant 0 : index
    %635 = vector.load %arg7[%c52, %c0_373] : memref<100x64xf32, #tpu.memory_space<vmem>>, vector<1x64xf32>
    %636 = vector.shape_cast %635 : vector<1x64xf32> to vector<64xf32>
    %637 = vector.shape_cast %636 : vector<64xf32> to vector<1x64xf32>
    %638 = vector.broadcast %637 : vector<1x64xf32> to vector<8x64xf32>
    %639 = arith.mulf %634, %638 : vector<8x64xf32>
    %640 = arith.addf %632, %639 : vector<8x64xf32>
    %c2_374 = arith.constant 2 : index
    %c0_375 = arith.constant 0 : index
    %c24_376 = arith.constant 24 : index
    %641 = vector.load %arg10[%c2_374, %c0_375, %c24_376] : memref<4x12x96xf32, #tpu.memory_space<vmem>>, vector<1x8x64xf32>
    %642 = vector.shape_cast %641 : vector<1x8x64xf32> to vector<8x64xf32>
    %c53 = arith.constant 53 : index
    %c0_377 = arith.constant 0 : index
    %643 = vector.load %arg7[%c53, %c0_377] : memref<100x64xf32, #tpu.memory_space<vmem>>, vector<1x64xf32>
    %644 = vector.shape_cast %643 : vector<1x64xf32> to vector<64xf32>
    %645 = vector.shape_cast %644 : vector<64xf32> to vector<1x64xf32>
    %646 = vector.broadcast %645 : vector<1x64xf32> to vector<8x64xf32>
    %647 = arith.mulf %642, %646 : vector<8x64xf32>
    %648 = arith.addf %640, %647 : vector<8x64xf32>
    %c2_378 = arith.constant 2 : index
    %c0_379 = arith.constant 0 : index
    %c32_380 = arith.constant 32 : index
    %649 = vector.load %arg10[%c2_378, %c0_379, %c32_380] : memref<4x12x96xf32, #tpu.memory_space<vmem>>, vector<1x8x64xf32>
    %650 = vector.shape_cast %649 : vector<1x8x64xf32> to vector<8x64xf32>
    %c54 = arith.constant 54 : index
    %c0_381 = arith.constant 0 : index
    %651 = vector.load %arg7[%c54, %c0_381] : memref<100x64xf32, #tpu.memory_space<vmem>>, vector<1x64xf32>
    %652 = vector.shape_cast %651 : vector<1x64xf32> to vector<64xf32>
    %653 = vector.shape_cast %652 : vector<64xf32> to vector<1x64xf32>
    %654 = vector.broadcast %653 : vector<1x64xf32> to vector<8x64xf32>
    %655 = arith.mulf %650, %654 : vector<8x64xf32>
    %656 = arith.addf %648, %655 : vector<8x64xf32>
    %c2_382 = arith.constant 2 : index
    %c1_383 = arith.constant 1 : index
    %c0_384 = arith.constant 0 : index
    %657 = vector.load %arg10[%c2_382, %c1_383, %c0_384] : memref<4x12x96xf32, #tpu.memory_space<vmem>>, vector<1x8x64xf32>
    %658 = vector.shape_cast %657 : vector<1x8x64xf32> to vector<8x64xf32>
    %c55 = arith.constant 55 : index
    %c0_385 = arith.constant 0 : index
    %659 = vector.load %arg7[%c55, %c0_385] : memref<100x64xf32, #tpu.memory_space<vmem>>, vector<1x64xf32>
    %660 = vector.shape_cast %659 : vector<1x64xf32> to vector<64xf32>
    %661 = vector.shape_cast %660 : vector<64xf32> to vector<1x64xf32>
    %662 = vector.broadcast %661 : vector<1x64xf32> to vector<8x64xf32>
    %663 = arith.mulf %658, %662 : vector<8x64xf32>
    %664 = arith.addf %656, %663 : vector<8x64xf32>
    %c2_386 = arith.constant 2 : index
    %c1_387 = arith.constant 1 : index
    %c8_388 = arith.constant 8 : index
    %665 = vector.load %arg10[%c2_386, %c1_387, %c8_388] : memref<4x12x96xf32, #tpu.memory_space<vmem>>, vector<1x8x64xf32>
    %666 = vector.shape_cast %665 : vector<1x8x64xf32> to vector<8x64xf32>
    %c56 = arith.constant 56 : index
    %c0_389 = arith.constant 0 : index
    %667 = vector.load %arg7[%c56, %c0_389] : memref<100x64xf32, #tpu.memory_space<vmem>>, vector<1x64xf32>
    %668 = vector.shape_cast %667 : vector<1x64xf32> to vector<64xf32>
    %669 = vector.shape_cast %668 : vector<64xf32> to vector<1x64xf32>
    %670 = vector.broadcast %669 : vector<1x64xf32> to vector<8x64xf32>
    %671 = arith.mulf %666, %670 : vector<8x64xf32>
    %672 = arith.addf %664, %671 : vector<8x64xf32>
    %c2_390 = arith.constant 2 : index
    %c1_391 = arith.constant 1 : index
    %c16_392 = arith.constant 16 : index
    %673 = vector.load %arg10[%c2_390, %c1_391, %c16_392] : memref<4x12x96xf32, #tpu.memory_space<vmem>>, vector<1x8x64xf32>
    %674 = vector.shape_cast %673 : vector<1x8x64xf32> to vector<8x64xf32>
    %c57 = arith.constant 57 : index
    %c0_393 = arith.constant 0 : index
    %675 = vector.load %arg7[%c57, %c0_393] : memref<100x64xf32, #tpu.memory_space<vmem>>, vector<1x64xf32>
    %676 = vector.shape_cast %675 : vector<1x64xf32> to vector<64xf32>
    %677 = vector.shape_cast %676 : vector<64xf32> to vector<1x64xf32>
    %678 = vector.broadcast %677 : vector<1x64xf32> to vector<8x64xf32>
    %679 = arith.mulf %674, %678 : vector<8x64xf32>
    %680 = arith.addf %672, %679 : vector<8x64xf32>
    %c2_394 = arith.constant 2 : index
    %c1_395 = arith.constant 1 : index
    %c24_396 = arith.constant 24 : index
    %681 = vector.load %arg10[%c2_394, %c1_395, %c24_396] : memref<4x12x96xf32, #tpu.memory_space<vmem>>, vector<1x8x64xf32>
    %682 = vector.shape_cast %681 : vector<1x8x64xf32> to vector<8x64xf32>
    %c58 = arith.constant 58 : index
    %c0_397 = arith.constant 0 : index
    %683 = vector.load %arg7[%c58, %c0_397] : memref<100x64xf32, #tpu.memory_space<vmem>>, vector<1x64xf32>
    %684 = vector.shape_cast %683 : vector<1x64xf32> to vector<64xf32>
    %685 = vector.shape_cast %684 : vector<64xf32> to vector<1x64xf32>
    %686 = vector.broadcast %685 : vector<1x64xf32> to vector<8x64xf32>
    %687 = arith.mulf %682, %686 : vector<8x64xf32>
    %688 = arith.addf %680, %687 : vector<8x64xf32>
    %c2_398 = arith.constant 2 : index
    %c1_399 = arith.constant 1 : index
    %c32_400 = arith.constant 32 : index
    %689 = vector.load %arg10[%c2_398, %c1_399, %c32_400] : memref<4x12x96xf32, #tpu.memory_space<vmem>>, vector<1x8x64xf32>
    %690 = vector.shape_cast %689 : vector<1x8x64xf32> to vector<8x64xf32>
    %c59 = arith.constant 59 : index
    %c0_401 = arith.constant 0 : index
    %691 = vector.load %arg7[%c59, %c0_401] : memref<100x64xf32, #tpu.memory_space<vmem>>, vector<1x64xf32>
    %692 = vector.shape_cast %691 : vector<1x64xf32> to vector<64xf32>
    %693 = vector.shape_cast %692 : vector<64xf32> to vector<1x64xf32>
    %694 = vector.broadcast %693 : vector<1x64xf32> to vector<8x64xf32>
    %695 = arith.mulf %690, %694 : vector<8x64xf32>
    %696 = arith.addf %688, %695 : vector<8x64xf32>
    %c2_402 = arith.constant 2 : index
    %c2_403 = arith.constant 2 : index
    %c0_404 = arith.constant 0 : index
    %697 = vector.load %arg10[%c2_402, %c2_403, %c0_404] : memref<4x12x96xf32, #tpu.memory_space<vmem>>, vector<1x8x64xf32>
    %698 = vector.shape_cast %697 : vector<1x8x64xf32> to vector<8x64xf32>
    %c60 = arith.constant 60 : index
    %c0_405 = arith.constant 0 : index
    %699 = vector.load %arg7[%c60, %c0_405] : memref<100x64xf32, #tpu.memory_space<vmem>>, vector<1x64xf32>
    %700 = vector.shape_cast %699 : vector<1x64xf32> to vector<64xf32>
    %701 = vector.shape_cast %700 : vector<64xf32> to vector<1x64xf32>
    %702 = vector.broadcast %701 : vector<1x64xf32> to vector<8x64xf32>
    %703 = arith.mulf %698, %702 : vector<8x64xf32>
    %704 = arith.addf %696, %703 : vector<8x64xf32>
    %c2_406 = arith.constant 2 : index
    %c2_407 = arith.constant 2 : index
    %c8_408 = arith.constant 8 : index
    %705 = vector.load %arg10[%c2_406, %c2_407, %c8_408] : memref<4x12x96xf32, #tpu.memory_space<vmem>>, vector<1x8x64xf32>
    %706 = vector.shape_cast %705 : vector<1x8x64xf32> to vector<8x64xf32>
    %c61 = arith.constant 61 : index
    %c0_409 = arith.constant 0 : index
    %707 = vector.load %arg7[%c61, %c0_409] : memref<100x64xf32, #tpu.memory_space<vmem>>, vector<1x64xf32>
    %708 = vector.shape_cast %707 : vector<1x64xf32> to vector<64xf32>
    %709 = vector.shape_cast %708 : vector<64xf32> to vector<1x64xf32>
    %710 = vector.broadcast %709 : vector<1x64xf32> to vector<8x64xf32>
    %711 = arith.mulf %706, %710 : vector<8x64xf32>
    %712 = arith.addf %704, %711 : vector<8x64xf32>
    %c2_410 = arith.constant 2 : index
    %c2_411 = arith.constant 2 : index
    %c16_412 = arith.constant 16 : index
    %713 = vector.load %arg10[%c2_410, %c2_411, %c16_412] : memref<4x12x96xf32, #tpu.memory_space<vmem>>, vector<1x8x64xf32>
    %714 = vector.shape_cast %713 : vector<1x8x64xf32> to vector<8x64xf32>
    %c62 = arith.constant 62 : index
    %c0_413 = arith.constant 0 : index
    %715 = vector.load %arg7[%c62, %c0_413] : memref<100x64xf32, #tpu.memory_space<vmem>>, vector<1x64xf32>
    %716 = vector.shape_cast %715 : vector<1x64xf32> to vector<64xf32>
    %717 = vector.shape_cast %716 : vector<64xf32> to vector<1x64xf32>
    %718 = vector.broadcast %717 : vector<1x64xf32> to vector<8x64xf32>
    %719 = arith.mulf %714, %718 : vector<8x64xf32>
    %720 = arith.addf %712, %719 : vector<8x64xf32>
    %c2_414 = arith.constant 2 : index
    %c2_415 = arith.constant 2 : index
    %c24_416 = arith.constant 24 : index
    %721 = vector.load %arg10[%c2_414, %c2_415, %c24_416] : memref<4x12x96xf32, #tpu.memory_space<vmem>>, vector<1x8x64xf32>
    %722 = vector.shape_cast %721 : vector<1x8x64xf32> to vector<8x64xf32>
    %c63 = arith.constant 63 : index
    %c0_417 = arith.constant 0 : index
    %723 = vector.load %arg7[%c63, %c0_417] : memref<100x64xf32, #tpu.memory_space<vmem>>, vector<1x64xf32>
    %724 = vector.shape_cast %723 : vector<1x64xf32> to vector<64xf32>
    %725 = vector.shape_cast %724 : vector<64xf32> to vector<1x64xf32>
    %726 = vector.broadcast %725 : vector<1x64xf32> to vector<8x64xf32>
    %727 = arith.mulf %722, %726 : vector<8x64xf32>
    %728 = arith.addf %720, %727 : vector<8x64xf32>
    %c2_418 = arith.constant 2 : index
    %c2_419 = arith.constant 2 : index
    %c32_420 = arith.constant 32 : index
    %729 = vector.load %arg10[%c2_418, %c2_419, %c32_420] : memref<4x12x96xf32, #tpu.memory_space<vmem>>, vector<1x8x64xf32>
    %730 = vector.shape_cast %729 : vector<1x8x64xf32> to vector<8x64xf32>
    %c64 = arith.constant 64 : index
    %c0_421 = arith.constant 0 : index
    %731 = vector.load %arg7[%c64, %c0_421] : memref<100x64xf32, #tpu.memory_space<vmem>>, vector<1x64xf32>
    %732 = vector.shape_cast %731 : vector<1x64xf32> to vector<64xf32>
    %733 = vector.shape_cast %732 : vector<64xf32> to vector<1x64xf32>
    %734 = vector.broadcast %733 : vector<1x64xf32> to vector<8x64xf32>
    %735 = arith.mulf %730, %734 : vector<8x64xf32>
    %736 = arith.addf %728, %735 : vector<8x64xf32>
    %c2_422 = arith.constant 2 : index
    %c3_423 = arith.constant 3 : index
    %c0_424 = arith.constant 0 : index
    %737 = vector.load %arg10[%c2_422, %c3_423, %c0_424] : memref<4x12x96xf32, #tpu.memory_space<vmem>>, vector<1x8x64xf32>
    %738 = vector.shape_cast %737 : vector<1x8x64xf32> to vector<8x64xf32>
    %c65 = arith.constant 65 : index
    %c0_425 = arith.constant 0 : index
    %739 = vector.load %arg7[%c65, %c0_425] : memref<100x64xf32, #tpu.memory_space<vmem>>, vector<1x64xf32>
    %740 = vector.shape_cast %739 : vector<1x64xf32> to vector<64xf32>
    %741 = vector.shape_cast %740 : vector<64xf32> to vector<1x64xf32>
    %742 = vector.broadcast %741 : vector<1x64xf32> to vector<8x64xf32>
    %743 = arith.mulf %738, %742 : vector<8x64xf32>
    %744 = arith.addf %736, %743 : vector<8x64xf32>
    %c2_426 = arith.constant 2 : index
    %c3_427 = arith.constant 3 : index
    %c8_428 = arith.constant 8 : index
    %745 = vector.load %arg10[%c2_426, %c3_427, %c8_428] : memref<4x12x96xf32, #tpu.memory_space<vmem>>, vector<1x8x64xf32>
    %746 = vector.shape_cast %745 : vector<1x8x64xf32> to vector<8x64xf32>
    %c66 = arith.constant 66 : index
    %c0_429 = arith.constant 0 : index
    %747 = vector.load %arg7[%c66, %c0_429] : memref<100x64xf32, #tpu.memory_space<vmem>>, vector<1x64xf32>
    %748 = vector.shape_cast %747 : vector<1x64xf32> to vector<64xf32>
    %749 = vector.shape_cast %748 : vector<64xf32> to vector<1x64xf32>
    %750 = vector.broadcast %749 : vector<1x64xf32> to vector<8x64xf32>
    %751 = arith.mulf %746, %750 : vector<8x64xf32>
    %752 = arith.addf %744, %751 : vector<8x64xf32>
    %c2_430 = arith.constant 2 : index
    %c3_431 = arith.constant 3 : index
    %c16_432 = arith.constant 16 : index
    %753 = vector.load %arg10[%c2_430, %c3_431, %c16_432] : memref<4x12x96xf32, #tpu.memory_space<vmem>>, vector<1x8x64xf32>
    %754 = vector.shape_cast %753 : vector<1x8x64xf32> to vector<8x64xf32>
    %c67 = arith.constant 67 : index
    %c0_433 = arith.constant 0 : index
    %755 = vector.load %arg7[%c67, %c0_433] : memref<100x64xf32, #tpu.memory_space<vmem>>, vector<1x64xf32>
    %756 = vector.shape_cast %755 : vector<1x64xf32> to vector<64xf32>
    %757 = vector.shape_cast %756 : vector<64xf32> to vector<1x64xf32>
    %758 = vector.broadcast %757 : vector<1x64xf32> to vector<8x64xf32>
    %759 = arith.mulf %754, %758 : vector<8x64xf32>
    %760 = arith.addf %752, %759 : vector<8x64xf32>
    %c2_434 = arith.constant 2 : index
    %c3_435 = arith.constant 3 : index
    %c24_436 = arith.constant 24 : index
    %761 = vector.load %arg10[%c2_434, %c3_435, %c24_436] : memref<4x12x96xf32, #tpu.memory_space<vmem>>, vector<1x8x64xf32>
    %762 = vector.shape_cast %761 : vector<1x8x64xf32> to vector<8x64xf32>
    %c68 = arith.constant 68 : index
    %c0_437 = arith.constant 0 : index
    %763 = vector.load %arg7[%c68, %c0_437] : memref<100x64xf32, #tpu.memory_space<vmem>>, vector<1x64xf32>
    %764 = vector.shape_cast %763 : vector<1x64xf32> to vector<64xf32>
    %765 = vector.shape_cast %764 : vector<64xf32> to vector<1x64xf32>
    %766 = vector.broadcast %765 : vector<1x64xf32> to vector<8x64xf32>
    %767 = arith.mulf %762, %766 : vector<8x64xf32>
    %768 = arith.addf %760, %767 : vector<8x64xf32>
    %c2_438 = arith.constant 2 : index
    %c3_439 = arith.constant 3 : index
    %c32_440 = arith.constant 32 : index
    %769 = vector.load %arg10[%c2_438, %c3_439, %c32_440] : memref<4x12x96xf32, #tpu.memory_space<vmem>>, vector<1x8x64xf32>
    %770 = vector.shape_cast %769 : vector<1x8x64xf32> to vector<8x64xf32>
    %c69 = arith.constant 69 : index
    %c0_441 = arith.constant 0 : index
    %771 = vector.load %arg7[%c69, %c0_441] : memref<100x64xf32, #tpu.memory_space<vmem>>, vector<1x64xf32>
    %772 = vector.shape_cast %771 : vector<1x64xf32> to vector<64xf32>
    %773 = vector.shape_cast %772 : vector<64xf32> to vector<1x64xf32>
    %774 = vector.broadcast %773 : vector<1x64xf32> to vector<8x64xf32>
    %775 = arith.mulf %770, %774 : vector<8x64xf32>
    %776 = arith.addf %768, %775 : vector<8x64xf32>
    %c2_442 = arith.constant 2 : index
    %c4_443 = arith.constant 4 : index
    %c0_444 = arith.constant 0 : index
    %777 = vector.load %arg10[%c2_442, %c4_443, %c0_444] : memref<4x12x96xf32, #tpu.memory_space<vmem>>, vector<1x8x64xf32>
    %778 = vector.shape_cast %777 : vector<1x8x64xf32> to vector<8x64xf32>
    %c70 = arith.constant 70 : index
    %c0_445 = arith.constant 0 : index
    %779 = vector.load %arg7[%c70, %c0_445] : memref<100x64xf32, #tpu.memory_space<vmem>>, vector<1x64xf32>
    %780 = vector.shape_cast %779 : vector<1x64xf32> to vector<64xf32>
    %781 = vector.shape_cast %780 : vector<64xf32> to vector<1x64xf32>
    %782 = vector.broadcast %781 : vector<1x64xf32> to vector<8x64xf32>
    %783 = arith.mulf %778, %782 : vector<8x64xf32>
    %784 = arith.addf %776, %783 : vector<8x64xf32>
    %c2_446 = arith.constant 2 : index
    %c4_447 = arith.constant 4 : index
    %c8_448 = arith.constant 8 : index
    %785 = vector.load %arg10[%c2_446, %c4_447, %c8_448] : memref<4x12x96xf32, #tpu.memory_space<vmem>>, vector<1x8x64xf32>
    %786 = vector.shape_cast %785 : vector<1x8x64xf32> to vector<8x64xf32>
    %c71 = arith.constant 71 : index
    %c0_449 = arith.constant 0 : index
    %787 = vector.load %arg7[%c71, %c0_449] : memref<100x64xf32, #tpu.memory_space<vmem>>, vector<1x64xf32>
    %788 = vector.shape_cast %787 : vector<1x64xf32> to vector<64xf32>
    %789 = vector.shape_cast %788 : vector<64xf32> to vector<1x64xf32>
    %790 = vector.broadcast %789 : vector<1x64xf32> to vector<8x64xf32>
    %791 = arith.mulf %786, %790 : vector<8x64xf32>
    %792 = arith.addf %784, %791 : vector<8x64xf32>
    %c2_450 = arith.constant 2 : index
    %c4_451 = arith.constant 4 : index
    %c16_452 = arith.constant 16 : index
    %793 = vector.load %arg10[%c2_450, %c4_451, %c16_452] : memref<4x12x96xf32, #tpu.memory_space<vmem>>, vector<1x8x64xf32>
    %794 = vector.shape_cast %793 : vector<1x8x64xf32> to vector<8x64xf32>
    %c72 = arith.constant 72 : index
    %c0_453 = arith.constant 0 : index
    %795 = vector.load %arg7[%c72, %c0_453] : memref<100x64xf32, #tpu.memory_space<vmem>>, vector<1x64xf32>
    %796 = vector.shape_cast %795 : vector<1x64xf32> to vector<64xf32>
    %797 = vector.shape_cast %796 : vector<64xf32> to vector<1x64xf32>
    %798 = vector.broadcast %797 : vector<1x64xf32> to vector<8x64xf32>
    %799 = arith.mulf %794, %798 : vector<8x64xf32>
    %800 = arith.addf %792, %799 : vector<8x64xf32>
    %c2_454 = arith.constant 2 : index
    %c4_455 = arith.constant 4 : index
    %c24_456 = arith.constant 24 : index
    %801 = vector.load %arg10[%c2_454, %c4_455, %c24_456] : memref<4x12x96xf32, #tpu.memory_space<vmem>>, vector<1x8x64xf32>
    %802 = vector.shape_cast %801 : vector<1x8x64xf32> to vector<8x64xf32>
    %c73 = arith.constant 73 : index
    %c0_457 = arith.constant 0 : index
    %803 = vector.load %arg7[%c73, %c0_457] : memref<100x64xf32, #tpu.memory_space<vmem>>, vector<1x64xf32>
    %804 = vector.shape_cast %803 : vector<1x64xf32> to vector<64xf32>
    %805 = vector.shape_cast %804 : vector<64xf32> to vector<1x64xf32>
    %806 = vector.broadcast %805 : vector<1x64xf32> to vector<8x64xf32>
    %807 = arith.mulf %802, %806 : vector<8x64xf32>
    %808 = arith.addf %800, %807 : vector<8x64xf32>
    %c2_458 = arith.constant 2 : index
    %c4_459 = arith.constant 4 : index
    %c32_460 = arith.constant 32 : index
    %809 = vector.load %arg10[%c2_458, %c4_459, %c32_460] : memref<4x12x96xf32, #tpu.memory_space<vmem>>, vector<1x8x64xf32>
    %810 = vector.shape_cast %809 : vector<1x8x64xf32> to vector<8x64xf32>
    %c74 = arith.constant 74 : index
    %c0_461 = arith.constant 0 : index
    %811 = vector.load %arg7[%c74, %c0_461] : memref<100x64xf32, #tpu.memory_space<vmem>>, vector<1x64xf32>
    %812 = vector.shape_cast %811 : vector<1x64xf32> to vector<64xf32>
    %813 = vector.shape_cast %812 : vector<64xf32> to vector<1x64xf32>
    %814 = vector.broadcast %813 : vector<1x64xf32> to vector<8x64xf32>
    %815 = arith.mulf %810, %814 : vector<8x64xf32>
    %816 = arith.addf %808, %815 : vector<8x64xf32>
    %c2_462 = arith.constant 2 : index
    %c1_463 = arith.constant 1 : index
    %c8_464 = arith.constant 8 : index
    %817 = vector.load %arg11[%c2_462, %c1_463, %c8_464] : memref<4x10x80xf32, #tpu.memory_space<vmem>>, vector<1x8x64xf32>
    %818 = vector.shape_cast %817 : vector<1x8x64xf32> to vector<8x64xf32>
    %819 = vector.shape_cast %816 : vector<8x64xf32> to vector<1x8x64xf32>
    tpu.vector_store %arg11[%c2_462, %c1_463, %c8_464], %819 {strides = array<i32>} : memref<4x10x80xf32, #tpu.memory_space<vmem>>, vector<1x8x64xf32>,
    %c3_465 = arith.constant 3 : index
    %c0_466 = arith.constant 0 : index
    %c0_467 = arith.constant 0 : index
    %820 = vector.load %arg10[%c3_465, %c0_466, %c0_467] : memref<4x12x96xf32, #tpu.memory_space<vmem>>, vector<1x8x64xf32>
    %821 = vector.shape_cast %820 : vector<1x8x64xf32> to vector<8x64xf32>
    %c75 = arith.constant 75 : index
    %c0_468 = arith.constant 0 : index
    %822 = vector.load %arg7[%c75, %c0_468] : memref<100x64xf32, #tpu.memory_space<vmem>>, vector<1x64xf32>
    %823 = vector.shape_cast %822 : vector<1x64xf32> to vector<64xf32>
    %824 = vector.shape_cast %823 : vector<64xf32> to vector<1x64xf32>
    %825 = vector.broadcast %824 : vector<1x64xf32> to vector<8x64xf32>
    %826 = arith.mulf %821, %825 : vector<8x64xf32>
    %c3_469 = arith.constant 3 : index
    %c0_470 = arith.constant 0 : index
    %c8_471 = arith.constant 8 : index
    %827 = vector.load %arg10[%c3_469, %c0_470, %c8_471] : memref<4x12x96xf32, #tpu.memory_space<vmem>>, vector<1x8x64xf32>
    %828 = vector.shape_cast %827 : vector<1x8x64xf32> to vector<8x64xf32>
    %c76 = arith.constant 76 : index
    %c0_472 = arith.constant 0 : index
    %829 = vector.load %arg7[%c76, %c0_472] : memref<100x64xf32, #tpu.memory_space<vmem>>, vector<1x64xf32>
    %830 = vector.shape_cast %829 : vector<1x64xf32> to vector<64xf32>
    %831 = vector.shape_cast %830 : vector<64xf32> to vector<1x64xf32>
    %832 = vector.broadcast %831 : vector<1x64xf32> to vector<8x64xf32>
    %833 = arith.mulf %828, %832 : vector<8x64xf32>
    %834 = arith.addf %826, %833 : vector<8x64xf32>
    %c3_473 = arith.constant 3 : index
    %c0_474 = arith.constant 0 : index
    %c16_475 = arith.constant 16 : index
    %835 = vector.load %arg10[%c3_473, %c0_474, %c16_475] : memref<4x12x96xf32, #tpu.memory_space<vmem>>, vector<1x8x64xf32>
    %836 = vector.shape_cast %835 : vector<1x8x64xf32> to vector<8x64xf32>
    %c77 = arith.constant 77 : index
    %c0_476 = arith.constant 0 : index
    %837 = vector.load %arg7[%c77, %c0_476] : memref<100x64xf32, #tpu.memory_space<vmem>>, vector<1x64xf32>
    %838 = vector.shape_cast %837 : vector<1x64xf32> to vector<64xf32>
    %839 = vector.shape_cast %838 : vector<64xf32> to vector<1x64xf32>
    %840 = vector.broadcast %839 : vector<1x64xf32> to vector<8x64xf32>
    %841 = arith.mulf %836, %840 : vector<8x64xf32>
    %842 = arith.addf %834, %841 : vector<8x64xf32>
    %c3_477 = arith.constant 3 : index
    %c0_478 = arith.constant 0 : index
    %c24_479 = arith.constant 24 : index
    %843 = vector.load %arg10[%c3_477, %c0_478, %c24_479] : memref<4x12x96xf32, #tpu.memory_space<vmem>>, vector<1x8x64xf32>
    %844 = vector.shape_cast %843 : vector<1x8x64xf32> to vector<8x64xf32>
    %c78 = arith.constant 78 : index
    %c0_480 = arith.constant 0 : index
    %845 = vector.load %arg7[%c78, %c0_480] : memref<100x64xf32, #tpu.memory_space<vmem>>, vector<1x64xf32>
    %846 = vector.shape_cast %845 : vector<1x64xf32> to vector<64xf32>
    %847 = vector.shape_cast %846 : vector<64xf32> to vector<1x64xf32>
    %848 = vector.broadcast %847 : vector<1x64xf32> to vector<8x64xf32>
    %849 = arith.mulf %844, %848 : vector<8x64xf32>
    %850 = arith.addf %842, %849 : vector<8x64xf32>
    %c3_481 = arith.constant 3 : index
    %c0_482 = arith.constant 0 : index
    %c32_483 = arith.constant 32 : index
    %851 = vector.load %arg10[%c3_481, %c0_482, %c32_483] : memref<4x12x96xf32, #tpu.memory_space<vmem>>, vector<1x8x64xf32>
    %852 = vector.shape_cast %851 : vector<1x8x64xf32> to vector<8x64xf32>
    %c79 = arith.constant 79 : index
    %c0_484 = arith.constant 0 : index
    %853 = vector.load %arg7[%c79, %c0_484] : memref<100x64xf32, #tpu.memory_space<vmem>>, vector<1x64xf32>
    %854 = vector.shape_cast %853 : vector<1x64xf32> to vector<64xf32>
    %855 = vector.shape_cast %854 : vector<64xf32> to vector<1x64xf32>
    %856 = vector.broadcast %855 : vector<1x64xf32> to vector<8x64xf32>
    %857 = arith.mulf %852, %856 : vector<8x64xf32>
    %858 = arith.addf %850, %857 : vector<8x64xf32>
    %c3_485 = arith.constant 3 : index
    %c1_486 = arith.constant 1 : index
    %c0_487 = arith.constant 0 : index
    %859 = vector.load %arg10[%c3_485, %c1_486, %c0_487] : memref<4x12x96xf32, #tpu.memory_space<vmem>>, vector<1x8x64xf32>
    %860 = vector.shape_cast %859 : vector<1x8x64xf32> to vector<8x64xf32>
    %c80 = arith.constant 80 : index
    %c0_488 = arith.constant 0 : index
    %861 = vector.load %arg7[%c80, %c0_488] : memref<100x64xf32, #tpu.memory_space<vmem>>, vector<1x64xf32>
    %862 = vector.shape_cast %861 : vector<1x64xf32> to vector<64xf32>
    %863 = vector.shape_cast %862 : vector<64xf32> to vector<1x64xf32>
    %864 = vector.broadcast %863 : vector<1x64xf32> to vector<8x64xf32>
    %865 = arith.mulf %860, %864 : vector<8x64xf32>
    %866 = arith.addf %858, %865 : vector<8x64xf32>
    %c3_489 = arith.constant 3 : index
    %c1_490 = arith.constant 1 : index
    %c8_491 = arith.constant 8 : index
    %867 = vector.load %arg10[%c3_489, %c1_490, %c8_491] : memref<4x12x96xf32, #tpu.memory_space<vmem>>, vector<1x8x64xf32>
    %868 = vector.shape_cast %867 : vector<1x8x64xf32> to vector<8x64xf32>
    %c81 = arith.constant 81 : index
    %c0_492 = arith.constant 0 : index
    %869 = vector.load %arg7[%c81, %c0_492] : memref<100x64xf32, #tpu.memory_space<vmem>>, vector<1x64xf32>
    %870 = vector.shape_cast %869 : vector<1x64xf32> to vector<64xf32>
    %871 = vector.shape_cast %870 : vector<64xf32> to vector<1x64xf32>
    %872 = vector.broadcast %871 : vector<1x64xf32> to vector<8x64xf32>
    %873 = arith.mulf %868, %872 : vector<8x64xf32>
    %874 = arith.addf %866, %873 : vector<8x64xf32>
    %c3_493 = arith.constant 3 : index
    %c1_494 = arith.constant 1 : index
    %c16_495 = arith.constant 16 : index
    %875 = vector.load %arg10[%c3_493, %c1_494, %c16_495] : memref<4x12x96xf32, #tpu.memory_space<vmem>>, vector<1x8x64xf32>
    %876 = vector.shape_cast %875 : vector<1x8x64xf32> to vector<8x64xf32>
    %c82 = arith.constant 82 : index
    %c0_496 = arith.constant 0 : index
    %877 = vector.load %arg7[%c82, %c0_496] : memref<100x64xf32, #tpu.memory_space<vmem>>, vector<1x64xf32>
    %878 = vector.shape_cast %877 : vector<1x64xf32> to vector<64xf32>
    %879 = vector.shape_cast %878 : vector<64xf32> to vector<1x64xf32>
    %880 = vector.broadcast %879 : vector<1x64xf32> to vector<8x64xf32>
    %881 = arith.mulf %876, %880 : vector<8x64xf32>
    %882 = arith.addf %874, %881 : vector<8x64xf32>
    %c3_497 = arith.constant 3 : index
    %c1_498 = arith.constant 1 : index
    %c24_499 = arith.constant 24 : index
    %883 = vector.load %arg10[%c3_497, %c1_498, %c24_499] : memref<4x12x96xf32, #tpu.memory_space<vmem>>, vector<1x8x64xf32>
    %884 = vector.shape_cast %883 : vector<1x8x64xf32> to vector<8x64xf32>
    %c83 = arith.constant 83 : index
    %c0_500 = arith.constant 0 : index
    %885 = vector.load %arg7[%c83, %c0_500] : memref<100x64xf32, #tpu.memory_space<vmem>>, vector<1x64xf32>
    %886 = vector.shape_cast %885 : vector<1x64xf32> to vector<64xf32>
    %887 = vector.shape_cast %886 : vector<64xf32> to vector<1x64xf32>
    %888 = vector.broadcast %887 : vector<1x64xf32> to vector<8x64xf32>
    %889 = arith.mulf %884, %888 : vector<8x64xf32>
    %890 = arith.addf %882, %889 : vector<8x64xf32>
    %c3_501 = arith.constant 3 : index
    %c1_502 = arith.constant 1 : index
    %c32_503 = arith.constant 32 : index
    %891 = vector.load %arg10[%c3_501, %c1_502, %c32_503] : memref<4x12x96xf32, #tpu.memory_space<vmem>>, vector<1x8x64xf32>
    %892 = vector.shape_cast %891 : vector<1x8x64xf32> to vector<8x64xf32>
    %c84 = arith.constant 84 : index
    %c0_504 = arith.constant 0 : index
    %893 = vector.load %arg7[%c84, %c0_504] : memref<100x64xf32, #tpu.memory_space<vmem>>, vector<1x64xf32>
    %894 = vector.shape_cast %893 : vector<1x64xf32> to vector<64xf32>
    %895 = vector.shape_cast %894 : vector<64xf32> to vector<1x64xf32>
    %896 = vector.broadcast %895 : vector<1x64xf32> to vector<8x64xf32>
    %897 = arith.mulf %892, %896 : vector<8x64xf32>
    %898 = arith.addf %890, %897 : vector<8x64xf32>
    %c3_505 = arith.constant 3 : index
    %c2_506 = arith.constant 2 : index
    %c0_507 = arith.constant 0 : index
    %899 = vector.load %arg10[%c3_505, %c2_506, %c0_507] : memref<4x12x96xf32, #tpu.memory_space<vmem>>, vector<1x8x64xf32>
    %900 = vector.shape_cast %899 : vector<1x8x64xf32> to vector<8x64xf32>
    %c85 = arith.constant 85 : index
    %c0_508 = arith.constant 0 : index
    %901 = vector.load %arg7[%c85, %c0_508] : memref<100x64xf32, #tpu.memory_space<vmem>>, vector<1x64xf32>
    %902 = vector.shape_cast %901 : vector<1x64xf32> to vector<64xf32>
    %903 = vector.shape_cast %902 : vector<64xf32> to vector<1x64xf32>
    %904 = vector.broadcast %903 : vector<1x64xf32> to vector<8x64xf32>
    %905 = arith.mulf %900, %904 : vector<8x64xf32>
    %906 = arith.addf %898, %905 : vector<8x64xf32>
    %c3_509 = arith.constant 3 : index
    %c2_510 = arith.constant 2 : index
    %c8_511 = arith.constant 8 : index
    %907 = vector.load %arg10[%c3_509, %c2_510, %c8_511] : memref<4x12x96xf32, #tpu.memory_space<vmem>>, vector<1x8x64xf32>
    %908 = vector.shape_cast %907 : vector<1x8x64xf32> to vector<8x64xf32>
    %c86 = arith.constant 86 : index
    %c0_512 = arith.constant 0 : index
    %909 = vector.load %arg7[%c86, %c0_512] : memref<100x64xf32, #tpu.memory_space<vmem>>, vector<1x64xf32>
    %910 = vector.shape_cast %909 : vector<1x64xf32> to vector<64xf32>
    %911 = vector.shape_cast %910 : vector<64xf32> to vector<1x64xf32>
    %912 = vector.broadcast %911 : vector<1x64xf32> to vector<8x64xf32>
    %913 = arith.mulf %908, %912 : vector<8x64xf32>
    %914 = arith.addf %906, %913 : vector<8x64xf32>
    %c3_513 = arith.constant 3 : index
    %c2_514 = arith.constant 2 : index
    %c16_515 = arith.constant 16 : index
    %915 = vector.load %arg10[%c3_513, %c2_514, %c16_515] : memref<4x12x96xf32, #tpu.memory_space<vmem>>, vector<1x8x64xf32>
    %916 = vector.shape_cast %915 : vector<1x8x64xf32> to vector<8x64xf32>
    %c87 = arith.constant 87 : index
    %c0_516 = arith.constant 0 : index
    %917 = vector.load %arg7[%c87, %c0_516] : memref<100x64xf32, #tpu.memory_space<vmem>>, vector<1x64xf32>
    %918 = vector.shape_cast %917 : vector<1x64xf32> to vector<64xf32>
    %919 = vector.shape_cast %918 : vector<64xf32> to vector<1x64xf32>
    %920 = vector.broadcast %919 : vector<1x64xf32> to vector<8x64xf32>
    %921 = arith.mulf %916, %920 : vector<8x64xf32>
    %922 = arith.addf %914, %921 : vector<8x64xf32>
    %c3_517 = arith.constant 3 : index
    %c2_518 = arith.constant 2 : index
    %c24_519 = arith.constant 24 : index
    %923 = vector.load %arg10[%c3_517, %c2_518, %c24_519] : memref<4x12x96xf32, #tpu.memory_space<vmem>>, vector<1x8x64xf32>
    %924 = vector.shape_cast %923 : vector<1x8x64xf32> to vector<8x64xf32>
    %c88 = arith.constant 88 : index
    %c0_520 = arith.constant 0 : index
    %925 = vector.load %arg7[%c88, %c0_520] : memref<100x64xf32, #tpu.memory_space<vmem>>, vector<1x64xf32>
    %926 = vector.shape_cast %925 : vector<1x64xf32> to vector<64xf32>
    %927 = vector.shape_cast %926 : vector<64xf32> to vector<1x64xf32>
    %928 = vector.broadcast %927 : vector<1x64xf32> to vector<8x64xf32>
    %929 = arith.mulf %924, %928 : vector<8x64xf32>
    %930 = arith.addf %922, %929 : vector<8x64xf32>
    %c3_521 = arith.constant 3 : index
    %c2_522 = arith.constant 2 : index
    %c32_523 = arith.constant 32 : index
    %931 = vector.load %arg10[%c3_521, %c2_522, %c32_523] : memref<4x12x96xf32, #tpu.memory_space<vmem>>, vector<1x8x64xf32>
    %932 = vector.shape_cast %931 : vector<1x8x64xf32> to vector<8x64xf32>
    %c89 = arith.constant 89 : index
    %c0_524 = arith.constant 0 : index
    %933 = vector.load %arg7[%c89, %c0_524] : memref<100x64xf32, #tpu.memory_space<vmem>>, vector<1x64xf32>
    %934 = vector.shape_cast %933 : vector<1x64xf32> to vector<64xf32>
    %935 = vector.shape_cast %934 : vector<64xf32> to vector<1x64xf32>
    %936 = vector.broadcast %935 : vector<1x64xf32> to vector<8x64xf32>
    %937 = arith.mulf %932, %936 : vector<8x64xf32>
    %938 = arith.addf %930, %937 : vector<8x64xf32>
    %c3_525 = arith.constant 3 : index
    %c3_526 = arith.constant 3 : index
    %c0_527 = arith.constant 0 : index
    %939 = vector.load %arg10[%c3_525, %c3_526, %c0_527] : memref<4x12x96xf32, #tpu.memory_space<vmem>>, vector<1x8x64xf32>
    %940 = vector.shape_cast %939 : vector<1x8x64xf32> to vector<8x64xf32>
    %c90 = arith.constant 90 : index
    %c0_528 = arith.constant 0 : index
    %941 = vector.load %arg7[%c90, %c0_528] : memref<100x64xf32, #tpu.memory_space<vmem>>, vector<1x64xf32>
    %942 = vector.shape_cast %941 : vector<1x64xf32> to vector<64xf32>
    %943 = vector.shape_cast %942 : vector<64xf32> to vector<1x64xf32>
    %944 = vector.broadcast %943 : vector<1x64xf32> to vector<8x64xf32>
    %945 = arith.mulf %940, %944 : vector<8x64xf32>
    %946 = arith.addf %938, %945 : vector<8x64xf32>
    %c3_529 = arith.constant 3 : index
    %c3_530 = arith.constant 3 : index
    %c8_531 = arith.constant 8 : index
    %947 = vector.load %arg10[%c3_529, %c3_530, %c8_531] : memref<4x12x96xf32, #tpu.memory_space<vmem>>, vector<1x8x64xf32>
    %948 = vector.shape_cast %947 : vector<1x8x64xf32> to vector<8x64xf32>
    %c91 = arith.constant 91 : index
    %c0_532 = arith.constant 0 : index
    %949 = vector.load %arg7[%c91, %c0_532] : memref<100x64xf32, #tpu.memory_space<vmem>>, vector<1x64xf32>
    %950 = vector.shape_cast %949 : vector<1x64xf32> to vector<64xf32>
    %951 = vector.shape_cast %950 : vector<64xf32> to vector<1x64xf32>
    %952 = vector.broadcast %951 : vector<1x64xf32> to vector<8x64xf32>
    %953 = arith.mulf %948, %952 : vector<8x64xf32>
    %954 = arith.addf %946, %953 : vector<8x64xf32>
    %c3_533 = arith.constant 3 : index
    %c3_534 = arith.constant 3 : index
    %c16_535 = arith.constant 16 : index
    %955 = vector.load %arg10[%c3_533, %c3_534, %c16_535] : memref<4x12x96xf32, #tpu.memory_space<vmem>>, vector<1x8x64xf32>
    %956 = vector.shape_cast %955 : vector<1x8x64xf32> to vector<8x64xf32>
    %c92 = arith.constant 92 : index
    %c0_536 = arith.constant 0 : index
    %957 = vector.load %arg7[%c92, %c0_536] : memref<100x64xf32, #tpu.memory_space<vmem>>, vector<1x64xf32>
    %958 = vector.shape_cast %957 : vector<1x64xf32> to vector<64xf32>
    %959 = vector.shape_cast %958 : vector<64xf32> to vector<1x64xf32>
    %960 = vector.broadcast %959 : vector<1x64xf32> to vector<8x64xf32>
    %961 = arith.mulf %956, %960 : vector<8x64xf32>
    %962 = arith.addf %954, %961 : vector<8x64xf32>
    %c3_537 = arith.constant 3 : index
    %c3_538 = arith.constant 3 : index
    %c24_539 = arith.constant 24 : index
    %963 = vector.load %arg10[%c3_537, %c3_538, %c24_539] : memref<4x12x96xf32, #tpu.memory_space<vmem>>, vector<1x8x64xf32>
    %964 = vector.shape_cast %963 : vector<1x8x64xf32> to vector<8x64xf32>
    %c93 = arith.constant 93 : index
    %c0_540 = arith.constant 0 : index
    %965 = vector.load %arg7[%c93, %c0_540] : memref<100x64xf32, #tpu.memory_space<vmem>>, vector<1x64xf32>
    %966 = vector.shape_cast %965 : vector<1x64xf32> to vector<64xf32>
    %967 = vector.shape_cast %966 : vector<64xf32> to vector<1x64xf32>
    %968 = vector.broadcast %967 : vector<1x64xf32> to vector<8x64xf32>
    %969 = arith.mulf %964, %968 : vector<8x64xf32>
    %970 = arith.addf %962, %969 : vector<8x64xf32>
    %c3_541 = arith.constant 3 : index
    %c3_542 = arith.constant 3 : index
    %c32_543 = arith.constant 32 : index
    %971 = vector.load %arg10[%c3_541, %c3_542, %c32_543] : memref<4x12x96xf32, #tpu.memory_space<vmem>>, vector<1x8x64xf32>
    %972 = vector.shape_cast %971 : vector<1x8x64xf32> to vector<8x64xf32>
    %c94 = arith.constant 94 : index
    %c0_544 = arith.constant 0 : index
    %973 = vector.load %arg7[%c94, %c0_544] : memref<100x64xf32, #tpu.memory_space<vmem>>, vector<1x64xf32>
    %974 = vector.shape_cast %973 : vector<1x64xf32> to vector<64xf32>
    %975 = vector.shape_cast %974 : vector<64xf32> to vector<1x64xf32>
    %976 = vector.broadcast %975 : vector<1x64xf32> to vector<8x64xf32>
    %977 = arith.mulf %972, %976 : vector<8x64xf32>
    %978 = arith.addf %970, %977 : vector<8x64xf32>
    %c3_545 = arith.constant 3 : index
    %c4_546 = arith.constant 4 : index
    %c0_547 = arith.constant 0 : index
    %979 = vector.load %arg10[%c3_545, %c4_546, %c0_547] : memref<4x12x96xf32, #tpu.memory_space<vmem>>, vector<1x8x64xf32>
    %980 = vector.shape_cast %979 : vector<1x8x64xf32> to vector<8x64xf32>
    %c95 = arith.constant 95 : index
    %c0_548 = arith.constant 0 : index
    %981 = vector.load %arg7[%c95, %c0_548] : memref<100x64xf32, #tpu.memory_space<vmem>>, vector<1x64xf32>
    %982 = vector.shape_cast %981 : vector<1x64xf32> to vector<64xf32>
    %983 = vector.shape_cast %982 : vector<64xf32> to vector<1x64xf32>
    %984 = vector.broadcast %983 : vector<1x64xf32> to vector<8x64xf32>
    %985 = arith.mulf %980, %984 : vector<8x64xf32>
    %986 = arith.addf %978, %985 : vector<8x64xf32>
    %c3_549 = arith.constant 3 : index
    %c4_550 = arith.constant 4 : index
    %c8_551 = arith.constant 8 : index
    %987 = vector.load %arg10[%c3_549, %c4_550, %c8_551] : memref<4x12x96xf32, #tpu.memory_space<vmem>>, vector<1x8x64xf32>
    %988 = vector.shape_cast %987 : vector<1x8x64xf32> to vector<8x64xf32>
    %c96 = arith.constant 96 : index
    %c0_552 = arith.constant 0 : index
    %989 = vector.load %arg7[%c96, %c0_552] : memref<100x64xf32, #tpu.memory_space<vmem>>, vector<1x64xf32>
    %990 = vector.shape_cast %989 : vector<1x64xf32> to vector<64xf32>
    %991 = vector.shape_cast %990 : vector<64xf32> to vector<1x64xf32>
    %992 = vector.broadcast %991 : vector<1x64xf32> to vector<8x64xf32>
    %993 = arith.mulf %988, %992 : vector<8x64xf32>
    %994 = arith.addf %986, %993 : vector<8x64xf32>
    %c3_553 = arith.constant 3 : index
    %c4_554 = arith.constant 4 : index
    %c16_555 = arith.constant 16 : index
    %995 = vector.load %arg10[%c3_553, %c4_554, %c16_555] : memref<4x12x96xf32, #tpu.memory_space<vmem>>, vector<1x8x64xf32>
    %996 = vector.shape_cast %995 : vector<1x8x64xf32> to vector<8x64xf32>
    %c97 = arith.constant 97 : index
    %c0_556 = arith.constant 0 : index
    %997 = vector.load %arg7[%c97, %c0_556] : memref<100x64xf32, #tpu.memory_space<vmem>>, vector<1x64xf32>
    %998 = vector.shape_cast %997 : vector<1x64xf32> to vector<64xf32>
    %999 = vector.shape_cast %998 : vector<64xf32> to vector<1x64xf32>
    %1000 = vector.broadcast %999 : vector<1x64xf32> to vector<8x64xf32>
    %1001 = arith.mulf %996, %1000 : vector<8x64xf32>
    %1002 = arith.addf %994, %1001 : vector<8x64xf32>
    %c3_557 = arith.constant 3 : index
    %c4_558 = arith.constant 4 : index
    %c24_559 = arith.constant 24 : index
    %1003 = vector.load %arg10[%c3_557, %c4_558, %c24_559] : memref<4x12x96xf32, #tpu.memory_space<vmem>>, vector<1x8x64xf32>
    %1004 = vector.shape_cast %1003 : vector<1x8x64xf32> to vector<8x64xf32>
    %c98 = arith.constant 98 : index
    %c0_560 = arith.constant 0 : index
    %1005 = vector.load %arg7[%c98, %c0_560] : memref<100x64xf32, #tpu.memory_space<vmem>>, vector<1x64xf32>
    %1006 = vector.shape_cast %1005 : vector<1x64xf32> to vector<64xf32>
    %1007 = vector.shape_cast %1006 : vector<64xf32> to vector<1x64xf32>
    %1008 = vector.broadcast %1007 : vector<1x64xf32> to vector<8x64xf32>
    %1009 = arith.mulf %1004, %1008 : vector<8x64xf32>
    %1010 = arith.addf %1002, %1009 : vector<8x64xf32>
    %c3_561 = arith.constant 3 : index
    %c4_562 = arith.constant 4 : index
    %c32_563 = arith.constant 32 : index
    %1011 = vector.load %arg10[%c3_561, %c4_562, %c32_563] : memref<4x12x96xf32, #tpu.memory_space<vmem>>, vector<1x8x64xf32>
    %1012 = vector.shape_cast %1011 : vector<1x8x64xf32> to vector<8x64xf32>
    %c99 = arith.constant 99 : index
    %c0_564 = arith.constant 0 : index
    %1013 = vector.load %arg7[%c99, %c0_564] : memref<100x64xf32, #tpu.memory_space<vmem>>, vector<1x64xf32>
    %1014 = vector.shape_cast %1013 : vector<1x64xf32> to vector<64xf32>
    %1015 = vector.shape_cast %1014 : vector<64xf32> to vector<1x64xf32>
    %1016 = vector.broadcast %1015 : vector<1x64xf32> to vector<8x64xf32>
    %1017 = arith.mulf %1012, %1016 : vector<8x64xf32>
    %1018 = arith.addf %1010, %1017 : vector<8x64xf32>
    %c3_565 = arith.constant 3 : index
    %c1_566 = arith.constant 1 : index
    %c8_567 = arith.constant 8 : index
    %1019 = vector.load %arg11[%c3_565, %c1_566, %c8_567] : memref<4x10x80xf32, #tpu.memory_space<vmem>>, vector<1x8x64xf32>
    %1020 = vector.shape_cast %1019 : vector<1x8x64xf32> to vector<8x64xf32>
    %1021 = vector.shape_cast %1018 : vector<8x64xf32> to vector<1x8x64xf32>
    tpu.vector_store %arg11[%c3_565, %c1_566, %c8_567], %1021 {strides = array<i32>} : memref<4x10x80xf32, #tpu.memory_space<vmem>>, vector<1x8x64xf32>,
    %c0_568 = arith.constant 0 : index
    %c0_569 = arith.constant 0 : index
    %c8_570 = arith.constant 8 : index
    %1022 = vector.load %arg11[%c0_568, %c0_569, %c8_570] : memref<4x10x80xf32, #tpu.memory_space<vmem>>, vector<1x10x64xf32>
    %1023 = vector.shape_cast %1022 : vector<1x10x64xf32> to vector<10x64xf32>
    %cst_571 = arith.constant 0.83651632 : f32
    %1024 = vector.broadcast %cst_571 : f32 to vector<10x64xf32>
    %1025 = arith.mulf %1023, %1024 : vector<10x64xf32>
    %c0_572 = arith.constant 0 : index
    %c0_573 = arith.constant 0 : index
    %c0_574 = arith.constant 0 : index
    %1026 = vector.load %arg11[%c0_572, %c0_573, %c0_574] : memref<4x10x80xf32, #tpu.memory_space<vmem>>, vector<1x10x64xf32>
    %1027 = vector.shape_cast %1026 : vector<1x10x64xf32> to vector<10x64xf32>
    %cst_575 = arith.constant -0.129409522 : f32
    %1028 = vector.broadcast %cst_575 : f32 to vector<10x64xf32>
    %1029 = arith.mulf %1027, %1028 : vector<10x64xf32>
    %1030 = arith.addf %1025, %1029 : vector<10x64xf32>
    %c1_576 = arith.constant 1 : index
    %c0_577 = arith.constant 0 : index
    %c8_578 = arith.constant 8 : index
    %1031 = vector.load %arg11[%c1_576, %c0_577, %c8_578] : memref<4x10x80xf32, #tpu.memory_space<vmem>>, vector<1x10x64xf32>
    %1032 = vector.shape_cast %1031 : vector<1x10x64xf32> to vector<10x64xf32>
    %cst_579 = arith.constant 0.83651632 : f32
    %1033 = vector.broadcast %cst_579 : f32 to vector<10x64xf32>
    %1034 = arith.mulf %1032, %1033 : vector<10x64xf32>
    %c1_580 = arith.constant 1 : index
    %c0_581 = arith.constant 0 : index
    %c0_582 = arith.constant 0 : index
    %1035 = vector.load %arg11[%c1_580, %c0_581, %c0_582] : memref<4x10x80xf32, #tpu.memory_space<vmem>>, vector<1x10x64xf32>
    %1036 = vector.shape_cast %1035 : vector<1x10x64xf32> to vector<10x64xf32>
    %cst_583 = arith.constant -0.129409522 : f32
    %1037 = vector.broadcast %cst_583 : f32 to vector<10x64xf32>
    %1038 = arith.mulf %1036, %1037 : vector<10x64xf32>
    %1039 = arith.addf %1034, %1038 : vector<10x64xf32>
    %c2_584 = arith.constant 2 : index
    %c0_585 = arith.constant 0 : index
    %c8_586 = arith.constant 8 : index
    %1040 = vector.load %arg11[%c2_584, %c0_585, %c8_586] : memref<4x10x80xf32, #tpu.memory_space<vmem>>, vector<1x10x64xf32>
    %1041 = vector.shape_cast %1040 : vector<1x10x64xf32> to vector<10x64xf32>
    %cst_587 = arith.constant -0.224143863 : f32
    %1042 = vector.broadcast %cst_587 : f32 to vector<10x64xf32>
    %1043 = arith.mulf %1041, %1042 : vector<10x64xf32>
    %c2_588 = arith.constant 2 : index
    %c0_589 = arith.constant 0 : index
    %c0_590 = arith.constant 0 : index
    %1044 = vector.load %arg11[%c2_588, %c0_589, %c0_590] : memref<4x10x80xf32, #tpu.memory_space<vmem>>, vector<1x10x64xf32>
    %1045 = vector.shape_cast %1044 : vector<1x10x64xf32> to vector<10x64xf32>
    %cst_591 = arith.constant -0.482962906 : f32
    %1046 = vector.broadcast %cst_591 : f32 to vector<10x64xf32>
    %1047 = arith.mulf %1045, %1046 : vector<10x64xf32>
    %1048 = arith.addf %1043, %1047 : vector<10x64xf32>
    %1049 = arith.addf %1030, %1048 : vector<10x64xf32>
    %c3_592 = arith.constant 3 : index
    %c0_593 = arith.constant 0 : index
    %c8_594 = arith.constant 8 : index
    %1050 = vector.load %arg11[%c3_592, %c0_593, %c8_594] : memref<4x10x80xf32, #tpu.memory_space<vmem>>, vector<1x10x64xf32>
    %1051 = vector.shape_cast %1050 : vector<1x10x64xf32> to vector<10x64xf32>
    %cst_595 = arith.constant -0.224143863 : f32
    %1052 = vector.broadcast %cst_595 : f32 to vector<10x64xf32>
    %1053 = arith.mulf %1051, %1052 : vector<10x64xf32>
    %c3_596 = arith.constant 3 : index
    %c0_597 = arith.constant 0 : index
    %c0_598 = arith.constant 0 : index
    %1054 = vector.load %arg11[%c3_596, %c0_597, %c0_598] : memref<4x10x80xf32, #tpu.memory_space<vmem>>, vector<1x10x64xf32>
    %1055 = vector.shape_cast %1054 : vector<1x10x64xf32> to vector<10x64xf32>
    %cst_599 = arith.constant -0.482962906 : f32
    %1056 = vector.broadcast %cst_599 : f32 to vector<10x64xf32>
    %1057 = arith.mulf %1055, %1056 : vector<10x64xf32>
    %1058 = arith.addf %1053, %1057 : vector<10x64xf32>
    %1059 = arith.addf %1039, %1058 : vector<10x64xf32>
    %c0_600 = arith.constant 0 : index
    %c0_601 = arith.constant 0 : index
    %c16_602 = arith.constant 16 : index
    %1060 = vector.load %arg11[%c0_600, %c0_601, %c16_602] : memref<4x10x80xf32, #tpu.memory_space<vmem>>, vector<1x10x64xf32>
    %1061 = vector.shape_cast %1060 : vector<1x10x64xf32> to vector<10x64xf32>
    %cst_603 = arith.constant 0.482962906 : f32
    %1062 = vector.broadcast %cst_603 : f32 to vector<10x64xf32>
    %1063 = arith.mulf %1061, %1062 : vector<10x64xf32>
    %c0_604 = arith.constant 0 : index
    %c0_605 = arith.constant 0 : index
    %c8_606 = arith.constant 8 : index
    %1064 = vector.load %arg11[%c0_604, %c0_605, %c8_606] : memref<4x10x80xf32, #tpu.memory_space<vmem>>, vector<1x10x64xf32>
    %1065 = vector.shape_cast %1064 : vector<1x10x64xf32> to vector<10x64xf32>
    %cst_607 = arith.constant 0.224143863 : f32
    %1066 = vector.broadcast %cst_607 : f32 to vector<10x64xf32>
    %1067 = arith.mulf %1065, %1066 : vector<10x64xf32>
    %1068 = arith.addf %1063, %1067 : vector<10x64xf32>
    %c1_608 = arith.constant 1 : index
    %c0_609 = arith.constant 0 : index
    %c16_610 = arith.constant 16 : index
    %1069 = vector.load %arg11[%c1_608, %c0_609, %c16_610] : memref<4x10x80xf32, #tpu.memory_space<vmem>>, vector<1x10x64xf32>
    %1070 = vector.shape_cast %1069 : vector<1x10x64xf32> to vector<10x64xf32>
    %cst_611 = arith.constant 0.482962906 : f32
    %1071 = vector.broadcast %cst_611 : f32 to vector<10x64xf32>
    %1072 = arith.mulf %1070, %1071 : vector<10x64xf32>
    %c1_612 = arith.constant 1 : index
    %c0_613 = arith.constant 0 : index
    %c8_614 = arith.constant 8 : index
    %1073 = vector.load %arg11[%c1_612, %c0_613, %c8_614] : memref<4x10x80xf32, #tpu.memory_space<vmem>>, vector<1x10x64xf32>
    %1074 = vector.shape_cast %1073 : vector<1x10x64xf32> to vector<10x64xf32>
    %cst_615 = arith.constant 0.224143863 : f32
    %1075 = vector.broadcast %cst_615 : f32 to vector<10x64xf32>
    %1076 = arith.mulf %1074, %1075 : vector<10x64xf32>
    %1077 = arith.addf %1072, %1076 : vector<10x64xf32>
    %c2_616 = arith.constant 2 : index
    %c0_617 = arith.constant 0 : index
    %c16_618 = arith.constant 16 : index
    %1078 = vector.load %arg11[%c2_616, %c0_617, %c16_618] : memref<4x10x80xf32, #tpu.memory_space<vmem>>, vector<1x10x64xf32>
    %1079 = vector.shape_cast %1078 : vector<1x10x64xf32> to vector<10x64xf32>
    %cst_619 = arith.constant -0.129409522 : f32
    %1080 = vector.broadcast %cst_619 : f32 to vector<10x64xf32>
    %1081 = arith.mulf %1079, %1080 : vector<10x64xf32>
    %c2_620 = arith.constant 2 : index
    %c0_621 = arith.constant 0 : index
    %c8_622 = arith.constant 8 : index
    %1082 = vector.load %arg11[%c2_620, %c0_621, %c8_622] : memref<4x10x80xf32, #tpu.memory_space<vmem>>, vector<1x10x64xf32>
    %1083 = vector.shape_cast %1082 : vector<1x10x64xf32> to vector<10x64xf32>
    %cst_623 = arith.constant 0.83651632 : f32
    %1084 = vector.broadcast %cst_623 : f32 to vector<10x64xf32>
    %1085 = arith.mulf %1083, %1084 : vector<10x64xf32>
    %1086 = arith.addf %1081, %1085 : vector<10x64xf32>
    %1087 = arith.addf %1068, %1086 : vector<10x64xf32>
    %c3_624 = arith.constant 3 : index
    %c0_625 = arith.constant 0 : index
    %c16_626 = arith.constant 16 : index
    %1088 = vector.load %arg11[%c3_624, %c0_625, %c16_626] : memref<4x10x80xf32, #tpu.memory_space<vmem>>, vector<1x10x64xf32>
    %1089 = vector.shape_cast %1088 : vector<1x10x64xf32> to vector<10x64xf32>
    %cst_627 = arith.constant -0.129409522 : f32
    %1090 = vector.broadcast %cst_627 : f32 to vector<10x64xf32>
    %1091 = arith.mulf %1089, %1090 : vector<10x64xf32>
    %c3_628 = arith.constant 3 : index
    %c0_629 = arith.constant 0 : index
    %c8_630 = arith.constant 8 : index
    %1092 = vector.load %arg11[%c3_628, %c0_629, %c8_630] : memref<4x10x80xf32, #tpu.memory_space<vmem>>, vector<1x10x64xf32>
    %1093 = vector.shape_cast %1092 : vector<1x10x64xf32> to vector<10x64xf32>
    %cst_631 = arith.constant 0.83651632 : f32
    %1094 = vector.broadcast %cst_631 : f32 to vector<10x64xf32>
    %1095 = arith.mulf %1093, %1094 : vector<10x64xf32>
    %1096 = arith.addf %1091, %1095 : vector<10x64xf32>
    %1097 = arith.addf %1077, %1096 : vector<10x64xf32>
    %1098 = vector.extract_strided_slice %1049 {offsets = [1, 0], sizes = [8, 64], strides = [1, 1]} : vector<10x64xf32> to vector<8x64xf32>
    %cst_632 = arith.constant 0.83651632 : f32
    %1099 = vector.broadcast %cst_632 : f32 to vector<8x64xf32>
    %1100 = arith.mulf %1098, %1099 : vector<8x64xf32>
    %1101 = vector.extract_strided_slice %1059 {offsets = [1, 0], sizes = [8, 64], strides = [1, 1]} : vector<10x64xf32> to vector<8x64xf32>
    %cst_633 = arith.constant -0.224143863 : f32
    %1102 = vector.broadcast %cst_633 : f32 to vector<8x64xf32>
    %1103 = arith.mulf %1101, %1102 : vector<8x64xf32>
    %1104 = arith.addf %1100, %1103 : vector<8x64xf32>
    %1105 = vector.extract_strided_slice %1049 {offsets = [0, 0], sizes = [8, 64], strides = [1, 1]} : vector<10x64xf32> to vector<8x64xf32>
    %cst_634 = arith.constant -0.129409522 : f32
    %1106 = vector.broadcast %cst_634 : f32 to vector<8x64xf32>
    %1107 = arith.mulf %1105, %1106 : vector<8x64xf32>
    %1108 = vector.extract_strided_slice %1059 {offsets = [0, 0], sizes = [8, 64], strides = [1, 1]} : vector<10x64xf32> to vector<8x64xf32>
    %cst_635 = arith.constant -0.482962906 : f32
    %1109 = vector.broadcast %cst_635 : f32 to vector<8x64xf32>
    %1110 = arith.mulf %1108, %1109 : vector<8x64xf32>
    %1111 = arith.addf %1107, %1110 : vector<8x64xf32>
    %1112 = arith.addf %1104, %1111 : vector<8x64xf32>
    %c0_636 = arith.constant 0 : index
    %c0_637 = arith.constant 0 : index
    %c0_638 = arith.constant 0 : index
    %1113 = vector.load %arg9[%c0_636, %c0_637, %c0_638] : memref<4x10x80xf32, #tpu.memory_space<vmem>>, vector<1x8x64xf32>
    %1114 = vector.shape_cast %1113 : vector<1x8x64xf32> to vector<8x64xf32>
    %c0_639 = arith.constant 0 : index
    %c0_640 = arith.constant 0 : index
    %1115 = vector.load %arg5[%c0_639, %c0_640] : memref<25x64xf32, #tpu.memory_space<vmem>>, vector<1x64xf32>
    %1116 = vector.shape_cast %1115 : vector<1x64xf32> to vector<64xf32>
    %1117 = vector.shape_cast %1116 : vector<64xf32> to vector<1x64xf32>
    %1118 = vector.broadcast %1117 : vector<1x64xf32> to vector<8x64xf32>
    %1119 = arith.mulf %1114, %1118 : vector<8x64xf32>
    %1120 = arith.addf %1112, %1119 : vector<8x64xf32>
    %c1_641 = arith.constant 1 : index
    %c0_642 = arith.constant 0 : index
    %c0_643 = arith.constant 0 : index
    %1121 = vector.load %arg9[%c1_641, %c0_642, %c0_643] : memref<4x10x80xf32, #tpu.memory_space<vmem>>, vector<1x8x64xf32>
    %1122 = vector.shape_cast %1121 : vector<1x8x64xf32> to vector<8x64xf32>
    %c1_644 = arith.constant 1 : index
    %c0_645 = arith.constant 0 : index
    %1123 = vector.load %arg5[%c1_644, %c0_645] : memref<25x64xf32, #tpu.memory_space<vmem>>, vector<1x64xf32>
    %1124 = vector.shape_cast %1123 : vector<1x64xf32> to vector<64xf32>
    %1125 = vector.shape_cast %1124 : vector<64xf32> to vector<1x64xf32>
    %1126 = vector.broadcast %1125 : vector<1x64xf32> to vector<8x64xf32>
    %1127 = arith.mulf %1122, %1126 : vector<8x64xf32>
    %1128 = arith.addf %1120, %1127 : vector<8x64xf32>
    %c0_646 = arith.constant 0 : index
    %c0_647 = arith.constant 0 : index
    %c8_648 = arith.constant 8 : index
    %1129 = vector.load %arg9[%c0_646, %c0_647, %c8_648] : memref<4x10x80xf32, #tpu.memory_space<vmem>>, vector<1x8x64xf32>
    %1130 = vector.shape_cast %1129 : vector<1x8x64xf32> to vector<8x64xf32>
    %c2_649 = arith.constant 2 : index
    %c0_650 = arith.constant 0 : index
    %1131 = vector.load %arg5[%c2_649, %c0_650] : memref<25x64xf32, #tpu.memory_space<vmem>>, vector<1x64xf32>
    %1132 = vector.shape_cast %1131 : vector<1x64xf32> to vector<64xf32>
    %1133 = vector.shape_cast %1132 : vector<64xf32> to vector<1x64xf32>
    %1134 = vector.broadcast %1133 : vector<1x64xf32> to vector<8x64xf32>
    %1135 = arith.mulf %1130, %1134 : vector<8x64xf32>
    %1136 = arith.addf %1128, %1135 : vector<8x64xf32>
    %c1_651 = arith.constant 1 : index
    %c0_652 = arith.constant 0 : index
    %c8_653 = arith.constant 8 : index
    %1137 = vector.load %arg9[%c1_651, %c0_652, %c8_653] : memref<4x10x80xf32, #tpu.memory_space<vmem>>, vector<1x8x64xf32>
    %1138 = vector.shape_cast %1137 : vector<1x8x64xf32> to vector<8x64xf32>
    %c3_654 = arith.constant 3 : index
    %c0_655 = arith.constant 0 : index
    %1139 = vector.load %arg5[%c3_654, %c0_655] : memref<25x64xf32, #tpu.memory_space<vmem>>, vector<1x64xf32>
    %1140 = vector.shape_cast %1139 : vector<1x64xf32> to vector<64xf32>
    %1141 = vector.shape_cast %1140 : vector<64xf32> to vector<1x64xf32>
    %1142 = vector.broadcast %1141 : vector<1x64xf32> to vector<8x64xf32>
    %1143 = arith.mulf %1138, %1142 : vector<8x64xf32>
    %1144 = arith.addf %1136, %1143 : vector<8x64xf32>
    %c0_656 = arith.constant 0 : index
    %c0_657 = arith.constant 0 : index
    %c16_658 = arith.constant 16 : index
    %1145 = vector.load %arg9[%c0_656, %c0_657, %c16_658] : memref<4x10x80xf32, #tpu.memory_space<vmem>>, vector<1x8x64xf32>
    %1146 = vector.shape_cast %1145 : vector<1x8x64xf32> to vector<8x64xf32>
    %c4_659 = arith.constant 4 : index
    %c0_660 = arith.constant 0 : index
    %1147 = vector.load %arg5[%c4_659, %c0_660] : memref<25x64xf32, #tpu.memory_space<vmem>>, vector<1x64xf32>
    %1148 = vector.shape_cast %1147 : vector<1x64xf32> to vector<64xf32>
    %1149 = vector.shape_cast %1148 : vector<64xf32> to vector<1x64xf32>
    %1150 = vector.broadcast %1149 : vector<1x64xf32> to vector<8x64xf32>
    %1151 = arith.mulf %1146, %1150 : vector<8x64xf32>
    %1152 = arith.addf %1144, %1151 : vector<8x64xf32>
    %c2_661 = arith.constant 2 : index
    %c0_662 = arith.constant 0 : index
    %c0_663 = arith.constant 0 : index
    %1153 = vector.load %arg9[%c2_661, %c0_662, %c0_663] : memref<4x10x80xf32, #tpu.memory_space<vmem>>, vector<1x8x64xf32>
    %1154 = vector.shape_cast %1153 : vector<1x8x64xf32> to vector<8x64xf32>
    %c5_664 = arith.constant 5 : index
    %c0_665 = arith.constant 0 : index
    %1155 = vector.load %arg5[%c5_664, %c0_665] : memref<25x64xf32, #tpu.memory_space<vmem>>, vector<1x64xf32>
    %1156 = vector.shape_cast %1155 : vector<1x64xf32> to vector<64xf32>
    %1157 = vector.shape_cast %1156 : vector<64xf32> to vector<1x64xf32>
    %1158 = vector.broadcast %1157 : vector<1x64xf32> to vector<8x64xf32>
    %1159 = arith.mulf %1154, %1158 : vector<8x64xf32>
    %1160 = arith.addf %1152, %1159 : vector<8x64xf32>
    %c3_666 = arith.constant 3 : index
    %c0_667 = arith.constant 0 : index
    %c0_668 = arith.constant 0 : index
    %1161 = vector.load %arg9[%c3_666, %c0_667, %c0_668] : memref<4x10x80xf32, #tpu.memory_space<vmem>>, vector<1x8x64xf32>
    %1162 = vector.shape_cast %1161 : vector<1x8x64xf32> to vector<8x64xf32>
    %c6_669 = arith.constant 6 : index
    %c0_670 = arith.constant 0 : index
    %1163 = vector.load %arg5[%c6_669, %c0_670] : memref<25x64xf32, #tpu.memory_space<vmem>>, vector<1x64xf32>
    %1164 = vector.shape_cast %1163 : vector<1x64xf32> to vector<64xf32>
    %1165 = vector.shape_cast %1164 : vector<64xf32> to vector<1x64xf32>
    %1166 = vector.broadcast %1165 : vector<1x64xf32> to vector<8x64xf32>
    %1167 = arith.mulf %1162, %1166 : vector<8x64xf32>
    %1168 = arith.addf %1160, %1167 : vector<8x64xf32>
    %c2_671 = arith.constant 2 : index
    %c0_672 = arith.constant 0 : index
    %c8_673 = arith.constant 8 : index
    %1169 = vector.load %arg9[%c2_671, %c0_672, %c8_673] : memref<4x10x80xf32, #tpu.memory_space<vmem>>, vector<1x8x64xf32>
    %1170 = vector.shape_cast %1169 : vector<1x8x64xf32> to vector<8x64xf32>
    %c7_674 = arith.constant 7 : index
    %c0_675 = arith.constant 0 : index
    %1171 = vector.load %arg5[%c7_674, %c0_675] : memref<25x64xf32, #tpu.memory_space<vmem>>, vector<1x64xf32>
    %1172 = vector.shape_cast %1171 : vector<1x64xf32> to vector<64xf32>
    %1173 = vector.shape_cast %1172 : vector<64xf32> to vector<1x64xf32>
    %1174 = vector.broadcast %1173 : vector<1x64xf32> to vector<8x64xf32>
    %1175 = arith.mulf %1170, %1174 : vector<8x64xf32>
    %1176 = arith.addf %1168, %1175 : vector<8x64xf32>
    %c3_676 = arith.constant 3 : index
    %c0_677 = arith.constant 0 : index
    %c8_678 = arith.constant 8 : index
    %1177 = vector.load %arg9[%c3_676, %c0_677, %c8_678] : memref<4x10x80xf32, #tpu.memory_space<vmem>>, vector<1x8x64xf32>
    %1178 = vector.shape_cast %1177 : vector<1x8x64xf32> to vector<8x64xf32>
    %c8_679 = arith.constant 8 : index
    %c0_680 = arith.constant 0 : index
    %1179 = vector.load %arg5[%c8_679, %c0_680] : memref<25x64xf32, #tpu.memory_space<vmem>>, vector<1x64xf32>
    %1180 = vector.shape_cast %1179 : vector<1x64xf32> to vector<64xf32>
    %1181 = vector.shape_cast %1180 : vector<64xf32> to vector<1x64xf32>
    %1182 = vector.broadcast %1181 : vector<1x64xf32> to vector<8x64xf32>
    %1183 = arith.mulf %1178, %1182 : vector<8x64xf32>
    %1184 = arith.addf %1176, %1183 : vector<8x64xf32>
    %c2_681 = arith.constant 2 : index
    %c0_682 = arith.constant 0 : index
    %c16_683 = arith.constant 16 : index
    %1185 = vector.load %arg9[%c2_681, %c0_682, %c16_683] : memref<4x10x80xf32, #tpu.memory_space<vmem>>, vector<1x8x64xf32>
    %1186 = vector.shape_cast %1185 : vector<1x8x64xf32> to vector<8x64xf32>
    %c9_684 = arith.constant 9 : index
    %c0_685 = arith.constant 0 : index
    %1187 = vector.load %arg5[%c9_684, %c0_685] : memref<25x64xf32, #tpu.memory_space<vmem>>, vector<1x64xf32>
    %1188 = vector.shape_cast %1187 : vector<1x64xf32> to vector<64xf32>
    %1189 = vector.shape_cast %1188 : vector<64xf32> to vector<1x64xf32>
    %1190 = vector.broadcast %1189 : vector<1x64xf32> to vector<8x64xf32>
    %1191 = arith.mulf %1186, %1190 : vector<8x64xf32>
    %1192 = arith.addf %1184, %1191 : vector<8x64xf32>
    %c0_686 = arith.constant 0 : index
    %c1_687 = arith.constant 1 : index
    %c0_688 = arith.constant 0 : index
    %1193 = vector.load %arg9[%c0_686, %c1_687, %c0_688] : memref<4x10x80xf32, #tpu.memory_space<vmem>>, vector<1x8x64xf32>
    %1194 = vector.shape_cast %1193 : vector<1x8x64xf32> to vector<8x64xf32>
    %c10_689 = arith.constant 10 : index
    %c0_690 = arith.constant 0 : index
    %1195 = vector.load %arg5[%c10_689, %c0_690] : memref<25x64xf32, #tpu.memory_space<vmem>>, vector<1x64xf32>
    %1196 = vector.shape_cast %1195 : vector<1x64xf32> to vector<64xf32>
    %1197 = vector.shape_cast %1196 : vector<64xf32> to vector<1x64xf32>
    %1198 = vector.broadcast %1197 : vector<1x64xf32> to vector<8x64xf32>
    %1199 = arith.mulf %1194, %1198 : vector<8x64xf32>
    %1200 = arith.addf %1192, %1199 : vector<8x64xf32>
    %c1_691 = arith.constant 1 : index
    %c1_692 = arith.constant 1 : index
    %c0_693 = arith.constant 0 : index
    %1201 = vector.load %arg9[%c1_691, %c1_692, %c0_693] : memref<4x10x80xf32, #tpu.memory_space<vmem>>, vector<1x8x64xf32>
    %1202 = vector.shape_cast %1201 : vector<1x8x64xf32> to vector<8x64xf32>
    %c11_694 = arith.constant 11 : index
    %c0_695 = arith.constant 0 : index
    %1203 = vector.load %arg5[%c11_694, %c0_695] : memref<25x64xf32, #tpu.memory_space<vmem>>, vector<1x64xf32>
    %1204 = vector.shape_cast %1203 : vector<1x64xf32> to vector<64xf32>
    %1205 = vector.shape_cast %1204 : vector<64xf32> to vector<1x64xf32>
    %1206 = vector.broadcast %1205 : vector<1x64xf32> to vector<8x64xf32>
    %1207 = arith.mulf %1202, %1206 : vector<8x64xf32>
    %1208 = arith.addf %1200, %1207 : vector<8x64xf32>
    %c0_696 = arith.constant 0 : index
    %c1_697 = arith.constant 1 : index
    %c8_698 = arith.constant 8 : index
    %1209 = vector.load %arg9[%c0_696, %c1_697, %c8_698] : memref<4x10x80xf32, #tpu.memory_space<vmem>>, vector<1x8x64xf32>
    %1210 = vector.shape_cast %1209 : vector<1x8x64xf32> to vector<8x64xf32>
    %c12_699 = arith.constant 12 : index
    %c0_700 = arith.constant 0 : index
    %1211 = vector.load %arg5[%c12_699, %c0_700] : memref<25x64xf32, #tpu.memory_space<vmem>>, vector<1x64xf32>
    %1212 = vector.shape_cast %1211 : vector<1x64xf32> to vector<64xf32>
    %1213 = vector.shape_cast %1212 : vector<64xf32> to vector<1x64xf32>
    %1214 = vector.broadcast %1213 : vector<1x64xf32> to vector<8x64xf32>
    %1215 = arith.mulf %1210, %1214 : vector<8x64xf32>
    %1216 = arith.addf %1208, %1215 : vector<8x64xf32>
    %c1_701 = arith.constant 1 : index
    %c1_702 = arith.constant 1 : index
    %c8_703 = arith.constant 8 : index
    %1217 = vector.load %arg9[%c1_701, %c1_702, %c8_703] : memref<4x10x80xf32, #tpu.memory_space<vmem>>, vector<1x8x64xf32>
    %1218 = vector.shape_cast %1217 : vector<1x8x64xf32> to vector<8x64xf32>
    %c13_704 = arith.constant 13 : index
    %c0_705 = arith.constant 0 : index
    %1219 = vector.load %arg5[%c13_704, %c0_705] : memref<25x64xf32, #tpu.memory_space<vmem>>, vector<1x64xf32>
    %1220 = vector.shape_cast %1219 : vector<1x64xf32> to vector<64xf32>
    %1221 = vector.shape_cast %1220 : vector<64xf32> to vector<1x64xf32>
    %1222 = vector.broadcast %1221 : vector<1x64xf32> to vector<8x64xf32>
    %1223 = arith.mulf %1218, %1222 : vector<8x64xf32>
    %1224 = arith.addf %1216, %1223 : vector<8x64xf32>
    %c0_706 = arith.constant 0 : index
    %c1_707 = arith.constant 1 : index
    %c16_708 = arith.constant 16 : index
    %1225 = vector.load %arg9[%c0_706, %c1_707, %c16_708] : memref<4x10x80xf32, #tpu.memory_space<vmem>>, vector<1x8x64xf32>
    %1226 = vector.shape_cast %1225 : vector<1x8x64xf32> to vector<8x64xf32>
    %c14_709 = arith.constant 14 : index
    %c0_710 = arith.constant 0 : index
    %1227 = vector.load %arg5[%c14_709, %c0_710] : memref<25x64xf32, #tpu.memory_space<vmem>>, vector<1x64xf32>
    %1228 = vector.shape_cast %1227 : vector<1x64xf32> to vector<64xf32>
    %1229 = vector.shape_cast %1228 : vector<64xf32> to vector<1x64xf32>
    %1230 = vector.broadcast %1229 : vector<1x64xf32> to vector<8x64xf32>
    %1231 = arith.mulf %1226, %1230 : vector<8x64xf32>
    %1232 = arith.addf %1224, %1231 : vector<8x64xf32>
    %c2_711 = arith.constant 2 : index
    %c1_712 = arith.constant 1 : index
    %c0_713 = arith.constant 0 : index
    %1233 = vector.load %arg9[%c2_711, %c1_712, %c0_713] : memref<4x10x80xf32, #tpu.memory_space<vmem>>, vector<1x8x64xf32>
    %1234 = vector.shape_cast %1233 : vector<1x8x64xf32> to vector<8x64xf32>
    %c15_714 = arith.constant 15 : index
    %c0_715 = arith.constant 0 : index
    %1235 = vector.load %arg5[%c15_714, %c0_715] : memref<25x64xf32, #tpu.memory_space<vmem>>, vector<1x64xf32>
    %1236 = vector.shape_cast %1235 : vector<1x64xf32> to vector<64xf32>
    %1237 = vector.shape_cast %1236 : vector<64xf32> to vector<1x64xf32>
    %1238 = vector.broadcast %1237 : vector<1x64xf32> to vector<8x64xf32>
    %1239 = arith.mulf %1234, %1238 : vector<8x64xf32>
    %1240 = arith.addf %1232, %1239 : vector<8x64xf32>
    %c3_716 = arith.constant 3 : index
    %c1_717 = arith.constant 1 : index
    %c0_718 = arith.constant 0 : index
    %1241 = vector.load %arg9[%c3_716, %c1_717, %c0_718] : memref<4x10x80xf32, #tpu.memory_space<vmem>>, vector<1x8x64xf32>
    %1242 = vector.shape_cast %1241 : vector<1x8x64xf32> to vector<8x64xf32>
    %c16_719 = arith.constant 16 : index
    %c0_720 = arith.constant 0 : index
    %1243 = vector.load %arg5[%c16_719, %c0_720] : memref<25x64xf32, #tpu.memory_space<vmem>>, vector<1x64xf32>
    %1244 = vector.shape_cast %1243 : vector<1x64xf32> to vector<64xf32>
    %1245 = vector.shape_cast %1244 : vector<64xf32> to vector<1x64xf32>
    %1246 = vector.broadcast %1245 : vector<1x64xf32> to vector<8x64xf32>
    %1247 = arith.mulf %1242, %1246 : vector<8x64xf32>
    %1248 = arith.addf %1240, %1247 : vector<8x64xf32>
    %c2_721 = arith.constant 2 : index
    %c1_722 = arith.constant 1 : index
    %c8_723 = arith.constant 8 : index
    %1249 = vector.load %arg9[%c2_721, %c1_722, %c8_723] : memref<4x10x80xf32, #tpu.memory_space<vmem>>, vector<1x8x64xf32>
    %1250 = vector.shape_cast %1249 : vector<1x8x64xf32> to vector<8x64xf32>
    %c17_724 = arith.constant 17 : index
    %c0_725 = arith.constant 0 : index
    %1251 = vector.load %arg5[%c17_724, %c0_725] : memref<25x64xf32, #tpu.memory_space<vmem>>, vector<1x64xf32>
    %1252 = vector.shape_cast %1251 : vector<1x64xf32> to vector<64xf32>
    %1253 = vector.shape_cast %1252 : vector<64xf32> to vector<1x64xf32>
    %1254 = vector.broadcast %1253 : vector<1x64xf32> to vector<8x64xf32>
    %1255 = arith.mulf %1250, %1254 : vector<8x64xf32>
    %1256 = arith.addf %1248, %1255 : vector<8x64xf32>
    %c3_726 = arith.constant 3 : index
    %c1_727 = arith.constant 1 : index
    %c8_728 = arith.constant 8 : index
    %1257 = vector.load %arg9[%c3_726, %c1_727, %c8_728] : memref<4x10x80xf32, #tpu.memory_space<vmem>>, vector<1x8x64xf32>
    %1258 = vector.shape_cast %1257 : vector<1x8x64xf32> to vector<8x64xf32>
    %c18_729 = arith.constant 18 : index
    %c0_730 = arith.constant 0 : index
    %1259 = vector.load %arg5[%c18_729, %c0_730] : memref<25x64xf32, #tpu.memory_space<vmem>>, vector<1x64xf32>
    %1260 = vector.shape_cast %1259 : vector<1x64xf32> to vector<64xf32>
    %1261 = vector.shape_cast %1260 : vector<64xf32> to vector<1x64xf32>
    %1262 = vector.broadcast %1261 : vector<1x64xf32> to vector<8x64xf32>
    %1263 = arith.mulf %1258, %1262 : vector<8x64xf32>
    %1264 = arith.addf %1256, %1263 : vector<8x64xf32>
    %c2_731 = arith.constant 2 : index
    %c1_732 = arith.constant 1 : index
    %c16_733 = arith.constant 16 : index
    %1265 = vector.load %arg9[%c2_731, %c1_732, %c16_733] : memref<4x10x80xf32, #tpu.memory_space<vmem>>, vector<1x8x64xf32>
    %1266 = vector.shape_cast %1265 : vector<1x8x64xf32> to vector<8x64xf32>
    %c19_734 = arith.constant 19 : index
    %c0_735 = arith.constant 0 : index
    %1267 = vector.load %arg5[%c19_734, %c0_735] : memref<25x64xf32, #tpu.memory_space<vmem>>, vector<1x64xf32>
    %1268 = vector.shape_cast %1267 : vector<1x64xf32> to vector<64xf32>
    %1269 = vector.shape_cast %1268 : vector<64xf32> to vector<1x64xf32>
    %1270 = vector.broadcast %1269 : vector<1x64xf32> to vector<8x64xf32>
    %1271 = arith.mulf %1266, %1270 : vector<8x64xf32>
    %1272 = arith.addf %1264, %1271 : vector<8x64xf32>
    %c0_736 = arith.constant 0 : index
    %c2_737 = arith.constant 2 : index
    %c0_738 = arith.constant 0 : index
    %1273 = vector.load %arg9[%c0_736, %c2_737, %c0_738] : memref<4x10x80xf32, #tpu.memory_space<vmem>>, vector<1x8x64xf32>
    %1274 = vector.shape_cast %1273 : vector<1x8x64xf32> to vector<8x64xf32>
    %c20_739 = arith.constant 20 : index
    %c0_740 = arith.constant 0 : index
    %1275 = vector.load %arg5[%c20_739, %c0_740] : memref<25x64xf32, #tpu.memory_space<vmem>>, vector<1x64xf32>
    %1276 = vector.shape_cast %1275 : vector<1x64xf32> to vector<64xf32>
    %1277 = vector.shape_cast %1276 : vector<64xf32> to vector<1x64xf32>
    %1278 = vector.broadcast %1277 : vector<1x64xf32> to vector<8x64xf32>
    %1279 = arith.mulf %1274, %1278 : vector<8x64xf32>
    %1280 = arith.addf %1272, %1279 : vector<8x64xf32>
    %c1_741 = arith.constant 1 : index
    %c2_742 = arith.constant 2 : index
    %c0_743 = arith.constant 0 : index
    %1281 = vector.load %arg9[%c1_741, %c2_742, %c0_743] : memref<4x10x80xf32, #tpu.memory_space<vmem>>, vector<1x8x64xf32>
    %1282 = vector.shape_cast %1281 : vector<1x8x64xf32> to vector<8x64xf32>
    %c21_744 = arith.constant 21 : index
    %c0_745 = arith.constant 0 : index
    %1283 = vector.load %arg5[%c21_744, %c0_745] : memref<25x64xf32, #tpu.memory_space<vmem>>, vector<1x64xf32>
    %1284 = vector.shape_cast %1283 : vector<1x64xf32> to vector<64xf32>
    %1285 = vector.shape_cast %1284 : vector<64xf32> to vector<1x64xf32>
    %1286 = vector.broadcast %1285 : vector<1x64xf32> to vector<8x64xf32>
    %1287 = arith.mulf %1282, %1286 : vector<8x64xf32>
    %1288 = arith.addf %1280, %1287 : vector<8x64xf32>
    %c0_746 = arith.constant 0 : index
    %c2_747 = arith.constant 2 : index
    %c8_748 = arith.constant 8 : index
    %1289 = vector.load %arg9[%c0_746, %c2_747, %c8_748] : memref<4x10x80xf32, #tpu.memory_space<vmem>>, vector<1x8x64xf32>
    %1290 = vector.shape_cast %1289 : vector<1x8x64xf32> to vector<8x64xf32>
    %c22_749 = arith.constant 22 : index
    %c0_750 = arith.constant 0 : index
    %1291 = vector.load %arg5[%c22_749, %c0_750] : memref<25x64xf32, #tpu.memory_space<vmem>>, vector<1x64xf32>
    %1292 = vector.shape_cast %1291 : vector<1x64xf32> to vector<64xf32>
    %1293 = vector.shape_cast %1292 : vector<64xf32> to vector<1x64xf32>
    %1294 = vector.broadcast %1293 : vector<1x64xf32> to vector<8x64xf32>
    %1295 = arith.mulf %1290, %1294 : vector<8x64xf32>
    %1296 = arith.addf %1288, %1295 : vector<8x64xf32>
    %c1_751 = arith.constant 1 : index
    %c2_752 = arith.constant 2 : index
    %c8_753 = arith.constant 8 : index
    %1297 = vector.load %arg9[%c1_751, %c2_752, %c8_753] : memref<4x10x80xf32, #tpu.memory_space<vmem>>, vector<1x8x64xf32>
    %1298 = vector.shape_cast %1297 : vector<1x8x64xf32> to vector<8x64xf32>
    %c23_754 = arith.constant 23 : index
    %c0_755 = arith.constant 0 : index
    %1299 = vector.load %arg5[%c23_754, %c0_755] : memref<25x64xf32, #tpu.memory_space<vmem>>, vector<1x64xf32>
    %1300 = vector.shape_cast %1299 : vector<1x64xf32> to vector<64xf32>
    %1301 = vector.shape_cast %1300 : vector<64xf32> to vector<1x64xf32>
    %1302 = vector.broadcast %1301 : vector<1x64xf32> to vector<8x64xf32>
    %1303 = arith.mulf %1298, %1302 : vector<8x64xf32>
    %1304 = arith.addf %1296, %1303 : vector<8x64xf32>
    %c0_756 = arith.constant 0 : index
    %c2_757 = arith.constant 2 : index
    %c16_758 = arith.constant 16 : index
    %1305 = vector.load %arg9[%c0_756, %c2_757, %c16_758] : memref<4x10x80xf32, #tpu.memory_space<vmem>>, vector<1x8x64xf32>
    %1306 = vector.shape_cast %1305 : vector<1x8x64xf32> to vector<8x64xf32>
    %c24_759 = arith.constant 24 : index
    %c0_760 = arith.constant 0 : index
    %1307 = vector.load %arg5[%c24_759, %c0_760] : memref<25x64xf32, #tpu.memory_space<vmem>>, vector<1x64xf32>
    %1308 = vector.shape_cast %1307 : vector<1x64xf32> to vector<64xf32>
    %1309 = vector.shape_cast %1308 : vector<64xf32> to vector<1x64xf32>
    %1310 = vector.broadcast %1309 : vector<1x64xf32> to vector<8x64xf32>
    %1311 = arith.mulf %1306, %1310 : vector<8x64xf32>
    %1312 = arith.addf %1304, %1311 : vector<8x64xf32>
    %c0_761 = arith.constant 0 : index
    %c0_762 = arith.constant 0 : index
    %1313 = vector.load %arg6[%c0_761, %c0_762] : memref<1x64xf32, #tpu.memory_space<vmem>>, vector<1x64xf32>
    %1314 = vector.shape_cast %1313 : vector<1x64xf32> to vector<64xf32>
    %1315 = vector.shape_cast %1314 : vector<64xf32> to vector<1x64xf32>
    %1316 = vector.broadcast %1315 : vector<1x64xf32> to vector<8x64xf32>
    %1317 = arith.addf %1312, %1316 : vector<8x64xf32>
    %c0_763 = arith.constant 0 : index
    %c0_764 = arith.constant 0 : index
    %c1_765 = arith.constant 1 : index
    %c0_766 = arith.constant 0 : index
    %1318 = vector.load %arg1[%c0_763, %c0_764, %c1_765, %c0_766] : memref<1x4x10x64xf32, #tpu.memory_space<vmem>>, vector<1x1x8x64xf32>
    %1319 = vector.shape_cast %1318 : vector<1x1x8x64xf32> to vector<8x64xf32>
    %1320 = arith.addf %1317, %1319 : vector<8x64xf32>
    %1321 = vector.extract_strided_slice %1087 {offsets = [1, 0], sizes = [8, 64], strides = [1, 1]} : vector<10x64xf32> to vector<8x64xf32>
    %cst_767 = arith.constant 0.83651632 : f32
    %1322 = vector.broadcast %cst_767 : f32 to vector<8x64xf32>
    %1323 = arith.mulf %1321, %1322 : vector<8x64xf32>
    %1324 = vector.extract_strided_slice %1097 {offsets = [1, 0], sizes = [8, 64], strides = [1, 1]} : vector<10x64xf32> to vector<8x64xf32>
    %cst_768 = arith.constant -0.224143863 : f32
    %1325 = vector.broadcast %cst_768 : f32 to vector<8x64xf32>
    %1326 = arith.mulf %1324, %1325 : vector<8x64xf32>
    %1327 = arith.addf %1323, %1326 : vector<8x64xf32>
    %1328 = vector.extract_strided_slice %1087 {offsets = [0, 0], sizes = [8, 64], strides = [1, 1]} : vector<10x64xf32> to vector<8x64xf32>
    %cst_769 = arith.constant -0.129409522 : f32
    %1329 = vector.broadcast %cst_769 : f32 to vector<8x64xf32>
    %1330 = arith.mulf %1328, %1329 : vector<8x64xf32>
    %1331 = vector.extract_strided_slice %1097 {offsets = [0, 0], sizes = [8, 64], strides = [1, 1]} : vector<10x64xf32> to vector<8x64xf32>
    %cst_770 = arith.constant -0.482962906 : f32
    %1332 = vector.broadcast %cst_770 : f32 to vector<8x64xf32>
    %1333 = arith.mulf %1331, %1332 : vector<8x64xf32>
    %1334 = arith.addf %1330, %1333 : vector<8x64xf32>
    %1335 = arith.addf %1327, %1334 : vector<8x64xf32>
    %c1_771 = arith.constant 1 : index
    %c0_772 = arith.constant 0 : index
    %c0_773 = arith.constant 0 : index
    %1336 = vector.load %arg9[%c1_771, %c0_772, %c0_773] : memref<4x10x80xf32, #tpu.memory_space<vmem>>, vector<1x8x64xf32>
    %1337 = vector.shape_cast %1336 : vector<1x8x64xf32> to vector<8x64xf32>
    %c0_774 = arith.constant 0 : index
    %c0_775 = arith.constant 0 : index
    %1338 = vector.load %arg5[%c0_774, %c0_775] : memref<25x64xf32, #tpu.memory_space<vmem>>, vector<1x64xf32>
    %1339 = vector.shape_cast %1338 : vector<1x64xf32> to vector<64xf32>
    %1340 = vector.shape_cast %1339 : vector<64xf32> to vector<1x64xf32>
    %1341 = vector.broadcast %1340 : vector<1x64xf32> to vector<8x64xf32>
    %1342 = arith.mulf %1337, %1341 : vector<8x64xf32>
    %1343 = arith.addf %1335, %1342 : vector<8x64xf32>
    %c0_776 = arith.constant 0 : index
    %c0_777 = arith.constant 0 : index
    %c8_778 = arith.constant 8 : index
    %1344 = vector.load %arg9[%c0_776, %c0_777, %c8_778] : memref<4x10x80xf32, #tpu.memory_space<vmem>>, vector<1x8x64xf32>
    %1345 = vector.shape_cast %1344 : vector<1x8x64xf32> to vector<8x64xf32>
    %c1_779 = arith.constant 1 : index
    %c0_780 = arith.constant 0 : index
    %1346 = vector.load %arg5[%c1_779, %c0_780] : memref<25x64xf32, #tpu.memory_space<vmem>>, vector<1x64xf32>
    %1347 = vector.shape_cast %1346 : vector<1x64xf32> to vector<64xf32>
    %1348 = vector.shape_cast %1347 : vector<64xf32> to vector<1x64xf32>
    %1349 = vector.broadcast %1348 : vector<1x64xf32> to vector<8x64xf32>
    %1350 = arith.mulf %1345, %1349 : vector<8x64xf32>
    %1351 = arith.addf %1343, %1350 : vector<8x64xf32>
    %c1_781 = arith.constant 1 : index
    %c0_782 = arith.constant 0 : index
    %c8_783 = arith.constant 8 : index
    %1352 = vector.load %arg9[%c1_781, %c0_782, %c8_783] : memref<4x10x80xf32, #tpu.memory_space<vmem>>, vector<1x8x64xf32>
    %1353 = vector.shape_cast %1352 : vector<1x8x64xf32> to vector<8x64xf32>
    %c2_784 = arith.constant 2 : index
    %c0_785 = arith.constant 0 : index
    %1354 = vector.load %arg5[%c2_784, %c0_785] : memref<25x64xf32, #tpu.memory_space<vmem>>, vector<1x64xf32>
    %1355 = vector.shape_cast %1354 : vector<1x64xf32> to vector<64xf32>
    %1356 = vector.shape_cast %1355 : vector<64xf32> to vector<1x64xf32>
    %1357 = vector.broadcast %1356 : vector<1x64xf32> to vector<8x64xf32>
    %1358 = arith.mulf %1353, %1357 : vector<8x64xf32>
    %1359 = arith.addf %1351, %1358 : vector<8x64xf32>
    %c0_786 = arith.constant 0 : index
    %c0_787 = arith.constant 0 : index
    %c16_788 = arith.constant 16 : index
    %1360 = vector.load %arg9[%c0_786, %c0_787, %c16_788] : memref<4x10x80xf32, #tpu.memory_space<vmem>>, vector<1x8x64xf32>
    %1361 = vector.shape_cast %1360 : vector<1x8x64xf32> to vector<8x64xf32>
    %c3_789 = arith.constant 3 : index
    %c0_790 = arith.constant 0 : index
    %1362 = vector.load %arg5[%c3_789, %c0_790] : memref<25x64xf32, #tpu.memory_space<vmem>>, vector<1x64xf32>
    %1363 = vector.shape_cast %1362 : vector<1x64xf32> to vector<64xf32>
    %1364 = vector.shape_cast %1363 : vector<64xf32> to vector<1x64xf32>
    %1365 = vector.broadcast %1364 : vector<1x64xf32> to vector<8x64xf32>
    %1366 = arith.mulf %1361, %1365 : vector<8x64xf32>
    %1367 = arith.addf %1359, %1366 : vector<8x64xf32>
    %c1_791 = arith.constant 1 : index
    %c0_792 = arith.constant 0 : index
    %c16_793 = arith.constant 16 : index
    %1368 = vector.load %arg9[%c1_791, %c0_792, %c16_793] : memref<4x10x80xf32, #tpu.memory_space<vmem>>, vector<1x8x64xf32>
    %1369 = vector.shape_cast %1368 : vector<1x8x64xf32> to vector<8x64xf32>
    %c4_794 = arith.constant 4 : index
    %c0_795 = arith.constant 0 : index
    %1370 = vector.load %arg5[%c4_794, %c0_795] : memref<25x64xf32, #tpu.memory_space<vmem>>, vector<1x64xf32>
    %1371 = vector.shape_cast %1370 : vector<1x64xf32> to vector<64xf32>
    %1372 = vector.shape_cast %1371 : vector<64xf32> to vector<1x64xf32>
    %1373 = vector.broadcast %1372 : vector<1x64xf32> to vector<8x64xf32>
    %1374 = arith.mulf %1369, %1373 : vector<8x64xf32>
    %1375 = arith.addf %1367, %1374 : vector<8x64xf32>
    %c3_796 = arith.constant 3 : index
    %c0_797 = arith.constant 0 : index
    %c0_798 = arith.constant 0 : index
    %1376 = vector.load %arg9[%c3_796, %c0_797, %c0_798] : memref<4x10x80xf32, #tpu.memory_space<vmem>>, vector<1x8x64xf32>
    %1377 = vector.shape_cast %1376 : vector<1x8x64xf32> to vector<8x64xf32>
    %c5_799 = arith.constant 5 : index
    %c0_800 = arith.constant 0 : index
    %1378 = vector.load %arg5[%c5_799, %c0_800] : memref<25x64xf32, #tpu.memory_space<vmem>>, vector<1x64xf32>
    %1379 = vector.shape_cast %1378 : vector<1x64xf32> to vector<64xf32>
    %1380 = vector.shape_cast %1379 : vector<64xf32> to vector<1x64xf32>
    %1381 = vector.broadcast %1380 : vector<1x64xf32> to vector<8x64xf32>
    %1382 = arith.mulf %1377, %1381 : vector<8x64xf32>
    %1383 = arith.addf %1375, %1382 : vector<8x64xf32>
    %c2_801 = arith.constant 2 : index
    %c0_802 = arith.constant 0 : index
    %c8_803 = arith.constant 8 : index
    %1384 = vector.load %arg9[%c2_801, %c0_802, %c8_803] : memref<4x10x80xf32, #tpu.memory_space<vmem>>, vector<1x8x64xf32>
    %1385 = vector.shape_cast %1384 : vector<1x8x64xf32> to vector<8x64xf32>
    %c6_804 = arith.constant 6 : index
    %c0_805 = arith.constant 0 : index
    %1386 = vector.load %arg5[%c6_804, %c0_805] : memref<25x64xf32, #tpu.memory_space<vmem>>, vector<1x64xf32>
    %1387 = vector.shape_cast %1386 : vector<1x64xf32> to vector<64xf32>
    %1388 = vector.shape_cast %1387 : vector<64xf32> to vector<1x64xf32>
    %1389 = vector.broadcast %1388 : vector<1x64xf32> to vector<8x64xf32>
    %1390 = arith.mulf %1385, %1389 : vector<8x64xf32>
    %1391 = arith.addf %1383, %1390 : vector<8x64xf32>
    %c3_806 = arith.constant 3 : index
    %c0_807 = arith.constant 0 : index
    %c8_808 = arith.constant 8 : index
    %1392 = vector.load %arg9[%c3_806, %c0_807, %c8_808] : memref<4x10x80xf32, #tpu.memory_space<vmem>>, vector<1x8x64xf32>
    %1393 = vector.shape_cast %1392 : vector<1x8x64xf32> to vector<8x64xf32>
    %c7_809 = arith.constant 7 : index
    %c0_810 = arith.constant 0 : index
    %1394 = vector.load %arg5[%c7_809, %c0_810] : memref<25x64xf32, #tpu.memory_space<vmem>>, vector<1x64xf32>
    %1395 = vector.shape_cast %1394 : vector<1x64xf32> to vector<64xf32>
    %1396 = vector.shape_cast %1395 : vector<64xf32> to vector<1x64xf32>
    %1397 = vector.broadcast %1396 : vector<1x64xf32> to vector<8x64xf32>
    %1398 = arith.mulf %1393, %1397 : vector<8x64xf32>
    %1399 = arith.addf %1391, %1398 : vector<8x64xf32>
    %c2_811 = arith.constant 2 : index
    %c0_812 = arith.constant 0 : index
    %c16_813 = arith.constant 16 : index
    %1400 = vector.load %arg9[%c2_811, %c0_812, %c16_813] : memref<4x10x80xf32, #tpu.memory_space<vmem>>, vector<1x8x64xf32>
    %1401 = vector.shape_cast %1400 : vector<1x8x64xf32> to vector<8x64xf32>
    %c8_814 = arith.constant 8 : index
    %c0_815 = arith.constant 0 : index
    %1402 = vector.load %arg5[%c8_814, %c0_815] : memref<25x64xf32, #tpu.memory_space<vmem>>, vector<1x64xf32>
    %1403 = vector.shape_cast %1402 : vector<1x64xf32> to vector<64xf32>
    %1404 = vector.shape_cast %1403 : vector<64xf32> to vector<1x64xf32>
    %1405 = vector.broadcast %1404 : vector<1x64xf32> to vector<8x64xf32>
    %1406 = arith.mulf %1401, %1405 : vector<8x64xf32>
    %1407 = arith.addf %1399, %1406 : vector<8x64xf32>
    %c3_816 = arith.constant 3 : index
    %c0_817 = arith.constant 0 : index
    %c16_818 = arith.constant 16 : index
    %1408 = vector.load %arg9[%c3_816, %c0_817, %c16_818] : memref<4x10x80xf32, #tpu.memory_space<vmem>>, vector<1x8x64xf32>
    %1409 = vector.shape_cast %1408 : vector<1x8x64xf32> to vector<8x64xf32>
    %c9_819 = arith.constant 9 : index
    %c0_820 = arith.constant 0 : index
    %1410 = vector.load %arg5[%c9_819, %c0_820] : memref<25x64xf32, #tpu.memory_space<vmem>>, vector<1x64xf32>
    %1411 = vector.shape_cast %1410 : vector<1x64xf32> to vector<64xf32>
    %1412 = vector.shape_cast %1411 : vector<64xf32> to vector<1x64xf32>
    %1413 = vector.broadcast %1412 : vector<1x64xf32> to vector<8x64xf32>
    %1414 = arith.mulf %1409, %1413 : vector<8x64xf32>
    %1415 = arith.addf %1407, %1414 : vector<8x64xf32>
    %c1_821 = arith.constant 1 : index
    %c1_822 = arith.constant 1 : index
    %c0_823 = arith.constant 0 : index
    %1416 = vector.load %arg9[%c1_821, %c1_822, %c0_823] : memref<4x10x80xf32, #tpu.memory_space<vmem>>, vector<1x8x64xf32>
    %1417 = vector.shape_cast %1416 : vector<1x8x64xf32> to vector<8x64xf32>
    %c10_824 = arith.constant 10 : index
    %c0_825 = arith.constant 0 : index
    %1418 = vector.load %arg5[%c10_824, %c0_825] : memref<25x64xf32, #tpu.memory_space<vmem>>, vector<1x64xf32>
    %1419 = vector.shape_cast %1418 : vector<1x64xf32> to vector<64xf32>
    %1420 = vector.shape_cast %1419 : vector<64xf32> to vector<1x64xf32>
    %1421 = vector.broadcast %1420 : vector<1x64xf32> to vector<8x64xf32>
    %1422 = arith.mulf %1417, %1421 : vector<8x64xf32>
    %1423 = arith.addf %1415, %1422 : vector<8x64xf32>
    %c0_826 = arith.constant 0 : index
    %c1_827 = arith.constant 1 : index
    %c8_828 = arith.constant 8 : index
    %1424 = vector.load %arg9[%c0_826, %c1_827, %c8_828] : memref<4x10x80xf32, #tpu.memory_space<vmem>>, vector<1x8x64xf32>
    %1425 = vector.shape_cast %1424 : vector<1x8x64xf32> to vector<8x64xf32>
    %c11_829 = arith.constant 11 : index
    %c0_830 = arith.constant 0 : index
    %1426 = vector.load %arg5[%c11_829, %c0_830] : memref<25x64xf32, #tpu.memory_space<vmem>>, vector<1x64xf32>
    %1427 = vector.shape_cast %1426 : vector<1x64xf32> to vector<64xf32>
    %1428 = vector.shape_cast %1427 : vector<64xf32> to vector<1x64xf32>
    %1429 = vector.broadcast %1428 : vector<1x64xf32> to vector<8x64xf32>
    %1430 = arith.mulf %1425, %1429 : vector<8x64xf32>
    %1431 = arith.addf %1423, %1430 : vector<8x64xf32>
    %c1_831 = arith.constant 1 : index
    %c1_832 = arith.constant 1 : index
    %c8_833 = arith.constant 8 : index
    %1432 = vector.load %arg9[%c1_831, %c1_832, %c8_833] : memref<4x10x80xf32, #tpu.memory_space<vmem>>, vector<1x8x64xf32>
    %1433 = vector.shape_cast %1432 : vector<1x8x64xf32> to vector<8x64xf32>
    %c12_834 = arith.constant 12 : index
    %c0_835 = arith.constant 0 : index
    %1434 = vector.load %arg5[%c12_834, %c0_835] : memref<25x64xf32, #tpu.memory_space<vmem>>, vector<1x64xf32>
    %1435 = vector.shape_cast %1434 : vector<1x64xf32> to vector<64xf32>
    %1436 = vector.shape_cast %1435 : vector<64xf32> to vector<1x64xf32>
    %1437 = vector.broadcast %1436 : vector<1x64xf32> to vector<8x64xf32>
    %1438 = arith.mulf %1433, %1437 : vector<8x64xf32>
    %1439 = arith.addf %1431, %1438 : vector<8x64xf32>
    %c0_836 = arith.constant 0 : index
    %c1_837 = arith.constant 1 : index
    %c16_838 = arith.constant 16 : index
    %1440 = vector.load %arg9[%c0_836, %c1_837, %c16_838] : memref<4x10x80xf32, #tpu.memory_space<vmem>>, vector<1x8x64xf32>
    %1441 = vector.shape_cast %1440 : vector<1x8x64xf32> to vector<8x64xf32>
    %c13_839 = arith.constant 13 : index
    %c0_840 = arith.constant 0 : index
    %1442 = vector.load %arg5[%c13_839, %c0_840] : memref<25x64xf32, #tpu.memory_space<vmem>>, vector<1x64xf32>
    %1443 = vector.shape_cast %1442 : vector<1x64xf32> to vector<64xf32>
    %1444 = vector.shape_cast %1443 : vector<64xf32> to vector<1x64xf32>
    %1445 = vector.broadcast %1444 : vector<1x64xf32> to vector<8x64xf32>
    %1446 = arith.mulf %1441, %1445 : vector<8x64xf32>
    %1447 = arith.addf %1439, %1446 : vector<8x64xf32>
    %c1_841 = arith.constant 1 : index
    %c1_842 = arith.constant 1 : index
    %c16_843 = arith.constant 16 : index
    %1448 = vector.load %arg9[%c1_841, %c1_842, %c16_843] : memref<4x10x80xf32, #tpu.memory_space<vmem>>, vector<1x8x64xf32>
    %1449 = vector.shape_cast %1448 : vector<1x8x64xf32> to vector<8x64xf32>
    %c14_844 = arith.constant 14 : index
    %c0_845 = arith.constant 0 : index
    %1450 = vector.load %arg5[%c14_844, %c0_845] : memref<25x64xf32, #tpu.memory_space<vmem>>, vector<1x64xf32>
    %1451 = vector.shape_cast %1450 : vector<1x64xf32> to vector<64xf32>
    %1452 = vector.shape_cast %1451 : vector<64xf32> to vector<1x64xf32>
    %1453 = vector.broadcast %1452 : vector<1x64xf32> to vector<8x64xf32>
    %1454 = arith.mulf %1449, %1453 : vector<8x64xf32>
    %1455 = arith.addf %1447, %1454 : vector<8x64xf32>
    %c3_846 = arith.constant 3 : index
    %c1_847 = arith.constant 1 : index
    %c0_848 = arith.constant 0 : index
    %1456 = vector.load %arg9[%c3_846, %c1_847, %c0_848] : memref<4x10x80xf32, #tpu.memory_space<vmem>>, vector<1x8x64xf32>
    %1457 = vector.shape_cast %1456 : vector<1x8x64xf32> to vector<8x64xf32>
    %c15_849 = arith.constant 15 : index
    %c0_850 = arith.constant 0 : index
    %1458 = vector.load %arg5[%c15_849, %c0_850] : memref<25x64xf32, #tpu.memory_space<vmem>>, vector<1x64xf32>
    %1459 = vector.shape_cast %1458 : vector<1x64xf32> to vector<64xf32>
    %1460 = vector.shape_cast %1459 : vector<64xf32> to vector<1x64xf32>
    %1461 = vector.broadcast %1460 : vector<1x64xf32> to vector<8x64xf32>
    %1462 = arith.mulf %1457, %1461 : vector<8x64xf32>
    %1463 = arith.addf %1455, %1462 : vector<8x64xf32>
    %c2_851 = arith.constant 2 : index
    %c1_852 = arith.constant 1 : index
    %c8_853 = arith.constant 8 : index
    %1464 = vector.load %arg9[%c2_851, %c1_852, %c8_853] : memref<4x10x80xf32, #tpu.memory_space<vmem>>, vector<1x8x64xf32>
    %1465 = vector.shape_cast %1464 : vector<1x8x64xf32> to vector<8x64xf32>
    %c16_854 = arith.constant 16 : index
    %c0_855 = arith.constant 0 : index
    %1466 = vector.load %arg5[%c16_854, %c0_855] : memref<25x64xf32, #tpu.memory_space<vmem>>, vector<1x64xf32>
    %1467 = vector.shape_cast %1466 : vector<1x64xf32> to vector<64xf32>
    %1468 = vector.shape_cast %1467 : vector<64xf32> to vector<1x64xf32>
    %1469 = vector.broadcast %1468 : vector<1x64xf32> to vector<8x64xf32>
    %1470 = arith.mulf %1465, %1469 : vector<8x64xf32>
    %1471 = arith.addf %1463, %1470 : vector<8x64xf32>
    %c3_856 = arith.constant 3 : index
    %c1_857 = arith.constant 1 : index
    %c8_858 = arith.constant 8 : index
    %1472 = vector.load %arg9[%c3_856, %c1_857, %c8_858] : memref<4x10x80xf32, #tpu.memory_space<vmem>>, vector<1x8x64xf32>
    %1473 = vector.shape_cast %1472 : vector<1x8x64xf32> to vector<8x64xf32>
    %c17_859 = arith.constant 17 : index
    %c0_860 = arith.constant 0 : index
    %1474 = vector.load %arg5[%c17_859, %c0_860] : memref<25x64xf32, #tpu.memory_space<vmem>>, vector<1x64xf32>
    %1475 = vector.shape_cast %1474 : vector<1x64xf32> to vector<64xf32>
    %1476 = vector.shape_cast %1475 : vector<64xf32> to vector<1x64xf32>
    %1477 = vector.broadcast %1476 : vector<1x64xf32> to vector<8x64xf32>
    %1478 = arith.mulf %1473, %1477 : vector<8x64xf32>
    %1479 = arith.addf %1471, %1478 : vector<8x64xf32>
    %c2_861 = arith.constant 2 : index
    %c1_862 = arith.constant 1 : index
    %c16_863 = arith.constant 16 : index
    %1480 = vector.load %arg9[%c2_861, %c1_862, %c16_863] : memref<4x10x80xf32, #tpu.memory_space<vmem>>, vector<1x8x64xf32>
    %1481 = vector.shape_cast %1480 : vector<1x8x64xf32> to vector<8x64xf32>
    %c18_864 = arith.constant 18 : index
    %c0_865 = arith.constant 0 : index
    %1482 = vector.load %arg5[%c18_864, %c0_865] : memref<25x64xf32, #tpu.memory_space<vmem>>, vector<1x64xf32>
    %1483 = vector.shape_cast %1482 : vector<1x64xf32> to vector<64xf32>
    %1484 = vector.shape_cast %1483 : vector<64xf32> to vector<1x64xf32>
    %1485 = vector.broadcast %1484 : vector<1x64xf32> to vector<8x64xf32>
    %1486 = arith.mulf %1481, %1485 : vector<8x64xf32>
    %1487 = arith.addf %1479, %1486 : vector<8x64xf32>
    %c3_866 = arith.constant 3 : index
    %c1_867 = arith.constant 1 : index
    %c16_868 = arith.constant 16 : index
    %1488 = vector.load %arg9[%c3_866, %c1_867, %c16_868] : memref<4x10x80xf32, #tpu.memory_space<vmem>>, vector<1x8x64xf32>
    %1489 = vector.shape_cast %1488 : vector<1x8x64xf32> to vector<8x64xf32>
    %c19_869 = arith.constant 19 : index
    %c0_870 = arith.constant 0 : index
    %1490 = vector.load %arg5[%c19_869, %c0_870] : memref<25x64xf32, #tpu.memory_space<vmem>>, vector<1x64xf32>
    %1491 = vector.shape_cast %1490 : vector<1x64xf32> to vector<64xf32>
    %1492 = vector.shape_cast %1491 : vector<64xf32> to vector<1x64xf32>
    %1493 = vector.broadcast %1492 : vector<1x64xf32> to vector<8x64xf32>
    %1494 = arith.mulf %1489, %1493 : vector<8x64xf32>
    %1495 = arith.addf %1487, %1494 : vector<8x64xf32>
    %c1_871 = arith.constant 1 : index
    %c2_872 = arith.constant 2 : index
    %c0_873 = arith.constant 0 : index
    %1496 = vector.load %arg9[%c1_871, %c2_872, %c0_873] : memref<4x10x80xf32, #tpu.memory_space<vmem>>, vector<1x8x64xf32>
    %1497 = vector.shape_cast %1496 : vector<1x8x64xf32> to vector<8x64xf32>
    %c20_874 = arith.constant 20 : index
    %c0_875 = arith.constant 0 : index
    %1498 = vector.load %arg5[%c20_874, %c0_875] : memref<25x64xf32, #tpu.memory_space<vmem>>, vector<1x64xf32>
    %1499 = vector.shape_cast %1498 : vector<1x64xf32> to vector<64xf32>
    %1500 = vector.shape_cast %1499 : vector<64xf32> to vector<1x64xf32>
    %1501 = vector.broadcast %1500 : vector<1x64xf32> to vector<8x64xf32>
    %1502 = arith.mulf %1497, %1501 : vector<8x64xf32>
    %1503 = arith.addf %1495, %1502 : vector<8x64xf32>
    %c0_876 = arith.constant 0 : index
    %c2_877 = arith.constant 2 : index
    %c8_878 = arith.constant 8 : index
    %1504 = vector.load %arg9[%c0_876, %c2_877, %c8_878] : memref<4x10x80xf32, #tpu.memory_space<vmem>>, vector<1x8x64xf32>
    %1505 = vector.shape_cast %1504 : vector<1x8x64xf32> to vector<8x64xf32>
    %c21_879 = arith.constant 21 : index
    %c0_880 = arith.constant 0 : index
    %1506 = vector.load %arg5[%c21_879, %c0_880] : memref<25x64xf32, #tpu.memory_space<vmem>>, vector<1x64xf32>
    %1507 = vector.shape_cast %1506 : vector<1x64xf32> to vector<64xf32>
    %1508 = vector.shape_cast %1507 : vector<64xf32> to vector<1x64xf32>
    %1509 = vector.broadcast %1508 : vector<1x64xf32> to vector<8x64xf32>
    %1510 = arith.mulf %1505, %1509 : vector<8x64xf32>
    %1511 = arith.addf %1503, %1510 : vector<8x64xf32>
    %c1_881 = arith.constant 1 : index
    %c2_882 = arith.constant 2 : index
    %c8_883 = arith.constant 8 : index
    %1512 = vector.load %arg9[%c1_881, %c2_882, %c8_883] : memref<4x10x80xf32, #tpu.memory_space<vmem>>, vector<1x8x64xf32>
    %1513 = vector.shape_cast %1512 : vector<1x8x64xf32> to vector<8x64xf32>
    %c22_884 = arith.constant 22 : index
    %c0_885 = arith.constant 0 : index
    %1514 = vector.load %arg5[%c22_884, %c0_885] : memref<25x64xf32, #tpu.memory_space<vmem>>, vector<1x64xf32>
    %1515 = vector.shape_cast %1514 : vector<1x64xf32> to vector<64xf32>
    %1516 = vector.shape_cast %1515 : vector<64xf32> to vector<1x64xf32>
    %1517 = vector.broadcast %1516 : vector<1x64xf32> to vector<8x64xf32>
    %1518 = arith.mulf %1513, %1517 : vector<8x64xf32>
    %1519 = arith.addf %1511, %1518 : vector<8x64xf32>
    %c0_886 = arith.constant 0 : index
    %c2_887 = arith.constant 2 : index
    %c16_888 = arith.constant 16 : index
    %1520 = vector.load %arg9[%c0_886, %c2_887, %c16_888] : memref<4x10x80xf32, #tpu.memory_space<vmem>>, vector<1x8x64xf32>
    %1521 = vector.shape_cast %1520 : vector<1x8x64xf32> to vector<8x64xf32>
    %c23_889 = arith.constant 23 : index
    %c0_890 = arith.constant 0 : index
    %1522 = vector.load %arg5[%c23_889, %c0_890] : memref<25x64xf32, #tpu.memory_space<vmem>>, vector<1x64xf32>
    %1523 = vector.shape_cast %1522 : vector<1x64xf32> to vector<64xf32>
    %1524 = vector.shape_cast %1523 : vector<64xf32> to vector<1x64xf32>
    %1525 = vector.broadcast %1524 : vector<1x64xf32> to vector<8x64xf32>
    %1526 = arith.mulf %1521, %1525 : vector<8x64xf32>
    %1527 = arith.addf %1519, %1526 : vector<8x64xf32>
    %c1_891 = arith.constant 1 : index
    %c2_892 = arith.constant 2 : index
    %c16_893 = arith.constant 16 : index
    %1528 = vector.load %arg9[%c1_891, %c2_892, %c16_893] : memref<4x10x80xf32, #tpu.memory_space<vmem>>, vector<1x8x64xf32>
    %1529 = vector.shape_cast %1528 : vector<1x8x64xf32> to vector<8x64xf32>
    %c24_894 = arith.constant 24 : index
    %c0_895 = arith.constant 0 : index
    %1530 = vector.load %arg5[%c24_894, %c0_895] : memref<25x64xf32, #tpu.memory_space<vmem>>, vector<1x64xf32>
    %1531 = vector.shape_cast %1530 : vector<1x64xf32> to vector<64xf32>
    %1532 = vector.shape_cast %1531 : vector<64xf32> to vector<1x64xf32>
    %1533 = vector.broadcast %1532 : vector<1x64xf32> to vector<8x64xf32>
    %1534 = arith.mulf %1529, %1533 : vector<8x64xf32>
    %1535 = arith.addf %1527, %1534 : vector<8x64xf32>
    %c0_896 = arith.constant 0 : index
    %c0_897 = arith.constant 0 : index
    %1536 = vector.load %arg6[%c0_896, %c0_897] : memref<1x64xf32, #tpu.memory_space<vmem>>, vector<1x64xf32>
    %1537 = vector.shape_cast %1536 : vector<1x64xf32> to vector<64xf32>
    %1538 = vector.shape_cast %1537 : vector<64xf32> to vector<1x64xf32>
    %1539 = vector.broadcast %1538 : vector<1x64xf32> to vector<8x64xf32>
    %1540 = arith.addf %1535, %1539 : vector<8x64xf32>
    %c0_898 = arith.constant 0 : index
    %c1_899 = arith.constant 1 : index
    %c1_900 = arith.constant 1 : index
    %c0_901 = arith.constant 0 : index
    %1541 = vector.load %arg1[%c0_898, %c1_899, %c1_900, %c0_901] : memref<1x4x10x64xf32, #tpu.memory_space<vmem>>, vector<1x1x8x64xf32>
    %1542 = vector.shape_cast %1541 : vector<1x1x8x64xf32> to vector<8x64xf32>
    %1543 = arith.addf %1540, %1542 : vector<8x64xf32>
    %1544 = vector.extract_strided_slice %1049 {offsets = [2, 0], sizes = [8, 64], strides = [1, 1]} : vector<10x64xf32> to vector<8x64xf32>
    %cst_902 = arith.constant 0.482962906 : f32
    %1545 = vector.broadcast %cst_902 : f32 to vector<8x64xf32>
    %1546 = arith.mulf %1544, %1545 : vector<8x64xf32>
    %1547 = vector.extract_strided_slice %1059 {offsets = [2, 0], sizes = [8, 64], strides = [1, 1]} : vector<10x64xf32> to vector<8x64xf32>
    %cst_903 = arith.constant -0.129409522 : f32
    %1548 = vector.broadcast %cst_903 : f32 to vector<8x64xf32>
    %1549 = arith.mulf %1547, %1548 : vector<8x64xf32>
    %1550 = arith.addf %1546, %1549 : vector<8x64xf32>
    %1551 = vector.extract_strided_slice %1049 {offsets = [1, 0], sizes = [8, 64], strides = [1, 1]} : vector<10x64xf32> to vector<8x64xf32>
    %cst_904 = arith.constant 0.224143863 : f32
    %1552 = vector.broadcast %cst_904 : f32 to vector<8x64xf32>
    %1553 = arith.mulf %1551, %1552 : vector<8x64xf32>
    %1554 = vector.extract_strided_slice %1059 {offsets = [1, 0], sizes = [8, 64], strides = [1, 1]} : vector<10x64xf32> to vector<8x64xf32>
    %cst_905 = arith.constant 0.83651632 : f32
    %1555 = vector.broadcast %cst_905 : f32 to vector<8x64xf32>
    %1556 = arith.mulf %1554, %1555 : vector<8x64xf32>
    %1557 = arith.addf %1553, %1556 : vector<8x64xf32>
    %1558 = arith.addf %1550, %1557 : vector<8x64xf32>
    %c2_906 = arith.constant 2 : index
    %c0_907 = arith.constant 0 : index
    %c0_908 = arith.constant 0 : index
    %1559 = vector.load %arg9[%c2_906, %c0_907, %c0_908] : memref<4x10x80xf32, #tpu.memory_space<vmem>>, vector<1x8x64xf32>
    %1560 = vector.shape_cast %1559 : vector<1x8x64xf32> to vector<8x64xf32>
    %c0_909 = arith.constant 0 : index
    %c0_910 = arith.constant 0 : index
    %1561 = vector.load %arg5[%c0_909, %c0_910] : memref<25x64xf32, #tpu.memory_space<vmem>>, vector<1x64xf32>
    %1562 = vector.shape_cast %1561 : vector<1x64xf32> to vector<64xf32>
    %1563 = vector.shape_cast %1562 : vector<64xf32> to vector<1x64xf32>
    %1564 = vector.broadcast %1563 : vector<1x64xf32> to vector<8x64xf32>
    %1565 = arith.mulf %1560, %1564 : vector<8x64xf32>
    %1566 = arith.addf %1558, %1565 : vector<8x64xf32>
    %c3_911 = arith.constant 3 : index
    %c0_912 = arith.constant 0 : index
    %c0_913 = arith.constant 0 : index
    %1567 = vector.load %arg9[%c3_911, %c0_912, %c0_913] : memref<4x10x80xf32, #tpu.memory_space<vmem>>, vector<1x8x64xf32>
    %1568 = vector.shape_cast %1567 : vector<1x8x64xf32> to vector<8x64xf32>
    %c1_914 = arith.constant 1 : index
    %c0_915 = arith.constant 0 : index
    %1569 = vector.load %arg5[%c1_914, %c0_915] : memref<25x64xf32, #tpu.memory_space<vmem>>, vector<1x64xf32>
    %1570 = vector.shape_cast %1569 : vector<1x64xf32> to vector<64xf32>
    %1571 = vector.shape_cast %1570 : vector<64xf32> to vector<1x64xf32>
    %1572 = vector.broadcast %1571 : vector<1x64xf32> to vector<8x64xf32>
    %1573 = arith.mulf %1568, %1572 : vector<8x64xf32>
    %1574 = arith.addf %1566, %1573 : vector<8x64xf32>
    %c2_916 = arith.constant 2 : index
    %c0_917 = arith.constant 0 : index
    %c8_918 = arith.constant 8 : index
    %1575 = vector.load %arg9[%c2_916, %c0_917, %c8_918] : memref<4x10x80xf32, #tpu.memory_space<vmem>>, vector<1x8x64xf32>
    %1576 = vector.shape_cast %1575 : vector<1x8x64xf32> to vector<8x64xf32>
    %c2_919 = arith.constant 2 : index
    %c0_920 = arith.constant 0 : index
    %1577 = vector.load %arg5[%c2_919, %c0_920] : memref<25x64xf32, #tpu.memory_space<vmem>>, vector<1x64xf32>
    %1578 = vector.shape_cast %1577 : vector<1x64xf32> to vector<64xf32>
    %1579 = vector.shape_cast %1578 : vector<64xf32> to vector<1x64xf32>
    %1580 = vector.broadcast %1579 : vector<1x64xf32> to vector<8x64xf32>
    %1581 = arith.mulf %1576, %1580 : vector<8x64xf32>
    %1582 = arith.addf %1574, %1581 : vector<8x64xf32>
    %c3_921 = arith.constant 3 : index
    %c0_922 = arith.constant 0 : index
    %c8_923 = arith.constant 8 : index
    %1583 = vector.load %arg9[%c3_921, %c0_922, %c8_923] : memref<4x10x80xf32, #tpu.memory_space<vmem>>, vector<1x8x64xf32>
    %1584 = vector.shape_cast %1583 : vector<1x8x64xf32> to vector<8x64xf32>
    %c3_924 = arith.constant 3 : index
    %c0_925 = arith.constant 0 : index
    %1585 = vector.load %arg5[%c3_924, %c0_925] : memref<25x64xf32, #tpu.memory_space<vmem>>, vector<1x64xf32>
    %1586 = vector.shape_cast %1585 : vector<1x64xf32> to vector<64xf32>
    %1587 = vector.shape_cast %1586 : vector<64xf32> to vector<1x64xf32>
    %1588 = vector.broadcast %1587 : vector<1x64xf32> to vector<8x64xf32>
    %1589 = arith.mulf %1584, %1588 : vector<8x64xf32>
    %1590 = arith.addf %1582, %1589 : vector<8x64xf32>
    %c2_926 = arith.constant 2 : index
    %c0_927 = arith.constant 0 : index
    %c16_928 = arith.constant 16 : index
    %1591 = vector.load %arg9[%c2_926, %c0_927, %c16_928] : memref<4x10x80xf32, #tpu.memory_space<vmem>>, vector<1x8x64xf32>
    %1592 = vector.shape_cast %1591 : vector<1x8x64xf32> to vector<8x64xf32>
    %c4_929 = arith.constant 4 : index
    %c0_930 = arith.constant 0 : index
    %1593 = vector.load %arg5[%c4_929, %c0_930] : memref<25x64xf32, #tpu.memory_space<vmem>>, vector<1x64xf32>
    %1594 = vector.shape_cast %1593 : vector<1x64xf32> to vector<64xf32>
    %1595 = vector.shape_cast %1594 : vector<64xf32> to vector<1x64xf32>
    %1596 = vector.broadcast %1595 : vector<1x64xf32> to vector<8x64xf32>
    %1597 = arith.mulf %1592, %1596 : vector<8x64xf32>
    %1598 = arith.addf %1590, %1597 : vector<8x64xf32>
    %c0_931 = arith.constant 0 : index
    %c1_932 = arith.constant 1 : index
    %c0_933 = arith.constant 0 : index
    %1599 = vector.load %arg9[%c0_931, %c1_932, %c0_933] : memref<4x10x80xf32, #tpu.memory_space<vmem>>, vector<1x8x64xf32>
    %1600 = vector.shape_cast %1599 : vector<1x8x64xf32> to vector<8x64xf32>
    %c5_934 = arith.constant 5 : index
    %c0_935 = arith.constant 0 : index
    %1601 = vector.load %arg5[%c5_934, %c0_935] : memref<25x64xf32, #tpu.memory_space<vmem>>, vector<1x64xf32>
    %1602 = vector.shape_cast %1601 : vector<1x64xf32> to vector<64xf32>
    %1603 = vector.shape_cast %1602 : vector<64xf32> to vector<1x64xf32>
    %1604 = vector.broadcast %1603 : vector<1x64xf32> to vector<8x64xf32>
    %1605 = arith.mulf %1600, %1604 : vector<8x64xf32>
    %1606 = arith.addf %1598, %1605 : vector<8x64xf32>
    %c1_936 = arith.constant 1 : index
    %c1_937 = arith.constant 1 : index
    %c0_938 = arith.constant 0 : index
    %1607 = vector.load %arg9[%c1_936, %c1_937, %c0_938] : memref<4x10x80xf32, #tpu.memory_space<vmem>>, vector<1x8x64xf32>
    %1608 = vector.shape_cast %1607 : vector<1x8x64xf32> to vector<8x64xf32>
    %c6_939 = arith.constant 6 : index
    %c0_940 = arith.constant 0 : index
    %1609 = vector.load %arg5[%c6_939, %c0_940] : memref<25x64xf32, #tpu.memory_space<vmem>>, vector<1x64xf32>
    %1610 = vector.shape_cast %1609 : vector<1x64xf32> to vector<64xf32>
    %1611 = vector.shape_cast %1610 : vector<64xf32> to vector<1x64xf32>
    %1612 = vector.broadcast %1611 : vector<1x64xf32> to vector<8x64xf32>
    %1613 = arith.mulf %1608, %1612 : vector<8x64xf32>
    %1614 = arith.addf %1606, %1613 : vector<8x64xf32>
    %c0_941 = arith.constant 0 : index
    %c1_942 = arith.constant 1 : index
    %c8_943 = arith.constant 8 : index
    %1615 = vector.load %arg9[%c0_941, %c1_942, %c8_943] : memref<4x10x80xf32, #tpu.memory_space<vmem>>, vector<1x8x64xf32>
    %1616 = vector.shape_cast %1615 : vector<1x8x64xf32> to vector<8x64xf32>
    %c7_944 = arith.constant 7 : index
    %c0_945 = arith.constant 0 : index
    %1617 = vector.load %arg5[%c7_944, %c0_945] : memref<25x64xf32, #tpu.memory_space<vmem>>, vector<1x64xf32>
    %1618 = vector.shape_cast %1617 : vector<1x64xf32> to vector<64xf32>
    %1619 = vector.shape_cast %1618 : vector<64xf32> to vector<1x64xf32>
    %1620 = vector.broadcast %1619 : vector<1x64xf32> to vector<8x64xf32>
    %1621 = arith.mulf %1616, %1620 : vector<8x64xf32>
    %1622 = arith.addf %1614, %1621 : vector<8x64xf32>
    %c1_946 = arith.constant 1 : index
    %c1_947 = arith.constant 1 : index
    %c8_948 = arith.constant 8 : index
    %1623 = vector.load %arg9[%c1_946, %c1_947, %c8_948] : memref<4x10x80xf32, #tpu.memory_space<vmem>>, vector<1x8x64xf32>
    %1624 = vector.shape_cast %1623 : vector<1x8x64xf32> to vector<8x64xf32>
    %c8_949 = arith.constant 8 : index
    %c0_950 = arith.constant 0 : index
    %1625 = vector.load %arg5[%c8_949, %c0_950] : memref<25x64xf32, #tpu.memory_space<vmem>>, vector<1x64xf32>
    %1626 = vector.shape_cast %1625 : vector<1x64xf32> to vector<64xf32>
    %1627 = vector.shape_cast %1626 : vector<64xf32> to vector<1x64xf32>
    %1628 = vector.broadcast %1627 : vector<1x64xf32> to vector<8x64xf32>
    %1629 = arith.mulf %1624, %1628 : vector<8x64xf32>
    %1630 = arith.addf %1622, %1629 : vector<8x64xf32>
    %c0_951 = arith.constant 0 : index
    %c1_952 = arith.constant 1 : index
    %c16_953 = arith.constant 16 : index
    %1631 = vector.load %arg9[%c0_951, %c1_952, %c16_953] : memref<4x10x80xf32, #tpu.memory_space<vmem>>, vector<1x8x64xf32>
    %1632 = vector.shape_cast %1631 : vector<1x8x64xf32> to vector<8x64xf32>
    %c9_954 = arith.constant 9 : index
    %c0_955 = arith.constant 0 : index
    %1633 = vector.load %arg5[%c9_954, %c0_955] : memref<25x64xf32, #tpu.memory_space<vmem>>, vector<1x64xf32>
    %1634 = vector.shape_cast %1633 : vector<1x64xf32> to vector<64xf32>
    %1635 = vector.shape_cast %1634 : vector<64xf32> to vector<1x64xf32>
    %1636 = vector.broadcast %1635 : vector<1x64xf32> to vector<8x64xf32>
    %1637 = arith.mulf %1632, %1636 : vector<8x64xf32>
    %1638 = arith.addf %1630, %1637 : vector<8x64xf32>
    %c2_956 = arith.constant 2 : index
    %c1_957 = arith.constant 1 : index
    %c0_958 = arith.constant 0 : index
    %1639 = vector.load %arg9[%c2_956, %c1_957, %c0_958] : memref<4x10x80xf32, #tpu.memory_space<vmem>>, vector<1x8x64xf32>
    %1640 = vector.shape_cast %1639 : vector<1x8x64xf32> to vector<8x64xf32>
    %c10_959 = arith.constant 10 : index
    %c0_960 = arith.constant 0 : index
    %1641 = vector.load %arg5[%c10_959, %c0_960] : memref<25x64xf32, #tpu.memory_space<vmem>>, vector<1x64xf32>
    %1642 = vector.shape_cast %1641 : vector<1x64xf32> to vector<64xf32>
    %1643 = vector.shape_cast %1642 : vector<64xf32> to vector<1x64xf32>
    %1644 = vector.broadcast %1643 : vector<1x64xf32> to vector<8x64xf32>
    %1645 = arith.mulf %1640, %1644 : vector<8x64xf32>
    %1646 = arith.addf %1638, %1645 : vector<8x64xf32>
    %c3_961 = arith.constant 3 : index
    %c1_962 = arith.constant 1 : index
    %c0_963 = arith.constant 0 : index
    %1647 = vector.load %arg9[%c3_961, %c1_962, %c0_963] : memref<4x10x80xf32, #tpu.memory_space<vmem>>, vector<1x8x64xf32>
    %1648 = vector.shape_cast %1647 : vector<1x8x64xf32> to vector<8x64xf32>
    %c11_964 = arith.constant 11 : index
    %c0_965 = arith.constant 0 : index
    %1649 = vector.load %arg5[%c11_964, %c0_965] : memref<25x64xf32, #tpu.memory_space<vmem>>, vector<1x64xf32>
    %1650 = vector.shape_cast %1649 : vector<1x64xf32> to vector<64xf32>
    %1651 = vector.shape_cast %1650 : vector<64xf32> to vector<1x64xf32>
    %1652 = vector.broadcast %1651 : vector<1x64xf32> to vector<8x64xf32>
    %1653 = arith.mulf %1648, %1652 : vector<8x64xf32>
    %1654 = arith.addf %1646, %1653 : vector<8x64xf32>
    %c2_966 = arith.constant 2 : index
    %c1_967 = arith.constant 1 : index
    %c8_968 = arith.constant 8 : index
    %1655 = vector.load %arg9[%c2_966, %c1_967, %c8_968] : memref<4x10x80xf32, #tpu.memory_space<vmem>>, vector<1x8x64xf32>
    %1656 = vector.shape_cast %1655 : vector<1x8x64xf32> to vector<8x64xf32>
    %c12_969 = arith.constant 12 : index
    %c0_970 = arith.constant 0 : index
    %1657 = vector.load %arg5[%c12_969, %c0_970] : memref<25x64xf32, #tpu.memory_space<vmem>>, vector<1x64xf32>
    %1658 = vector.shape_cast %1657 : vector<1x64xf32> to vector<64xf32>
    %1659 = vector.shape_cast %1658 : vector<64xf32> to vector<1x64xf32>
    %1660 = vector.broadcast %1659 : vector<1x64xf32> to vector<8x64xf32>
    %1661 = arith.mulf %1656, %1660 : vector<8x64xf32>
    %1662 = arith.addf %1654, %1661 : vector<8x64xf32>
    %c3_971 = arith.constant 3 : index
    %c1_972 = arith.constant 1 : index
    %c8_973 = arith.constant 8 : index
    %1663 = vector.load %arg9[%c3_971, %c1_972, %c8_973] : memref<4x10x80xf32, #tpu.memory_space<vmem>>, vector<1x8x64xf32>
    %1664 = vector.shape_cast %1663 : vector<1x8x64xf32> to vector<8x64xf32>
    %c13_974 = arith.constant 13 : index
    %c0_975 = arith.constant 0 : index
    %1665 = vector.load %arg5[%c13_974, %c0_975] : memref<25x64xf32, #tpu.memory_space<vmem>>, vector<1x64xf32>
    %1666 = vector.shape_cast %1665 : vector<1x64xf32> to vector<64xf32>
    %1667 = vector.shape_cast %1666 : vector<64xf32> to vector<1x64xf32>
    %1668 = vector.broadcast %1667 : vector<1x64xf32> to vector<8x64xf32>
    %1669 = arith.mulf %1664, %1668 : vector<8x64xf32>
    %1670 = arith.addf %1662, %1669 : vector<8x64xf32>
    %c2_976 = arith.constant 2 : index
    %c1_977 = arith.constant 1 : index
    %c16_978 = arith.constant 16 : index
    %1671 = vector.load %arg9[%c2_976, %c1_977, %c16_978] : memref<4x10x80xf32, #tpu.memory_space<vmem>>, vector<1x8x64xf32>
    %1672 = vector.shape_cast %1671 : vector<1x8x64xf32> to vector<8x64xf32>
    %c14_979 = arith.constant 14 : index
    %c0_980 = arith.constant 0 : index
    %1673 = vector.load %arg5[%c14_979, %c0_980] : memref<25x64xf32, #tpu.memory_space<vmem>>, vector<1x64xf32>
    %1674 = vector.shape_cast %1673 : vector<1x64xf32> to vector<64xf32>
    %1675 = vector.shape_cast %1674 : vector<64xf32> to vector<1x64xf32>
    %1676 = vector.broadcast %1675 : vector<1x64xf32> to vector<8x64xf32>
    %1677 = arith.mulf %1672, %1676 : vector<8x64xf32>
    %1678 = arith.addf %1670, %1677 : vector<8x64xf32>
    %c0_981 = arith.constant 0 : index
    %c2_982 = arith.constant 2 : index
    %c0_983 = arith.constant 0 : index
    %1679 = vector.load %arg9[%c0_981, %c2_982, %c0_983] : memref<4x10x80xf32, #tpu.memory_space<vmem>>, vector<1x8x64xf32>
    %1680 = vector.shape_cast %1679 : vector<1x8x64xf32> to vector<8x64xf32>
    %c15_984 = arith.constant 15 : index
    %c0_985 = arith.constant 0 : index
    %1681 = vector.load %arg5[%c15_984, %c0_985] : memref<25x64xf32, #tpu.memory_space<vmem>>, vector<1x64xf32>
    %1682 = vector.shape_cast %1681 : vector<1x64xf32> to vector<64xf32>
    %1683 = vector.shape_cast %1682 : vector<64xf32> to vector<1x64xf32>
    %1684 = vector.broadcast %1683 : vector<1x64xf32> to vector<8x64xf32>
    %1685 = arith.mulf %1680, %1684 : vector<8x64xf32>
    %1686 = arith.addf %1678, %1685 : vector<8x64xf32>
    %c1_986 = arith.constant 1 : index
    %c2_987 = arith.constant 2 : index
    %c0_988 = arith.constant 0 : index
    %1687 = vector.load %arg9[%c1_986, %c2_987, %c0_988] : memref<4x10x80xf32, #tpu.memory_space<vmem>>, vector<1x8x64xf32>
    %1688 = vector.shape_cast %1687 : vector<1x8x64xf32> to vector<8x64xf32>
    %c16_989 = arith.constant 16 : index
    %c0_990 = arith.constant 0 : index
    %1689 = vector.load %arg5[%c16_989, %c0_990] : memref<25x64xf32, #tpu.memory_space<vmem>>, vector<1x64xf32>
    %1690 = vector.shape_cast %1689 : vector<1x64xf32> to vector<64xf32>
    %1691 = vector.shape_cast %1690 : vector<64xf32> to vector<1x64xf32>
    %1692 = vector.broadcast %1691 : vector<1x64xf32> to vector<8x64xf32>
    %1693 = arith.mulf %1688, %1692 : vector<8x64xf32>
    %1694 = arith.addf %1686, %1693 : vector<8x64xf32>
    %c0_991 = arith.constant 0 : index
    %c2_992 = arith.constant 2 : index
    %c8_993 = arith.constant 8 : index
    %1695 = vector.load %arg9[%c0_991, %c2_992, %c8_993] : memref<4x10x80xf32, #tpu.memory_space<vmem>>, vector<1x8x64xf32>
    %1696 = vector.shape_cast %1695 : vector<1x8x64xf32> to vector<8x64xf32>
    %c17_994 = arith.constant 17 : index
    %c0_995 = arith.constant 0 : index
    %1697 = vector.load %arg5[%c17_994, %c0_995] : memref<25x64xf32, #tpu.memory_space<vmem>>, vector<1x64xf32>
    %1698 = vector.shape_cast %1697 : vector<1x64xf32> to vector<64xf32>
    %1699 = vector.shape_cast %1698 : vector<64xf32> to vector<1x64xf32>
    %1700 = vector.broadcast %1699 : vector<1x64xf32> to vector<8x64xf32>
    %1701 = arith.mulf %1696, %1700 : vector<8x64xf32>
    %1702 = arith.addf %1694, %1701 : vector<8x64xf32>
    %c1_996 = arith.constant 1 : index
    %c2_997 = arith.constant 2 : index
    %c8_998 = arith.constant 8 : index
    %1703 = vector.load %arg9[%c1_996, %c2_997, %c8_998] : memref<4x10x80xf32, #tpu.memory_space<vmem>>, vector<1x8x64xf32>
    %1704 = vector.shape_cast %1703 : vector<1x8x64xf32> to vector<8x64xf32>
    %c18_999 = arith.constant 18 : index
    %c0_1000 = arith.constant 0 : index
    %1705 = vector.load %arg5[%c18_999, %c0_1000] : memref<25x64xf32, #tpu.memory_space<vmem>>, vector<1x64xf32>
    %1706 = vector.shape_cast %1705 : vector<1x64xf32> to vector<64xf32>
    %1707 = vector.shape_cast %1706 : vector<64xf32> to vector<1x64xf32>
    %1708 = vector.broadcast %1707 : vector<1x64xf32> to vector<8x64xf32>
    %1709 = arith.mulf %1704, %1708 : vector<8x64xf32>
    %1710 = arith.addf %1702, %1709 : vector<8x64xf32>
    %c0_1001 = arith.constant 0 : index
    %c2_1002 = arith.constant 2 : index
    %c16_1003 = arith.constant 16 : index
    %1711 = vector.load %arg9[%c0_1001, %c2_1002, %c16_1003] : memref<4x10x80xf32, #tpu.memory_space<vmem>>, vector<1x8x64xf32>
    %1712 = vector.shape_cast %1711 : vector<1x8x64xf32> to vector<8x64xf32>
    %c19_1004 = arith.constant 19 : index
    %c0_1005 = arith.constant 0 : index
    %1713 = vector.load %arg5[%c19_1004, %c0_1005] : memref<25x64xf32, #tpu.memory_space<vmem>>, vector<1x64xf32>
    %1714 = vector.shape_cast %1713 : vector<1x64xf32> to vector<64xf32>
    %1715 = vector.shape_cast %1714 : vector<64xf32> to vector<1x64xf32>
    %1716 = vector.broadcast %1715 : vector<1x64xf32> to vector<8x64xf32>
    %1717 = arith.mulf %1712, %1716 : vector<8x64xf32>
    %1718 = arith.addf %1710, %1717 : vector<8x64xf32>
    %c2_1006 = arith.constant 2 : index
    %c2_1007 = arith.constant 2 : index
    %c0_1008 = arith.constant 0 : index
    %1719 = vector.load %arg9[%c2_1006, %c2_1007, %c0_1008] : memref<4x10x80xf32, #tpu.memory_space<vmem>>, vector<1x8x64xf32>
    %1720 = vector.shape_cast %1719 : vector<1x8x64xf32> to vector<8x64xf32>
    %c20_1009 = arith.constant 20 : index
    %c0_1010 = arith.constant 0 : index
    %1721 = vector.load %arg5[%c20_1009, %c0_1010] : memref<25x64xf32, #tpu.memory_space<vmem>>, vector<1x64xf32>
    %1722 = vector.shape_cast %1721 : vector<1x64xf32> to vector<64xf32>
    %1723 = vector.shape_cast %1722 : vector<64xf32> to vector<1x64xf32>
    %1724 = vector.broadcast %1723 : vector<1x64xf32> to vector<8x64xf32>
    %1725 = arith.mulf %1720, %1724 : vector<8x64xf32>
    %1726 = arith.addf %1718, %1725 : vector<8x64xf32>
    %c3_1011 = arith.constant 3 : index
    %c2_1012 = arith.constant 2 : index
    %c0_1013 = arith.constant 0 : index
    %1727 = vector.load %arg9[%c3_1011, %c2_1012, %c0_1013] : memref<4x10x80xf32, #tpu.memory_space<vmem>>, vector<1x8x64xf32>
    %1728 = vector.shape_cast %1727 : vector<1x8x64xf32> to vector<8x64xf32>
    %c21_1014 = arith.constant 21 : index
    %c0_1015 = arith.constant 0 : index
    %1729 = vector.load %arg5[%c21_1014, %c0_1015] : memref<25x64xf32, #tpu.memory_space<vmem>>, vector<1x64xf32>
    %1730 = vector.shape_cast %1729 : vector<1x64xf32> to vector<64xf32>
    %1731 = vector.shape_cast %1730 : vector<64xf32> to vector<1x64xf32>
    %1732 = vector.broadcast %1731 : vector<1x64xf32> to vector<8x64xf32>
    %1733 = arith.mulf %1728, %1732 : vector<8x64xf32>
    %1734 = arith.addf %1726, %1733 : vector<8x64xf32>
    %c2_1016 = arith.constant 2 : index
    %c2_1017 = arith.constant 2 : index
    %c8_1018 = arith.constant 8 : index
    %1735 = vector.load %arg9[%c2_1016, %c2_1017, %c8_1018] : memref<4x10x80xf32, #tpu.memory_space<vmem>>, vector<1x8x64xf32>
    %1736 = vector.shape_cast %1735 : vector<1x8x64xf32> to vector<8x64xf32>
    %c22_1019 = arith.constant 22 : index
    %c0_1020 = arith.constant 0 : index
    %1737 = vector.load %arg5[%c22_1019, %c0_1020] : memref<25x64xf32, #tpu.memory_space<vmem>>, vector<1x64xf32>
    %1738 = vector.shape_cast %1737 : vector<1x64xf32> to vector<64xf32>
    %1739 = vector.shape_cast %1738 : vector<64xf32> to vector<1x64xf32>
    %1740 = vector.broadcast %1739 : vector<1x64xf32> to vector<8x64xf32>
    %1741 = arith.mulf %1736, %1740 : vector<8x64xf32>
    %1742 = arith.addf %1734, %1741 : vector<8x64xf32>
    %c3_1021 = arith.constant 3 : index
    %c2_1022 = arith.constant 2 : index
    %c8_1023 = arith.constant 8 : index
    %1743 = vector.load %arg9[%c3_1021, %c2_1022, %c8_1023] : memref<4x10x80xf32, #tpu.memory_space<vmem>>, vector<1x8x64xf32>
    %1744 = vector.shape_cast %1743 : vector<1x8x64xf32> to vector<8x64xf32>
    %c23_1024 = arith.constant 23 : index
    %c0_1025 = arith.constant 0 : index
    %1745 = vector.load %arg5[%c23_1024, %c0_1025] : memref<25x64xf32, #tpu.memory_space<vmem>>, vector<1x64xf32>
    %1746 = vector.shape_cast %1745 : vector<1x64xf32> to vector<64xf32>
    %1747 = vector.shape_cast %1746 : vector<64xf32> to vector<1x64xf32>
    %1748 = vector.broadcast %1747 : vector<1x64xf32> to vector<8x64xf32>
    %1749 = arith.mulf %1744, %1748 : vector<8x64xf32>
    %1750 = arith.addf %1742, %1749 : vector<8x64xf32>
    %c2_1026 = arith.constant 2 : index
    %c2_1027 = arith.constant 2 : index
    %c16_1028 = arith.constant 16 : index
    %1751 = vector.load %arg9[%c2_1026, %c2_1027, %c16_1028] : memref<4x10x80xf32, #tpu.memory_space<vmem>>, vector<1x8x64xf32>
    %1752 = vector.shape_cast %1751 : vector<1x8x64xf32> to vector<8x64xf32>
    %c24_1029 = arith.constant 24 : index
    %c0_1030 = arith.constant 0 : index
    %1753 = vector.load %arg5[%c24_1029, %c0_1030] : memref<25x64xf32, #tpu.memory_space<vmem>>, vector<1x64xf32>
    %1754 = vector.shape_cast %1753 : vector<1x64xf32> to vector<64xf32>
    %1755 = vector.shape_cast %1754 : vector<64xf32> to vector<1x64xf32>
    %1756 = vector.broadcast %1755 : vector<1x64xf32> to vector<8x64xf32>
    %1757 = arith.mulf %1752, %1756 : vector<8x64xf32>
    %1758 = arith.addf %1750, %1757 : vector<8x64xf32>
    %c0_1031 = arith.constant 0 : index
    %c0_1032 = arith.constant 0 : index
    %1759 = vector.load %arg6[%c0_1031, %c0_1032] : memref<1x64xf32, #tpu.memory_space<vmem>>, vector<1x64xf32>
    %1760 = vector.shape_cast %1759 : vector<1x64xf32> to vector<64xf32>
    %1761 = vector.shape_cast %1760 : vector<64xf32> to vector<1x64xf32>
    %1762 = vector.broadcast %1761 : vector<1x64xf32> to vector<8x64xf32>
    %1763 = arith.addf %1758, %1762 : vector<8x64xf32>
    %c0_1033 = arith.constant 0 : index
    %c2_1034 = arith.constant 2 : index
    %c1_1035 = arith.constant 1 : index
    %c0_1036 = arith.constant 0 : index
    %1764 = vector.load %arg1[%c0_1033, %c2_1034, %c1_1035, %c0_1036] : memref<1x4x10x64xf32, #tpu.memory_space<vmem>>, vector<1x1x8x64xf32>
    %1765 = vector.shape_cast %1764 : vector<1x1x8x64xf32> to vector<8x64xf32>
    %1766 = arith.addf %1763, %1765 : vector<8x64xf32>
    %1767 = vector.extract_strided_slice %1087 {offsets = [2, 0], sizes = [8, 64], strides = [1, 1]} : vector<10x64xf32> to vector<8x64xf32>
    %cst_1037 = arith.constant 0.482962906 : f32
    %1768 = vector.broadcast %cst_1037 : f32 to vector<8x64xf32>
    %1769 = arith.mulf %1767, %1768 : vector<8x64xf32>
    %1770 = vector.extract_strided_slice %1097 {offsets = [2, 0], sizes = [8, 64], strides = [1, 1]} : vector<10x64xf32> to vector<8x64xf32>
    %cst_1038 = arith.constant -0.129409522 : f32
    %1771 = vector.broadcast %cst_1038 : f32 to vector<8x64xf32>
    %1772 = arith.mulf %1770, %1771 : vector<8x64xf32>
    %1773 = arith.addf %1769, %1772 : vector<8x64xf32>
    %1774 = vector.extract_strided_slice %1087 {offsets = [1, 0], sizes = [8, 64], strides = [1, 1]} : vector<10x64xf32> to vector<8x64xf32>
    %cst_1039 = arith.constant 0.224143863 : f32
    %1775 = vector.broadcast %cst_1039 : f32 to vector<8x64xf32>
    %1776 = arith.mulf %1774, %1775 : vector<8x64xf32>
    %1777 = vector.extract_strided_slice %1097 {offsets = [1, 0], sizes = [8, 64], strides = [1, 1]} : vector<10x64xf32> to vector<8x64xf32>
    %cst_1040 = arith.constant 0.83651632 : f32
    %1778 = vector.broadcast %cst_1040 : f32 to vector<8x64xf32>
    %1779 = arith.mulf %1777, %1778 : vector<8x64xf32>
    %1780 = arith.addf %1776, %1779 : vector<8x64xf32>
    %1781 = arith.addf %1773, %1780 : vector<8x64xf32>
    %c3_1041 = arith.constant 3 : index
    %c0_1042 = arith.constant 0 : index
    %c0_1043 = arith.constant 0 : index
    %1782 = vector.load %arg9[%c3_1041, %c0_1042, %c0_1043] : memref<4x10x80xf32, #tpu.memory_space<vmem>>, vector<1x8x64xf32>
    %1783 = vector.shape_cast %1782 : vector<1x8x64xf32> to vector<8x64xf32>
    %c0_1044 = arith.constant 0 : index
    %c0_1045 = arith.constant 0 : index
    %1784 = vector.load %arg5[%c0_1044, %c0_1045] : memref<25x64xf32, #tpu.memory_space<vmem>>, vector<1x64xf32>
    %1785 = vector.shape_cast %1784 : vector<1x64xf32> to vector<64xf32>
    %1786 = vector.shape_cast %1785 : vector<64xf32> to vector<1x64xf32>
    %1787 = vector.broadcast %1786 : vector<1x64xf32> to vector<8x64xf32>
    %1788 = arith.mulf %1783, %1787 : vector<8x64xf32>
    %1789 = arith.addf %1781, %1788 : vector<8x64xf32>
    %c2_1046 = arith.constant 2 : index
    %c0_1047 = arith.constant 0 : index
    %c8_1048 = arith.constant 8 : index
    %1790 = vector.load %arg9[%c2_1046, %c0_1047, %c8_1048] : memref<4x10x80xf32, #tpu.memory_space<vmem>>, vector<1x8x64xf32>
    %1791 = vector.shape_cast %1790 : vector<1x8x64xf32> to vector<8x64xf32>
    %c1_1049 = arith.constant 1 : index
    %c0_1050 = arith.constant 0 : index
    %1792 = vector.load %arg5[%c1_1049, %c0_1050] : memref<25x64xf32, #tpu.memory_space<vmem>>, vector<1x64xf32>
    %1793 = vector.shape_cast %1792 : vector<1x64xf32> to vector<64xf32>
    %1794 = vector.shape_cast %1793 : vector<64xf32> to vector<1x64xf32>
    %1795 = vector.broadcast %1794 : vector<1x64xf32> to vector<8x64xf32>
    %1796 = arith.mulf %1791, %1795 : vector<8x64xf32>
    %1797 = arith.addf %1789, %1796 : vector<8x64xf32>
    %c3_1051 = arith.constant 3 : index
    %c0_1052 = arith.constant 0 : index
    %c8_1053 = arith.constant 8 : index
    %1798 = vector.load %arg9[%c3_1051, %c0_1052, %c8_1053] : memref<4x10x80xf32, #tpu.memory_space<vmem>>, vector<1x8x64xf32>
    %1799 = vector.shape_cast %1798 : vector<1x8x64xf32> to vector<8x64xf32>
    %c2_1054 = arith.constant 2 : index
    %c0_1055 = arith.constant 0 : index
    %1800 = vector.load %arg5[%c2_1054, %c0_1055] : memref<25x64xf32, #tpu.memory_space<vmem>>, vector<1x64xf32>
    %1801 = vector.shape_cast %1800 : vector<1x64xf32> to vector<64xf32>
    %1802 = vector.shape_cast %1801 : vector<64xf32> to vector<1x64xf32>
    %1803 = vector.broadcast %1802 : vector<1x64xf32> to vector<8x64xf32>
    %1804 = arith.mulf %1799, %1803 : vector<8x64xf32>
    %1805 = arith.addf %1797, %1804 : vector<8x64xf32>
    %c2_1056 = arith.constant 2 : index
    %c0_1057 = arith.constant 0 : index
    %c16_1058 = arith.constant 16 : index
    %1806 = vector.load %arg9[%c2_1056, %c0_1057, %c16_1058] : memref<4x10x80xf32, #tpu.memory_space<vmem>>, vector<1x8x64xf32>
    %1807 = vector.shape_cast %1806 : vector<1x8x64xf32> to vector<8x64xf32>
    %c3_1059 = arith.constant 3 : index
    %c0_1060 = arith.constant 0 : index
    %1808 = vector.load %arg5[%c3_1059, %c0_1060] : memref<25x64xf32, #tpu.memory_space<vmem>>, vector<1x64xf32>
    %1809 = vector.shape_cast %1808 : vector<1x64xf32> to vector<64xf32>
    %1810 = vector.shape_cast %1809 : vector<64xf32> to vector<1x64xf32>
    %1811 = vector.broadcast %1810 : vector<1x64xf32> to vector<8x64xf32>
    %1812 = arith.mulf %1807, %1811 : vector<8x64xf32>
    %1813 = arith.addf %1805, %1812 : vector<8x64xf32>
    %c3_1061 = arith.constant 3 : index
    %c0_1062 = arith.constant 0 : index
    %c16_1063 = arith.constant 16 : index
    %1814 = vector.load %arg9[%c3_1061, %c0_1062, %c16_1063] : memref<4x10x80xf32, #tpu.memory_space<vmem>>, vector<1x8x64xf32>
    %1815 = vector.shape_cast %1814 : vector<1x8x64xf32> to vector<8x64xf32>
    %c4_1064 = arith.constant 4 : index
    %c0_1065 = arith.constant 0 : index
    %1816 = vector.load %arg5[%c4_1064, %c0_1065] : memref<25x64xf32, #tpu.memory_space<vmem>>, vector<1x64xf32>
    %1817 = vector.shape_cast %1816 : vector<1x64xf32> to vector<64xf32>
    %1818 = vector.shape_cast %1817 : vector<64xf32> to vector<1x64xf32>
    %1819 = vector.broadcast %1818 : vector<1x64xf32> to vector<8x64xf32>
    %1820 = arith.mulf %1815, %1819 : vector<8x64xf32>
    %1821 = arith.addf %1813, %1820 : vector<8x64xf32>
    %c1_1066 = arith.constant 1 : index
    %c1_1067 = arith.constant 1 : index
    %c0_1068 = arith.constant 0 : index
    %1822 = vector.load %arg9[%c1_1066, %c1_1067, %c0_1068] : memref<4x10x80xf32, #tpu.memory_space<vmem>>, vector<1x8x64xf32>
    %1823 = vector.shape_cast %1822 : vector<1x8x64xf32> to vector<8x64xf32>
    %c5_1069 = arith.constant 5 : index
    %c0_1070 = arith.constant 0 : index
    %1824 = vector.load %arg5[%c5_1069, %c0_1070] : memref<25x64xf32, #tpu.memory_space<vmem>>, vector<1x64xf32>
    %1825 = vector.shape_cast %1824 : vector<1x64xf32> to vector<64xf32>
    %1826 = vector.shape_cast %1825 : vector<64xf32> to vector<1x64xf32>
    %1827 = vector.broadcast %1826 : vector<1x64xf32> to vector<8x64xf32>
    %1828 = arith.mulf %1823, %1827 : vector<8x64xf32>
    %1829 = arith.addf %1821, %1828 : vector<8x64xf32>
    %c0_1071 = arith.constant 0 : index
    %c1_1072 = arith.constant 1 : index
    %c8_1073 = arith.constant 8 : index
    %1830 = vector.load %arg9[%c0_1071, %c1_1072, %c8_1073] : memref<4x10x80xf32, #tpu.memory_space<vmem>>, vector<1x8x64xf32>
    %1831 = vector.shape_cast %1830 : vector<1x8x64xf32> to vector<8x64xf32>
    %c6_1074 = arith.constant 6 : index
    %c0_1075 = arith.constant 0 : index
    %1832 = vector.load %arg5[%c6_1074, %c0_1075] : memref<25x64xf32, #tpu.memory_space<vmem>>, vector<1x64xf32>
    %1833 = vector.shape_cast %1832 : vector<1x64xf32> to vector<64xf32>
    %1834 = vector.shape_cast %1833 : vector<64xf32> to vector<1x64xf32>
    %1835 = vector.broadcast %1834 : vector<1x64xf32> to vector<8x64xf32>
    %1836 = arith.mulf %1831, %1835 : vector<8x64xf32>
    %1837 = arith.addf %1829, %1836 : vector<8x64xf32>
    %c1_1076 = arith.constant 1 : index
    %c1_1077 = arith.constant 1 : index
    %c8_1078 = arith.constant 8 : index
    %1838 = vector.load %arg9[%c1_1076, %c1_1077, %c8_1078] : memref<4x10x80xf32, #tpu.memory_space<vmem>>, vector<1x8x64xf32>
    %1839 = vector.shape_cast %1838 : vector<1x8x64xf32> to vector<8x64xf32>
    %c7_1079 = arith.constant 7 : index
    %c0_1080 = arith.constant 0 : index
    %1840 = vector.load %arg5[%c7_1079, %c0_1080] : memref<25x64xf32, #tpu.memory_space<vmem>>, vector<1x64xf32>
    %1841 = vector.shape_cast %1840 : vector<1x64xf32> to vector<64xf32>
    %1842 = vector.shape_cast %1841 : vector<64xf32> to vector<1x64xf32>
    %1843 = vector.broadcast %1842 : vector<1x64xf32> to vector<8x64xf32>
    %1844 = arith.mulf %1839, %1843 : vector<8x64xf32>
    %1845 = arith.addf %1837, %1844 : vector<8x64xf32>
    %c0_1081 = arith.constant 0 : index
    %c1_1082 = arith.constant 1 : index
    %c16_1083 = arith.constant 16 : index
    %1846 = vector.load %arg9[%c0_1081, %c1_1082, %c16_1083] : memref<4x10x80xf32, #tpu.memory_space<vmem>>, vector<1x8x64xf32>
    %1847 = vector.shape_cast %1846 : vector<1x8x64xf32> to vector<8x64xf32>
    %c8_1084 = arith.constant 8 : index
    %c0_1085 = arith.constant 0 : index
    %1848 = vector.load %arg5[%c8_1084, %c0_1085] : memref<25x64xf32, #tpu.memory_space<vmem>>, vector<1x64xf32>
    %1849 = vector.shape_cast %1848 : vector<1x64xf32> to vector<64xf32>
    %1850 = vector.shape_cast %1849 : vector<64xf32> to vector<1x64xf32>
    %1851 = vector.broadcast %1850 : vector<1x64xf32> to vector<8x64xf32>
    %1852 = arith.mulf %1847, %1851 : vector<8x64xf32>
    %1853 = arith.addf %1845, %1852 : vector<8x64xf32>
    %c1_1086 = arith.constant 1 : index
    %c1_1087 = arith.constant 1 : index
    %c16_1088 = arith.constant 16 : index
    %1854 = vector.load %arg9[%c1_1086, %c1_1087, %c16_1088] : memref<4x10x80xf32, #tpu.memory_space<vmem>>, vector<1x8x64xf32>
    %1855 = vector.shape_cast %1854 : vector<1x8x64xf32> to vector<8x64xf32>
    %c9_1089 = arith.constant 9 : index
    %c0_1090 = arith.constant 0 : index
    %1856 = vector.load %arg5[%c9_1089, %c0_1090] : memref<25x64xf32, #tpu.memory_space<vmem>>, vector<1x64xf32>
    %1857 = vector.shape_cast %1856 : vector<1x64xf32> to vector<64xf32>
    %1858 = vector.shape_cast %1857 : vector<64xf32> to vector<1x64xf32>
    %1859 = vector.broadcast %1858 : vector<1x64xf32> to vector<8x64xf32>
    %1860 = arith.mulf %1855, %1859 : vector<8x64xf32>
    %1861 = arith.addf %1853, %1860 : vector<8x64xf32>
    %c3_1091 = arith.constant 3 : index
    %c1_1092 = arith.constant 1 : index
    %c0_1093 = arith.constant 0 : index
    %1862 = vector.load %arg9[%c3_1091, %c1_1092, %c0_1093] : memref<4x10x80xf32, #tpu.memory_space<vmem>>, vector<1x8x64xf32>
    %1863 = vector.shape_cast %1862 : vector<1x8x64xf32> to vector<8x64xf32>
    %c10_1094 = arith.constant 10 : index
    %c0_1095 = arith.constant 0 : index
    %1864 = vector.load %arg5[%c10_1094, %c0_1095] : memref<25x64xf32, #tpu.memory_space<vmem>>, vector<1x64xf32>
    %1865 = vector.shape_cast %1864 : vector<1x64xf32> to vector<64xf32>
    %1866 = vector.shape_cast %1865 : vector<64xf32> to vector<1x64xf32>
    %1867 = vector.broadcast %1866 : vector<1x64xf32> to vector<8x64xf32>
    %1868 = arith.mulf %1863, %1867 : vector<8x64xf32>
    %1869 = arith.addf %1861, %1868 : vector<8x64xf32>
    %c2_1096 = arith.constant 2 : index
    %c1_1097 = arith.constant 1 : index
    %c8_1098 = arith.constant 8 : index
    %1870 = vector.load %arg9[%c2_1096, %c1_1097, %c8_1098] : memref<4x10x80xf32, #tpu.memory_space<vmem>>, vector<1x8x64xf32>
    %1871 = vector.shape_cast %1870 : vector<1x8x64xf32> to vector<8x64xf32>
    %c11_1099 = arith.constant 11 : index
    %c0_1100 = arith.constant 0 : index
    %1872 = vector.load %arg5[%c11_1099, %c0_1100] : memref<25x64xf32, #tpu.memory_space<vmem>>, vector<1x64xf32>
    %1873 = vector.shape_cast %1872 : vector<1x64xf32> to vector<64xf32>
    %1874 = vector.shape_cast %1873 : vector<64xf32> to vector<1x64xf32>
    %1875 = vector.broadcast %1874 : vector<1x64xf32> to vector<8x64xf32>
    %1876 = arith.mulf %1871, %1875 : vector<8x64xf32>
    %1877 = arith.addf %1869, %1876 : vector<8x64xf32>
    %c3_1101 = arith.constant 3 : index
    %c1_1102 = arith.constant 1 : index
    %c8_1103 = arith.constant 8 : index
    %1878 = vector.load %arg9[%c3_1101, %c1_1102, %c8_1103] : memref<4x10x80xf32, #tpu.memory_space<vmem>>, vector<1x8x64xf32>
    %1879 = vector.shape_cast %1878 : vector<1x8x64xf32> to vector<8x64xf32>
    %c12_1104 = arith.constant 12 : index
    %c0_1105 = arith.constant 0 : index
    %1880 = vector.load %arg5[%c12_1104, %c0_1105] : memref<25x64xf32, #tpu.memory_space<vmem>>, vector<1x64xf32>
    %1881 = vector.shape_cast %1880 : vector<1x64xf32> to vector<64xf32>
    %1882 = vector.shape_cast %1881 : vector<64xf32> to vector<1x64xf32>
    %1883 = vector.broadcast %1882 : vector<1x64xf32> to vector<8x64xf32>
    %1884 = arith.mulf %1879, %1883 : vector<8x64xf32>
    %1885 = arith.addf %1877, %1884 : vector<8x64xf32>
    %c2_1106 = arith.constant 2 : index
    %c1_1107 = arith.constant 1 : index
    %c16_1108 = arith.constant 16 : index
    %1886 = vector.load %arg9[%c2_1106, %c1_1107, %c16_1108] : memref<4x10x80xf32, #tpu.memory_space<vmem>>, vector<1x8x64xf32>
    %1887 = vector.shape_cast %1886 : vector<1x8x64xf32> to vector<8x64xf32>
    %c13_1109 = arith.constant 13 : index
    %c0_1110 = arith.constant 0 : index
    %1888 = vector.load %arg5[%c13_1109, %c0_1110] : memref<25x64xf32, #tpu.memory_space<vmem>>, vector<1x64xf32>
    %1889 = vector.shape_cast %1888 : vector<1x64xf32> to vector<64xf32>
    %1890 = vector.shape_cast %1889 : vector<64xf32> to vector<1x64xf32>
    %1891 = vector.broadcast %1890 : vector<1x64xf32> to vector<8x64xf32>
    %1892 = arith.mulf %1887, %1891 : vector<8x64xf32>
    %1893 = arith.addf %1885, %1892 : vector<8x64xf32>
    %c3_1111 = arith.constant 3 : index
    %c1_1112 = arith.constant 1 : index
    %c16_1113 = arith.constant 16 : index
    %1894 = vector.load %arg9[%c3_1111, %c1_1112, %c16_1113] : memref<4x10x80xf32, #tpu.memory_space<vmem>>, vector<1x8x64xf32>
    %1895 = vector.shape_cast %1894 : vector<1x8x64xf32> to vector<8x64xf32>
    %c14_1114 = arith.constant 14 : index
    %c0_1115 = arith.constant 0 : index
    %1896 = vector.load %arg5[%c14_1114, %c0_1115] : memref<25x64xf32, #tpu.memory_space<vmem>>, vector<1x64xf32>
    %1897 = vector.shape_cast %1896 : vector<1x64xf32> to vector<64xf32>
    %1898 = vector.shape_cast %1897 : vector<64xf32> to vector<1x64xf32>
    %1899 = vector.broadcast %1898 : vector<1x64xf32> to vector<8x64xf32>
    %1900 = arith.mulf %1895, %1899 : vector<8x64xf32>
    %1901 = arith.addf %1893, %1900 : vector<8x64xf32>
    %c1_1116 = arith.constant 1 : index
    %c2_1117 = arith.constant 2 : index
    %c0_1118 = arith.constant 0 : index
    %1902 = vector.load %arg9[%c1_1116, %c2_1117, %c0_1118] : memref<4x10x80xf32, #tpu.memory_space<vmem>>, vector<1x8x64xf32>
    %1903 = vector.shape_cast %1902 : vector<1x8x64xf32> to vector<8x64xf32>
    %c15_1119 = arith.constant 15 : index
    %c0_1120 = arith.constant 0 : index
    %1904 = vector.load %arg5[%c15_1119, %c0_1120] : memref<25x64xf32, #tpu.memory_space<vmem>>, vector<1x64xf32>
    %1905 = vector.shape_cast %1904 : vector<1x64xf32> to vector<64xf32>
    %1906 = vector.shape_cast %1905 : vector<64xf32> to vector<1x64xf32>
    %1907 = vector.broadcast %1906 : vector<1x64xf32> to vector<8x64xf32>
    %1908 = arith.mulf %1903, %1907 : vector<8x64xf32>
    %1909 = arith.addf %1901, %1908 : vector<8x64xf32>
    %c0_1121 = arith.constant 0 : index
    %c2_1122 = arith.constant 2 : index
    %c8_1123 = arith.constant 8 : index
    %1910 = vector.load %arg9[%c0_1121, %c2_1122, %c8_1123] : memref<4x10x80xf32, #tpu.memory_space<vmem>>, vector<1x8x64xf32>
    %1911 = vector.shape_cast %1910 : vector<1x8x64xf32> to vector<8x64xf32>
    %c16_1124 = arith.constant 16 : index
    %c0_1125 = arith.constant 0 : index
    %1912 = vector.load %arg5[%c16_1124, %c0_1125] : memref<25x64xf32, #tpu.memory_space<vmem>>, vector<1x64xf32>
    %1913 = vector.shape_cast %1912 : vector<1x64xf32> to vector<64xf32>
    %1914 = vector.shape_cast %1913 : vector<64xf32> to vector<1x64xf32>
    %1915 = vector.broadcast %1914 : vector<1x64xf32> to vector<8x64xf32>
    %1916 = arith.mulf %1911, %1915 : vector<8x64xf32>
    %1917 = arith.addf %1909, %1916 : vector<8x64xf32>
    %c1_1126 = arith.constant 1 : index
    %c2_1127 = arith.constant 2 : index
    %c8_1128 = arith.constant 8 : index
    %1918 = vector.load %arg9[%c1_1126, %c2_1127, %c8_1128] : memref<4x10x80xf32, #tpu.memory_space<vmem>>, vector<1x8x64xf32>
    %1919 = vector.shape_cast %1918 : vector<1x8x64xf32> to vector<8x64xf32>
    %c17_1129 = arith.constant 17 : index
    %c0_1130 = arith.constant 0 : index
    %1920 = vector.load %arg5[%c17_1129, %c0_1130] : memref<25x64xf32, #tpu.memory_space<vmem>>, vector<1x64xf32>
    %1921 = vector.shape_cast %1920 : vector<1x64xf32> to vector<64xf32>
    %1922 = vector.shape_cast %1921 : vector<64xf32> to vector<1x64xf32>
    %1923 = vector.broadcast %1922 : vector<1x64xf32> to vector<8x64xf32>
    %1924 = arith.mulf %1919, %1923 : vector<8x64xf32>
    %1925 = arith.addf %1917, %1924 : vector<8x64xf32>
    %c0_1131 = arith.constant 0 : index
    %c2_1132 = arith.constant 2 : index
    %c16_1133 = arith.constant 16 : index
    %1926 = vector.load %arg9[%c0_1131, %c2_1132, %c16_1133] : memref<4x10x80xf32, #tpu.memory_space<vmem>>, vector<1x8x64xf32>
    %1927 = vector.shape_cast %1926 : vector<1x8x64xf32> to vector<8x64xf32>
    %c18_1134 = arith.constant 18 : index
    %c0_1135 = arith.constant 0 : index
    %1928 = vector.load %arg5[%c18_1134, %c0_1135] : memref<25x64xf32, #tpu.memory_space<vmem>>, vector<1x64xf32>
    %1929 = vector.shape_cast %1928 : vector<1x64xf32> to vector<64xf32>
    %1930 = vector.shape_cast %1929 : vector<64xf32> to vector<1x64xf32>
    %1931 = vector.broadcast %1930 : vector<1x64xf32> to vector<8x64xf32>
    %1932 = arith.mulf %1927, %1931 : vector<8x64xf32>
    %1933 = arith.addf %1925, %1932 : vector<8x64xf32>
    %c1_1136 = arith.constant 1 : index
    %c2_1137 = arith.constant 2 : index
    %c16_1138 = arith.constant 16 : index
    %1934 = vector.load %arg9[%c1_1136, %c2_1137, %c16_1138] : memref<4x10x80xf32, #tpu.memory_space<vmem>>, vector<1x8x64xf32>
    %1935 = vector.shape_cast %1934 : vector<1x8x64xf32> to vector<8x64xf32>
    %c19_1139 = arith.constant 19 : index
    %c0_1140 = arith.constant 0 : index
    %1936 = vector.load %arg5[%c19_1139, %c0_1140] : memref<25x64xf32, #tpu.memory_space<vmem>>, vector<1x64xf32>
    %1937 = vector.shape_cast %1936 : vector<1x64xf32> to vector<64xf32>
    %1938 = vector.shape_cast %1937 : vector<64xf32> to vector<1x64xf32>
    %1939 = vector.broadcast %1938 : vector<1x64xf32> to vector<8x64xf32>
    %1940 = arith.mulf %1935, %1939 : vector<8x64xf32>
    %1941 = arith.addf %1933, %1940 : vector<8x64xf32>
    %c3_1141 = arith.constant 3 : index
    %c2_1142 = arith.constant 2 : index
    %c0_1143 = arith.constant 0 : index
    %1942 = vector.load %arg9[%c3_1141, %c2_1142, %c0_1143] : memref<4x10x80xf32, #tpu.memory_space<vmem>>, vector<1x8x64xf32>
    %1943 = vector.shape_cast %1942 : vector<1x8x64xf32> to vector<8x64xf32>
    %c20_1144 = arith.constant 20 : index
    %c0_1145 = arith.constant 0 : index
    %1944 = vector.load %arg5[%c20_1144, %c0_1145] : memref<25x64xf32, #tpu.memory_space<vmem>>, vector<1x64xf32>
    %1945 = vector.shape_cast %1944 : vector<1x64xf32> to vector<64xf32>
    %1946 = vector.shape_cast %1945 : vector<64xf32> to vector<1x64xf32>
    %1947 = vector.broadcast %1946 : vector<1x64xf32> to vector<8x64xf32>
    %1948 = arith.mulf %1943, %1947 : vector<8x64xf32>
    %1949 = arith.addf %1941, %1948 : vector<8x64xf32>
    %c2_1146 = arith.constant 2 : index
    %c2_1147 = arith.constant 2 : index
    %c8_1148 = arith.constant 8 : index
    %1950 = vector.load %arg9[%c2_1146, %c2_1147, %c8_1148] : memref<4x10x80xf32, #tpu.memory_space<vmem>>, vector<1x8x64xf32>
    %1951 = vector.shape_cast %1950 : vector<1x8x64xf32> to vector<8x64xf32>
    %c21_1149 = arith.constant 21 : index
    %c0_1150 = arith.constant 0 : index
    %1952 = vector.load %arg5[%c21_1149, %c0_1150] : memref<25x64xf32, #tpu.memory_space<vmem>>, vector<1x64xf32>
    %1953 = vector.shape_cast %1952 : vector<1x64xf32> to vector<64xf32>
    %1954 = vector.shape_cast %1953 : vector<64xf32> to vector<1x64xf32>
    %1955 = vector.broadcast %1954 : vector<1x64xf32> to vector<8x64xf32>
    %1956 = arith.mulf %1951, %1955 : vector<8x64xf32>
    %1957 = arith.addf %1949, %1956 : vector<8x64xf32>
    %c3_1151 = arith.constant 3 : index
    %c2_1152 = arith.constant 2 : index
    %c8_1153 = arith.constant 8 : index
    %1958 = vector.load %arg9[%c3_1151, %c2_1152, %c8_1153] : memref<4x10x80xf32, #tpu.memory_space<vmem>>, vector<1x8x64xf32>
    %1959 = vector.shape_cast %1958 : vector<1x8x64xf32> to vector<8x64xf32>
    %c22_1154 = arith.constant 22 : index
    %c0_1155 = arith.constant 0 : index
    %1960 = vector.load %arg5[%c22_1154, %c0_1155] : memref<25x64xf32, #tpu.memory_space<vmem>>, vector<1x64xf32>
    %1961 = vector.shape_cast %1960 : vector<1x64xf32> to vector<64xf32>
    %1962 = vector.shape_cast %1961 : vector<64xf32> to vector<1x64xf32>
    %1963 = vector.broadcast %1962 : vector<1x64xf32> to vector<8x64xf32>
    %1964 = arith.mulf %1959, %1963 : vector<8x64xf32>
    %1965 = arith.addf %1957, %1964 : vector<8x64xf32>
    %c2_1156 = arith.constant 2 : index
    %c2_1157 = arith.constant 2 : index
    %c16_1158 = arith.constant 16 : index
    %1966 = vector.load %arg9[%c2_1156, %c2_1157, %c16_1158] : memref<4x10x80xf32, #tpu.memory_space<vmem>>, vector<1x8x64xf32>
    %1967 = vector.shape_cast %1966 : vector<1x8x64xf32> to vector<8x64xf32>
    %c23_1159 = arith.constant 23 : index
    %c0_1160 = arith.constant 0 : index
    %1968 = vector.load %arg5[%c23_1159, %c0_1160] : memref<25x64xf32, #tpu.memory_space<vmem>>, vector<1x64xf32>
    %1969 = vector.shape_cast %1968 : vector<1x64xf32> to vector<64xf32>
    %1970 = vector.shape_cast %1969 : vector<64xf32> to vector<1x64xf32>
    %1971 = vector.broadcast %1970 : vector<1x64xf32> to vector<8x64xf32>
    %1972 = arith.mulf %1967, %1971 : vector<8x64xf32>
    %1973 = arith.addf %1965, %1972 : vector<8x64xf32>
    %c3_1161 = arith.constant 3 : index
    %c2_1162 = arith.constant 2 : index
    %c16_1163 = arith.constant 16 : index
    %1974 = vector.load %arg9[%c3_1161, %c2_1162, %c16_1163] : memref<4x10x80xf32, #tpu.memory_space<vmem>>, vector<1x8x64xf32>
    %1975 = vector.shape_cast %1974 : vector<1x8x64xf32> to vector<8x64xf32>
    %c24_1164 = arith.constant 24 : index
    %c0_1165 = arith.constant 0 : index
    %1976 = vector.load %arg5[%c24_1164, %c0_1165] : memref<25x64xf32, #tpu.memory_space<vmem>>, vector<1x64xf32>
    %1977 = vector.shape_cast %1976 : vector<1x64xf32> to vector<64xf32>
    %1978 = vector.shape_cast %1977 : vector<64xf32> to vector<1x64xf32>
    %1979 = vector.broadcast %1978 : vector<1x64xf32> to vector<8x64xf32>
    %1980 = arith.mulf %1975, %1979 : vector<8x64xf32>
    %1981 = arith.addf %1973, %1980 : vector<8x64xf32>
    %c0_1166 = arith.constant 0 : index
    %c0_1167 = arith.constant 0 : index
    %1982 = vector.load %arg6[%c0_1166, %c0_1167] : memref<1x64xf32, #tpu.memory_space<vmem>>, vector<1x64xf32>
    %1983 = vector.shape_cast %1982 : vector<1x64xf32> to vector<64xf32>
    %1984 = vector.shape_cast %1983 : vector<64xf32> to vector<1x64xf32>
    %1985 = vector.broadcast %1984 : vector<1x64xf32> to vector<8x64xf32>
    %1986 = arith.addf %1981, %1985 : vector<8x64xf32>
    %c0_1168 = arith.constant 0 : index
    %c3_1169 = arith.constant 3 : index
    %c1_1170 = arith.constant 1 : index
    %c0_1171 = arith.constant 0 : index
    %1987 = vector.load %arg1[%c0_1168, %c3_1169, %c1_1170, %c0_1171] : memref<1x4x10x64xf32, #tpu.memory_space<vmem>>, vector<1x1x8x64xf32>
    %1988 = vector.shape_cast %1987 : vector<1x1x8x64xf32> to vector<8x64xf32>
    %1989 = arith.addf %1986, %1988 : vector<8x64xf32>
    %1990 = tpu.concatenate %1320, %1543, %1766, %1989 in 1 : vector<8x64xf32>, vector<8x64xf32>, vector<8x64xf32>, vector<8x64xf32> -> vector<8x256xf32>
    %c0_1172 = arith.constant 0 : index
    %c0_1173 = arith.constant 0 : index
    %c0_1174 = arith.constant 0 : index
    %1991 = vector.load %arg8[%c0_1172, %c0_1173, %c0_1174] : memref<1x8x256xf32, #tpu.memory_space<vmem>>, vector<1x8x256xf32>
    %1992 = vector.shape_cast %1991 : vector<1x8x256xf32> to vector<8x256xf32>
    %1993 = vector.shape_cast %1990 : vector<8x256xf32> to vector<1x8x256xf32>
    tpu.vector_store %arg8[%c0_1172, %c0_1173, %c0_1174], %1993 {strides = array<i32>} : memref<1x8x256xf32, #tpu.memory_space<vmem>>, vector<1x8x256xf32>,
    return
  }
  func.func @transform_0(%arg0: i32) -> (i32, i32, i32, i32) {
    %c0_i32 = arith.constant 0 : i32
    %c0_i32_0 = arith.constant 0 : i32
    %c0_i32_1 = arith.constant 0 : i32
    %c0_i32_2 = arith.constant 0 : i32
    return %arg0, %c0_i32, %c0_i32_0, %c0_i32_1 : i32, i32, i32, i32
  }
  func.func @transform_1(%arg0: i32) -> (i32, i32) {
    %c0_i32 = arith.constant 0 : i32
    %c0_i32_0 = arith.constant 0 : i32
    %c0_i32_1 = arith.constant 0 : i32
    return %c0_i32, %c0_i32_0 : i32, i32
  }
  func.func @transform_2(%arg0: i32) -> (i32, i32) {
    %c0_i32 = arith.constant 0 : i32
    %c0_i32_0 = arith.constant 0 : i32
    %c0_i32_1 = arith.constant 0 : i32
    return %c0_i32, %c0_i32_0 : i32, i32
  }
  func.func @transform_3(%arg0: i32) -> (i32, i32) {
    %c0_i32 = arith.constant 0 : i32
    %c0_i32_0 = arith.constant 0 : i32
    %c0_i32_1 = arith.constant 0 : i32
    return %c0_i32, %c0_i32_0 : i32, i32
  }
  func.func @transform_4(%arg0: i32) -> (i32, i32) {
    %c0_i32 = arith.constant 0 : i32
    %c0_i32_0 = arith.constant 0 : i32
    %c0_i32_1 = arith.constant 0 : i32
    return %c0_i32, %c0_i32_0 : i32, i32
  }
  func.func @transform_5(%arg0: i32) -> (i32, i32) {
    %c0_i32 = arith.constant 0 : i32
    %c0_i32_0 = arith.constant 0 : i32
    %c0_i32_1 = arith.constant 0 : i32
    return %c0_i32, %c0_i32_0 : i32, i32
  }
  func.func @transform_6(%arg0: i32) -> (i32, i32) {
    %c0_i32 = arith.constant 0 : i32
    %c0_i32_0 = arith.constant 0 : i32
    %c0_i32_1 = arith.constant 0 : i32
    return %c0_i32, %c0_i32_0 : i32, i32
  }
  func.func @transform_7(%arg0: i32) -> (i32, i32, i32) {
    %c0_i32 = arith.constant 0 : i32
    %c0_i32_0 = arith.constant 0 : i32
    %c0_i32_1 = arith.constant 0 : i32
    return %arg0, %c0_i32, %c0_i32_0 : i32, i32, i32
  }
}

</mosaic_0001>

<bundles_post_ra>
// kernel: tpu_custom_call.1
= control target key start
LH: loop header
LB: loop body
LE: loop exit
PB: predicated region body
PF: predicated region fallthrough
CT: control target
= control target key end

     0   :  { %12 = vsyncpa [#allocation6], 0  ;;  %s6524_s0 = inlined_call_operand.vmem [shape: f32[2,4,10,64], index: 0, kind: input, shape index: {}]   ;;  %s6525_s1 = inlined_call_operand.hbm [shape: bf16[512,256], index: 1, kind: input, shape index: {}]   ;;  %s6526_s2 = inlined_call_operand.vmem [shape: f32[1,256], index: 2, kind: input, shape index: {}]   ;;  %s6527_s3 = inlined_call_operand.vmem [shape: f32[1,256], index: 3, kind: input, shape index: {}]   ;;  %s6528_s4 = inlined_call_operand.vmem [shape: f32[25,64], index: 4, kind: input, shape index: {}]   ;;  %s6529_s5 = inlined_call_operand.vmem [shape: f32[1,64], index: 5, kind: input, shape index: {}]   ;;  %s6530_s6 = inlined_call_operand.vmem [shape: f32[100,64], index: 6, kind: input, shape index: {}]   ;;  %s6531_s7 = inlined_call_operand.hbm [shape: f32[2,8,256], index: 7, kind: output, shape index: {}]  }
   0x1   :  { %13 = vsyncpa [#allocation7], 0 }
   0x2   :  { %15 = vsyncpa [#allocation7 + $0x1], 0  ;;  %s4464_s24 = smov 0   ;;  %s4466_s25 = smov 0  }
   0x3   :  { %s4468_s26 = smov 0   ;;  %s4470_s27 = smov 0  }
   0x4 LB: > { %s4485_s28 = sadd.s32 4294967295, %s4406_s27   ;;  %s3918_s29 = sadd.s32 4294967294, %s4406_s27   ;;  %s4406_s27 = sphi %s4470_s27, %s6870_s27   ;;  %s4402_s26 = sphi %s4468_s26, %s6869_s26   ;;  %s4398_s25 = sphi %s4466_s25, %s6868_s25   ;;  %s4394_s24 = sphi %s4464_s24, %s6867_s24  }
   0x5   : > { %s4489_s30 = sadd.s32 1, %s4406_s27   ;;  %s180_s8 = sadd.s32 1, %s4402_s26 }
   0x6   : > { %s177_s9 = ssub.s32 %s4406_s27, %s4489_s30  ;;  %p190_p0 = scmp.ne.s32.totalorder %s4402_s26, %s4398_s25 }
   0x7   : > { %p178_p1 = scmp.eq.s32.totalorder %s177_s9, 0  ;;  %p191_p2 = scmp.eq.s32.totalorder %s4485_s28, 1 }
   0x8   : > { %p196_p3 = scmp.ne.s32.totalorder %s4398_s25, %s4394_s24  ;;  %p197_p4 = scmp.eq.s32.totalorder %s3918_s29, 1 }
   0x9   : > { %s4500_s10 = scalar_select %p178_p1, %s4402_s26, %s180_s8  }
   0xa   : > { %p4502_p5 = por %p191_p2, %p190_p0  ;;  %p4506_p6 = por %p197_p4, %p196_p3 }
   0xb   : > { %p3919_p7 = scmp.ge.s32.totalorder %s4406_s27, 1  ;;  %p204_p8 = scmp.lt.s32.totalorder %s4406_s27, 3 }
   0xc   : > { %s6605_s12 = scalar_select %p4506_p6, 1, 0 }
   0xd   : > { %p4147_p9 = scmp.eq.s32.totalorder %s4485_s28, 0  ;;  %p4513_p10 = pnand %p3919_p7, %p204_p8 }
   0xe   : > { %s4408_s14 = smov [#allocation5]  }
   0xf   : > { %s216_s15 = sshll.u32 %s4408_s14, 4  ;;  %p4139_p11 = pneg %p4513_p10  ;;  %s217_s15 = int_to_ptr.vmem [resolvable:$true] %s216_s15 }
  0x10   : > { %s4327_s16 = scalar_lea.vmem %s217_s15, 8192  ;;  %p4335_p3 = scmp.lt.s32.totalorder %s217_s15, %s217_s15 }
  0x11   : > { %p4140_p12 = pnand %p4147_p9, %p4139_p11  ;;  %p4328_p0 = scmp.ne.s32.totalorder %s217_s15, %s4327_s16 }
  0x12   : > { %p4336_p4 = scmp.lt.s32.totalorder %s4327_s16, %s4327_s16 }
  0x13   : > { %p4318_p13 = pneg %p4140_p12 }
  0x14   : > { %p4337_p6 = por %p4336_p4, %p4335_p3 }
  0x15   : > { %p4330_p1 = pnand %p4328_p0, %p4318_p13 }
  0x17   : > { %p4331_p2 = pneg %p4330_p1 }
  0x19   : > { %p4338_p7 = pnand %p4337_p6, %p4331_p2 }
  0x1b   : > { %4341 = shalt.err (!%p4338_p7)
}
  0x1c   : > { %s4409_s17 = smov 128   ;;  %s4410_s18 = smov 8  }
  0x1d   : > { %4142 = dma.hbm_to_vmem [thread:$0]  (!%p4140_p12), %s6525_s1, 8192, %s217_s15, [#allocation6], %s4409_s17, %s4409_s17, %s4410_s18  }
  0x1e   : > { %255 = sbr.rel (%p4513_p10) target bundleno = 1579 (0x62b), region = 48 }
  0x23   : > { %4385 = dma.done.wait (%p4147_p9), [#allocation6], 8192  }
  0x24   : > { %4387 = vsyncadd (%p4147_p9), [#allocation6], 4294959104  ;;  %p287_p8 = scmp.lt.s32.totalorder %s4485_s28, 1  ;;  %v4197_v6 = vld [vmem:[#allocation5 + $0x74] ss:$8 sps:$4 sm:$0xff]   ;;  %s4411_s9 = smov 64  }
  0x25   : > { %v4199_v7 = vld [vmem:[#allocation5 + $0x70] ss:$8 sps:$4 sm:$0xff]   ;;  %v4200_v10 = vld [vmem:[#allocation5 + $0x64] ss:$8 sps:$4 sm:$0xff]   ;;  %752 = vmatprep.subr.bf16.mxu0 %v4197_v6  ;;  %v4202_v11 = vld [vmem:[#allocation5 + $0x174] ss:$8 sps:$4 sm:$0xff]  }
  0x26   : > { %s288_s21 = scalar_select %p287_p8, %s4485_s28, 1  ;;  %v4204_v12 = vld [vmem:[#allocation5 + $0x60] ss:$8 sps:$4 sm:$0xff]   ;;  %753 = vmatpush1.bf16.msra.mxu0 %v4199_v7  ;;  %v4205_v13 = vld [vmem:[#allocation5 + $0x170] ss:$8 sps:$4 sm:$0xff]   ;;  %793 = vmatprep.subr.bf16.mxu1 %v4202_v11  ;;  %vm351_vm0 = vcmask 523264  }
  0x27   : > { %754 = vmatprep.subr.bf16.mxu0 %v4200_v10  ;;  %v4206_v14 = vld [vmem:[#allocation5 + $0x54] ss:$8 sps:$4 sm:$0xff]   ;;  %v4208_v15 = vld [vmem:[#allocation5 + $0x164] ss:$8 sps:$4 sm:$0xff]   ;;  %v4210_v16 = vld [vmem:[#allocation5 + $0x50] ss:$8 sps:$4 sm:$0xff]   ;;  %794 = vmatpush1.bf16.msra.mxu1 %v4205_v13 }
  0x28   : > { %s4131_s22 = sshll.u32 %s288_s21, 6  ;;  %v4211_v17 = vld [vmem:[#allocation5 + $0x160] ss:$8 sps:$4 sm:$0xff]   ;;  %795 = vmatprep.subr.bf16.mxu1 %v4208_v15  ;;  %v4214_v18 = vld [vmem:[#allocation5 + $0x154] ss:$8 sps:$4 sm:$0xff]   ;;  %s4412_s15 = smov 8  }
  0x29   : > { %s4535_s8 = scalar_lea.vmem %s6524_s0, %s4131_s22  ;;  %v4212_v19 = vld [vmem:[#allocation5 + $0x44] ss:$8 sps:$4 sm:$0xff]   ;;  %v4216_v20 = vld [vmem:[#allocation5 + $0x40] ss:$8 sps:$4 sm:$0xff]   ;;  %v4217_v21 = vld [vmem:[#allocation5 + $0x150] ss:$8 sps:$4 sm:$0xff]  }
  0x2a   : > { %v3929_v0 = vld [vmem:[%s4535_s8 + $0x11] sm:$0xff]  ;;  %755 = vmatpush1.bf16.msra.mxu0 %v4204_v12  ;;  %v4220_v22 = vld [vmem:[#allocation5 + $0x144] ss:$8 sps:$4 sm:$0xff]   ;;  %v4223_v25 = vld [vmem:[#allocation5 + $0x140] ss:$8 sps:$4 sm:$0xff]   ;;  %s4413_s22 = smov 16  }
  0x2b   : > { %v3928_v1 = vld [vmem:[%s4535_s8 + $0x30] sm:$0xff]  ;;  %v330_v3 = vpack.c.bf16 %v3929_v0, %v3929_v0  ;;  %756 = vmatprep.subr.bf16.mxu0 %v4206_v14  ;;  %796 = vmatpush1.bf16.msra.mxu1 %v4211_v17  ;;  %v4224_v27 = vld [vmem:[#allocation5 + $0x24] ss:$8 sps:$4 sm:$0xff]   ;;  %v4228_v28 = vld [vmem:[#allocation5 + $0x20] ss:$8 sps:$4 sm:$0xff]   ;;  %s4414_s14 = smov 24  }
  0x2c   : > { %v3932_v2 = vld [vmem:[%s4535_s8 + $0x12] sm:$0xff]  ;;  %v325_v4 = vpack.c.bf16 %v3928_v1, %v3928_v1  ;;  %797 = vmatprep.subr.bf16.mxu1 %v4214_v18  ;;  %v4232_v30 = vld [vmem:[#allocation5 + $0x124] ss:$8 sps:$4 sm:$0xff]   ;;  %v4235_v33 = vld [vmem:[#allocation5 + $0x120] ss:$8 sps:$4 sm:$0xff]   ;;  %s4415_s20 = smov 32  }
  0x2d   : > { %v3931_v5 = vld [vmem:[%s4535_s8 + $0x31] sm:$0xff]  ;;  %343 = vrot.lane.b32.xlu0 %v330_v3, %s4411_s9  ;;  %v338_v8 = vpack.c.bf16 %v3932_v2, %v3932_v2  ;;  %v4236_v35 = vld [vmem:[#allocation5 + $0x4] ss:$8 sps:$4 sm:$0xff]   ;;  %v4240_v36 = vld [vmem:[#allocation5] ss:$8 sps:$4 sm:$0xff]   ;;  %vm292_vm1 = vcmask 654336  }
  0x2e   : > { %340 = vrot.lane.b32.xlu1 %v325_v4, %s4411_s9  ;;  %v334_v9 = vpack.c.bf16 %v3931_v5, %v3931_v5  ;;  %757 = vmatpush1.bf16.msra.mxu0 %v4210_v16  ;;  %v4218_v23 = vld [vmem:[#allocation5 + $0x34] ss:$8 sps:$4 sm:$0xff]   ;;  %v4222_v24 = vld [vmem:[#allocation5 + $0x30] ss:$8 sps:$4 sm:$0xff]   ;;  %v4244_v38 = vld [vmem:[#allocation5 + $0x104] ss:$8 sps:$4 sm:$0xff]  }
  0x2f   : > { %758 = vmatprep.subr.bf16.mxu0 %v4212_v19  ;;  %798 = vmatpush1.bf16.msra.mxu1 %v4217_v21  ;;  %v4226_v26 = vld [vmem:[#allocation5 + $0x134] ss:$8 sps:$4 sm:$0xff]   ;;  %v4229_v29 = vld [vmem:[#allocation5 + $0x130] ss:$8 sps:$4 sm:$0xff]   ;;  %v4247_v41 = vld [vmem:[#allocation5 + $0x100] ss:$8 sps:$4 sm:$0xff]  }
  0x30   : > { %799 = vmatprep.subr.bf16.mxu1 %v4220_v22  ;;  %v4230_v31 = vld [vmem:[#allocation5 + $0x14] ss:$8 sps:$4 sm:$0xff]   ;;  %v4234_v32 = vld [vmem:[#allocation5 + $0x10] ss:$8 sps:$4 sm:$0xff]   ;;  %v4248_v43 = vld [vmem:[#allocation5 + $0xe4] ss:$8 sps:$4 sm:$0xff]  }
  0x31   : > { %349 = vrot.lane.b32.xlu0 %v338_v8, %s4411_s9  ;;  %v4238_v34 = vld [vmem:[#allocation5 + $0x114] ss:$8 sps:$4 sm:$0xff]   ;;  %v4241_v37 = vld [vmem:[#allocation5 + $0x110] ss:$8 sps:$4 sm:$0xff]   ;;  %v4252_v44 = vld [vmem:[#allocation5 + $0xe0] ss:$8 sps:$4 sm:$0xff]  }
  0x32   : > { %346 = vrot.lane.b32.xlu1 %v334_v9, %s4411_s9  ;;  %759 = vmatpush1.bf16.msra.mxu0 %v4216_v20  ;;  %v4242_v39 = vld [vmem:[#allocation5 + $0xf4] ss:$8 sps:$4 sm:$0xff]   ;;  %v4246_v40 = vld [vmem:[#allocation5 + $0xf0] ss:$8 sps:$4 sm:$0xff]   ;;  %v4256_v46 = vld [vmem:[#allocation5 + $0x1e4] ss:$8 sps:$4 sm:$0xff]  }
  0x33   : > { %760 = vmatprep.subr.bf16.mxu0 %v4218_v23  ;;  %800 = vmatpush1.bf16.msra.mxu1 %v4223_v25  ;;  %v4250_v42 = vld [vmem:[#allocation5 + $0x1f4] ss:$8 sps:$4 sm:$0xff]   ;;  %v4253_v45 = vld [vmem:[#allocation5 + $0x1f0] ss:$8 sps:$4 sm:$0xff]   ;;  %v4259_v49 = vld [vmem:[#allocation5 + $0x1e0] ss:$8 sps:$4 sm:$0xff]  }
  0x34   : > { %801 = vmatprep.subr.bf16.mxu1 %v4226_v26  ;;  %v4254_v47 = vld [vmem:[#allocation5 + $0xd4] ss:$8 sps:$4 sm:$0xff]   ;;  %v4258_v48 = vld [vmem:[#allocation5 + $0xd0] ss:$8 sps:$4 sm:$0xff]   ;;  %v4260_v51 = vld [vmem:[#allocation5 + $0xc4] ss:$8 sps:$4 sm:$0xff]  }
  0x35   : > { %v4262_v50 = vld [vmem:[#allocation5 + $0x1d4] ss:$8 sps:$4 sm:$0xff]   ;;  %v4265_v52 = vld [vmem:[#allocation5 + $0x1d0] ss:$8 sps:$4 sm:$0xff]   ;;  %v4264_v53 = vld [vmem:[#allocation5 + $0xc0] ss:$8 sps:$4 sm:$0xff]  }
  0x36   : > { %761 = vmatpush1.bf16.msra.mxu0 %v4222_v24  ;;  %v4268_v54 = vld [vmem:[#allocation5 + $0x1c4] ss:$8 sps:$4 sm:$0xff]   ;;  %v3998_v55 = vld [vmem:[%s6530_s6 + $0x1] ss:$0 sm:$0xff]  ;;  %v4266_v56 = vld [vmem:[#allocation5 + $0xb4] ss:$8 sps:$4 sm:$0xff]  }
  0x37   : > { %762 = vmatprep.subr.bf16.mxu0 %v4224_v27  ;;  %802 = vmatpush1.bf16.msra.mxu1 %v4229_v29  ;;  %v3999_v57 = vld [vmem:[%s6530_s6 + $0x2] ss:$0 sm:$0xff]  ;;  %v4023_v58 = vld [vmem:[%s6530_s6 + $0x1a] ss:$0 sm:$0xff]  ;;  %v4274_v61 = vld [vmem:[#allocation5 + $0x1b4] ss:$8 sps:$4 sm:$0xff]  }
  0x38   : > { %803 = vmatprep.subr.bf16.mxu1 %v4232_v30  ;;  %1207 = vrot.lane.b32.xlu0 %v3998_v55, %s4412_s15  ;;  %v4271_v59 = vld [vmem:[#allocation5 + $0x1c0] ss:$8 sps:$4 sm:$0xff]   ;;  %v4270_v60 = vld [vmem:[#allocation5 + $0xb0] ss:$8 sps:$4 sm:$0xff]   ;;  %v4272_v63 = vld [vmem:[#allocation5 + $0xa4] ss:$8 sps:$4 sm:$0xff]  }
  0x39   : > { %1551 = vrot.lane.b32.xlu1 %v4023_v58, %s4412_s15  ;;  %v4024_v62 = vld [vmem:[%s6530_s6 + $0x1b] ss:$0 sm:$0xff]  ;;  %v4000_v0 = vld [vmem:[%s6530_s6 + $0x3] ss:$0 sm:$0xff]  ;;  %v4280_v3 = vld [vmem:[#allocation5 + $0x1a4] ss:$8 sps:$4 sm:$0xff]  }
  0x3a   : > { %763 = vmatpush1.bf16.msra.mxu0 %v4228_v28  ;;  %v4277_v1 = vld [vmem:[#allocation5 + $0x1b0] ss:$8 sps:$4 sm:$0xff]   ;;  %v4276_v2 = vld [vmem:[#allocation5 + $0xa0] ss:$8 sps:$4 sm:$0xff]   ;;  %v4025_v4 = vld [vmem:[%s6530_s6 + $0x1c] ss:$0 sm:$0xff] }
  0x3b   : > { %764 = vmatprep.subr.bf16.mxu0 %v4230_v31  ;;  %804 = vmatpush1.bf16.msra.mxu1 %v4235_v33  ;;  %v4278_v5 = vld [vmem:[#allocation5 + $0x94] ss:$8 sps:$4 sm:$0xff]   ;;  %v4001_v6 = vld [vmem:[%s6530_s6 + $0x4] ss:$0 sm:$0xff]  ;;  %v4283_v7 = vld [vmem:[#allocation5 + $0x1a0] ss:$8 sps:$4 sm:$0xff]  }
  0x3c   : > { %805 = vmatprep.subr.bf16.mxu1 %v4238_v34  ;;  %1222 = vrot.lane.b32.xlu0 %v3999_v57, %s4413_s22  ;;  %v4282_v8 = vld [vmem:[#allocation5 + $0x90] ss:$8 sps:$4 sm:$0xff]   ;;  %v4286_v9 = vld [vmem:[#allocation5 + $0x194] ss:$8 sps:$4 sm:$0xff]   ;;  %v4284_v11 = vld [vmem:[#allocation5 + $0x84] ss:$8 sps:$4 sm:$0xff]  }
  0x3d   : > { %1566 = vrot.lane.b32.xlu1 %v4024_v62, %s4413_s22  ;;  %v4026_v10 = vld [vmem:[%s6530_s6 + $0x1d] ss:$0 sm:$0xff]  ;;  %v4003_v12 = vld [vmem:[%s6530_s6 + $0x6] ss:$0 sm:$0xff]  ;;  %v4289_v13 = vld [vmem:[#allocation5 + $0x190] ss:$8 sps:$4 sm:$0xff]  }
  0x3e   : > { %765 = vmatpush1.bf16.msra.mxu0 %v4234_v32  ;;  %v4288_v14 = vld [vmem:[#allocation5 + $0x80] ss:$8 sps:$4 sm:$0xff]   ;;  %v4290_v15 = vld [vmem:[#allocation5 + $0x184] ss:$8 sps:$4 sm:$0xff]   ;;  %v4028_v16 = vld [vmem:[%s6530_s6 + $0x1f] ss:$0 sm:$0xff] }
  0x3f   : > { %766 = vmatprep.subr.bf16.mxu0 %v4236_v35  ;;  %806 = vmatpush1.bf16.msra.mxu1 %v4241_v37  ;;  %v4004_v17 = vld [vmem:[%s6530_s6 + $0x7] ss:$0 sm:$0xff]  ;;  %v4292_v18 = vld [vmem:[#allocation5 + $0x180] ss:$8 sps:$4 sm:$0xff]   ;;  %v4033_v25 = vld [vmem:[%s6530_s6 + $0x24] ss:$0 sm:$0xff] }
  0x40   : > { %807 = vmatprep.subr.bf16.mxu1 %v4244_v38  ;;  %1237 = vrot.lane.b32.xlu0 %v4000_v0, %s4414_s14  ;;  %v4029_v19 = vld [vmem:[%s6530_s6 + $0x20] ss:$0 sm:$0xff]  ;;  %v4005_v20 = vld [vmem:[%s6530_s6 + $0x8] ss:$0 sm:$0xff]  ;;  %v4030_v21 = vld [vmem:[%s6530_s6 + $0x21] ss:$0 sm:$0xff] }
  0x41   : > { %1581 = vrot.lane.b32.xlu1 %v4025_v4, %s4414_s14  ;;  %v4006_v22 = vld [vmem:[%s6530_s6 + $0x9] ss:$0 sm:$0xff]  ;;  %v4031_v23 = vld [vmem:[%s6530_s6 + $0x22] ss:$0 sm:$0xff]  ;;  %v4008_v24 = vld [vmem:[%s6530_s6 + $0xb] ss:$0 sm:$0xff] }
  0x42   : > { %767 = vmatpush1.bf16.msra.mxu0 %v4240_v36  ;;  %v4009_v26 = vld [vmem:[%s6530_s6 + $0xc] ss:$0 sm:$0xff]  ;;  %v4034_v27 = vld [vmem:[%s6530_s6 + $0x25] ss:$0 sm:$0xff]  ;;  %v4010_v28 = vld [vmem:[%s6530_s6 + $0xd] ss:$0 sm:$0xff] }
  0x43   : > { %768 = vmatprep.subr.bf16.mxu0 %v4242_v39  ;;  %808 = vmatpush1.bf16.msra.mxu1 %v4247_v41  ;;  %v4035_v29 = vld [vmem:[%s6530_s6 + $0x26] ss:$0 sm:$0xff]  ;;  %v4011_v30 = vld [vmem:[%s6530_s6 + $0xe] ss:$0 sm:$0xff]  ;;  %v4036_v31 = vld [vmem:[%s6530_s6 + $0x27] ss:$0 sm:$0xff] }
  0x44   : > { %809 = vmatprep.subr.bf16.mxu1 %v4250_v42  ;;  %1252 = vrot.lane.b32.xlu0 %v4001_v6, %s4415_s20  ;;  %v4013_v32 = vld [vmem:[%s6530_s6 + $0x10] ss:$0 sm:$0xff]  ;;  %v4038_v33 = vld [vmem:[%s6530_s6 + $0x29] ss:$0 sm:$0xff]  ;;  %v4014_v34 = vld [vmem:[%s6530_s6 + $0x11] ss:$0 sm:$0xff] }
  0x45   : > { %1596 = vrot.lane.b32.xlu1 %v4026_v10, %s4415_s20  ;;  %v4048_v35 = vld [vmem:[%s6530_s6 + $0x33] ss:$0 sm:$0xff]  ;;  %v4015_v36 = vld [vmem:[%s6530_s6 + $0x12] ss:$0 sm:$0xff]  ;;  %v4049_v37 = vld [vmem:[%s6530_s6 + $0x34] ss:$0 sm:$0xff] }
  0x46   : > { %769 = vmatpush2.bf16.msra.mxu0 %v4246_v40  ;;  %v4016_v38 = vld [vmem:[%s6530_s6 + $0x13] ss:$0 sm:$0xff]  ;;  %v4050_v39 = vld [vmem:[%s6530_s6 + $0x35] ss:$0 sm:$0xff]  ;;  %v4051_v41 = vld [vmem:[%s6530_s6 + $0x36] ss:$0 sm:$0xff] }
  0x47   : > { %770 = vmatprep.subr.bf16.mxu0 %v4248_v43  ;;  %810 = vmatpush2.bf16.msra.mxu1 %v4253_v45  ;;  %v4018_v40 = vld [vmem:[%s6530_s6 + $0x15] ss:$0 sm:$0xff]  ;;  %v326_v42 = vld [vmem:[%s4535_s8 + $0x1] sm:$0xff]  ;;  %v4053_v45 = vld [vmem:[%s6530_s6 + $0x38] ss:$0 sm:$0xff]  ;;  %vm294_vm2 = vcmask 648192  }
  0x48   : > { %811 = vmatprep.subr.bf16.mxu1 %v4256_v46  ;;  %1275 = vrot.lane.b32.xlu0 %v4003_v12, %s4412_s15  ;;  %v3927_v43 = vld [vmem:[%s4535_s8 + $0x20] sm:$0xff]  ;;  %v327_v46 = vpack.c.bf16 %v326_v42, %v326_v42  ;;  %v4021_v58 = vld [vmem:[%s6530_s6 + $0x18] ss:$0 sm:$0xff]  ;;  %v4073_v0 = vld [vmem:[%s6530_s6 + $0x4c] ss:$0 sm:$0xff]  ;;  %s4417_s18 = smov 72  }
  0x49   : > { %1619 = vrot.lane.b32.xlu1 %v4028_v16, %s4412_s15  ;;  %v4078_v4 = vld [vmem:[%s6530_s6 + $0x51] ss:$0 sm:$0xff]  ;;  %v4080_v6 = vld [vmem:[%s6530_s6 + $0x53] ss:$0 sm:$0xff]  ;;  %v4083_v10 = vld [vmem:[%s6530_s6 + $0x56] ss:$0 sm:$0xff] }
  0x4a   : > { %771 = vmatpush2.bf16.msra.mxu0 %v4252_v44  ;;  %v4019_v44 = vld [vmem:[%s6530_s6 + $0x16] ss:$0 sm:$0xff]  ;;  %v4084_v12 = vld [vmem:[%s6530_s6 + $0x57] ss:$0 sm:$0xff]  ;;  %v4086_v16 = vld [vmem:[%s6530_s6 + $0x59] ss:$0 sm:$0xff] }
  0x4b   : > { %772 = vmatprep.subr.bf16.mxu0 %v4254_v47  ;;  %812 = vmatpush2.bf16.msra.mxu1 %v4259_v49  ;;  %v322_v47 = vpack.c.bf16 %v3927_v43, %v3927_v43  ;;  %v3930_v49 = vld [vmem:[%s4535_s8 + $0x21] sm:$0xff]  ;;  %vm878_vm3 = vcmask 588864   ;;  %vm302_vm4 = vcmask 785408   ;;  %vm304_vm5 = vcmask 781312   ;;  %s4420_s17 = smov 104  }
  0x4c   : > { %813 = vmatprep.subr.bf16.mxu1 %v4262_v50  ;;  %1290 = vrot.lane.b32.xlu0 %v4004_v17, %s4413_s22  ;;  %v4020_v50 = vld [vmem:[%s6530_s6 + $0x17] ss:$0 sm:$0xff]  ;;  %v332_v57 = vpack.c.bf16 %v3930_v49, %v3930_v49  ;;  %v4063_v17 = vld [vmem:[%s6530_s6 + $0x42] ss:$0 sm:$0xff]  ;;  %v834_v49 = vld [vmem:[%s6526_s2] sm:$0x3] }
  0x4d   : > { %1634 = vrot.lane.b32.xlu1 %v4029_v19, %s4413_s22  ;;  %v4039_v19 = vld [vmem:[%s6530_s6 + $0x2a] ss:$0 sm:$0xff]  ;;  %vm1061_vm6 = vcmask 1046528   ;;  %vm1080_vm7 = vcmask 1045504   ;;  %vm1090_vm8 = vcmask 654464   ;;  %vm3365_vm9 = vcmask 1040384  }
  0x4e   : > { %773 = vmatpush2.bf16.msra.mxu0 %v4258_v48  ;;  %v335_v48 = vld [vmem:[%s4535_s8 + $0x2] sm:$0xff] }
  0x4f   : > { %774 = vmatprep.subr.bf16.mxu0 %v4260_v51  ;;  %814 = vmatpush2.bf16.msra.mxu1 %v4265_v52 }
  0x50   : > { %815 = vmatprep.subr.bf16.mxu1 %v4268_v54  ;;  %1305 = vrot.lane.b32.xlu0 %v4005_v20, %s4414_s14  ;;  %v4064_v20 = vld [vmem:[%s6530_s6 + $0x43] ss:$0 sm:$0xff] }
  0x51   : > { %1649 = vrot.lane.b32.xlu1 %v4030_v21, %s4414_s14  ;;  %v4089_v21 = vld [vmem:[%s6530_s6 + $0x5c] ss:$0 sm:$0xff] }
  0x52   : > { %775 = vmatpush2.bf16.msra.mxu0 %v4264_v53  ;;  %v4054_v53 = vld [vmem:[%s6530_s6 + $0x39] ss:$0 sm:$0xff] }
  0x53   : > { %776 = vmatprep.subr.bf16.mxu0 %v4266_v56  ;;  %816 = vmatpush2.bf16.msra.mxu1 %v4271_v59  ;;  %v336_v56 = vpack.c.bf16 %v335_v48, %v335_v48 }
  0x54   : > { %817 = vmatprep.subr.bf16.mxu1 %v4274_v61  ;;  %1320 = vrot.lane.b32.xlu0 %v4006_v22, %s4415_s20  ;;  %v4055_v61 = vld [vmem:[%s6530_s6 + $0x3a] ss:$0 sm:$0xff]  ;;  %v4040_v22 = vld [vmem:[%s6530_s6 + $0x2b] ss:$0 sm:$0xff] }
  0x55   : > { %1664 = vrot.lane.b32.xlu1 %v4031_v23, %s4415_s20  ;;  %v4065_v23 = vld [vmem:[%s6530_s6 + $0x44] ss:$0 sm:$0xff] }
  0x56   : > { %777 = vmatpush2.bf16.msra.mxu0 %v4270_v60 }
  0x57   : > { %778 = vmatprep.subr.bf16.mxu0 %v4272_v63  ;;  %818 = vmatpush2.bf16.msra.mxu1 %v4277_v1  ;;  %v4074_v1 = vld [vmem:[%s6530_s6 + $0x4d] ss:$0 sm:$0xff] }
  0x58   : > { %819 = vmatprep.subr.bf16.mxu1 %v4280_v3  ;;  %1343 = vrot.lane.b32.xlu0 %v4008_v24, %s4412_s15  ;;  %v4076_v3 = vld [vmem:[%s6530_s6 + $0x4f] ss:$0 sm:$0xff]  ;;  %v4090_v24 = vld [vmem:[%s6530_s6 + $0x5d] ss:$0 sm:$0xff] }
  0x59   : > { %1687 = vrot.lane.b32.xlu1 %v4033_v25, %s4412_s15  ;;  %v4041_v25 = vld [vmem:[%s6530_s6 + $0x2c] ss:$0 sm:$0xff] }
  0x5a   : > { %779 = vmatpush2.bf16.msra.mxu0 %v4276_v2  ;;  %v4075_v2 = vld [vmem:[%s6530_s6 + $0x4e] ss:$0 sm:$0xff] }
  0x5b   : > { %780 = vmatprep.subr.bf16.mxu0 %v4278_v5  ;;  %820 = vmatpush2.bf16.msra.mxu1 %v4283_v7  ;;  %v4079_v5 = vld [vmem:[%s6530_s6 + $0x52] ss:$0 sm:$0xff]  ;;  %v4056_v7 = vld [vmem:[%s6530_s6 + $0x3b] ss:$0 sm:$0xff] }
  0x5c   : > { %821 = vmatprep.subr.bf16.mxu1 %v4286_v9  ;;  %1358 = vrot.lane.b32.xlu0 %v4009_v26, %s4413_s22  ;;  %v4058_v9 = vld [vmem:[%s6530_s6 + $0x3d] ss:$0 sm:$0xff]  ;;  %v4066_v26 = vld [vmem:[%s6530_s6 + $0x45] ss:$0 sm:$0xff] }
  0x5d   : > { %1702 = vrot.lane.b32.xlu1 %v4034_v27, %s4413_s22  ;;  %v4091_v27 = vld [vmem:[%s6530_s6 + $0x5e] ss:$0 sm:$0xff] }
  0x5e   : > { %781 = vmatpush2.bf16.msra.mxu0 %v4282_v8  ;;  %v4081_v8 = vld [vmem:[%s6530_s6 + $0x54] ss:$0 sm:$0xff] }
  0x5f   : > { %782 = vmatprep.subr.bf16.mxu0 %v4284_v11  ;;  %822 = vmatpush2.bf16.msra.mxu1 %v4289_v13  ;;  %v4059_v11 = vld [vmem:[%s6530_s6 + $0x3e] ss:$0 sm:$0xff]  ;;  %v4060_v13 = vld [vmem:[%s6530_s6 + $0x3f] ss:$0 sm:$0xff] }
  0x60   : > { %823 = vmatprep.subr.bf16.mxu1 %v4290_v15  ;;  %1373 = vrot.lane.b32.xlu0 %v4010_v28, %s4414_s14  ;;  %v4061_v15 = vld [vmem:[%s6530_s6 + $0x40] ss:$0 sm:$0xff] }
  0x61   : > { %1717 = vrot.lane.b32.xlu1 %v4035_v29, %s4414_s14 }
  0x62   : > { %783 = vmatpush2.bf16.msra.mxu0 %v4288_v14  ;;  %v4085_v14 = vld [vmem:[%s6530_s6 + $0x58] ss:$0 sm:$0xff] }
  0x63   : > { %824 = vmatpush2.bf16.msra.mxu1 %v4292_v18  ;;  %v4088_v18 = vld [vmem:[%s6530_s6 + $0x5b] ss:$0 sm:$0xff] }
  0x64   : > { %1388 = vrot.lane.b32.xlu0 %v4011_v30, %s4415_s20  ;;  %v6532_v30 = vmov 0.0  }
  0x65   : > { %1732 = vrot.lane.b32.xlu1 %v4036_v31, %s4415_s20  ;;  %296 = vst.msk [vmem:[#allocation2 + $0x10] sm:$0xff] %vm292_vm1, %v6532_v30  ;;  %293 = vst.msk [vmem:[#allocation2] sm:$0xff] %vm292_vm1, %v6532_v30 }
  0x66   : > { %297 = vst.msk [vmem:[#allocation2 + $0x18] sm:$0x3] %vm294_vm2, %v6532_v30  ;;  %295 = vst.msk [vmem:[#allocation2 + $0x8] sm:$0x3] %vm294_vm2, %v6532_v30 }
  0x67   : > { %298 = vst.msk [vmem:[#allocation2 + $0x20] sm:$0xff] %vm292_vm1, %v6532_v30  ;;  %300 = vst.msk [vmem:[#allocation2 + $0x30] sm:$0xff] %vm292_vm1, %v6532_v30 }
  0x68   : > { %1411 = vrot.lane.b32.xlu0 %v4013_v32, %s4412_s15  ;;  %299 = vst.msk [vmem:[#allocation2 + $0x28] sm:$0x3] %vm294_vm2, %v6532_v30  ;;  %301 = vst.msk [vmem:[#allocation2 + $0x38] sm:$0x3] %vm294_vm2, %v6532_v30 }
  0x69   : > { %1755 = vrot.lane.b32.xlu1 %v4038_v33, %s4412_s15  ;;  %312 = vst.msk [vmem:[#allocation4] sm:$0xff] %vm292_vm1, %v6532_v30  ;;  %314 = vst.msk [vmem:[#allocation4 + $0x10] sm:$0xff] %vm292_vm1, %v6532_v30 }
  0x6a   : > { %313 = vst.msk [vmem:[#allocation4 + $0x8] sm:$0x3] %vm294_vm2, %v6532_v30  ;;  %315 = vst.msk [vmem:[#allocation4 + $0x18] sm:$0x3] %vm294_vm2, %v6532_v30 }
  0x6b   : > { %316 = vst.msk [vmem:[#allocation4 + $0x20] sm:$0xff] %vm292_vm1, %v6532_v30  ;;  %318 = vst.msk [vmem:[#allocation4 + $0x30] sm:$0xff] %vm292_vm1, %v6532_v30 }
  0x6c   : > { %1426 = vrot.lane.b32.xlu0 %v4014_v34, %s4413_s22  ;;  %317 = vst.msk [vmem:[#allocation4 + $0x28] sm:$0x3] %vm294_vm2, %v6532_v30  ;;  %319 = vst.msk [vmem:[#allocation4 + $0x38] sm:$0x3] %vm294_vm2, %v6532_v30 }
  0x6d   : > { %1896 = vrot.lane.b32.xlu1 %v4048_v35, %s4412_s15 }
  0x70   : > { %1441 = vrot.lane.b32.xlu0 %v4015_v36, %s4414_s14 }
  0x71   : > { %1911 = vrot.lane.b32.xlu1 %v4049_v37, %s4413_s22 }
  0x74   : > { %1456 = vrot.lane.b32.xlu0 %v4016_v38, %s4415_s20 }
  0x75   : > { %1926 = vrot.lane.b32.xlu1 %v4050_v39, %s4414_s14 }
  0x78   : > { %1479 = vrot.lane.b32.xlu0 %v4018_v40, %s4412_s15 }
  0x79   : > { %1941 = vrot.lane.b32.xlu1 %v4051_v41, %s4415_s20  ;;  %v836_v41 = vlaneseq }
  0x7c   : > { %1494 = vrot.lane.b32.xlu0 %v4019_v44, %s4413_s22  ;;  %v837_v44 = vshrl.u32 %v836_v41, 7 }
  0x7d   : > { %1964 = vrot.lane.b32.xlu1 %v4053_v45, %s4412_s15 }
  0x7e   : > { %v838_v45 = vsub.s32 0, %v837_v44 }
  0x80   : > { %1509 = vrot.lane.b32.xlu0 %v4020_v50, %s4414_s14  ;;  %v842_v50 = vsub.s32 1, %v837_v44 }
  0x81   : > { %1979 = vrot.lane.b32.xlu1 %v4054_v53, %s4413_s22  ;;  %v839_v53 = vrot.slane %v834_v49, %v838_v45 }
  0x84   : > { %1524 = vrot.lane.b32.xlu0 %v4021_v58, %s4415_s20  ;;  %v843_v58 = vrot.slane %v834_v49, %v842_v50  ;;  %v4068_v49 = vld [vmem:[%s6530_s6 + $0x47] ss:$0 sm:$0xff] }
  0x85   : > { %1994 = vrot.lane.b32.xlu1 %v4055_v61, %s4414_s14 }
  0x88   : > { %2241 = vrot.lane.b32.xlu0 %v4073_v0, %s4412_s15 }
  0x89   : > { %2009 = vrot.lane.b32.xlu1 %v4056_v7, %s4415_s20 }
  0x8c   : > { %2256 = vrot.lane.b32.xlu0 %v4074_v1, %s4413_s22 }
  0x8d   : > { %2032 = vrot.lane.b32.xlu1 %v4058_v9, %s4412_s15 }
  0x90   : > { %2271 = vrot.lane.b32.xlu0 %v4075_v2, %s4414_s14 }
  0x91   : > { %2047 = vrot.lane.b32.xlu1 %v4059_v11, %s4413_s22 }
  0x94   : > { %2286 = vrot.lane.b32.xlu0 %v4076_v3, %s4415_s20 }
  0x95   : > { %2062 = vrot.lane.b32.xlu1 %v4060_v13, %s4414_s14 }
  0x98   : > { %2309 = vrot.lane.b32.xlu0 %v4078_v4, %s4412_s15 }
  0x99   : > { %2077 = vrot.lane.b32.xlu1 %v4061_v15, %s4415_s20 }
  0x9c   : > { %2324 = vrot.lane.b32.xlu0 %v4079_v5, %s4413_s22 }
  0x9d   : > { %2100 = vrot.lane.b32.xlu1 %v4063_v17, %s4412_s15 }
  0x9f   : > { %v344_v51 = vpop.permute.xlu0 %343 }
  0xa0   : > { %v341_v52 = vpop.permute.xlu1 %340  ;;  %v358_v54 = vsel %vm351_vm0, %v327_v46, %v344_v51  ;;  %2339 = vrot.lane.b32.xlu0 %v4080_v6, %s4414_s14 }
  0xa1   : > { %v354_v55 = vsel %vm351_vm0, %v322_v47, %v341_v52  ;;  %784 = vmatprep.mubr.bf16.mxu0 %v358_v54  ;;  %1770 = vrot.lane.b32.xlu1 %v4039_v19, %s4413_s22  ;;  %v848_v52 = vld [vmem:[%s6527_s3] sm:$0x3] }
  0xa2   : > { %785 = vmatmul.mubr.bf16.vlgmr.msra.gmra.mxu0 %v354_v55  ;;  %v857_v1 = vrot.slane %v848_v52, %v842_v50 }
  0xa3   : > { %v350_v59 = vpop.permute.xlu0 %349 }
  0xa4   : > { %v347_v60 = vpop.permute.xlu1 %346  ;;  %v366_v62 = vsel %vm351_vm0, %v336_v56, %v350_v59  ;;  %2354 = vrot.lane.b32.xlu0 %v4081_v8, %s4415_s20 }
  0xa5   : > { %v362_v63 = vsel %vm351_vm0, %v332_v57, %v347_v60  ;;  %825 = vmatprep.mubr.bf16.mxu1 %v366_v62  ;;  %2460 = vrot.lane.b32.xlu1 %v4089_v21, %s4413_s22  ;;  %v853_v57 = vrot.slane %v848_v52, %v838_v45  ;;  %v4043_v52 = vld [vmem:[%s6530_s6 + $0x2e] ss:$0 sm:$0xff] }
  0xa6   : > { %826 = vmatmul.mubr.bf16.vlgmr.msra.gmra.mxu1 %v362_v63 }
  0xa8   : > { %2377 = vrot.lane.b32.xlu0 %v4083_v10, %s4412_s15 }
  0xa9   : > { %2130 = vrot.lane.b32.xlu1 %v4065_v23, %s4414_s14 }
  0xaa   : > { %v4821_v28 = vpop.permute.xlu0 %1207 }
  0xab   : > { %v4867_v36 = vpop.permute.xlu1 %1551 }
  0xac   : > { %2392 = vrot.lane.b32.xlu0 %v4084_v12, %s4413_s22 }
  0xad   : > { %1800 = vrot.lane.b32.xlu1 %v4041_v25, %s4415_s20 }
  0xae   : > { %v4823_v29 = vpop.permute.xlu0 %1222 }
  0xaf   : > { %v4871_v38 = vpop.permute.xlu1 %1566 }
  0xb0   : > { %2407 = vrot.lane.b32.xlu0 %v4085_v14, %s4414_s14 }
  0xb1   : > { %2490 = vrot.lane.b32.xlu1 %v4091_v27, %s4415_s20 }
  0xb2   : > { %v4857_v31 = vpop.permute.xlu0 %1237 }
  0xb3   : > { %v4875_v40 = vpop.permute.xlu1 %1581 }
  0xb4   : > { %2422 = vrot.lane.b32.xlu0 %v4086_v16, %s4415_s20 }
  0xb6   : > { %v4859_v32 = vpop.permute.xlu0 %1252 }
  0xb7   : > { %v4879_v43 = vpop.permute.xlu1 %1596 }
  0xb8   : > { %2445 = vrot.lane.b32.xlu0 %v4088_v18, %s4412_s15 }
  0xba   : > { %v4861_v33 = vpop.permute.xlu0 %1275 }
  0xbb   : > { %v4883_v47 = vpop.permute.xlu1 %1619 }
  0xbc   : > { %2115 = vrot.lane.b32.xlu0 %v4064_v20, %s4413_s22 }
  0xbe   : > { %v4863_v34 = vpop.permute.xlu0 %1290 }
  0xbf   : > { %v4893_v60 = vpop.permute.xlu1 %1634 }
  0xc0   : > { %1785 = vrot.lane.b32.xlu0 %v4040_v22, %s4414_s14 }
  0xc2   : > { %v4865_v35 = vpop.permute.xlu0 %1305 }
  0xc3   : > { %v4897_v9 = vpop.permute.xlu1 %1649 }
  0xc4   : > { %2475 = vrot.lane.b32.xlu0 %v4090_v24, %s4414_s14 }
  0xc6   : > { %v4869_v37 = vpop.permute.xlu0 %1320 }
  0xc7   : > { %v4901_v14 = vpop.permute.xlu1 %1664 }
  0xc8   : > { %2145 = vrot.lane.b32.xlu0 %v4066_v26, %s4415_s20 }
  0xca   : > { %v4873_v39 = vpop.permute.xlu0 %1343 }
  0xcb   : > { %v4905_v16 = vpop.permute.xlu1 %1687 }
  0xce   : > { %v4877_v42 = vpop.permute.xlu0 %1358 }
  0xcf   : > { %v4909_v20 = vpop.permute.xlu1 %1702 }
  0xd2   : > { %v4881_v46 = vpop.permute.xlu0 %1373 }
  0xd3   : > { %v4913_v24 = vpop.permute.xlu1 %1717 }
  0xd6   : > { %v4891_v59 = vpop.permute.xlu0 %1388 }
  0xd7   : > { %6607 = vst [vmem:[#allocation11_spill] sm:$0xff] %v4891_v59  ;;  %v4917_v26 = vpop.permute.xlu1 %1732 }
  0xd8   : > { %6614 = vst [vmem:[#allocation18_spill] sm:$0xff] %v4917_v26 }
  0xda   : > { %v4895_v8 = vpop.permute.xlu0 %1411 }
  0xdb   : > { %6608 = vst [vmem:[#allocation12_spill] sm:$0xff] %v4895_v8 }
  0xde   : > { %v4899_v13 = vpop.permute.xlu0 %1426 }
  0xdf   : > { %6609 = vst [vmem:[#allocation13_spill] sm:$0xff] %v4899_v13 }
  0xe2   : > { %v4903_v15 = vpop.permute.xlu0 %1441 }
  0xe3   : > { %6610 = vst [vmem:[#allocation14_spill] sm:$0xff] %v4903_v15 }
  0xe6   : > { %v4907_v19 = vpop.permute.xlu0 %1456 }
  0xe7   : > { %6611 = vst [vmem:[#allocation15_spill] sm:$0xff] %v4907_v19 }
  0xea   : > { %v4911_v23 = vpop.permute.xlu0 %1479 }
  0xeb   : > { %6612 = vst [vmem:[#allocation16_spill] sm:$0xff] %v4911_v23 }
  0xee   : > { %v4915_v25 = vpop.permute.xlu0 %1494 }
  0xef   : > { %6613 = vst [vmem:[#allocation17_spill] sm:$0xff] %v4915_v25 }
  0xf2   : > { %v4921_v45 = vpop.permute.xlu0 %1509 }
  0xf3   : > { %6615 = vst [vmem:[#allocation19_spill] sm:$0xff] %v4921_v45 }
 0x162   : > { %v786_v48 = vpop.f32.mrf.mxu0 }
 0x164   : > { %v788_v51 = vpop.f32.mrf.mxu0 }
 0x166   : > { %v790_v54 = vpop.f32.mrf.mxu0  ;;  %v827_v55 = vpop.f32.mrf.mxu1 }
 0x167   : > { %v828_v56 = vadd.f32 %v827_v55, %v786_v48  ;;  %v4923_v48 = vpop.permute.xlu1 %1755  ;;  %v4094_v55 = vld [vmem:[%s6530_s6 + $0x61] ss:$0 sm:$0xff] }
 0x168   : > { %v791_v61 = vpop.f32.mrf.mxu0  ;;  %v829_v62 = vpop.f32.mrf.mxu1  ;;  %6616 = vst [vmem:[#allocation20_spill] sm:$0xff] %v4923_v48 }
 0x169   : > { %v846_v63 = vmul.f32 %v839_v53, %v828_v56  ;;  %v830_v0 = vadd.f32 %v829_v62, %v788_v51  ;;  %v4044_v51 = vld [vmem:[%s6530_s6 + $0x2f] ss:$0 sm:$0xff]  ;;  %v4936_v53 = vpop.permute.xlu0 %1524  ;;  %v4093_v56 = vld [vmem:[%s6530_s6 + $0x60] ss:$0 sm:$0xff]  ;;  %v4070_v61 = vld [vmem:[%s6530_s6 + $0x49] ss:$0 sm:$0xff] }
 0x16a   : > { %v831_v2 = vpop.f32.mrf.mxu1  ;;  %6617 = vst [vmem:[#allocation21_spill] sm:$0xff] %v4936_v53  ;;  %v4069_v62 = vld [vmem:[%s6530_s6 + $0x48] ss:$0 sm:$0xff] }
 0x16b   : > { %v860_v3 = vadd.f32 %v853_v57, %v846_v63  ;;  %v847_v4 = vmul.f32 %v843_v58, %v830_v0  ;;  %v4938_v54 = vpop.permute.xlu1 %1896  ;;  %v4046_v63 = vld [vmem:[%s6530_s6 + $0x31] ss:$0 sm:$0xff]  ;;  %v4045_v0 = vld [vmem:[%s6530_s6 + $0x30] ss:$0 sm:$0xff] }
 0x16c   : > { %v832_v5 = vpop.f32.mrf.mxu1  ;;  %6618 = vst [vmem:[#allocation22_spill] sm:$0xff] %v4938_v54 }
 0x16d   : > { %v862_v6 = vsub.f32 0.0, %v860_v3  ;;  %v861_v7 = vadd.f32 %v857_v1, %v847_v4  ;;  %v4949_v57 = vpop.permute.xlu0 %2241 }
 0x16e   : > { %6619 = vst [vmem:[#allocation23_spill] sm:$0xff] %v4949_v57 }
 0x16f   : > { %v864_v10 = vmul.f32 1.442695, %v862_v6  ;;  %v863_v11 = vsub.f32 0.0, %v861_v7  ;;  %v4951_v58 = vpop.permute.xlu1 %1911  ;;  %v4096_v6 = vld [vmem:[%s6530_s6 + $0x63] ss:$0 sm:$0xff] }
 0x170   : > { %6620 = vst [vmem:[#allocation24_spill] sm:$0xff] %v4951_v58 }
 0x171   : > { %4293 = vpow2.f32 %v864_v10  ;;  %v866_v12 = vmul.f32 1.442695, %v863_v11  ;;  %v4968_v1 = vpop.permute.xlu0 %2256 }
 0x172   : > { %6621 = vst [vmem:[#allocation25_spill] sm:$0xff] %v4968_v1 }
 0x173   : > { %4295 = vpow2.f32 %v866_v12  ;;  %v4970_v2 = vpop.permute.xlu1 %1926 }
 0x174   : > { %6622 = vst [vmem:[#allocation26_spill] sm:$0xff] %v4970_v2 }
 0x175   : > { %v4978_v4 = vpop.permute.xlu0 %2271 }
 0x176   : > { %6623 = vst [vmem:[#allocation27_spill] sm:$0xff] %v4978_v4 }
 0x177   : > { %v4980_v5 = vpop.permute.xlu1 %1941 }
 0x178   : > { %6624 = vst [vmem:[#allocation28_spill] sm:$0xff] %v4980_v5 }
 0x179   : > { %v4991_v10 = vpop.permute.xlu0 %2286 }
 0x17a   : > { %6625 = vst [vmem:[#allocation29_spill] sm:$0xff] %v4991_v10 }
 0x17b   : > { %v4993_v11 = vpop.permute.xlu1 %1964 }
 0x17c   : > { %6626 = vst [vmem:[#allocation30_spill] sm:$0xff] %v4993_v11 }
 0x17d   : > { %v4995_v12 = vpop.permute.xlu0 %2309 }
 0x17e   : > { %v4294_v17 = vpop.eup %4293  ;;  %6627 = vst [vmem:[#allocation31_spill] sm:$0xff] %v4995_v12 }
 0x17f   : > { %v868_v18 = vadd.f32 1.0, %v4294_v17  ;;  %v4997_v17 = vpop.permute.xlu1 %1979 }
 0x180   : > { %v4296_v21 = vpop.eup %4295  ;;  %6628 = vst [vmem:[#allocation32_spill] sm:$0xff] %v4997_v17 }
 0x181   : > { %4297 = vrcp.f32 %v868_v18  ;;  %v869_v22 = vadd.f32 1.0, %v4296_v21  ;;  %v4999_v18 = vpop.permute.xlu0 %2324 }
 0x182   : > { %6629 = vst [vmem:[#allocation33_spill] sm:$0xff] %v4999_v18 }
 0x183   : > { %4299 = vrcp.f32 %v869_v22  ;;  %v5001_v21 = vpop.permute.xlu1 %1994 }
 0x184   : > { %6630 = vst [vmem:[#allocation34_spill] sm:$0xff] %v5001_v21 }
 0x185   : > { %v5003_v22 = vpop.permute.xlu0 %2339 }
 0x186   : > { %6631 = vst [vmem:[#allocation35_spill] sm:$0xff] %v5003_v22 }
 0x18e   : > { %v4298_v27 = vpop.eup %4297 }
 0x18f   : > { %v872_v41 = vmul.f32 %v4298_v27, %v860_v3  ;;  %v4095_v3 = vld [vmem:[%s6530_s6 + $0x62] ss:$0 sm:$0xff]  ;;  %v5005_v27 = vpop.permute.xlu1 %2009 }
 0x190   : > { %v4300_v44 = vpop.eup %4299  ;;  %6632 = vst [vmem:[#allocation36_spill] sm:$0xff] %v5005_v27 }
 0x191   : > { %880 = vrot.lane.b32.xlu1 %v872_v41, %s4417_s18  ;;  %875 = vrot.lane.b32.xlu0 %v872_v41, %s4412_s15  ;;  %v873_v50 = vmul.f32 %v4300_v44, %v861_v7  ;;  %v4071_v7 = vld [vmem:[%s6530_s6 + $0x4a] ss:$0 sm:$0xff]  ;;  %v5007_v41 = vpop.permute.xlu0 %2354 }
 0x192   : > { %6633 = vst [vmem:[#allocation37_spill] sm:$0xff] %v5007_v41 }
 0x193   : > { %v5009_v44 = vpop.permute.xlu1 %2032 }
 0x194   : > { %6634 = vst [vmem:[#allocation38_spill] sm:$0xff] %v5009_v44 }
 0x195   : > { %2168 = vrot.lane.b32.xlu1 %v4068_v49, %s4412_s15  ;;  %886 = vrot.lane.b32.xlu0 %v873_v50, %s4412_s15  ;;  %v5011_v49 = vpop.permute.xlu0 %2377 }
 0x196   : > { %6635 = vst [vmem:[#allocation39_spill] sm:$0xff] %v5011_v49 }
 0x199   : > { %1838 = vrot.lane.b32.xlu1 %v4044_v51, %s4413_s22  ;;  %1823 = vrot.lane.b32.xlu0 %v4043_v52, %s4412_s15  ;;  %v5015_v51 = vpop.permute.xlu0 %2392 }
 0x19a   : > { %6637 = vst [vmem:[#allocation41_spill] sm:$0xff] %v5015_v51 }
 0x19d   : > { %2528 = vrot.lane.b32.xlu1 %v4094_v55, %s4413_s22  ;;  %2513 = vrot.lane.b32.xlu0 %v4093_v56, %s4412_s15  ;;  %v5019_v55 = vpop.permute.xlu0 %2407 }
 0x19e   : > { %6639 = vst [vmem:[#allocation43_spill] sm:$0xff] %v5019_v55 }
 0x1a1   : > { %2198 = vrot.lane.b32.xlu1 %v4070_v61, %s4414_s14  ;;  %2183 = vrot.lane.b32.xlu0 %v4069_v62, %s4413_s22  ;;  %v5023_v61 = vpop.permute.xlu0 %2422 }
 0x1a2   : > { %6641 = vst [vmem:[#allocation45_spill] sm:$0xff] %v5023_v61 }
 0x1a5   : > { %1868 = vrot.lane.b32.xlu1 %v4046_v63, %s4415_s20  ;;  %1853 = vrot.lane.b32.xlu0 %v4045_v0, %s4414_s14  ;;  %v5027_v63 = vpop.permute.xlu0 %2445 }
 0x1a6   : > { %6643 = vst [vmem:[#allocation47_spill] sm:$0xff] %v5027_v63 }
 0x1a9   : > { %891 = vrot.lane.b32.xlu1 %v873_v50, %s4417_s18  ;;  %2543 = vrot.lane.b32.xlu0 %v4095_v3, %s4414_s14  ;;  %v5013_v50 = vpop.permute.xlu1 %2047  ;;  %v5031_v3 = vpop.permute.xlu0 %2115  ;;  %s4418_s14 = smov 120   ;;  %s4421_s18 = smov 96  }
 0x1aa   : > { %6636 = vst [vmem:[#allocation40_spill] sm:$0xff] %v5013_v50  ;;  %6645 = vst [vmem:[#allocation49_spill] sm:$0xff] %v5031_v3 }
 0x1ad   : > { %2558 = vrot.lane.b32.xlu1 %v4096_v6, %s4415_s20  ;;  %2213 = vrot.lane.b32.xlu0 %v4071_v7, %s4415_s20  ;;  %v5017_v52 = vpop.permute.xlu1 %2062  ;;  %v5035_v7 = vpop.permute.xlu0 %1785  ;;  %s4419_s20 = smov 112  }
 0x1ae   : > { %6638 = vst [vmem:[#allocation42_spill] sm:$0xff] %v5017_v52  ;;  %6647 = vst [vmem:[#allocation51_spill] sm:$0xff] %v5035_v7 }
 0x1b1   : > { %v5021_v56 = vpop.permute.xlu1 %2077  ;;  %v5039_v51 = vpop.permute.xlu0 %2475 }
 0x1b2   : > { %6640 = vst [vmem:[#allocation44_spill] sm:$0xff] %v5021_v56  ;;  %6649 = vst [vmem:[#allocation53_spill] sm:$0xff] %v5039_v51 }
 0x1b5   : > { %v5025_v62 = vpop.permute.xlu1 %2100  ;;  %v5043_v49 = vpop.permute.xlu0 %2145 }
 0x1b6   : > { %6642 = vst [vmem:[#allocation46_spill] sm:$0xff] %v5025_v62  ;;  %6651 = vst [vmem:[#allocation55_spill] sm:$0xff] %v5043_v49 }
 0x1b9   : > { %v5029_v0 = vpop.permute.xlu1 %1770 }
 0x1ba   : > { %6644 = vst [vmem:[#allocation48_spill] sm:$0xff] %v5029_v0 }
 0x1bd   : > { %v5033_v6 = vpop.permute.xlu1 %2460 }
 0x1be   : > { %6646 = vst [vmem:[#allocation50_spill] sm:$0xff] %v5033_v6 }
 0x1c1   : > { %v5037_v30 = vpop.permute.xlu1 %2130 }
 0x1c2   : > { %6648 = vst [vmem:[#allocation52_spill] sm:$0xff] %v5037_v30 }
 0x1c5   : > { %v5041_v55 = vpop.permute.xlu1 %1800 }
 0x1c6   : > { %6650 = vst [vmem:[#allocation54_spill] sm:$0xff] %v5041_v55 }
 0x1c9   : > { %v5045_v61 = vpop.permute.xlu1 %2490 }
 0x1ca   : > { %6652 = vst [vmem:[#allocation56_spill] sm:$0xff] %v5045_v61 }
 0x203   : > { %v881_v63 = vpop.permute.xlu1 %880  ;;  %v876_v41 = vpop.permute.xlu0 %875 }
 0x204   : > { %884 = vst.msk [vmem:[#allocation2 + $0x11] sm:$0xff] %vm878_vm3, %v881_v63  ;;  %879 = vst.msk [vmem:[#allocation2 + $0x1] sm:$0xff] %vm878_vm3, %v876_v41 }
 0x207   : > { %v5049_v3 = vpop.permute.xlu1 %2168  ;;  %v887_v7 = vpop.permute.xlu0 %886 }
 0x208   : > { %6653 = vst [vmem:[#allocation57_spill] sm:$0xff] %v5049_v3  ;;  %890 = vst.msk [vmem:[#allocation2 + $0x21] sm:$0xff] %vm878_vm3, %v887_v7 }
 0x20b   : > { %v5052_v30 = vpop.permute.xlu1 %1838  ;;  %v901_v51 = vld [vmem:[#allocation2 + $0x8] sm:$0x3]  ;;  %v900_v55 = vld [vmem:[#allocation2] sm:$0xff]  ;;  %v5054_v0 = vld [vmem:[#allocation2 + $0x18] sm:$0x3] }
 0x20c   : > { %6654 = vst [vmem:[#allocation58_spill] sm:$0xff] %v5052_v30  ;;  %v903_v6 = vmul.f32 0.8365163, %v901_v51  ;;  %v902_v49 = vmul.f32 0.8365163, %v900_v55  ;;  %v5056_v61 = vld [vmem:[#allocation2 + $0x10] sm:$0xff] }
 0x20d   : > { %v915_v63 = vmul.f32 0.22414386, %v5054_v0  ;;  %v914_v7 = vmul.f32 0.22414386, %v5056_v61  ;;  %v927_v3 = vmul.f32 -0.12940952, %v901_v51 }
 0x20e   : > { %908 = vrot.lane.b32.xlu1 %v903_v6, %s4418_s14  ;;  %906 = vrot.lane.b32.xlu0 %v902_v49, %s4418_s14  ;;  %v926_v22 = vmul.f32 -0.12940952, %v900_v55  ;;  %v983_v6 = vmul.f32 -0.22414386, %v901_v51 }
 0x20f   : > { %v5060_v41 = vpop.permute.xlu1 %2528  ;;  %v5079_v62 = vld [vmem:[#allocation2 + $0x20] sm:$0xff] }
 0x210   : > { %6655 = vst [vmem:[#allocation59_spill] sm:$0xff] %v5060_v41  ;;  %v982_v41 = vmul.f32 -0.22414386, %v900_v55  ;;  %6658 = vst [vmem:[#allocation62_spill] sm:$0xff] %v5079_v62 }
 0x212   : > { %920 = vrot.lane.b32.xlu1 %v915_v63, %s4418_s14  ;;  %918 = vrot.lane.b32.xlu0 %v914_v7, %s4418_s14  ;;  %v995_v7 = vmul.f32 0.8365163, %v5054_v0 }
 0x213   : > { %v5066_v30 = vpop.permute.xlu1 %2198 }
 0x214   : > { %6656 = vst [vmem:[#allocation60_spill] sm:$0xff] %v5066_v30  ;;  %v994_v30 = vmul.f32 0.8365163, %v5056_v61 }
 0x216   : > { %932 = vrot.lane.b32.xlu1 %v927_v3, %s4419_s20  ;;  %930 = vrot.lane.b32.xlu0 %v926_v22, %s4419_s20  ;;  %v1007_v22 = vmul.f32 -0.4829629, %v901_v51  ;;  %v1006_v3 = vmul.f32 -0.4829629, %v900_v55 }
 0x217   : > { %v5070_v49 = vpop.permute.xlu1 %1868 }
 0x218   : > { %6657 = vst [vmem:[#allocation61_spill] sm:$0xff] %v5070_v49  ;;  %v943_v49 = vld [vmem:[#allocation2 + $0x28] sm:$0x3] }
 0x219   : > { %v969_v55 = vmul.f32 -0.12940952, %v943_v49 }
 0x21a   : > { %988 = vrot.lane.b32.xlu1 %v983_v6, %s4418_s14  ;;  %986 = vrot.lane.b32.xlu0 %v982_v41, %s4418_s14  ;;  %v945_v41 = vmul.f32 0.8365163, %v943_v49  ;;  %v944_v6 = vmul.f32 0.8365163, %v5079_v62 }
 0x21b   : > { %v892_v63 = vpop.permute.xlu1 %891 }
 0x21c   : > { %895 = vst.msk [vmem:[#allocation2 + $0x31] sm:$0xff] %vm878_vm3, %v892_v63 }
 0x21e   : > { %1000 = vrot.lane.b32.xlu1 %v995_v7, %s4418_s14  ;;  %998 = vrot.lane.b32.xlu0 %v994_v30, %s4418_s14  ;;  %v968_v7 = vmul.f32 -0.12940952, %v5079_v62 }
 0x222   : > { %1012 = vrot.lane.b32.xlu1 %v1007_v22, %s4419_s20  ;;  %1010 = vrot.lane.b32.xlu0 %v1006_v3, %s4419_s20  ;;  %v1021_v22 = vmul.f32 -0.22414386, %v943_v49  ;;  %v1020_v3 = vmul.f32 -0.22414386, %v5079_v62 }
 0x223   : > { %v5084_v63 = vld [vmem:[#allocation2 + $0x38] sm:$0x3]  ;;  %v5086_v18 = vld [vmem:[#allocation2 + $0x30] sm:$0xff] }
 0x224   : > { %v957_v30 = vmul.f32 0.22414386, %v5084_v63  ;;  %v956_v51 = vmul.f32 0.22414386, %v5086_v18  ;;  %v941_v17 = vmul.f32 0.4829629, %v5084_v63 }
 0x225   : > { %v940_v45 = vmul.f32 0.4829629, %v5086_v18 }
 0x226   : > { %950 = vrot.lane.b32.xlu1 %v945_v41, %s4418_s14  ;;  %948 = vrot.lane.b32.xlu0 %v944_v6, %s4418_s14  ;;  %v1033_v41 = vmul.f32 0.8365163, %v5084_v63  ;;  %v1032_v6 = vmul.f32 0.8365163, %v5086_v18 }
 0x22a   : > { %962 = vrot.lane.b32.xlu1 %v957_v30, %s4418_s14  ;;  %960 = vrot.lane.b32.xlu0 %v956_v51, %s4418_s14  ;;  %v4099_v30 = vld [vmem:[%s6528_s4 + $0x2] ss:$0 sm:$0xff]  ;;  %v1044_v51 = vmul.f32 -0.4829629, %v5079_v62 }
 0x22e   : > { %974 = vrot.lane.b32.xlu1 %v969_v55, %s4419_s20  ;;  %972 = vrot.lane.b32.xlu0 %v968_v7, %s4419_s20  ;;  %v4103_v55 = vld [vmem:[%s6528_s4 + $0x6] ss:$0 sm:$0xff]  ;;  %v5116_v7 = vld [vmem:[%s6528_s4 + $0x1] ss:$0 sm:$0xff] }
 0x22f   : > { %6659 = vst [vmem:[#allocation63_spill] sm:$0xff] %v5116_v7 }
 0x232   : > { %1026 = vrot.lane.b32.xlu1 %v1021_v22, %s4418_s14  ;;  %1024 = vrot.lane.b32.xlu0 %v1020_v3, %s4418_s14  ;;  %v4106_v22 = vld [vmem:[%s6528_s4 + $0x9] ss:$0 sm:$0xff]  ;;  %v4101_v3 = vld [vmem:[%s6528_s4 + $0x4] ss:$0 sm:$0xff] }
 0x236   : > { %1038 = vrot.lane.b32.xlu1 %v1033_v41, %s4418_s14  ;;  %1036 = vrot.lane.b32.xlu0 %v1032_v6, %s4418_s14  ;;  %v4109_v41 = vld [vmem:[%s6528_s4 + $0xc] ss:$0 sm:$0xff]  ;;  %v4104_v6 = vld [vmem:[%s6528_s4 + $0x7] ss:$0 sm:$0xff] }
 0x23a   : > { %2749 = vrot.lane.b32.xlu1 %v4099_v30, %s4412_s15  ;;  %1048 = vrot.lane.b32.xlu0 %v1044_v51, %s4419_s20  ;;  %v4111_v30 = vld [vmem:[%s6528_s4 + $0xe] ss:$0 sm:$0xff]  ;;  %v4108_v51 = vld [vmem:[%s6528_s4 + $0xb] ss:$0 sm:$0xff] }
 0x23e   : > { %3175 = vrot.lane.b32.xlu1 %v4103_v55, %s4412_s15  ;;  %3132 = vrot.lane.b32.xlu0 %v5116_v7, %s4412_s15  ;;  %v4114_v55 = vld [vmem:[%s6528_s4 + $0x11] ss:$0 sm:$0xff]  ;;  %v5180_v7 = vpop.permute.xlu1 %2558 }
 0x23f   : > { %6666 = vst [vmem:[#allocation69_spill] sm:$0xff] %v5180_v7 }
 0x242   : > { %2854 = vrot.lane.b32.xlu1 %v4106_v22, %s4413_s22  ;;  %2779 = vrot.lane.b32.xlu0 %v4101_v3, %s4413_s22  ;;  %v1045_v22 = vmul.f32 -0.4829629, %v943_v49  ;;  %v6660_v3 = vmov 0.0   ;;  %v4116_v49 = vld [vmem:[%s6528_s4 + $0x13] ss:$0 sm:$0xff] }
 0x243   : > { %306 = vst.msk [vmem:[#allocation3 + $0x10] sm:$0xff] %vm302_vm4, %v6660_v3  ;;  %303 = vst.msk [vmem:[#allocation3] sm:$0xff] %vm302_vm4, %v6660_v3 }
 0x244   : > { %307 = vst.msk [vmem:[#allocation3 + $0x18] sm:$0xf] %vm304_vm5, %v6660_v3  ;;  %305 = vst.msk [vmem:[#allocation3 + $0x8] sm:$0xf] %vm304_vm5, %v6660_v3 }
 0x245   : > { %308 = vst.msk [vmem:[#allocation3 + $0x20] sm:$0xff] %vm302_vm4, %v6660_v3  ;;  %310 = vst.msk [vmem:[#allocation3 + $0x30] sm:$0xff] %vm302_vm4, %v6660_v3 }
 0x246   : > { %2899 = vrot.lane.b32.xlu1 %v4109_v41, %s4412_s15  ;;  %2824 = vrot.lane.b32.xlu0 %v4104_v6, %s4412_s15  ;;  %309 = vst.msk [vmem:[#allocation3 + $0x28] sm:$0xf] %vm304_vm5, %v6660_v3  ;;  %311 = vst.msk [vmem:[#allocation3 + $0x38] sm:$0xf] %vm304_vm5, %v6660_v3  ;;  %v4113_v41 = vld [vmem:[%s6528_s4 + $0x10] ss:$0 sm:$0xff] }
 0x247   : > { %v4118_v6 = vld [vmem:[%s6528_s4 + $0x15] ss:$0 sm:$0xff] }
 0x24a   : > { %2929 = vrot.lane.b32.xlu1 %v4111_v30, %s4413_s22  ;;  %3218 = vrot.lane.b32.xlu0 %v4108_v51, %s4412_s15  ;;  %v5170_v30 = vpop.permute.xlu0 %1823 }
 0x24b   : > { %6661 = vst [vmem:[#allocation64_spill] sm:$0xff] %v5170_v30 }
 0x24e   : > { %1050 = vrot.lane.b32.xlu1 %v1045_v22, %s4419_s20  ;;  %2974 = vrot.lane.b32.xlu0 %v4114_v55, %s4412_s15  ;;  %v5172_v51 = vpop.permute.xlu0 %2513 }
 0x24f   : > { %6662 = vst [vmem:[#allocation65_spill] sm:$0xff] %v5172_v51 }
 0x252   : > { %3261 = vrot.lane.b32.xlu1 %v4113_v41, %s4412_s15  ;;  %3004 = vrot.lane.b32.xlu0 %v4116_v49, %s4413_s22  ;;  %v5174_v55 = vpop.permute.xlu0 %2183 }
 0x253   : > { %6663 = vst [vmem:[#allocation66_spill] sm:$0xff] %v5174_v55 }
 0x256   : > { %3304 = vrot.lane.b32.xlu0 %v4118_v6, %s4412_s15  ;;  %v5176_v22 = vpop.permute.xlu0 %1853 }
 0x257   : > { %6664 = vst [vmem:[#allocation67_spill] sm:$0xff] %v5176_v22  ;;  %v898_v22 = vmul.f32 0.4829629, %v5056_v61 }
 0x25a   : > { %v5178_v3 = vpop.permute.xlu0 %2543 }
 0x25b   : > { %6665 = vst [vmem:[#allocation68_spill] sm:$0xff] %v5178_v3  ;;  %v899_v3 = vmul.f32 0.4829629, %v5054_v0 }
 0x25e   : > { %v5182_v41 = vpop.permute.xlu0 %2213 }
 0x25f   : > { %6667 = vst [vmem:[#allocation70_spill] sm:$0xff] %v5182_v41 }
 0x280   : > { %v909_v49 = vpop.permute.xlu1 %908  ;;  %v907_v62 = vpop.permute.xlu0 %906 }
 0x281   : > { %v913_v7 = vadd.f32 %v909_v49, %v899_v3  ;;  %v912_v4 = vadd.f32 %v907_v62, %v898_v22 }
 0x284   : > { %v921_v56 = vpop.permute.xlu1 %920  ;;  %v919_v12 = vpop.permute.xlu0 %918 }
 0x285   : > { %v925_v44 = vadd.f32 %v921_v56, %v913_v7  ;;  %v924_v1 = vadd.f32 %v919_v12, %v912_v4 }
 0x288   : > { %v933_v52 = vpop.permute.xlu1 %932  ;;  %v931_v6 = vpop.permute.xlu0 %930 }
 0x289   : > { %v937_v27 = vadd.f32 %v933_v52, %v925_v44  ;;  %v936_v53 = vadd.f32 %v931_v6, %v924_v1 }
 0x28b   : > { %v1058_v11 = vmul.f32 0.8365163, %v937_v27  ;;  %v1077_v25 = vmul.f32 -0.12940952, %v937_v27  ;;  %v1094_v5 = vmul.f32 -0.22414386, %v937_v27 }
 0x28c   : > { %v5184_v10 = vpop.permute.xlu1 %988  ;;  %v5186_v30 = vpop.permute.xlu0 %986  ;;  %v1057_v49 = vmul.f32 0.8365163, %v936_v53  ;;  %v1093_v2 = vmul.f32 -0.22414386, %v936_v53  ;;  %v1112_v62 = vmul.f32 -0.4829629, %v937_v27 }
 0x28d   : > { %v1076_v56 = vmul.f32 -0.12940952, %v936_v53  ;;  %v1111_v4 = vmul.f32 -0.4829629, %v936_v53  ;;  %v1063_v52 = vrot.slane %v1058_v11, 1  ;;  %v1098_v1 = vrot.slane %v1094_v5, 1 }
 0x28e   : > { %v1062_v6 = vrot.slane %v1057_v49, 1  ;;  %v1097_v15 = vrot.slane %v1093_v2, 1  ;;  %v1082_v8 = vrot.slane %v1077_v25, 2  ;;  %v1116_v48 = vrot.slane %v1112_v62, 2 }
 0x28f   : > { %v1081_v59 = vrot.slane %v1076_v56, 2  ;;  %v1115_v26 = vrot.slane %v1111_v4, 2 }
 0x290   : > { %v5188_v51 = vpop.permute.xlu1 %1000  ;;  %v5190_v55 = vpop.permute.xlu0 %998  ;;  %v1099_v11 = vsel %vm1061_vm6, %v1097_v15, %v1098_v1  ;;  %v1064_v27 = vsel %vm1061_vm6, %v1062_v6, %v1063_v52  ;;  %v981_v6 = vmul.f32 -0.12940952, %v5054_v0 }
 0x294   : > { %v5194_v41 = vpop.permute.xlu1 %1012  ;;  %v5196_v50 = vpop.permute.xlu0 %1010 }
 0x298   : > { %v951_v57 = vpop.permute.xlu1 %950  ;;  %v949_v21 = vpop.permute.xlu0 %948 }
 0x299   : > { %v955_v19 = vadd.f32 %v951_v57, %v941_v17  ;;  %v954_v58 = vadd.f32 %v949_v21, %v940_v45 }
 0x29c   : > { %v963_v23 = vpop.permute.xlu1 %962  ;;  %v961_v3 = vpop.permute.xlu0 %960 }
 0x29d   : > { %v967_v12 = vadd.f32 %v963_v23, %v955_v19  ;;  %v966_v44 = vadd.f32 %v961_v3, %v954_v58 }
 0x2a0   : > { %v975_v7 = vpop.permute.xlu1 %974  ;;  %v973_v22 = vpop.permute.xlu0 %972 }
 0x2a1   : > { %v979_v54 = vadd.f32 %v975_v7, %v967_v12  ;;  %v978_v13 = vadd.f32 %v973_v22, %v966_v44  ;;  %v1083_v44 = vsel %vm1080_vm7, %v1081_v59, %v1082_v8 }
 0x2a3   : > { %v1068_v57 = vmul.f32 0.22414386, %v979_v54  ;;  %v1103_v45 = vmul.f32 0.8365163, %v979_v54  ;;  %v1056_v17 = vmul.f32 0.4829629, %v978_v13 }
 0x2a4   : > { %v1067_v21 = vmul.f32 0.22414386, %v978_v13  ;;  %v1092_v53 = vmul.f32 -0.12940952, %v978_v13  ;;  %v1102_v19 = vmul.f32 0.8365163, %v978_v13  ;;  %v1027_v23 = vpop.permute.xlu1 %1026  ;;  %v1117_v13 = vsel %vm1080_vm7, %v1115_v26, %v1116_v48  ;;  %v1025_v52 = vpop.permute.xlu0 %1024 }
 0x2a5   : > { %v1072_v58 = vrot.slane %v1068_v57, 1  ;;  %v1107_v5 = vrot.slane %v1103_v45, 1  ;;  %v1066_v25 = vadd.f32 %v1064_v27, %v1056_v17  ;;  %v980_v57 = vmul.f32 -0.12940952, %v5056_v61 }
 0x2a6   : > { %v1071_v2 = vrot.slane %v1067_v21, 1  ;;  %v1106_v3 = vrot.slane %v1102_v19, 1  ;;  %v1101_v49 = vadd.f32 %v1099_v11, %v1092_v53  ;;  %v993_v45 = vadd.f32 %v5184_v10, %v981_v6 }
 0x2a7   : > { %v992_v26 = vadd.f32 %v5186_v30, %v980_v57  ;;  %v1018_v53 = vmul.f32 -0.12940952, %v5086_v18  ;;  %v1019_v30 = vmul.f32 -0.12940952, %v5084_v63 }
 0x2a8   : > { %v1039_v62 = vpop.permute.xlu1 %1038  ;;  %v1108_v56 = vsel %vm1061_vm6, %v1106_v3, %v1107_v5  ;;  %v1073_v54 = vsel %vm1061_vm6, %v1071_v2, %v1072_v58  ;;  %v1037_v59 = vpop.permute.xlu0 %1036  ;;  %v1005_v48 = vadd.f32 %v5188_v51, %v993_v45 }
 0x2a9   : > { %v1110_v4 = vadd.f32 %v1108_v56, %v1101_v49  ;;  %v1075_v12 = vadd.f32 %v1073_v54, %v1066_v25  ;;  %v1004_v17 = vadd.f32 %v5190_v55, %v992_v26  ;;  %v1030_v58 = vadd.f32 %v1025_v52, %v1018_v53 }
 0x2aa   : > { %v1017_v21 = vadd.f32 %v5194_v41, %v1005_v48  ;;  %v1031_v55 = vadd.f32 %v1027_v23, %v1019_v30 }
 0x2ab   : > { %v1119_v7 = vadd.f32 %v1117_v13, %v1110_v4  ;;  %v1085_v15 = vadd.f32 %v1083_v44, %v1075_v12  ;;  %v1016_v19 = vadd.f32 %v5196_v50, %v1004_v17  ;;  %v1042_v11 = vadd.f32 %v1037_v59, %v1030_v58 }
 0x2ac   : > { %v5206_v1 = vpop.permute.xlu1 %2749  ;;  %v1049_v5 = vpop.permute.xlu0 %1048  ;;  %v1128_v10 = vmul.f32 0.8365163, %v1017_v21  ;;  %v1162_v27 = vmul.f32 -0.22414386, %v1017_v21  ;;  %v1146_v41 = vmul.f32 -0.12940952, %v1017_v21  ;;  %v1043_v50 = vadd.f32 %v1039_v62, %v1031_v55 }
 0x2ad   : > { %1121 = vrot.lane.b32.xlu1 %v1119_v7, %s4413_s22  ;;  %1087 = vrot.lane.b32.xlu0 %v1085_v15, %s4413_s22  ;;  %v1127_v2 = vmul.f32 0.8365163, %v1016_v19  ;;  %v1161_v3 = vmul.f32 -0.22414386, %v1016_v19  ;;  %v1054_v49 = vadd.f32 %v1049_v5, %v1042_v11  ;;  %v1180_v56 = vmul.f32 -0.4829629, %v1017_v21 }
 0x2ae   : > { %v1132_v25 = vrot.slane %v1128_v10, 1  ;;  %v1145_v54 = vmul.f32 -0.12940952, %v1016_v19  ;;  %v1166_v4 = vrot.slane %v1162_v27, 1  ;;  %v1179_v44 = vmul.f32 -0.4829629, %v1016_v19 }
 0x2af   : > { %v1131_v12 = vrot.slane %v1127_v2, 1  ;;  %v1165_v13 = vrot.slane %v1161_v3, 1  ;;  %v1136_v15 = vmul.f32 0.22414386, %v1054_v49  ;;  %v1170_v63 = vmul.f32 0.8365163, %v1054_v49 }
 0x2b0   : > { %v5210_v22 = vpop.permute.xlu1 %3175  ;;  %v1126_v6 = vmul.f32 0.4829629, %v1054_v49  ;;  %v1160_v57 = vmul.f32 -0.12940952, %v1054_v49  ;;  %v1150_v45 = vrot.slane %v1146_v41, 2  ;;  %v1184_v26 = vrot.slane %v1180_v56, 2 }
 0x2b1   : > { %v1149_v48 = vrot.slane %v1145_v54, 2  ;;  %v1183_v17 = vrot.slane %v1179_v44, 2  ;;  %v1167_v21 = vsel %vm1061_vm6, %v1165_v13, %v1166_v4  ;;  %v1133_v62 = vsel %vm1061_vm6, %v1131_v12, %v1132_v25  ;;  %v5236_v25 = vpop.permute.xlu0 %3132 }
 0x2b2   : > { %v1140_v53 = vrot.slane %v1136_v15, 1  ;;  %v1174_v58 = vrot.slane %v1170_v63, 1  ;;  %v1169_v10 = vadd.f32 %v1167_v21, %v1160_v57  ;;  %v1135_v30 = vadd.f32 %v1133_v62, %v1126_v6 }
 0x2b3   : > { %v1185_v55 = vsel %vm1080_vm7, %v1183_v17, %v1184_v26  ;;  %v1151_v49 = vsel %vm1080_vm7, %v1149_v48, %v1150_v45 }
 0x2b4   : > { %v5216_v8 = vpop.permute.xlu1 %2854 }
 0x2b5   : > { %v5238_v54 = vpop.permute.xlu0 %2779 }
 0x2b8   : > { %v5223_v0 = vpop.permute.xlu1 %2899 }
 0x2bc   : > { %v5226_v51 = vpop.permute.xlu1 %2929 }
 0x2c0   : > { %v1051_v7 = vpop.permute.xlu1 %1050 }
 0x2c1   : > { %v1055_v52 = vadd.f32 %v1051_v7, %v1043_v50  ;;  %v5240_v50 = vpop.permute.xlu0 %2824 }
 0x2c3   : > { %v1137_v59 = vmul.f32 0.22414386, %v1055_v52  ;;  %v1171_v23 = vmul.f32 0.8365163, %v1055_v52 }
 0x2c4   : > { %v5248_v44 = vpop.permute.xlu1 %3261 }
 0x2c5   : > { %v1141_v5 = vrot.slane %v1137_v59, 1  ;;  %v1175_v19 = vrot.slane %v1171_v23, 1  ;;  %v5242_v4 = vpop.permute.xlu0 %3218 }
 0x2c7   : > { %v1142_v11 = vsel %vm1061_vm6, %v1140_v53, %v1141_v5  ;;  %v1176_v27 = vsel %vm1061_vm6, %v1174_v58, %v1175_v19  ;;  %v6668_v58 = vld [vmem:[#allocation18_spill] sm:$0xff]  ;;  %v6669_v5 = vld [vmem:[#allocation11_spill] sm:$0xff] }
 0x2c8   : > { %v1178_v2 = vadd.f32 %v1176_v27, %v1169_v10  ;;  %v1144_v3 = vadd.f32 %v1142_v11, %v1135_v30  ;;  %v6671_v30 = vld [vmem:[#allocation12_spill] sm:$0xff] }
 0x2c9   : > { %v5244_v12 = vpop.permute.xlu0 %2974 }
 0x2ca   : > { %v1187_v41 = vadd.f32 %v1185_v55, %v1178_v2  ;;  %v1153_v56 = vadd.f32 %v1151_v49, %v1144_v3  ;;  %v6672_v2 = vld [vmem:[#allocation13_spill] sm:$0xff]  ;;  %v6673_v55 = vld [vmem:[#allocation22_spill] sm:$0xff] }
 0x2cc   : > { %1189 = vrot.lane.b32.xlu1 %v1187_v41, %s4413_s22  ;;  %1155 = vrot.lane.b32.xlu0 %v1153_v56, %s4413_s22  ;;  %v6674_v41 = vld [vmem:[#allocation14_spill] sm:$0xff] }
 0x2cd   : > { %v5246_v13 = vpop.permute.xlu0 %3004 }
 0x2d1   : > { %v5250_v7 = vpop.permute.xlu0 %3304 }
 0x31f   : > { %v1122_v15 = vpop.permute.xlu1 %1121  ;;  %v1088_v63 = vpop.permute.xlu0 %1087 }
 0x320   : > { %1125 = vst.msk [vmem:[#allocation3 + $0x12] sm:$0xff] %vm1090_vm8, %v1122_v15  ;;  %1091 = vst.msk [vmem:[#allocation3 + $0x2] sm:$0xff] %vm1090_vm8, %v1088_v63  ;;  %v6675_v15 = vld [vmem:[#allocation24_spill] sm:$0xff] }
 0x327   : > { %v5254_v52 = vld [vmem:[#allocation3 + $0x10] sm:$0xff]  ;;  %v5256_v6 = vld [vmem:[#allocation3] sm:$0xff] }
 0x328   : > { %v1554_v57 = vmul.f32 %v4867_v36, %v5254_v52  ;;  %v1210_v45 = vmul.f32 %v4821_v28, %v5256_v6  ;;  %v1569_v26 = vmul.f32 %v4871_v38, %v5254_v52  ;;  %v1225_v59 = vmul.f32 %v4823_v29, %v5256_v6  ;;  %v5280_v23 = vld [vmem:[#allocation3 + $0x11] sm:$0xff]  ;;  %v5282_v48 = vld [vmem:[#allocation3 + $0x1] sm:$0xff] }
 0x329   : > { %v1584_v36 = vmul.f32 %v4875_v40, %v5254_v52  ;;  %v1240_v28 = vmul.f32 %v4857_v31, %v5256_v6  ;;  %v1599_v38 = vmul.f32 %v4879_v43, %v5254_v52  ;;  %v1255_v29 = vmul.f32 %v4859_v32, %v5256_v6  ;;  %v5310_v62 = vld [vmem:[#allocation3 + $0x12] sm:$0xff]  ;;  %v5312_v53 = vld [vmem:[#allocation3 + $0x2] sm:$0xff] }
 0x32a   : > { %1556 = vrot.lane.b32.xlu0 %v1554_v57, %s4418_s14  ;;  %1212 = vrot.lane.b32.xlu1 %v1210_v45, %s4418_s14  ;;  %v1622_v31 = vmul.f32 %v4883_v47, %v5280_v23  ;;  %v1278_v40 = vmul.f32 %v4861_v33, %v5282_v48  ;;  %v1637_v32 = vmul.f32 %v4893_v60, %v5280_v23  ;;  %v5338_v19 = vld [vmem:[#allocation3 + $0x13] sm:$0xff]  ;;  %v5340_v10 = vld [vmem:[#allocation3 + $0x3] sm:$0xff] }
 0x32b   : > { %v1293_v43 = vmul.f32 %v4863_v34, %v5282_v48  ;;  %v1652_v33 = vmul.f32 %v4897_v9, %v5280_v23  ;;  %v1308_v47 = vmul.f32 %v4865_v35, %v5282_v48  ;;  %v1667_v34 = vmul.f32 %v4901_v14, %v5280_v23  ;;  %v6676_v57 = vld [vmem:[#allocation15_spill] sm:$0xff] }
 0x32c   : > { %v1323_v60 = vmul.f32 %v4869_v37, %v5282_v48  ;;  %v1690_v35 = vmul.f32 %v4905_v16, %v5310_v62  ;;  %v1346_v9 = vmul.f32 %v4873_v39, %v5312_v53  ;;  %v1705_v37 = vmul.f32 %v4909_v20, %v5310_v62 }
 0x32d   : > { %v1361_v14 = vmul.f32 %v4877_v42, %v5312_v53  ;;  %v1720_v16 = vmul.f32 %v4913_v24, %v5310_v62  ;;  %v1376_v39 = vmul.f32 %v4881_v46, %v5312_v53  ;;  %v1735_v20 = vmul.f32 %v6668_v58, %v5310_v62  ;;  %v6670_v46 = vld [vmem:[#allocation20_spill] sm:$0xff] }
 0x32e   : > { %1571 = vrot.lane.b32.xlu0 %v1569_v26, %s4419_s20  ;;  %1227 = vrot.lane.b32.xlu1 %v1225_v59, %s4419_s20  ;;  %v1391_v42 = vmul.f32 %v6669_v5, %v5312_v53  ;;  %v1758_v24 = vmul.f32 %v6670_v46, %v5338_v19  ;;  %v1414_v11 = vmul.f32 %v6671_v30, %v5340_v10  ;;  %v6677_v26 = vld [vmem:[#allocation26_spill] sm:$0xff]  ;;  %v6688_v46 = vld [vmem:[#allocation25_spill] sm:$0xff] }
 0x32f   : > { %v1429_v3 = vmul.f32 %v6672_v2, %v5340_v10  ;;  %v1444_v56 = vmul.f32 %v6674_v41, %v5340_v10  ;;  %v1459_v45 = vmul.f32 %v6676_v57, %v5340_v10  ;;  %v6689_v30 = vld [vmem:[#allocation38_spill] sm:$0xff]  ;;  %v6690_v2 = vld [vmem:[#allocation27_spill] sm:$0xff]  ;;  %v6692_v41 = vld [vmem:[#allocation29_spill] sm:$0xff] }
 0x332   : > { %1586 = vrot.lane.b32.xlu0 %v1584_v36, %s4420_s17  ;;  %1242 = vrot.lane.b32.xlu1 %v1240_v28, %s4420_s17  ;;  %v5368_v36 = vld [vmem:[#allocation3 + $0x4] sm:$0xff] }
 0x333   : > { %v6678_v28 = vld [vmem:[#allocation16_spill] sm:$0xff] }
 0x336   : > { %1601 = vrot.lane.b32.xlu0 %v1599_v38, %s4421_s18  ;;  %1257 = vrot.lane.b32.xlu1 %v1255_v29, %s4421_s18  ;;  %v1482_v38 = vmul.f32 %v6678_v28, %v5368_v36  ;;  %v6679_v29 = vld [vmem:[#allocation28_spill] sm:$0xff] }
 0x33a   : > { %1624 = vrot.lane.b32.xlu0 %v1622_v31, %s4418_s14  ;;  %1280 = vrot.lane.b32.xlu1 %v1278_v40, %s4418_s14 }
 0x33e   : > { %1639 = vrot.lane.b32.xlu0 %v1637_v32, %s4419_s20  ;;  %1295 = vrot.lane.b32.xlu1 %v1293_v43, %s4419_s20  ;;  %v1190_v17 = vpop.permute.xlu1 %1189  ;;  %v1156_v21 = vpop.permute.xlu0 %1155  ;;  %v6680_v32 = vld [vmem:[#allocation17_spill] sm:$0xff] }
 0x33f   : > { %1193 = vst.msk [vmem:[#allocation3 + $0x32] sm:$0xff] %vm1090_vm8, %v1190_v17  ;;  %1159 = vst.msk [vmem:[#allocation3 + $0x22] sm:$0xff] %vm1090_vm8, %v1156_v21  ;;  %v1497_v43 = vmul.f32 %v6680_v32, %v5368_v36  ;;  %v6681_v17 = vld [vmem:[#allocation30_spill] sm:$0xff] }
 0x340   : > { %v6697_v32 = vld [vmem:[#allocation46_spill] sm:$0xff] }
 0x342   : > { %1654 = vrot.lane.b32.xlu0 %v1652_v33, %s4420_s17  ;;  %1310 = vrot.lane.b32.xlu1 %v1308_v47, %s4420_s17  ;;  %v6682_v33 = vld [vmem:[#allocation19_spill] sm:$0xff] }
 0x343   : > { %v1512_v47 = vmul.f32 %v6682_v33, %v5368_v36  ;;  %v6699_v33 = vld [vmem:[#allocation48_spill] sm:$0xff] }
 0x346   : > { %1669 = vrot.lane.b32.xlu0 %v1667_v34, %s4421_s18  ;;  %1325 = vrot.lane.b32.xlu1 %v1323_v60, %s4421_s18  ;;  %v5348_v27 = vld [vmem:[#allocation3 + $0x20] sm:$0xff]  ;;  %v6683_v34 = vld [vmem:[#allocation32_spill] sm:$0xff]  ;;  %v5424_v57 = vld [vmem:[#allocation3 + $0x31] sm:$0xff] }
 0x347   : > { %v1899_v49 = vmul.f32 %v6673_v55, %v5348_v27  ;;  %v1914_v63 = vmul.f32 %v6675_v15, %v5348_v27  ;;  %v1929_v59 = vmul.f32 %v6677_v26, %v5348_v27  ;;  %v1944_v31 = vmul.f32 %v6679_v29, %v5348_v27  ;;  %v5376_v40 = vld [vmem:[#allocation3 + $0x21] sm:$0xff]  ;;  %v6693_v15 = vld [vmem:[#allocation42_spill] sm:$0xff]  ;;  %v6696_v29 = vld [vmem:[#allocation33_spill] sm:$0xff] }
 0x348   : > { %v1967_v21 = vmul.f32 %v6681_v17, %v5376_v40  ;;  %v1982_v60 = vmul.f32 %v6683_v34, %v5376_v40  ;;  %v6691_v55 = vld [vmem:[#allocation40_spill] sm:$0xff]  ;;  %v6698_v17 = vld [vmem:[#allocation35_spill] sm:$0xff]  ;;  %v5446_v34 = vld [vmem:[#allocation3 + $0x33] sm:$0xff] }
 0x34a   : > { %1692 = vrot.lane.b32.xlu0 %v1690_v35, %s4418_s14  ;;  %1348 = vrot.lane.b32.xlu1 %v1346_v9, %s4418_s14  ;;  %v6684_v35 = vld [vmem:[#allocation21_spill] sm:$0xff] }
 0x34b   : > { %v1527_v9 = vmul.f32 %v6684_v35, %v5368_v36 }
 0x34e   : > { %1707 = vrot.lane.b32.xlu0 %v1705_v37, %s4419_s20  ;;  %1363 = vrot.lane.b32.xlu1 %v1361_v14, %s4419_s20  ;;  %v6685_v37 = vld [vmem:[#allocation34_spill] sm:$0xff] }
 0x34f   : > { %v1997_v14 = vmul.f32 %v6685_v37, %v5376_v40 }
 0x352   : > { %1722 = vrot.lane.b32.xlu0 %v1720_v16, %s4420_s17  ;;  %1378 = vrot.lane.b32.xlu1 %v1376_v39, %s4420_s17  ;;  %v5396_v16 = vld [vmem:[#allocation3 + $0x30] sm:$0xff]  ;;  %v6686_v39 = vld [vmem:[#allocation23_spill] sm:$0xff] }
 0x353   : > { %v2244_v58 = vmul.f32 %v6686_v39, %v5396_v16  ;;  %v6702_v39 = vld [vmem:[#allocation39_spill] sm:$0xff] }
 0x356   : > { %1737 = vrot.lane.b32.xlu0 %v1735_v20, %s4421_s18  ;;  %1393 = vrot.lane.b32.xlu1 %v1391_v42, %s4421_s18  ;;  %v6687_v20 = vld [vmem:[#allocation36_spill] sm:$0xff] }
 0x357   : > { %v2012_v5 = vmul.f32 %v6687_v20, %v5376_v40  ;;  %v5404_v42 = vld [vmem:[#allocation3 + $0x22] sm:$0xff] }
 0x358   : > { %v6703_v20 = vld [vmem:[#allocation52_spill] sm:$0xff] }
 0x35a   : > { %1760 = vrot.lane.b32.xlu0 %v1758_v24, %s4418_s14  ;;  %1416 = vrot.lane.b32.xlu1 %v1414_v11, %s4418_s14  ;;  %v2259_v24 = vmul.f32 %v6688_v46, %v5396_v16  ;;  %v2035_v11 = vmul.f32 %v6689_v30, %v5404_v42  ;;  %v6704_v30 = vld [vmem:[#allocation41_spill] sm:$0xff] }
 0x35e   : > { %1431 = vrot.lane.b32.xlu1 %v1429_v3, %s4419_s20  ;;  %1901 = vrot.lane.b32.xlu0 %v1899_v49, %s4418_s14  ;;  %v2274_v3 = vmul.f32 %v6690_v2, %v5396_v16  ;;  %v2050_v49 = vmul.f32 %v6691_v55, %v5404_v42  ;;  %v6705_v2 = vld [vmem:[#allocation54_spill] sm:$0xff]  ;;  %v3997_v55 = vld [vmem:[%s6530_s6] ss:$0 sm:$0xff] }
 0x362   : > { %1446 = vrot.lane.b32.xlu1 %v1444_v56, %s4420_s17  ;;  %1916 = vrot.lane.b32.xlu0 %v1914_v63, %s4419_s20  ;;  %v2289_v56 = vmul.f32 %v6692_v41, %v5396_v16  ;;  %v2065_v63 = vmul.f32 %v6693_v15, %v5404_v42  ;;  %v6706_v15 = vld [vmem:[#allocation43_spill] sm:$0xff] }
 0x366   : > { %1461 = vrot.lane.b32.xlu1 %v1459_v45, %s4421_s18  ;;  %1931 = vrot.lane.b32.xlu0 %v1929_v59, %s4420_s17  ;;  %v6694_v45 = vld [vmem:[#allocation31_spill] sm:$0xff]  ;;  %v6695_v59 = vld [vmem:[#allocation44_spill] sm:$0xff] }
 0x367   : > { %v2312_v26 = vmul.f32 %v6694_v45, %v5424_v57  ;;  %v2080_v28 = vmul.f32 %v6695_v59, %v5404_v42  ;;  %v6707_v45 = vld [vmem:[#allocation56_spill] sm:$0xff]  ;;  %v1200_v59 = vmul.f32 %v3997_v55, %v5256_v6 }
 0x36a   : > { %1484 = vrot.lane.b32.xlu1 %v1482_v38, %s4418_s14  ;;  %1946 = vrot.lane.b32.xlu0 %v1944_v31, %s4421_s18  ;;  %v5432_v38 = vld [vmem:[#allocation3 + $0x23] sm:$0xff]  ;;  %v2327_v31 = vmul.f32 %v6696_v29, %v5424_v57 }
 0x36b   : > { %v5482_v29 = vld [vmem:[#allocation3 + $0x24] sm:$0xff] }
 0x36e   : > { %1499 = vrot.lane.b32.xlu1 %v1497_v43, %s4419_s20  ;;  %1969 = vrot.lane.b32.xlu0 %v1967_v21, %s4418_s14  ;;  %v2103_v43 = vmul.f32 %v6697_v32, %v5432_v38  ;;  %v2342_v21 = vmul.f32 %v6698_v17, %v5424_v57 }
 0x372   : > { %1514 = vrot.lane.b32.xlu1 %v1512_v47, %s4420_s17  ;;  %1984 = vrot.lane.b32.xlu0 %v1982_v60, %s4419_s20  ;;  %v1773_v47 = vmul.f32 %v6699_v33, %v5338_v19  ;;  %v6700_v60 = vld [vmem:[#allocation37_spill] sm:$0xff] }
 0x373   : > { %v2357_v35 = vmul.f32 %v6700_v60, %v5424_v57 }
 0x376   : > { %1529 = vrot.lane.b32.xlu1 %v1527_v9, %s4421_s18  ;;  %1999 = vrot.lane.b32.xlu0 %v1997_v14, %s4420_s17  ;;  %v6701_v9 = vld [vmem:[#allocation50_spill] sm:$0xff] }
 0x377   : > { %v2463_v37 = vmul.f32 %v6701_v9, %v5446_v34  ;;  %v5454_v14 = vld [vmem:[#allocation3 + $0x32] sm:$0xff] }
 0x378   : > { %v5490_v9 = vld [vmem:[#allocation3 + $0x14] sm:$0xff] }
 0x37a   : > { %2246 = vrot.lane.b32.xlu1 %v2244_v58, %s4418_s14  ;;  %2014 = vrot.lane.b32.xlu0 %v2012_v5, %s4421_s18  ;;  %v2380_v58 = vmul.f32 %v6702_v39, %v5454_v14  ;;  %v2133_v5 = vmul.f32 %v6703_v20, %v5432_v38 }
 0x37e   : > { %2261 = vrot.lane.b32.xlu1 %v2259_v24, %s4419_s20  ;;  %2037 = vrot.lane.b32.xlu0 %v2035_v11, %s4418_s14  ;;  %v2395_v11 = vmul.f32 %v6704_v30, %v5454_v14  ;;  %v6711_v30 = vld [vmem:[#allocation58_spill] sm:$0xff] }
 0x382   : > { %2276 = vrot.lane.b32.xlu1 %v2274_v3, %s4420_s17  ;;  %2052 = vrot.lane.b32.xlu0 %v2050_v49, %s4419_s20  ;;  %v1803_v3 = vmul.f32 %v6705_v2, %v5338_v19  ;;  %v4022_v49 = vld [vmem:[%s6530_s6 + $0x19] ss:$0 sm:$0xff] }
 0x386   : > { %2291 = vrot.lane.b32.xlu1 %v2289_v56, %s4421_s18  ;;  %2067 = vrot.lane.b32.xlu0 %v2065_v63, %s4420_s17  ;;  %v2410_v63 = vmul.f32 %v6706_v15, %v5454_v14 }
 0x38a   : > { %2314 = vrot.lane.b32.xlu1 %v2312_v26, %s4418_s14  ;;  %2082 = vrot.lane.b32.xlu0 %v2080_v28, %s4421_s18  ;;  %v2493_v26 = vmul.f32 %v6707_v45, %v5446_v34  ;;  %v1544_v28 = vmul.f32 %v4022_v49, %v5254_v52  ;;  %v4002_v52 = vld [vmem:[%s6530_s6 + $0x5] ss:$0 sm:$0xff] }
 0x38b   : > { %v1267_v55 = vmul.f32 %v4002_v52, %v5282_v48 }
 0x38e   : > { %2329 = vrot.lane.b32.xlu1 %v2327_v31, %s4419_s20  ;;  %2105 = vrot.lane.b32.xlu0 %v2103_v43, %s4418_s14 }
 0x392   : > { %2344 = vrot.lane.b32.xlu1 %v2342_v21, %s4420_s17  ;;  %1775 = vrot.lane.b32.xlu0 %v1773_v47, %s4419_s20  ;;  %v6708_v21 = vld [vmem:[#allocation45_spill] sm:$0xff] }
 0x393   : > { %v2425_v33 = vmul.f32 %v6708_v21, %v5454_v14  ;;  %v6709_v47 = vld [vmem:[#allocation57_spill] sm:$0xff] }
 0x394   : > { %v2171_v60 = vmul.f32 %v6709_v47, %v5482_v29 }
 0x396   : > { %2359 = vrot.lane.b32.xlu1 %v2357_v35, %s4421_s18  ;;  %2465 = vrot.lane.b32.xlu0 %v2463_v37, %s4419_s20  ;;  %v4027_v37 = vld [vmem:[%s6530_s6 + $0x1e] ss:$0 sm:$0xff] }
 0x397   : > { %v1611_v49 = vmul.f32 %v4027_v37, %v5280_v23  ;;  %v6717_v37 = vld [vmem:[#allocation61_spill] sm:$0xff] }
 0x39a   : > { %2382 = vrot.lane.b32.xlu1 %v2380_v58, %s4418_s14  ;;  %2135 = vrot.lane.b32.xlu0 %v2133_v5, %s4420_s17 }
 0x39c   : > { %v1213_v46 = vpop.permute.xlu1 %1212  ;;  %v1557_v24 = vpop.permute.xlu0 %1556 }
 0x39d   : > { %v1215_v31 = vadd.f32 %v1213_v46, %v1200_v59  ;;  %v1559_v32 = vadd.f32 %v1557_v24, %v1544_v28  ;;  %v6710_v46 = vld [vmem:[#allocation47_spill] sm:$0xff] }
 0x39e   : > { %2397 = vrot.lane.b32.xlu1 %v2395_v11, %s4419_s20  ;;  %1805 = vrot.lane.b32.xlu0 %v1803_v3, %s4421_s18  ;;  %v2448_v24 = vmul.f32 %v6710_v46, %v5446_v34  ;;  %v1841_v11 = vmul.f32 %v6711_v30, %v5490_v9  ;;  %v6713_v28 = vld [vmem:[#allocation59_spill] sm:$0xff] }
 0x39f   : > { %v4032_v46 = vld [vmem:[%s6530_s6 + $0x23] ss:$0 sm:$0xff] }
 0x3a0   : > { %v1228_v41 = vpop.permute.xlu1 %1227  ;;  %v1572_v56 = vpop.permute.xlu0 %1571 }
 0x3a1   : > { %v1230_v35 = vadd.f32 %v1228_v41, %v1215_v31  ;;  %v1574_v6 = vadd.f32 %v1572_v56, %v1559_v32  ;;  %v5506_v41 = vld [vmem:[#allocation3 + $0x34] sm:$0xff]  ;;  %v6714_v32 = vld [vmem:[#allocation51_spill] sm:$0xff] }
 0x3a2   : > { %2412 = vrot.lane.b32.xlu1 %v2410_v63, %s4420_s17  ;;  %2495 = vrot.lane.b32.xlu0 %v2493_v26, %s4421_s18  ;;  %v6712_v26 = vld [vmem:[#allocation49_spill] sm:$0xff]  ;;  %v2531_v31 = vmul.f32 %v6713_v28, %v5506_v41  ;;  %v1679_v28 = vmul.f32 %v4032_v46, %v5310_v62  ;;  %v6721_v62 = vld [vmem:[#allocation62_spill] sm:$0xff] }
 0x3a3   : > { %v2118_v59 = vmul.f32 %v6712_v26, %v5432_v38 }
 0x3a4   : > { %v1243_v43 = vpop.permute.xlu1 %1242  ;;  %v1587_v17 = vpop.permute.xlu0 %1586 }
 0x3a5   : > { %v1245_v39 = vadd.f32 %v1243_v43, %v1230_v35  ;;  %v1589_v58 = vadd.f32 %v1587_v17, %v1574_v6  ;;  %v1788_v43 = vmul.f32 %v6714_v32, %v5338_v19  ;;  %v6715_v17 = vld [vmem:[#allocation60_spill] sm:$0xff]  ;;  %v6716_v6 = vld [vmem:[#allocation53_spill] sm:$0xff] }
 0x3a6   : > { %2427 = vrot.lane.b32.xlu1 %v2425_v33, %s4421_s18  ;;  %2173 = vrot.lane.b32.xlu0 %v2171_v60, %s4418_s14  ;;  %v2201_v21 = vmul.f32 %v6715_v17, %v5482_v29  ;;  %v2478_v52 = vmul.f32 %v6716_v6, %v5446_v34 }
 0x3a8   : > { %v1258_v20 = vpop.permute.xlu1 %1257  ;;  %v1602_v5 = vpop.permute.xlu0 %1601 }
 0x3a9   : > { %v1260_v2 = vadd.f32 %v1258_v20, %v1245_v39  ;;  %v1604_v3 = vadd.f32 %v1602_v5, %v1589_v58  ;;  %v1871_v39 = vmul.f32 %v6717_v37, %v5490_v9  ;;  %v4007_v5 = vld [vmem:[%s6530_s6 + $0xa] ss:$0 sm:$0xff] }
 0x3aa   : > { %2450 = vrot.lane.b32.xlu1 %v2448_v24, %s4418_s14  ;;  %1843 = vrot.lane.b32.xlu0 %v1841_v11, %s4419_s20  ;;  %v5537_v11 = vld [vmem:[%s6528_s4] ss:$0 sm:$0xff] }
 0x3ab   : > { %v1268_v56 = vadd.f32 %v1267_v55, %v1260_v2  ;;  %v1612_v15 = vadd.f32 %v1611_v49, %v1604_v3  ;;  %v6718_v55 = vld [vmem:[#allocation55_spill] sm:$0xff]  ;;  %v3123_v46 = vmul.f32 %v5537_v11, %v5056_v61 }
 0x3ac   : > { %v1281_v63 = vpop.permute.xlu1 %1280  ;;  %v1625_v45 = vpop.permute.xlu0 %1624  ;;  %v2148_v49 = vmul.f32 %v6718_v55, %v5432_v38 }
 0x3ad   : > { %v1283_v33 = vadd.f32 %v1281_v63, %v1268_v56  ;;  %v1627_v47 = vadd.f32 %v1625_v45, %v1612_v15  ;;  %v6719_v56 = vld [vmem:[#allocation69_spill] sm:$0xff]  ;;  %v3586_v63 = vmul.f32 %v5537_v11, %v5086_v18  ;;  %v5556_v18 = vld [vmem:[%s6528_s4 + $0x3] ss:$0 sm:$0xff] }
 0x3ae   : > { %2120 = vrot.lane.b32.xlu1 %v2118_v59, %s4419_s20  ;;  %2533 = vrot.lane.b32.xlu0 %v2531_v31, %s4419_s20  ;;  %v2561_v15 = vmul.f32 %v6719_v56, %v5506_v41  ;;  %v1335_v59 = vmul.f32 %v4007_v5, %v5312_v53  ;;  %v3594_v53 = vmul.f32 %v5236_v25, %v6721_v62  ;;  %v6724_v56 = vld [vmem:[#allocation63_spill] sm:$0xff] }
 0x3b0   : > { %v1296_v23 = vpop.permute.xlu1 %1295  ;;  %v1640_v48 = vpop.permute.xlu0 %1639  ;;  %v3596_v37 = vrot.slane %v3594_v53, 6  ;;  %v6726_v53 = vld [vmem:[#allocation68_spill] sm:$0xff] }
 0x3b1   : > { %v1298_v58 = vadd.f32 %v1296_v23, %v1283_v33  ;;  %v1642_v20 = vadd.f32 %v1640_v48, %v1627_v47 }
 0x3b2   : > { %1790 = vrot.lane.b32.xlu1 %v1788_v43, %s4420_s17  ;;  %2203 = vrot.lane.b32.xlu0 %v2201_v21, %s4420_s17  ;;  %v6720_v43 = vld [vmem:[#allocation64_spill] sm:$0xff]  ;;  %v3588_v21 = vrot.slane %v3586_v63, 6 }
 0x3b3   : > { %v1826_v17 = vmul.f32 %v6720_v43, %v5490_v9 }
 0x3b4   : > { %v1311_v60 = vpop.permute.xlu1 %1310  ;;  %v1655_v35 = vpop.permute.xlu0 %1654 }
 0x3b5   : > { %v1313_v24 = vadd.f32 %v1311_v60, %v1298_v58  ;;  %v1657_v30 = vadd.f32 %v1655_v35, %v1642_v20  ;;  %v6722_v60 = vld [vmem:[#allocation65_spill] sm:$0xff]  ;;  %v6723_v20 = vld [vmem:[#allocation66_spill] sm:$0xff] }
 0x3b6   : > { %2480 = vrot.lane.b32.xlu1 %v2478_v52, %s4420_s17  ;;  %1873 = vrot.lane.b32.xlu0 %v1871_v39, %s4421_s18  ;;  %v2516_v35 = vmul.f32 %v6722_v60, %v5506_v41  ;;  %v2186_v5 = vmul.f32 %v6723_v20, %v5482_v29  ;;  %v5600_v60 = vld [vmem:[%s6528_s4 + $0x5] ss:$0 sm:$0xff]  ;;  %v4047_v20 = vld [vmem:[%s6530_s6 + $0x32] ss:$0 sm:$0xff] }
 0x3b8   : > { %v1326_v2 = vpop.permute.xlu1 %1325  ;;  %v1670_v3 = vpop.permute.xlu0 %1669 }
 0x3b9   : > { %v1328_v45 = vadd.f32 %v1326_v2, %v1313_v24  ;;  %v1672_v26 = vadd.f32 %v1670_v3, %v1657_v30  ;;  %v4012_v2 = vld [vmem:[%s6530_s6 + $0xf] ss:$0 sm:$0xff]  ;;  %v4037_v3 = vld [vmem:[%s6530_s6 + $0x28] ss:$0 sm:$0xff] }
 0x3ba   : > { %2150 = vrot.lane.b32.xlu1 %v2148_v49, %s4421_s18  ;;  %2563 = vrot.lane.b32.xlu0 %v2561_v15, %s4421_s18  ;;  %v2735_v15 = vmul.f32 %v6724_v56, %v5056_v61  ;;  %v1889_v56 = vmul.f32 %v4047_v20, %v5348_v27  ;;  %v4305_v20 = vld [vmem:[%s6528_s4 + $0x1] ss:$0 sm:$0xff] }
 0x3bb   : > { %v1336_v31 = vadd.f32 %v1335_v59, %v1328_v45  ;;  %v1680_v23 = vadd.f32 %v1679_v28, %v1672_v26  ;;  %v6725_v26 = vld [vmem:[#allocation67_spill] sm:$0xff]  ;;  %v3125_v28 = vrot.slane %v3123_v46, 7  ;;  %v4119_v46 = vld [vmem:[%s6528_s4 + $0x16] ss:$0 sm:$0xff] }
 0x3bc   : > { %v1349_v48 = vpop.permute.xlu1 %1348  ;;  %v1693_v32 = vpop.permute.xlu0 %1692  ;;  %v1856_v59 = vmul.f32 %v6725_v26, %v5490_v9  ;;  %v2737_v61 = vrot.slane %v2735_v15, 7  ;;  %v4017_v15 = vld [vmem:[%s6530_s6 + $0x14] ss:$0 sm:$0xff]  ;;  %v4121_v26 = vld [vmem:[%s6528_s4 + $0x18] ss:$0 sm:$0xff] }
 0x3bd   : > { %v1351_v6 = vadd.f32 %v1349_v48, %v1336_v31  ;;  %v1695_v52 = vadd.f32 %v1693_v32, %v1680_v23  ;;  %v1403_v48 = vmul.f32 %v4012_v2, %v5340_v10  ;;  %v1747_v32 = vmul.f32 %v4037_v3, %v5338_v19  ;;  %v5595_v19 = vld [vmem:[#allocation2 + $0x1] sm:$0xff] }
 0x3be   : > { %1828 = vrot.lane.b32.xlu1 %v1826_v17, %s4418_s14  ;;  %3589 = vrot.lane.b32.xlu0 %v3588_v21, %s4413_s22  ;;  %v5616_v3 = vld [vmem:[#allocation2] sm:$0xff] }
 0x3c0   : > { %v1364_v33 = vpop.permute.xlu1 %1363  ;;  %v1708_v47 = vpop.permute.xlu0 %1707 }
 0x3c1   : > { %v1366_v24 = vadd.f32 %v1364_v33, %v1351_v6  ;;  %v1710_v30 = vadd.f32 %v1708_v47, %v1695_v52  ;;  %v2546_v33 = vmul.f32 %v6726_v53, %v5506_v41  ;;  %v5591_v47 = vld [vmem:[#allocation2 + $0x10] sm:$0xff]  ;;  %v6727_v52 = vld [vmem:[#allocation70_spill] sm:$0xff] }
 0x3c2   : > { %2518 = vrot.lane.b32.xlu1 %v2516_v35, %s4418_s14  ;;  %3151 = vrot.lane.b32.xlu0 %v5556_v18, %s4413_s22  ;;  %v3143_v10 = vmul.f32 %v5591_v47, %v5206_v1 }
 0x3c4   : > { %v1379_v39 = vpop.permute.xlu1 %1378  ;;  %v1723_v58 = vpop.permute.xlu0 %1722 }
 0x3c5   : > { %v1381_v55 = vadd.f32 %v1379_v39, %v1366_v24  ;;  %v1725_v49 = vadd.f32 %v1723_v58, %v1710_v30  ;;  %v3145_v39 = vrot.slane %v3143_v10, 7  ;;  %v3409_v58 = vmul.f32 %v5600_v60, %v5595_v19 }
 0x3c6   : > { %2188 = vrot.lane.b32.xlu1 %v2186_v5, %s4419_s20  ;;  %3597 = vrot.lane.b32.xlu0 %v3596_v37, %s4412_s15  ;;  %v2216_v37 = vmul.f32 %v6727_v52, %v5482_v29  ;;  %v3630_v10 = vmul.f32 %v5210_v22, %v5595_v19 }
 0x3c7   : > { %v3411_v2 = vrot.slane %v3409_v58, 6  ;;  %v5650_v58 = vld [vmem:[#allocation2 + $0x30] sm:$0xff] }
 0x3c8   : > { %v1394_v63 = vpop.permute.xlu1 %1393  ;;  %v1738_v45 = vpop.permute.xlu0 %1737 }
 0x3c9   : > { %v1396_v31 = vadd.f32 %v1394_v63, %v1381_v55  ;;  %v1740_v23 = vadd.f32 %v1738_v45, %v1725_v49  ;;  %v2782_v55 = vmul.f32 %v5616_v3, %v5238_v54 }
 0x3ca   : > { %1858 = vrot.lane.b32.xlu1 %v1856_v59, %s4420_s17  ;;  %3126 = vrot.lane.b32.xlu0 %v3125_v28, %s4413_s22 }
 0x3cb   : > { %v1404_v43 = vadd.f32 %v1403_v48, %v1396_v31  ;;  %v5585_v17 = vadd.f32 %v1747_v32, %v1740_v23  ;;  %v2784_v31 = vrot.slane %v2782_v55, 7  ;;  %v5629_v23 = vld [vmem:[#allocation2 + $0x20] sm:$0xff] }
 0x3cc   : > { %v1417_v21 = vpop.permute.xlu1 %1416  ;;  %v5587_v62 = vpop.permute.xlu0 %1760  ;;  %v3373_v27 = vmul.f32 %v5629_v23, %v5537_v11 }
 0x3cd   : > { %v1419_v5 = vadd.f32 %v1417_v21, %v1404_v43  ;;  %v1471_v43 = vmul.f32 %v4017_v15, %v5368_v36 }
 0x3ce   : > { %2548 = vrot.lane.b32.xlu1 %v2546_v33, %s4420_s17  ;;  %2738 = vrot.lane.b32.xlu0 %v2737_v61, %s4412_s15  ;;  %v4052_v61 = vld [vmem:[%s6530_s6 + $0x37] ss:$0 sm:$0xff]  ;;  %v5642_v33 = vld [vmem:[%s6528_s4 + $0x8] ss:$0 sm:$0xff] }
 0x3d0   : > { %v1432_v35 = vpop.permute.xlu1 %1431  ;;  %v1902_v6 = vpop.permute.xlu0 %1901 }
 0x3d1   : > { %v1434_v49 = vadd.f32 %v1432_v35, %v1419_v5  ;;  %v1904_v63 = vadd.f32 %v1902_v6, %v1889_v56  ;;  %v3375_v6 = vrot.slane %v3373_v27, 6  ;;  %v3381_v5 = vmul.f32 %v4305_v20, %v5650_v58 }
 0x3d2   : > { %2218 = vrot.lane.b32.xlu1 %v2216_v37, %s4421_s18  ;;  %3146 = vrot.lane.b32.xlu0 %v3145_v39, %s4412_s15  ;;  %v1956_v37 = vmul.f32 %v4052_v61, %v5376_v40  ;;  %v3166_v40 = vmul.f32 %v5650_v58, %v5600_v60  ;;  %v3602_v27 = vmul.f32 %v5650_v58, %v5206_v1  ;;  %s4132_s18 = sshll.u32 %s4485_s28, 8  ;;  %s4423_s28 = smov [#allocation8]  }
 0x3d3   : > { %v3383_v55 = vrot.slane %v3381_v5, 6  ;;  %v3135_v61 = vmul.f32 %v5616_v3, %v5236_v25  ;;  %v3401_v5 = vmul.f32 %v5629_v23, %v5238_v54  ;;  %v5681_v25 = vld [vmem:[#allocation2 + $0x11] sm:$0xff]  ;;  %s6488_s20 = scalar_lea.hbm %s6531_s7, %s4132_s18  ;;  %s4346_s21 = sshll.u32 %s4423_s28, 4  ;;  %s4347_s21 = int_to_ptr.vmem [resolvable:$false] %s4346_s21 }
 0x3d4   : > { %v1447_v24 = vpop.permute.xlu1 %1446  ;;  %v1917_v30 = vpop.permute.xlu0 %1916  ;;  %v3168_v15 = vrot.slane %v3166_v40, 7  ;;  %s4348_s17 = scalar_lea.vmem %s4347_s21, 512 }
 0x3d5   : > { %v1449_v45 = vadd.f32 %v1447_v24, %v1434_v49  ;;  %v1919_v48 = vadd.f32 %v1917_v30, %v1904_v63  ;;  %v2721_v63 = vmul.f32 %v5616_v3, %v5537_v11  ;;  %v4057_v11 = vld [vmem:[%s6530_s6 + $0x3c] ss:$0 sm:$0xff]  ;;  %v3403_v40 = vrot.slane %v3401_v5, 6 }
 0x3d6   : > { %3049 = vrot.lane.b32.xlu1 %v4119_v46, %s4412_s15  ;;  %3412 = vrot.lane.b32.xlu0 %v3411_v2, %s4412_s15  ;;  %v3632_v46 = vrot.slane %v3630_v10, 6  ;;  %v3604_v10 = vrot.slane %v3602_v27, 6 }
 0x3d8   : > { %v1462_v59 = vpop.permute.xlu1 %1461  ;;  %v1932_v28 = vpop.permute.xlu0 %1931 }
 0x3d9   : > { %v1464_v32 = vadd.f32 %v1462_v59, %v1449_v45  ;;  %v1934_v21 = vadd.f32 %v1932_v28, %v1919_v48 }
 0x3da   : > { %3079 = vrot.lane.b32.xlu1 %v4121_v26, %s4413_s22  ;;  %2785 = vrot.lane.b32.xlu0 %v2784_v31, %s4418_s14 }
 0x3db   : > { %v1472_v53 = vadd.f32 %v1471_v43, %v1464_v32 }
 0x3dc   : > { %v1485_v35 = vpop.permute.xlu1 %1484  ;;  %v1947_v36 = vpop.permute.xlu0 %1946 }
 0x3dd   : > { %v1949_v52 = vadd.f32 %v1947_v36, %v1934_v21  ;;  %v1487_v2 = vadd.f32 %v1485_v35, %v1472_v53  ;;  %v2024_v36 = vmul.f32 %v4057_v11, %v5404_v42 }
 0x3de   : > { %3376 = vrot.lane.b32.xlu1 %v3375_v6, %s4412_s15  ;;  %3194 = vrot.lane.b32.xlu0 %v5642_v33, %s4413_s22  ;;  %v4072_v6 = vld [vmem:[%s6530_s6 + $0x4b] ss:$0 sm:$0xff] }
 0x3df   : > { %v1957_v39 = vadd.f32 %v1956_v37, %v1949_v52  ;;  %v3137_v37 = vrot.slane %v3135_v61, 7 }
 0x3e0   : > { %v1500_v24 = vpop.permute.xlu1 %1499  ;;  %v1970_v30 = vpop.permute.xlu0 %1969 }
 0x3e1   : > { %v1502_v45 = vadd.f32 %v1500_v24, %v1487_v2  ;;  %v1972_v26 = vadd.f32 %v1970_v30, %v1957_v39  ;;  %v3622_v2 = vmul.f32 %v5600_v60, %v5681_v25 }
 0x3e2   : > { %2764 = vrot.lane.b32.xlu1 %v5556_v18, %s4412_s15  ;;  %3633 = vrot.lane.b32.xlu0 %v3632_v46, %s4412_s15  ;;  %v2723_v18 = vrot.slane %v2721_v63, 7  ;;  %v2234_v46 = vmul.f32 %v4072_v6, %v5396_v16 }
 0x3e4   : > { %v1515_v49 = vpop.permute.xlu1 %1514  ;;  %v1985_v56 = vpop.permute.xlu0 %1984 }
 0x3e5   : > { %v1517_v59 = vadd.f32 %v1515_v49, %v1502_v45  ;;  %v1987_v48 = vadd.f32 %v1985_v56, %v1972_v26  ;;  %v4077_v49 = vld [vmem:[%s6530_s6 + $0x50] ss:$0 sm:$0xff]  ;;  %v3624_v45 = vrot.slane %v3622_v2, 6 }
 0x3e6   : > { %3384 = vrot.lane.b32.xlu1 %v3383_v55, %s4412_s15  ;;  %3169 = vrot.lane.b32.xlu0 %v3168_v15, %s4413_s22 }
 0x3e8   : > { %v1530_v28 = vpop.permute.xlu1 %1529  ;;  %v2000_v31 = vpop.permute.xlu0 %1999 }
 0x3e9   : > { %v1532_v32 = vadd.f32 %v1530_v28, %v1517_v59  ;;  %v2002_v43 = vadd.f32 %v2000_v31, %v1987_v48  ;;  %v2301_v28 = vmul.f32 %v4077_v49, %v5424_v57  ;;  %v4062_v31 = vld [vmem:[%s6530_s6 + $0x41] ss:$0 sm:$0xff]  ;;  %v5699_v48 = vld [vmem:[%s6528_s4 + $0x6] ss:$0 sm:$0xff] }
 0x3ea   : > { %2724 = vrot.lane.b32.xlu1 %v2723_v18, %s4412_s15  ;;  %v2092_v57 = vmul.f32 %v4062_v31, %v5432_v38  ;;  %v4082_v38 = vld [vmem:[%s6530_s6 + $0x55] ss:$0 sm:$0xff] }
 0x3eb   : > { %1534 = vrot.lane.b32.xlu0 %v1532_v32, %s4412_s15  ;;  %v3417_v32 = vmul.f32 %v5699_v48, %v5681_v25 }
 0x3ec   : > { %v2247_v21 = vpop.permute.xlu1 %2246  ;;  %v2015_v53 = vpop.permute.xlu0 %2014 }
 0x3ed   : > { %v2017_v35 = vadd.f32 %v2015_v53, %v2002_v43  ;;  %v2249_v42 = vadd.f32 %v2247_v21, %v2234_v46  ;;  %v3419_v53 = vrot.slane %v3417_v32, 6 }
 0x3ee   : > { %3605 = vrot.lane.b32.xlu1 %v3604_v10, %s4412_s15 }
 0x3ef   : > { %v2025_v52 = vadd.f32 %v2024_v36, %v2017_v35  ;;  %v2796_v36 = vmul.f32 %v5629_v23, %v5600_v60 }
 0x3f0   : > { %v2262_v39 = vpop.permute.xlu1 %2261  ;;  %v2038_v20 = vpop.permute.xlu0 %2037 }
 0x3f1   : > { %v2264_v55 = vadd.f32 %v2262_v39, %v2249_v42  ;;  %v2040_v56 = vadd.f32 %v2038_v20, %v2025_v52  ;;  %v2798_v39 = vrot.slane %v2796_v36, 7  ;;  %v4042_v36 = vld [vmem:[%s6530_s6 + $0x2d] ss:$0 sm:$0xff] }
 0x3f2   : > { %3138 = vrot.lane.b32.xlu1 %v3137_v37, %s4412_s15 }
 0x3f4   : > { %v2277_v24 = vpop.permute.xlu1 %2276  ;;  %v2053_v30 = vpop.permute.xlu0 %2052 }
 0x3f5   : > { %v2279_v15 = vadd.f32 %v2277_v24, %v2264_v55  ;;  %v2055_v26 = vadd.f32 %v2053_v30, %v2040_v56  ;;  %v2369_v24 = vmul.f32 %v4082_v38, %v5454_v14  ;;  %v1815_v38 = vmul.f32 %v4042_v36, %v5490_v9 }
 0x3f6   : > { %3404 = vrot.lane.b32.xlu1 %v3403_v40, %s4418_s14 }
 0x3f8   : > { %v2292_v63 = vpop.permute.xlu1 %2291  ;;  %v2068_v16 = vpop.permute.xlu0 %2067 }
 0x3f9   : > { %v2294_v59 = vadd.f32 %v2292_v63, %v2279_v15  ;;  %v2070_v18 = vadd.f32 %v2068_v16, %v2055_v26  ;;  %v4087_v16 = vld [vmem:[%s6530_s6 + $0x5a] ss:$0 sm:$0xff] }
 0x3fa   : > { %3625 = vrot.lane.b32.xlu1 %v3624_v45, %s4413_s22  ;;  %v2437_v31 = vmul.f32 %v4087_v16, %v5446_v34 }
 0x3fb   : > { %v2302_v27 = vadd.f32 %v2301_v28, %v2294_v59 }
 0x3fc   : > { %v2315_v11 = vpop.permute.xlu1 %2314  ;;  %v2083_v43 = vpop.permute.xlu0 %2082 }
 0x3fd   : > { %v2085_v61 = vadd.f32 %v2083_v43, %v2070_v18  ;;  %v2317_v6 = vadd.f32 %v2315_v11, %v2302_v27  ;;  %v1763_v43 = vadd.f32 %v5587_v62, %v5585_v17  ;;  %v4092_v17 = vld [vmem:[%s6530_s6 + $0x5f] ss:$0 sm:$0xff] }
 0x3fe   : > { %2839 = vrot.lane.b32.xlu1 %v5642_v33, %s4412_s15 }
 0x3ff   : > { %v2093_v21 = vadd.f32 %v2092_v57, %v2085_v61 }
 0x400   : > { %v2330_v10 = vpop.permute.xlu1 %2329  ;;  %v2106_v35 = vpop.permute.xlu0 %2105 }
 0x401   : > { %v2332_v20 = vadd.f32 %v2330_v10, %v2317_v6  ;;  %v2108_v6 = vadd.f32 %v2106_v35, %v2093_v21  ;;  %v2505_v35 = vmul.f32 %v4092_v17, %v5506_v41  ;;  %v3437_v17 = vmul.f32 %v5595_v19, %v5216_v8 }
 0x402   : > { %3420 = vrot.lane.b32.xlu1 %v3419_v53, %s4412_s15 }
 0x404   : > { %v2345_v52 = vpop.permute.xlu1 %2344  ;;  %v1776_v37 = vpop.permute.xlu0 %1775 }
 0x405   : > { %v2347_v33 = vadd.f32 %v2345_v52, %v2332_v20  ;;  %v1778_v61 = vadd.f32 %v1776_v37, %v1763_v43 }
 0x406   : > { %2799 = vrot.lane.b32.xlu1 %v2798_v39, %s4412_s15 }
 0x408   : > { %v2360_v5 = vpop.permute.xlu1 %2359  ;;  %v2466_v46 = vpop.permute.xlu0 %2465 }
 0x409   : > { %v2362_v42 = vadd.f32 %v2360_v5, %v2347_v33 }
 0x40b   : > { %v2370_v60 = vadd.f32 %v2369_v24, %v2362_v42  ;;  %v4067_v42 = vld [vmem:[%s6530_s6 + $0x46] ss:$0 sm:$0xff] }
 0x40c   : > { %v2383_v30 = vpop.permute.xlu1 %2382  ;;  %v2136_v40 = vpop.permute.xlu0 %2135  ;;  %v2160_v9 = vmul.f32 %v4067_v42, %v5482_v29 }
 0x40d   : > { %v2385_v49 = vadd.f32 %v2383_v30, %v2370_v60 }
 0x410   : > { %v2398_v2 = vpop.permute.xlu1 %2397  ;;  %v1806_v55 = vpop.permute.xlu0 %1805 }
 0x411   : > { %v2400_v63 = vadd.f32 %v2398_v2, %v2385_v49 }
 0x414   : > { %v2413_v56 = vpop.permute.xlu1 %2412  ;;  %v2496_v15 = vpop.permute.xlu0 %2495 }
 0x415   : > { %v2415_v45 = vadd.f32 %v2413_v56, %v2400_v63 }
 0x418   : > { %v2428_v26 = vpop.permute.xlu1 %2427  ;;  %v2174_v59 = vpop.permute.xlu0 %2173 }
 0x419   : > { %v2430_v28 = vadd.f32 %v2428_v26, %v2415_v45 }
 0x41b   : > { %v2438_v14 = vadd.f32 %v2437_v31, %v2430_v28 }
 0x41c   : > { %v2451_v18 = vpop.permute.xlu1 %2450  ;;  %v1844_v27 = vpop.permute.xlu0 %1843 }
 0x41d   : > { %v2453_v57 = vadd.f32 %v2451_v18, %v2438_v14 }
 0x41f   : > { %v2468_v20 = vadd.f32 %v2466_v46, %v2453_v57 }
 0x420   : > { %v2121_v32 = vpop.permute.xlu1 %2120  ;;  %v2534_v11 = vpop.permute.xlu0 %2533 }
 0x421   : > { %v2123_v39 = vadd.f32 %v2121_v32, %v2108_v6 }
 0x423   : > { %v2138_v21 = vadd.f32 %v2136_v40, %v2123_v39 }
 0x424   : > { %v1791_v53 = vpop.permute.xlu1 %1790  ;;  %v2204_v10 = vpop.permute.xlu0 %2203 }
 0x425   : > { %v1793_v52 = vadd.f32 %v1791_v53, %v1778_v61 }
 0x427   : > { %v1808_v34 = vadd.f32 %v1806_v55, %v1793_v52  ;;  %v3638_v52 = vmul.f32 %v5681_v25, %v5240_v50 }
 0x428   : > { %v2481_v33 = vpop.permute.xlu1 %2480  ;;  %v1874_v5 = vpop.permute.xlu0 %1873 }
 0x429   : > { %v2483_v62 = vadd.f32 %v2481_v33, %v2468_v20  ;;  %v1816_v37 = vadd.f32 %v1815_v38, %v1808_v34  ;;  %v3640_v20 = vrot.slane %v3638_v52, 6  ;;  %v3186_v33 = vmul.f32 %v5650_v58, %v5240_v50 }
 0x42b   : > { %v2498_v24 = vadd.f32 %v2496_v15, %v2483_v62  ;;  %v3188_v42 = vrot.slane %v3186_v33, 7 }
 0x42c   : > { %v2151_v60 = vpop.permute.xlu1 %2150  ;;  %v2564_v46 = vpop.permute.xlu0 %2563 }
 0x42d   : > { %v2153_v30 = vadd.f32 %v2151_v60, %v2138_v21  ;;  %v2506_v2 = vadd.f32 %v2505_v35, %v2498_v24  ;;  %v3439_v21 = vrot.slane %v3437_v17, 6 }
 0x42f   : > { %v2161_v55 = vadd.f32 %v2160_v9, %v2153_v30  ;;  %v2857_v9 = vmul.f32 %v5629_v23, %v5216_v8 }
 0x430   : > { %v1829_v49 = vpop.permute.xlu1 %1828  ;;  %v5732_v56 = vpop.permute.xlu0 %3589 }
 0x431   : > { %v1831_v45 = vadd.f32 %v1829_v49, %v1816_v37  ;;  %v2176_v14 = vadd.f32 %v2174_v59, %v2161_v55  ;;  %v2810_v59 = vmul.f32 %v5699_v48, %v5650_v58  ;;  %v4107_v37 = vld [vmem:[%s6528_s4 + $0xa] ss:$0 sm:$0xff]  ;;  %v2859_v55 = vrot.slane %v2857_v9, 7  ;;  %v4110_v49 = vld [vmem:[%s6528_s4 + $0xd] ss:$0 sm:$0xff] }
 0x433   : > { %v1846_v15 = vadd.f32 %v1844_v27, %v1831_v45 }
 0x434   : > { %v2519_v63 = vpop.permute.xlu1 %2518  ;;  %v5734_v16 = vpop.permute.xlu0 %3151 }
 0x435   : > { %v2521_v40 = vadd.f32 %v2519_v63, %v2506_v2  ;;  %v4307_v63 = vld [vmem:[%s6528_s4 + $0xb] ss:$0 sm:$0xff] }
 0x437   : > { %v2536_v43 = vadd.f32 %v2534_v11, %v2521_v40  ;;  %v3178_v11 = vmul.f32 %v5629_v23, %v5210_v22  ;;  %v5763_v22 = vld [vmem:[#allocation2 + $0x31] sm:$0xff] }
 0x438   : > { %v2189_v26 = vpop.permute.xlu1 %2188  ;;  %v5736_v28 = vpop.permute.xlu0 %3597  ;;  %6730 = vst [vmem:[#allocation20_spill] sm:$0xff] %v5763_v22  ;;  %v3658_v35 = vmul.f32 %v4107_v37, %v5763_v22  ;;  %v3453_v45 = vmul.f32 %v4307_v63, %v5763_v22 }
 0x439   : > { %v2191_v18 = vadd.f32 %v2189_v26, %v2176_v14  ;;  %v3180_v48 = vrot.slane %v3178_v11, 7 }
 0x43a   : > { %v3660_v30 = vrot.slane %v3658_v35, 6 }
 0x43b   : > { %v2206_v6 = vadd.f32 %v2204_v10, %v2191_v18  ;;  %v2812_v10 = vrot.slane %v2810_v59, 7  ;;  %v3209_v18 = vmul.f32 %v4107_v37, %v5681_v25  ;;  %v5812_v59 = vld [vmem:[#allocation2 + $0x2] sm:$0xff] }
 0x43c   : > { %v1859_v41 = vpop.permute.xlu1 %1858  ;;  %v5738_v31 = vpop.permute.xlu0 %3126  ;;  %6733 = vst [vmem:[#allocation22_spill] sm:$0xff] %v5812_v59 }
 0x43d   : > { %v1861_v29 = vadd.f32 %v1859_v41, %v1846_v15  ;;  %v3455_v15 = vrot.slane %v3453_v45, 6  ;;  %v2871_v41 = vmul.f32 %v4107_v37, %v5595_v19 }
 0x43f   : > { %v1876_v32 = vadd.f32 %v1874_v5, %v1861_v29  ;;  %v5758_v5 = vld [vmem:[#allocation2 + $0x21] sm:$0xff] }
 0x440   : > { %v2549_v61 = vpop.permute.xlu1 %2548  ;;  %v5740_v57 = vpop.permute.xlu0 %2738  ;;  %6729 = vst [vmem:[#allocation11_spill] sm:$0xff] %v5758_v5  ;;  %v3445_v24 = vmul.f32 %v4107_v37, %v5758_v5  ;;  %v3666_v40 = vmul.f32 %v5242_v4, %v5758_v5 }
 0x441   : > { %v2551_v53 = vadd.f32 %v2549_v61, %v2536_v43  ;;  %1878 = vrot.lane.b32.xlu1 %v1876_v32, %s4412_s15  ;;  %v2873_v32 = vrot.slane %v2871_v41, 7  ;;  %v3674_v43 = vmul.f32 %v5763_v22, %v5223_v0  ;;  %v2885_v61 = vmul.f32 %v4307_v63, %v5681_v25 }
 0x442   : > { %v3668_v14 = vrot.slane %v3666_v40, 6 }
 0x443   : > { %v2566_v36 = vadd.f32 %v2564_v46, %v2551_v53  ;;  %v3447_v46 = vrot.slane %v3445_v24, 6  ;;  %v3211_v53 = vrot.slane %v3209_v18, 7  ;;  %v2887_v52 = vrot.slane %v2885_v61, 7 }
 0x444   : > { %v2219_v27 = vpop.permute.xlu1 %2218  ;;  %v5745_v39 = vpop.permute.xlu0 %3146 }
 0x445   : > { %6728 = vst [vmem:[#allocation18_spill] sm:$0xff] %v5745_v39  ;;  %v2221_v34 = vadd.f32 %v2219_v27, %v2206_v6  ;;  %2568 = vrot.lane.b32.xlu1 %v2566_v36, %s4412_s15  ;;  %v3221_v36 = vmul.f32 %v5242_v4, %v5595_v19  ;;  %v3676_v6 = vrot.slane %v3674_v43, 6  ;;  %v3229_v27 = vmul.f32 %v5223_v0, %v5681_v25 }
 0x446   : > { %v3473_v4 = vmul.f32 %v5758_v5, %v5226_v51 }
 0x447   : > { %2223 = vrot.lane.b32.xlu0 %v2221_v34, %s4412_s15  ;;  %v5817_v34 = vld [vmem:[%s6528_s4 + $0xf] ss:$0 sm:$0xff]  ;;  %v3223_v11 = vrot.slane %v3221_v36, 7 }
 0x448   : > { %v5753_v38 = vpop.permute.xlu0 %3412  ;;  %v3481_v33 = vmul.f32 %v5817_v34, %v5812_v59 }
 0x449   : > { %3641 = vrot.lane.b32.xlu1 %v3640_v20, %s4412_s15  ;;  %v5819_v20 = vpop.permute.xlu1 %3049 }
 0x44a   : > { %v3483_v37 = vrot.slane %v3481_v33, 6 }
 0x44b   : > { %2813 = vrot.lane.b32.xlu0 %v2812_v10, %s4412_s15  ;;  %v3231_v10 = vrot.slane %v3229_v27, 7 }
 0x44c   : > { %v5765_v62 = vpop.permute.xlu0 %2785 }
 0x44d   : > { %3181 = vrot.lane.b32.xlu1 %v3180_v48, %s4412_s15  ;;  %v3475_v48 = vrot.slane %v3473_v4, 6  ;;  %v5828_v17 = vpop.permute.xlu1 %3079 }
 0x44e   : > { %6734 = vst [vmem:[#allocation14_spill] sm:$0xff] %v5828_v17 }
 0x44f   : > { %3189 = vrot.lane.b32.xlu0 %v3188_v42, %s4412_s15 }
 0x450   : > { %v5774_v60 = vpop.permute.xlu0 %3194 }
 0x451   : > { %3440 = vrot.lane.b32.xlu1 %v3439_v21, %s4418_s14  ;;  %v5837_v35 = vpop.permute.xlu1 %3376 }
 0x453   : > { %3448 = vrot.lane.b32.xlu0 %v3447_v46, %s4412_s15 }
 0x454   : > { %v5780_v2 = vpop.permute.xlu0 %3633 }
 0x455   : > { %6731 = vst [vmem:[#allocation12_spill] sm:$0xff] %v5780_v2  ;;  %3661 = vrot.lane.b32.xlu1 %v3660_v30, %s4413_s22  ;;  %v5842_v9 = vpop.permute.xlu1 %2764 }
 0x457   : > { %2860 = vrot.lane.b32.xlu0 %v2859_v55, %s4418_s14 }
 0x458   : > { %v5791_v26 = vpop.permute.xlu0 %3169 }
 0x459   : > { %6732 = vst [vmem:[#allocation13_spill] sm:$0xff] %v5791_v26  ;;  %2914 = vrot.lane.b32.xlu1 %v4110_v49, %s4412_s15  ;;  %v5844_v30 = vpop.permute.xlu1 %3384 }
 0x45b   : > { %3237 = vrot.lane.b32.xlu0 %v4110_v49, %s4413_s22 }
 0x45d   : > { %3456 = vrot.lane.b32.xlu1 %v3455_v15, %s4412_s15  ;;  %v1535_v29 = vpop.permute.xlu0 %1534  ;;  %v5846_v55 = vpop.permute.xlu1 %2724 }
 0x45e   : > { %1537 = vst.msk [vmem:[#allocation4 + $0x1] sm:$0xff] %vm878_vm3, %v1535_v29 }
 0x45f   : > { %3669 = vrot.lane.b32.xlu0 %v3668_v14, %s4412_s15 }
 0x461   : > { %2874 = vrot.lane.b32.xlu1 %v2873_v32, %s4412_s15  ;;  %v5848_v49 = vpop.permute.xlu1 %3605 }
 0x463   : > { %3212 = vrot.lane.b32.xlu0 %v3211_v53, %s4413_s22 }
 0x465   : > { %3677 = vrot.lane.b32.xlu1 %v3676_v6, %s4412_s15  ;;  %v5831_v42 = vld [vmem:[#allocation4] sm:$0xff]  ;;  %v5835_v21 = vld [vmem:[#allocation4 + $0x8] sm:$0x3]  ;;  %v5850_v63 = vpop.permute.xlu1 %3138 }
 0x466   : > { %v2577_v24 = vmul.f32 -0.12940952, %v5831_v42  ;;  %v2578_v46 = vmul.f32 -0.12940952, %v5835_v21 }
 0x467   : > { %2888 = vrot.lane.b32.xlu0 %v2887_v52, %s4412_s15 }
 0x469   : > { %3224 = vrot.lane.b32.xlu1 %v3223_v11, %s4412_s15  ;;  %v5852_v45 = vpop.permute.xlu1 %3404 }
 0x46b   : > { %3232 = vrot.lane.b32.xlu0 %v3231_v10, %s4412_s15 }
 0x46d   : > { %3476 = vrot.lane.b32.xlu1 %v3475_v48, %s4418_s14  ;;  %v5854_v40 = vpop.permute.xlu1 %3625  ;;  %v2643_v48 = vmul.f32 0.22414386, %v5831_v42 }
 0x46e   : > { %6735 = vst [vmem:[#allocation24_spill] sm:$0xff] %v5854_v40 }
 0x46f   : > { %3484 = vrot.lane.b32.xlu0 %v3483_v37, %s4412_s15 }
 0x471   : > { %v5856_v15 = vpop.permute.xlu1 %2839 }
 0x473   : > { %2581 = vrot.lane.b32.xlu0 %v2577_v24, %s4412_s15 }
 0x475   : > { %v5858_v41 = vpop.permute.xlu1 %3420 }
 0x477   : > { %2583 = vrot.lane.b32.xlu0 %v2578_v46, %s4412_s15  ;;  %v2644_v46 = vmul.f32 0.22414386, %v5835_v21 }
 0x479   : > { %v5860_v14 = vpop.permute.xlu1 %2799 }
 0x4b3   : > { %v1879_v29 = vpop.permute.xlu1 %1878 }
 0x4b4   : > { %1882 = vst.msk [vmem:[#allocation4 + $0x11] sm:$0xff] %vm878_vm3, %v1879_v29 }
 0x4b7   : > { %v2569_v18 = vpop.permute.xlu1 %2568 }
 0x4b8   : > { %2572 = vst.msk [vmem:[#allocation4 + $0x31] sm:$0xff] %vm878_vm3, %v2569_v18  ;;  %v5896_v18 = vld [vmem:[#allocation2 + $0x12] sm:$0xff] }
 0x4b9   : > { %v2224_v32 = vpop.permute.xlu0 %2223  ;;  %6736 = vst [vmem:[#allocation15_spill] sm:$0xff] %v5896_v18 }
 0x4ba   : > { %2227 = vst.msk [vmem:[#allocation4 + $0x21] sm:$0xff] %vm878_vm3, %v2224_v32 }
 0x4bb   : > { %v5865_v43 = vld [vmem:[#allocation4 + $0x10] sm:$0xff]  ;;  %v5868_v53 = vld [vmem:[#allocation4 + $0x18] sm:$0x3] }
 0x4bc   : > { %v2593_v61 = vmul.f32 -0.12940952, %v5865_v43  ;;  %v2594_v36 = vmul.f32 -0.12940952, %v5868_v53  ;;  %v2657_v24 = vmul.f32 0.22414386, %v5865_v43 }
 0x4bd   : > { %v2658_v32 = vmul.f32 0.22414386, %v5868_v53 }
 0x4be   : > { %2597 = vrot.lane.b32.xlu1 %v2593_v61, %s4412_s15 }
 0x4bf   : > { %v5874_v52 = vld [vmem:[#allocation4 + $0x30] sm:$0xff]  ;;  %v5884_v33 = vld [vmem:[#allocation4 + $0x38] sm:$0x3] }
 0x4c0   : > { %v2627_v4 = vmul.f32 -0.4829629, %v5874_v52  ;;  %v2628_v37 = vmul.f32 -0.4829629, %v5884_v33  ;;  %v2687_v61 = vmul.f32 0.8365163, %v5874_v52 }
 0x4c1   : > { %v5872_v6 = vld [vmem:[#allocation4 + $0x20] sm:$0xff]  ;;  %v5878_v11 = vld [vmem:[#allocation4 + $0x28] sm:$0x3] }
 0x4c2   : > { %2599 = vrot.lane.b32.xlu1 %v2594_v36, %s4412_s15  ;;  %v2609_v27 = vmul.f32 -0.4829629, %v5872_v6  ;;  %v2610_v10 = vmul.f32 -0.4829629, %v5878_v11  ;;  %v2671_v29 = vmul.f32 0.8365163, %v5872_v6  ;;  %v3694_v36 = vmul.f32 %v5817_v34, %v5896_v18 }
 0x4c4   : > { %2613 = vrot.lane.b32.xlu0 %v2609_v27, %s4412_s15  ;;  %v2672_v27 = vmul.f32 0.8365163, %v5878_v11 }
 0x4c6   : > { %2631 = vrot.lane.b32.xlu1 %v2627_v4, %s4412_s15  ;;  %v3696_v4 = vrot.slane %v3694_v36, 6  ;;  %v3702_v36 = vmul.f32 %v5248_v44, %v5812_v59 }
 0x4c8   : > { %2615 = vrot.lane.b32.xlu0 %v2610_v10, %s4412_s15  ;;  %v2688_v10 = vmul.f32 0.8365163, %v5884_v33 }
 0x4ca   : > { %2647 = vrot.lane.b32.xlu1 %v2643_v48, %s4412_s15  ;;  %v2932_v48 = vmul.f32 %v5226_v51, %v5595_v19 }
 0x4cc   : > { %2633 = vrot.lane.b32.xlu0 %v2628_v37, %s4412_s15  ;;  %v4115_v37 = vld [vmem:[%s6528_s4 + $0x12] ss:$0 sm:$0xff] }
 0x4ce   : > { %2661 = vrot.lane.b32.xlu1 %v2657_v24, %s4412_s15  ;;  %v4308_v24 = vld [vmem:[%s6528_s4 + $0x10] ss:$0 sm:$0xff] }
 0x4d0   : > { %2649 = vrot.lane.b32.xlu0 %v2644_v46, %s4412_s15  ;;  %v3489_v46 = vmul.f32 %v4308_v24, %v5896_v18 }
 0x4d2   : > { %2675 = vrot.lane.b32.xlu1 %v2671_v29, %s4412_s15  ;;  %v2934_v29 = vrot.slane %v2932_v48, 7  ;;  %v3252_v48 = vmul.f32 %v5817_v34, %v5763_v22 }
 0x4d4   : > { %2663 = vrot.lane.b32.xlu0 %v2658_v32, %s4412_s15  ;;  %v3491_v32 = vrot.slane %v3489_v46, 6  ;;  %v3264_v46 = vmul.f32 %v5248_v44, %v5758_v5  ;;  %v3272_v44 = vmul.f32 %v5244_v12, %v5763_v22 }
 0x4d6   : > { %2691 = vrot.lane.b32.xlu1 %v2687_v61, %s4412_s15  ;;  %v2946_v61 = vmul.f32 %v5817_v34, %v5758_v5 }
 0x4d8   : > { %2677 = vrot.lane.b32.xlu0 %v2672_v27, %s4412_s15  ;;  %v2948_v27 = vrot.slane %v2946_v61, 7  ;;  %v3266_v61 = vrot.slane %v3264_v46, 7 }
 0x4da   : > { %3697 = vrot.lane.b32.xlu1 %v3696_v4, %s4413_s22  ;;  %v3710_v4 = vmul.f32 %v5896_v18, %v5244_v12 }
 0x4dc   : > { %2693 = vrot.lane.b32.xlu0 %v2688_v10, %s4412_s15  ;;  %v3704_v10 = vrot.slane %v3702_v36, 6  ;;  %v3509_v36 = vmul.f32 %v5812_v59, %v5246_v13 }
 0x4de   : > { %2989 = vrot.lane.b32.xlu1 %v4115_v37, %s4412_s15 }
 0x4e0   : > { %2935 = vrot.lane.b32.xlu0 %v2934_v29, %s4418_s14  ;;  %v3712_v29 = vrot.slane %v3710_v4, 6  ;;  %v5945_v4 = vld [vmem:[#allocation2 + $0x22] sm:$0xff] }
 0x4e1   : > { %6738 = vst [vmem:[#allocation16_spill] sm:$0xff] %v5945_v4 }
 0x4e2   : > { %3492 = vrot.lane.b32.xlu1 %v3491_v32, %s4412_s15  ;;  %v2960_v32 = vmul.f32 %v4308_v24, %v5763_v22  ;;  %v4117_v24 = vld [vmem:[%s6528_s4 + $0x14] ss:$0 sm:$0xff] }
 0x4e4   : > { %3280 = vrot.lane.b32.xlu0 %v4115_v37, %s4413_s22  ;;  %v3254_v37 = vrot.slane %v3252_v48, 7  ;;  %v2962_v34 = vrot.slane %v2960_v32, 7  ;;  %v3511_v48 = vrot.slane %v3509_v36, 6  ;;  %v3518_v32 = vmul.f32 %v4117_v24, %v5945_v4 }
 0x4e5   : > { %v3007_v36 = vmul.f32 %v5246_v13, %v5758_v5 }
 0x4e6   : > { %2949 = vrot.lane.b32.xlu1 %v2948_v27, %s4412_s15  ;;  %v5940_v27 = vld [vmem:[#allocation2 + $0x32] sm:$0xff]  ;;  %v3520_v2 = vrot.slane %v3518_v32, 6 }
 0x4e7   : > { %6737 = vst [vmem:[#allocation26_spill] sm:$0xff] %v5940_v27  ;;  %v3730_v46 = vmul.f32 %v4117_v24, %v5940_v27 }
 0x4e8   : > { %3705 = vrot.lane.b32.xlu0 %v3704_v10, %s4412_s15  ;;  %v5950_v10 = vpop.permute.xlu0 %2813 }
 0x4ea   : > { %3713 = vrot.lane.b32.xlu1 %v3712_v29, %s4412_s15  ;;  %v3274_v29 = vrot.slane %v3272_v44, 7  ;;  %v4309_v44 = vld [vmem:[%s6528_s4 + $0x15] ss:$0 sm:$0xff] }
 0x4ec   : > { %3255 = vrot.lane.b32.xlu0 %v3254_v37, %s4413_s22  ;;  %v3732_v37 = vrot.slane %v3730_v46, 6  ;;  %v5959_v26 = vpop.permute.xlu0 %3189  ;;  %v3009_v46 = vrot.slane %v3007_v36, 7  ;;  %v3746_v36 = vmul.f32 %v5940_v27, %v5819_v20 }
 0x4ed   : > { %6740 = vst [vmem:[#allocation17_spill] sm:$0xff] %v5959_v26  ;;  %v3021_v26 = vmul.f32 %v4117_v24, %v5812_v59 }
 0x4ee   : > { %3267 = vrot.lane.b32.xlu1 %v3266_v61, %s4412_s15  ;;  %v5957_v61 = vpop.permute.xlu1 %3641 }
 0x4ef   : > { %6739 = vst [vmem:[#allocation28_spill] sm:$0xff] %v5957_v61  ;;  %v3738_v61 = vmul.f32 %v5945_v4, %v5250_v7 }
 0x4f0   : > { %2963 = vrot.lane.b32.xlu0 %v2962_v34, %s4412_s15  ;;  %v4120_v34 = vld [vmem:[%s6528_s4 + $0x17] ss:$0 sm:$0xff] }
 0x4f2   : > { %3512 = vrot.lane.b32.xlu1 %v3511_v48, %s4418_s14  ;;  %v3527_v48 = vmul.f32 %v4309_v44, %v5940_v27  ;;  %v5973_v32 = vpop.permute.xlu1 %3181 }
 0x4f3   : > { %6741 = vst [vmem:[#allocation30_spill] sm:$0xff] %v5973_v32 }
 0x4f4   : > { %3275 = vrot.lane.b32.xlu0 %v3274_v29, %s4412_s15  ;;  %v3529_v29 = vrot.slane %v3527_v48, 6  ;;  %v3740_v48 = vrot.slane %v3738_v61, 6 }
 0x4f6   : > { %3733 = vrot.lane.b32.xlu1 %v3732_v37, %s4413_s22  ;;  %v5975_v37 = vpop.permute.xlu0 %3448  ;;  %v5985_v40 = vpop.permute.xlu1 %3440 }
 0x4f7   : > { %6742 = vst [vmem:[#allocation19_spill] sm:$0xff] %v5975_v37  ;;  %6743 = vst [vmem:[#allocation32_spill] sm:$0xff] %v5985_v40  ;;  %v3307_v37 = vmul.f32 %v5250_v7, %v5812_v59 }
 0x4f8   : > { %3521 = vrot.lane.b32.xlu0 %v3520_v2, %s4412_s15  ;;  %v3023_v2 = vrot.slane %v3021_v26, 7  ;;  %v3035_v26 = vmul.f32 %v4309_v44, %v5896_v18  ;;  %v3315_v44 = vmul.f32 %v5819_v20, %v5896_v18 }
 0x4f9   : > { %v3309_v61 = vrot.slane %v3307_v37, 7 }
 0x4fa   : > { %3064 = vrot.lane.b32.xlu1 %v4120_v34, %s4412_s15  ;;  %v5987_v32 = vpop.permute.xlu0 %2860  ;;  %v5996_v27 = vpop.permute.xlu1 %3661  ;;  %v3037_v7 = vrot.slane %v3035_v26, 7 }
 0x4fb   : > { %6744 = vst [vmem:[#allocation21_spill] sm:$0xff] %v5987_v32  ;;  %6745 = vst [vmem:[#allocation34_spill] sm:$0xff] %v5996_v27  ;;  %v4123_v27 = vld [vmem:[%s4535_s8 + $0x11] sm:$0xff]  ;;  %v6121_v32 = vmul.f32 %v5246_v13, %v5763_v22 }
 0x4fc   : > { %3010 = vrot.lane.b32.xlu0 %v3009_v46, %s4418_s14  ;;  %v3295_v46 = vmul.f32 %v4117_v24, %v5896_v18  ;;  %v3547_v24 = vmul.f32 %v5945_v4, %v5828_v17 }
 0x4fd   : > { %6769 = vst [vmem:[#allocation57_spill] sm:$0xff] %v6121_v32 }
 0x4fe   : > { %3530 = vrot.lane.b32.xlu1 %v3529_v29, %s4412_s15  ;;  %v3748_v29 = vrot.slane %v3746_v36, 6  ;;  %v5998_v40 = vpop.permute.xlu0 %3237  ;;  %v3549_v37 = vrot.slane %v3547_v24, 6 }
 0x4ff   : > { %6746 = vst [vmem:[#allocation23_spill] sm:$0xff] %v5998_v40 }
 0x500   : > { %3323 = vrot.lane.b32.xlu0 %v4120_v34, %s4413_s22  ;;  %v3297_v34 = vrot.slane %v3295_v46, 7  ;;  %v4122_v46 = vld [vmem:[%s6529_s5] ss:$0 sm:$0xff] }
 0x502   : > { %3024 = vrot.lane.b32.xlu1 %v3023_v2, %s4412_s15  ;;  %v6007_v2 = vpop.permute.xlu1 %2914  ;;  %v6009_v36 = vpop.permute.xlu0 %3669 }
 0x503   : > { %6747 = vst [vmem:[#allocation36_spill] sm:$0xff] %v6009_v36 }
 0x504   : > { %3741 = vrot.lane.b32.xlu0 %v3740_v48, %s4412_s15  ;;  %v3317_v48 = vrot.slane %v3315_v44, 7  ;;  %v4125_v44 = vld [vmem:[%s4535_s8 + $0x31] sm:$0xff] }
 0x506   : > { %3749 = vrot.lane.b32.xlu1 %v3748_v29, %s4412_s15  ;;  %v4124_v29 = vld [vmem:[%s4535_s8 + $0x21] sm:$0xff]  ;;  %v6021_v24 = vpop.permute.xlu1 %3456 }
 0x507   : > { %v3559_v26 = vrot.slane %v4124_v29, 6  ;;  %6748 = vst [vmem:[#allocation25_spill] sm:$0xff] %v6021_v24 }
 0x508   : > { %3298 = vrot.lane.b32.xlu0 %v3297_v34, %s4413_s22  ;;  %v3082_v34 = vmul.f32 %v5828_v17, %v5812_v59  ;;  %v3345_v17 = vrot.slane %v4123_v27, 7  ;;  %v6055_v27 = vmul.f32 %v5650_v58, %v5216_v8 }
 0x50a   : > { %3310 = vrot.lane.b32.xlu1 %v3309_v61, %s4412_s15  ;;  %v3101_v61 = vld [vmem:[%s4535_s8 + $0x1] sm:$0xff]  ;;  %v6030_v29 = vpop.permute.xlu1 %2874  ;;  %6756 = vst [vmem:[#allocation33_spill] sm:$0xff] %v6055_v27  ;;  %v2575_v27 = vmul.f32 0.8365163, %v5831_v42  ;;  %s4422_s8 = smov 48  }
 0x50b   : > { %v3103_v36 = vrot.slane %v3101_v61, 7  ;;  %6750 = vst [vmem:[#allocation27_spill] sm:$0xff] %v6030_v29  ;;  %v6047_v61 = vmul.f32 %v5616_v3, %v5206_v1  ;;  %v2608_v29 = vmul.f32 -0.22414386, %v5878_v11 }
 0x50c   : > { %3038 = vrot.lane.b32.xlu0 %v3037_v7, %s4412_s15  ;;  %v6023_v7 = vpop.permute.xlu0 %3212 }
 0x50d   : > { %6749 = vst [vmem:[#allocation38_spill] sm:$0xff] %v6023_v7 }
 0x50e   : > { %3550 = vrot.lane.b32.xlu1 %v3549_v37, %s4418_s14  ;;  %v3084_v37 = vrot.slane %v3082_v34, 7  ;;  %v6036_v7 = vpop.permute.xlu1 %3677 }
 0x50f   : > { %6752 = vst [vmem:[#allocation29_spill] sm:$0xff] %v6036_v7  ;;  %v6086_v7 = vmul.f32 %v5763_v22, %v5226_v51 }
 0x510   : > { %3318 = vrot.lane.b32.xlu0 %v3317_v48, %s4412_s15  ;;  %v3770_v48 = vrot.slane %v4125_v44, 6  ;;  %v6032_v40 = vpop.permute.xlu0 %2888  ;;  %v6059_v44 = vmul.f32 %v5681_v25, %v5216_v8  ;;  %v6078_v8 = vmul.f32 %v5629_v23, %v5240_v50 }
 0x511   : > { %6751 = vst [vmem:[#allocation40_spill] sm:$0xff] %v6032_v40  ;;  %6762 = vst [vmem:[#allocation39_spill] sm:$0xff] %v6086_v7 }
 0x512   : > { %3338 = vrot.lane.b32.xlu1 %v4122_v46, %s4413_s22  ;;  %6757 = vst [vmem:[#allocation46_spill] sm:$0xff] %v6059_v44 }
 0x514   : > { %3096 = vrot.lane.b32.xlu0 %v4122_v46, %s4412_s15  ;;  %v6038_v46 = vpop.permute.xlu0 %3232 }
 0x515   : > { %6753 = vst [vmem:[#allocation42_spill] sm:$0xff] %v6038_v46  ;;  %v6069_v46 = vmul.f32 %v5650_v58, %v5238_v54 }
 0x516   : > { %3560 = vrot.lane.b32.xlu1 %v3559_v26, %s4412_s15  ;;  %v6041_v26 = vpop.permute.xlu1 %3224 }
 0x517   : > { %6754 = vst [vmem:[#allocation31_spill] sm:$0xff] %v6041_v26  ;;  %6760 = vst [vmem:[#allocation37_spill] sm:$0xff] %v6069_v46  ;;  %v2607_v26 = vmul.f32 -0.22414386, %v5872_v6 }
 0x518   : > { %3085 = vrot.lane.b32.xlu0 %v3084_v37, %s4418_s14  ;;  %v6043_v34 = vpop.permute.xlu0 %3484 }
 0x519   : > { %6755 = vst [vmem:[#allocation44_spill] sm:$0xff] %v6043_v34  ;;  %v6094_v34 = vmul.f32 %v5226_v51, %v5681_v25  ;;  %v6108_v51 = vmul.f32 %v5244_v12, %v5758_v5 }
 0x51a   : > { %3104 = vrot.lane.b32.xlu1 %v3103_v36, %s4412_s15  ;;  %v6051_v36 = vmul.f32 %v5629_v23, %v5206_v1  ;;  %v6065_v37 = vpop.permute.xlu1 %3476  ;;  %v6073_v1 = vmul.f32 %v5758_v5, %v5223_v0  ;;  %v2591_v5 = vmul.f32 0.8365163, %v5865_v43  ;;  %s284_s15 = sand.u32 1, %s4398_s25  }
 0x51b   : > { %6759 = vst [vmem:[#allocation48_spill] sm:$0xff] %v6065_v37  ;;  %6764 = vst [vmem:[#allocation41_spill] sm:$0xff] %v6094_v34  ;;  %v6113_v37 = vmul.f32 %v5616_v3, %v5734_v16  ;;  %v6129_v3 = vmul.f32 %v5629_v23, %v5734_v16  ;;  %v6150_v34 = vmul.f32 %v5774_v60, %v5595_v19  ;;  %s3833_s16 = scalar_lea.sflag [#allocation7], %s284_s15 }
 0x51c   : > { %3771 = vrot.lane.b32.xlu0 %v3770_v48, %s4413_s22  ;;  %v2582_v48 = vpop.permute.xlu0 %2581  ;;  %6761 = vst [vmem:[#allocation50_spill] sm:$0xff] %v6073_v1  ;;  %6766 = vst [vmem:[#allocation43_spill] sm:$0xff] %v6108_v51 }
 0x51d   : > { %6767 = vst [vmem:[#allocation56_spill] sm:$0xff] %v6113_v37  ;;  %6770 = vst [vmem:[#allocation47_spill] sm:$0xff] %v6129_v3 }
 0x51e   : > { %6774 = vst [vmem:[#allocation51_spill] sm:$0xff] %v6150_v34 }
 0x520   : > { %3346 = vrot.lane.b32.xlu0 %v3345_v17, %s4413_s22  ;;  %v6063_v17 = vmul.f32 %v5591_v47, %v5238_v54  ;;  %v6082_v47 = vmul.f32 %v5595_v19, %v5240_v50  ;;  %v6090_v54 = vmul.f32 %v5223_v0, %v5595_v19  ;;  %v6104_v0 = vmul.f32 %v5812_v59, %v5244_v12  ;;  %v2584_v24 = vpop.permute.xlu0 %2583  ;;  %s3924_s22 = sshll.u32 %s284_s15, 4 }
 0x521   : > { %v6117_v50 = vmul.f32 %v5896_v18, %v5246_v13  ;;  %v6133_v18 = vmul.f32 %v5629_v23, %v5774_v60  ;;  %v6137_v13 = vmul.f32 %v5945_v4, %v5819_v20  ;;  %v6141_v12 = vmul.f32 %v5819_v20, %v5812_v59 }
 0x522   : > { %6758 = vst [vmem:[#allocation35_spill] sm:$0xff] %v6063_v17  ;;  %6763 = vst [vmem:[#allocation52_spill] sm:$0xff] %v6090_v54  ;;  %v2587_v59 = vadd.f32 %v2582_v48, %v2575_v27  ;;  %v2625_v54 = vmul.f32 -0.22414386, %v5874_v52  ;;  %v2576_v60 = vmul.f32 0.8365163, %v5835_v21 }
 0x523   : > { %6765 = vst [vmem:[#allocation54_spill] sm:$0xff] %v6104_v0  ;;  %6768 = vst [vmem:[#allocation45_spill] sm:$0xff] %v6117_v50  ;;  %v4310_v48 = vld [vmem:[#allocation2 + $0x10] sm:$0xff]  ;;  %v2592_v19 = vmul.f32 0.8365163, %v5868_v53 }
 0x524   : > { %6771 = vst [vmem:[#allocation58_spill] sm:$0xff] %v6133_v18  ;;  %6772 = vst [vmem:[#allocation49_spill] sm:$0xff] %v6137_v13  ;;  %v2588_v16 = vadd.f32 %v2584_v24, %v2576_v60 }
 0x525   : > { %6773 = vst [vmem:[#allocation59_spill] sm:$0xff] %v6141_v12 }
 0x530   : > { %v2598_v40 = vpop.permute.xlu1 %2597 }
 0x531   : > { %v2603_v7 = vadd.f32 %v2598_v40, %v2591_v5  ;;  %v2626_v5 = vmul.f32 -0.22414386, %v5884_v33 }
 0x534   : > { %v2600_v44 = vpop.permute.xlu1 %2599 }
 0x535   : > { %v2604_v13 = vadd.f32 %v2600_v44, %v2592_v19  ;;  %v2642_v44 = vmul.f32 0.4829629, %v5835_v21 }
 0x536   : > { %v2614_v4 = vpop.permute.xlu0 %2613 }
 0x537   : > { %v2619_v1 = vadd.f32 %v2614_v4, %v2607_v26  ;;  %v6163_v4 = vmul.f32 %v4310_v48, %v5842_v9  ;;  %v6167_v26 = vmul.f32 %v5650_v58, %v5842_v9 }
 0x538   : > { %v2632_v23 = vpop.permute.xlu1 %2631 }
 0x539   : > { %v2621_v50 = vadd.f32 %v2619_v1, %v2587_v59  ;;  %v2637_v20 = vadd.f32 %v2632_v23, %v2625_v54 }
 0x53a   : > { %v2616_v51 = vpop.permute.xlu0 %2615 }
 0x53b   : > { %v2639_v12 = vadd.f32 %v2637_v20, %v2603_v7  ;;  %v2701_v59 = vmul.f32 0.8365163, %v2621_v50  ;;  %v2707_v40 = vmul.f32 -0.12940952, %v2621_v50  ;;  %v3351_v1 = vmul.f32 0.4829629, %v2621_v50 }
 0x53c   : > { %v2620_v54 = vadd.f32 %v2616_v51, %v2608_v29  ;;  %v2648_v23 = vpop.permute.xlu1 %2647  ;;  %v3357_v9 = vmul.f32 0.22414386, %v2621_v50  ;;  %v2769_v7 = vrot.slane %v6163_v4, 7  ;;  %v3397_v20 = vrot.slane %v6167_v26, 6 }
 0x53d   : > { %v2703_v48 = vmul.f32 -0.22414386, %v2639_v12  ;;  %v2708_v27 = vmul.f32 -0.4829629, %v2639_v12  ;;  %v3353_v32 = vmul.f32 -0.12940952, %v2639_v12  ;;  %v6178_v50 = vmul.f32 %v5650_v58, %v5856_v15 }
 0x53e   : > { %v3359_v0 = vmul.f32 0.8365163, %v2639_v12  ;;  %v2622_v18 = vadd.f32 %v2620_v54, %v2588_v16  ;;  %v2634_v34 = vpop.permute.xlu0 %2633  ;;  %v2641_v29 = vmul.f32 0.4829629, %v5831_v42  ;;  %v6182_v42 = vmul.f32 %v5681_v25, %v5856_v15 }
 0x53f   : > { %v2705_v17 = vadd.f32 %v2703_v48, %v2701_v59  ;;  %v2709_v24 = vadd.f32 %v2708_v27, %v2707_v40  ;;  %v3355_v60 = vadd.f32 %v3353_v32, %v3351_v1  ;;  %v2638_v37 = vadd.f32 %v2634_v34, %v2626_v5 }
 0x540   : > { %v3361_v46 = vadd.f32 %v3359_v0, %v3357_v9  ;;  %v2662_v51 = vpop.permute.xlu1 %2661  ;;  %v2702_v22 = vmul.f32 0.8365163, %v2622_v18  ;;  %v3352_v32 = vmul.f32 0.4829629, %v2622_v18  ;;  %v3358_v34 = vmul.f32 0.22414386, %v2622_v18 }
 0x541   : > { %v2711_v3 = vrot.slane %v2709_v24, 7  ;;  %v2640_v39 = vadd.f32 %v2638_v37, %v2604_v13  ;;  %v2655_v37 = vmul.f32 0.4829629, %v5865_v43  ;;  %v2669_v13 = vmul.f32 -0.12940952, %v5872_v6 }
 0x542   : > { %v3366_v12 = vrot.slane %v3361_v46, 7  ;;  %v2650_v16 = vpop.permute.xlu0 %2649  ;;  %v2653_v1 = vadd.f32 %v2648_v23, %v2641_v29  ;;  %v2685_v43 = vmul.f32 -0.12940952, %v5874_v52  ;;  %v2656_v24 = vmul.f32 0.4829629, %v5868_v53 }
 0x543   : > { %v2713_v19 = vadd.f32 %v2711_v3, %v2705_v17  ;;  %v2704_v27 = vmul.f32 -0.22414386, %v2640_v39  ;;  %v3354_v5 = vmul.f32 -0.12940952, %v2640_v39  ;;  %v3360_v0 = vmul.f32 0.8365163, %v2640_v39 }
 0x544   : > { %v3371_v59 = vadd.f32 %v3366_v12, %v3355_v60  ;;  %v2676_v21 = vpop.permute.xlu1 %2675  ;;  %v2670_v60 = vmul.f32 -0.12940952, %v5878_v11 }
 0x545   : > { %v2727_v58 = vadd.f32 %v5846_v55, %v2713_v19  ;;  %v2706_v46 = vadd.f32 %v2704_v27, %v2702_v22  ;;  %v3356_v40 = vadd.f32 %v3354_v5, %v3352_v32  ;;  %v3362_v18 = vadd.f32 %v3360_v0, %v3358_v34 }
 0x546   : > { %v3379_v17 = vadd.f32 %v5837_v35, %v3371_v59  ;;  %v2681_v39 = vadd.f32 %v2676_v21, %v2669_v13  ;;  %v2664_v54 = vpop.permute.xlu0 %2663  ;;  %v6775_v32 = vrot.slane %v6047_v61, 7  ;;  %v2667_v5 = vadd.f32 %v2662_v51, %v2655_v37 }
 0x547   : > { %v2741_v25 = vadd.f32 %v5740_v57, %v2727_v58  ;;  %v2714_v15 = vadd.f32 %v2711_v3, %v2706_v46  ;;  %v3367_v48 = vrot.slane %v3362_v18, 7  ;;  %v6776_v3 = vrot.slane %v6051_v36, 6 }
 0x548   : > { %v3387_v9 = vadd.f32 %v5844_v30, %v3379_v17  ;;  %v2683_v6 = vadd.f32 %v2681_v39, %v2653_v1  ;;  %v2692_v22 = vpop.permute.xlu1 %2691  ;;  %v2686_v59 = vmul.f32 -0.12940952, %v5884_v33  ;;  %v2654_v21 = vadd.f32 %v2650_v16, %v2642_v44 }
 0x549   : > { %v2756_v23 = vadd.f32 %v6775_v32, %v2741_v25  ;;  %v2728_v29 = vadd.f32 %v5846_v55, %v2714_v15  ;;  %v3368_v34 = vsel %vm3365_vm9, %v3366_v12, %v3367_v48  ;;  %v2697_v19 = vadd.f32 %v2692_v22, %v2685_v43 }
 0x54a   : > { %v3393_v27 = vadd.f32 %v6776_v3, %v3387_v9  ;;  %v3372_v52 = vadd.f32 %v3368_v34, %v3356_v40  ;;  %v2678_v0 = vpop.permute.xlu0 %2677  ;;  %v3109_v13 = vmul.f32 0.8365163, %v2683_v6  ;;  %v3115_v58 = vmul.f32 -0.12940952, %v2683_v6 }
 0x54b   : > { %v2771_v53 = vadd.f32 %v2769_v7, %v2756_v23  ;;  %v2742_v11 = vadd.f32 %v5740_v57, %v2728_v29  ;;  %v2699_v12 = vadd.f32 %v2697_v19, %v2667_v5  ;;  %v2682_v46 = vadd.f32 %v2678_v0, %v2670_v60 }
 0x54c   : > { %v3380_v55 = vadd.f32 %v5837_v35, %v3372_v52  ;;  %v6204_v18 = vpop.permute.xlu1 %3697  ;;  %v3399_v51 = vadd.f32 %v3397_v20, %v3393_v27  ;;  %v6777_v37 = vmov %v6775_v32  ;;  %v3565_v40 = vmul.f32 0.4829629, %v2683_v6 }
 0x54d   : > { %v2757_v33 = vadd.f32 %v6777_v37, %v2742_v11  ;;  %v3571_v17 = vmul.f32 0.22414386, %v2683_v6  ;;  %v3111_v57 = vmul.f32 -0.22414386, %v2699_v12  ;;  %v3116_v44 = vmul.f32 -0.4829629, %v2699_v12 }
 0x54e   : > { %v3388_v1 = vadd.f32 %v5844_v30, %v3380_v55  ;;  %v2694_v16 = vpop.permute.xlu0 %2693  ;;  %v2788_v35 = vadd.f32 %v5765_v62, %v2771_v53  ;;  %v3567_v25 = vmul.f32 -0.12940952, %v2699_v12  ;;  %v3573_v15 = vmul.f32 0.8365163, %v2699_v12 }
 0x54f   : > { %v2772_v39 = vadd.f32 %v2769_v7, %v2757_v33  ;;  %v2684_v48 = vadd.f32 %v2682_v46, %v2654_v21  ;;  %v6778_v43 = vmov %v6776_v3  ;;  %v3113_v61 = vadd.f32 %v3111_v57, %v3109_v13 }
 0x550   : > { %v3394_v9 = vadd.f32 %v6778_v43, %v3388_v1  ;;  %v3117_v22 = vadd.f32 %v3116_v44, %v3115_v58  ;;  %v2698_v60 = vadd.f32 %v2694_v16, %v2686_v59  ;;  %v6216_v6 = vpop.permute.xlu1 %2989  ;;  %v2668_v32 = vadd.f32 %v2664_v54, %v2656_v24  ;;  %v4311_v16 = vld [vmem:[#allocation2 + $0x11] sm:$0xff] }
 0x551   : > { %v2789_v30 = vadd.f32 %v5765_v62, %v2772_v39  ;;  %v3569_v23 = vadd.f32 %v3567_v25, %v3565_v40  ;;  %v3575_v29 = vadd.f32 %v3573_v15, %v3571_v17  ;;  %v3407_v34 = vadd.f32 %v5852_v45, %v3399_v51 }
 0x552   : > { %v3400_v4 = vadd.f32 %v3397_v20, %v3394_v9  ;;  %v3110_v7 = vmul.f32 0.8365163, %v2684_v48  ;;  %v3119_v19 = vrot.slane %v3117_v22, 7  ;;  %v6222_v3 = vpop.permute.xlu0 %2935  ;;  %v3566_v27 = vmul.f32 0.4829629, %v2684_v48 }
 0x553   : > { %v3579_v36 = vrot.slane %v3575_v29, 7  ;;  %v3572_v52 = vmul.f32 0.22414386, %v2684_v48  ;;  %v2700_v5 = vadd.f32 %v2698_v60, %v2668_v32  ;;  %v2802_v62 = vadd.f32 %v5860_v14, %v2788_v35 }
 0x554   : > { %v3408_v0 = vadd.f32 %v5852_v45, %v3400_v4  ;;  %v3121_v59 = vadd.f32 %v3119_v19, %v3113_v61  ;;  %v2803_v54 = vadd.f32 %v5860_v14, %v2789_v30  ;;  %v6227_v24 = vpop.permute.xlu1 %3492  ;;  %v2844_v21 = vrot.slane %v6178_v50, 7  ;;  %v6782_v30 = vld [vmem:[#allocation18_spill] sm:$0xff]  ;;  %v6783_v4 = vld [vmem:[#allocation47_spill] sm:$0xff] }
 0x555   : > { %v3584_v53 = vadd.f32 %v3579_v36, %v3569_v23  ;;  %v3112_v26 = vmul.f32 -0.22414386, %v2700_v5  ;;  %v3568_v20 = vmul.f32 -0.12940952, %v2700_v5  ;;  %v3574_v11 = vmul.f32 0.8365163, %v2700_v5 }
 0x556   : > { %v3433_v13 = vrot.slane %v6182_v42, 6  ;;  %v3416_v55 = vadd.f32 %v5753_v38, %v3408_v0  ;;  %v3129_v58 = vadd.f32 %v5738_v31, %v3121_v59  ;;  %v6233_v45 = vpop.permute.xlu0 %3280  ;;  %v2816_v33 = vadd.f32 %v5950_v10, %v2802_v62  ;;  %v6787_v59 = vld [vmem:[#allocation21_spill] sm:$0xff] }
 0x557   : > { %v3592_v12 = vadd.f32 %v5732_v56, %v3584_v53  ;;  %v3114_v46 = vadd.f32 %v3112_v26, %v3110_v7  ;;  %v3570_v14 = vadd.f32 %v3568_v20, %v3566_v27  ;;  %v3576_v51 = vadd.f32 %v3574_v11, %v3572_v52  ;;  %v6788_v26 = vld [vmem:[#allocation37_spill] sm:$0xff] }
 0x558   : > { %v3141_v37 = vadd.f32 %v5850_v63, %v3129_v58  ;;  %v2817_v40 = vadd.f32 %v5950_v10, %v2803_v54  ;;  %v3415_v50 = vadd.f32 %v5753_v38, %v3407_v34  ;;  %v6240_v42 = vpop.permute.xlu1 %2949  ;;  %v3424_v44 = vadd.f32 %v5858_v41, %v3416_v55  ;;  %v6791_v58 = vld [vmem:[#allocation56_spill] sm:$0xff] }
 0x559   : > { %v3600_v17 = vadd.f32 %v5736_v28, %v3592_v12  ;;  %v3122_v1 = vadd.f32 %v3119_v19, %v3114_v46  ;;  %v3580_v57 = vrot.slane %v3576_v51, 7  ;;  %v2917_v35 = vmul.f32 %v4311_v16, %v6007_v2 }
 0x55a   : > { %v6779_v39 = vrot.slane %v6078_v8, 7  ;;  %v3423_v10 = vadd.f32 %v5858_v41, %v3415_v50  ;;  %v6250_v38 = vpop.permute.xlu0 %3705  ;;  %v6781_v22 = vrot.slane %v6082_v47, 6  ;;  %v3149_v32 = vadd.f32 %v6782_v30, %v3141_v37  ;;  %v6790_v47 = vld [vmem:[#allocation32_spill] sm:$0xff] }
 0x55b   : > { %v3608_v43 = vadd.f32 %v5848_v49, %v3600_v17  ;;  %v3130_v9 = vadd.f32 %v5738_v31, %v3122_v1  ;;  %v3581_v61 = vsel %vm3365_vm9, %v3579_v36, %v3580_v57  ;;  %v6784_v41 = vrot.slane %v6783_v4, 6  ;;  %v6786_v36 = vld [vmem:[#allocation20_spill] sm:$0xff]  ;;  %v6796_v1 = vld [vmem:[#allocation19_spill] sm:$0xff] }
 0x55c   : > { %v2831_v25 = vadd.f32 %v6779_v39, %v2816_v33  ;;  %v6780_v15 = vmov %v6779_v39  ;;  %v3430_v60 = vadd.f32 %v6781_v22, %v3424_v44  ;;  %v3585_v23 = vadd.f32 %v3581_v61, %v3570_v14  ;;  %v6258_v8 = vpop.permute.xlu1 %3713  ;;  %v6794_v33 = vld [vmem:[#allocation24_spill] sm:$0xff] }
 0x55d   : > { %v2832_v48 = vadd.f32 %v6780_v15, %v2817_v40  ;;  %v3614_v7 = vadd.f32 %v6784_v41, %v3608_v43  ;;  %v3142_v19 = vadd.f32 %v5850_v63, %v3130_v9  ;;  %v6785_v27 = vmov %v6781_v22  ;;  %v6797_v39 = vld [vmem:[#allocation40_spill] sm:$0xff]  ;;  %v6799_v43 = vld [vmem:[#allocation35_spill] sm:$0xff] }
 0x55e   : > { %v2846_v29 = vadd.f32 %v2844_v21, %v2831_v25  ;;  %v3429_v31 = vadd.f32 %v6785_v27, %v3423_v10  ;;  %v3436_v52 = vadd.f32 %v3433_v13, %v3430_v60  ;;  %v3467_v5 = vmul.f32 %v6786_v36, %v6007_v2  ;;  %v6270_v53 = vpop.permute.xlu0 %3255  ;;  %v6801_v60 = vld [vmem:[#allocation25_spill] sm:$0xff]  ;;  %v6806_v27 = vld [vmem:[#allocation28_spill] sm:$0xff]  ;;  %v6807_v36 = vld [vmem:[#allocation50_spill] sm:$0xff] }
 0x55f   : > { %v2847_v34 = vadd.f32 %v2844_v21, %v2832_v48  ;;  %v3593_v0 = vadd.f32 %v5732_v56, %v3585_v23  ;;  %v6789_v20 = vrot.slane %v6788_v26, 6  ;;  %v3150_v63 = vadd.f32 %v6782_v30, %v3142_v19  ;;  %v6793_v56 = vld [vmem:[#allocation27_spill] sm:$0xff]  ;;  %v6798_v48 = vld [vmem:[#allocation12_spill] sm:$0xff] }
 0x560   : > { %v2863_v62 = vadd.f32 %v6787_v59, %v2846_v29  ;;  %v3435_v21 = vadd.f32 %v3433_v13, %v3429_v31  ;;  %v3444_v55 = vadd.f32 %v6790_v47, %v3436_v52  ;;  %v6792_v12 = vrot.slane %v6791_v58, 7  ;;  %v6281_v37 = vpop.permute.xlu1 %3267 }
 0x561   : > { %v2864_v54 = vadd.f32 %v6787_v59, %v2847_v34  ;;  %v3620_v11 = vadd.f32 %v6789_v20, %v3614_v7  ;;  %v3601_v2 = vadd.f32 %v5736_v28, %v3593_v0  ;;  %v2919_v44 = vrot.slane %v2917_v35, 7 }
 0x562   : > { %v3158_v46 = vadd.f32 %v6792_v12, %v3149_v32  ;;  %v2877_v14 = vadd.f32 %v6793_v56, %v2863_v62  ;;  %v6795_v50 = vmov %v6792_v12  ;;  %v3443_v13 = vadd.f32 %v6790_v47, %v3435_v21  ;;  %v6291_v15 = vpop.permute.xlu0 %2963 }
 0x563   : > { %v2878_v51 = vadd.f32 %v6793_v56, %v2864_v54  ;;  %v3628_v40 = vadd.f32 %v6794_v33, %v3620_v11  ;;  %v3159_v17 = vadd.f32 %v6795_v50, %v3150_v63  ;;  %v3452_v57 = vadd.f32 %v6796_v1, %v3444_v55  ;;  %v6811_v63 = vld [vmem:[#allocation13_spill] sm:$0xff]  ;;  %v6812_v55 = vld [vmem:[#allocation51_spill] sm:$0xff] }
 0x564   : > { %v3609_v16 = vadd.f32 %v5848_v49, %v3601_v2  ;;  %v2891_v28 = vadd.f32 %v6797_v39, %v2877_v14  ;;  %v6800_v9 = vrot.slane %v6799_v43, 7  ;;  %v3451_v22 = vadd.f32 %v6796_v1, %v3443_v13  ;;  %v6803_v49 = vld [vmem:[#allocation52_spill] sm:$0xff]  ;;  %v6304_v19 = vpop.permute.xlu1 %3512  ;;  %v6817_v13 = vld [vmem:[#allocation30_spill] sm:$0xff] }
 0x565   : > { %v2892_v25 = vadd.f32 %v6797_v39, %v2878_v51  ;;  %v3636_v10 = vadd.f32 %v6798_v48, %v3628_v40  ;;  %v3460_v30 = vadd.f32 %v6801_v60, %v3452_v57  ;;  %v3469_v32 = vrot.slane %v3467_v5, 6  ;;  %v6815_v40 = vld [vmem:[#allocation11_spill] sm:$0xff] }
 0x566   : > { %v3165_v61 = vadd.f32 %v6800_v9, %v3159_v17  ;;  %v6802_v35 = vmov %v6784_v41  ;;  %v6804_v29 = vrot.slane %v6803_v49, 7  ;;  %v3459_v52 = vadd.f32 %v6801_v60, %v3451_v22  ;;  %v6315_v47 = vpop.permute.xlu0 %3275  ;;  %v6822_v60 = vld [vmem:[#allocation17_spill] sm:$0xff] }
 0x567   : > { %v3615_v23 = vadd.f32 %v6802_v35, %v3609_v16  ;;  %v3644_v31 = vadd.f32 %v6806_v27, %v3636_v10  ;;  %v6808_v0 = vrot.slane %v6807_v36, 6  ;;  %v6809_v5 = vmov %v6800_v9  ;;  %v6821_v9 = vld [vmem:[#allocation15_spill] sm:$0xff] }
 0x568   : > { %v2906_v34 = vadd.f32 %v6804_v29, %v2891_v28  ;;  %v6805_v41 = vmov %v6804_v29  ;;  %v3164_v62 = vadd.f32 %v6809_v5, %v3158_v46  ;;  %v6810_v4 = vmov %v6789_v20  ;;  %v6816_v46 = vld [vmem:[#allocation23_spill] sm:$0xff]  ;;  %v6329_v57 = vpop.permute.xlu1 %3733 }
 0x569   : > { %v2907_v7 = vadd.f32 %v6805_v41, %v2892_v25  ;;  %v3466_v59 = vadd.f32 %v6808_v0, %v3460_v30  ;;  %v3621_v54 = vadd.f32 %v6810_v4, %v3615_v23  ;;  %v3173_v21 = vadd.f32 %v6811_v63, %v3165_v61  ;;  %v6820_v25 = vld [vmem:[#allocation48_spill] sm:$0xff]  ;;  %v6823_v23 = vld [vmem:[#allocation34_spill] sm:$0xff] }
 0x56a   : > { %v2921_v20 = vadd.f32 %v2919_v44, %v2906_v34  ;;  %v6813_v58 = vrot.slane %v6812_v55, 6  ;;  %v6814_v2 = vmov %v6808_v0  ;;  %v3172_v51 = vadd.f32 %v6811_v63, %v3164_v62  ;;  %v6340_v35 = vpop.permute.xlu0 %3521 }
 0x56b   : > { %v2922_v11 = vadd.f32 %v2919_v44, %v2907_v7  ;;  %v3465_v56 = vadd.f32 %v6814_v2, %v3459_v52  ;;  %v3472_v14 = vadd.f32 %v3469_v32, %v3466_v59  ;;  %v6324_v50 = vmul.f32 %v6816_v46, %v6815_v40  ;;  %v6818_v44 = vld [vmem:[#allocation46_spill] sm:$0xff]  ;;  %v6827_v59 = vld [vmem:[#allocation36_spill] sm:$0xff] }
 0x56c   : > { %v3650_v12 = vadd.f32 %v6813_v58, %v3644_v31  ;;  %v3629_v26 = vadd.f32 %v6794_v33, %v3621_v54  ;;  %v3185_v1 = vadd.f32 %v6817_v13, %v3173_v21  ;;  %v6819_v16 = vrot.slane %v6818_v44, 6  ;;  %v6825_v52 = vld [vmem:[#allocation58_spill] sm:$0xff]  ;;  %v6351_v0 = vpop.permute.xlu1 %3064 }
 0x56d   : > { %v2939_v17 = vadd.f32 %v6222_v3, %v2922_v11  ;;  %v3471_v28 = vadd.f32 %v3469_v32, %v3465_v56  ;;  %v3480_v10 = vadd.f32 %v6820_v25, %v3472_v14  ;;  %v3184_v43 = vadd.f32 %v6817_v13, %v3172_v51  ;;  %v6824_v32 = vld [vmem:[#allocation44_spill] sm:$0xff]  ;;  %v6832_v14 = vld [vmem:[#allocation29_spill] sm:$0xff] }
 0x56e   : > { %v3656_v39 = vadd.f32 %v6819_v16, %v3650_v12  ;;  %v3503_v61 = vmul.f32 %v6821_v9, %v6216_v6  ;;  %v2938_v22 = vadd.f32 %v6222_v3, %v2921_v20  ;;  %v3637_v33 = vadd.f32 %v6798_v48, %v3629_v26  ;;  %v6363_v56 = vpop.permute.xlu0 %3010  ;;  %v4312_v16 = vld [vmem:[#allocation2 + $0x1] sm:$0xff] }
 0x56f   : > { %v3193_v30 = vadd.f32 %v6822_v60, %v3185_v1  ;;  %v3479_v29 = vadd.f32 %v6820_v25, %v3471_v28  ;;  %v3488_v34 = vadd.f32 %v6824_v32, %v3480_v10  ;;  %v3192_v41 = vadd.f32 %v6822_v60, %v3184_v43  ;;  %v6837_v28 = vld [vmem:[#allocation38_spill] sm:$0xff] }
 0x570   : > { %v3664_v49 = vadd.f32 %v6823_v23, %v3656_v39  ;;  %v3684_v7 = vrot.slane %v6324_v50, 6  ;;  %v2953_v31 = vadd.f32 %v6240_v42, %v2939_v17  ;;  %v3645_v3 = vadd.f32 %v6806_v27, %v3637_v33  ;;  %v6833_v50 = vld [vmem:[#allocation54_spill] sm:$0xff]  ;;  %v3531_v43 = vpop.permute.xlu1 %3530 }
 0x571   : > { %v6826_v48 = vrot.slane %v6825_v52, 7  ;;  %v3487_v62 = vadd.f32 %v6824_v32, %v3479_v29  ;;  %v3496_v4 = vadd.f32 %v6227_v24, %v3488_v34  ;;  %v3505_v11 = vrot.slane %v3503_v61, 6  ;;  %v6839_v29 = vld [vmem:[#allocation31_spill] sm:$0xff] }
 0x572   : > { %v3672_v5 = vadd.f32 %v6827_v59, %v3664_v49  ;;  %v2952_v63 = vadd.f32 %v6240_v42, %v2938_v22  ;;  %v6829_v21 = vmov %v6813_v58  ;;  %v6830_v58 = vld [vmem:[#allocation33_spill] sm:$0xff]  ;;  %v6834_v26 = vrot.slane %v6833_v50, 6  ;;  %v6383_v34 = vpop.permute.xlu0 %3323 }
 0x573   : > { %v3202_v36 = vadd.f32 %v6826_v48, %v3193_v30  ;;  %v6828_v54 = vmov %v6826_v48  ;;  %v3651_v27 = vadd.f32 %v6829_v21, %v3645_v3  ;;  %v6831_v12 = vrot.slane %v6830_v58, 7  ;;  %v4313_v30 = vld [vmem:[#allocation2 + $0x31] sm:$0xff]  ;;  %v6844_v21 = vld [vmem:[#allocation43_spill] sm:$0xff] }
 0x574   : > { %v3201_v20 = vadd.f32 %v6828_v54, %v3192_v41  ;;  %v3680_v51 = vadd.f32 %v6832_v14, %v3672_v5  ;;  %v3495_v40 = vadd.f32 %v6227_v24, %v3487_v62  ;;  %v3502_v17 = vadd.f32 %v6834_v26, %v3496_v4  ;;  %v6840_v41 = vld [vmem:[#allocation39_spill] sm:$0xff]  ;;  %v6842_v62 = vld [vmem:[#allocation22_spill] sm:$0xff] }
 0x575   : > { %v3208_v2 = vadd.f32 %v6831_v12, %v3202_v36  ;;  %v6835_v13 = vmov %v6831_v12  ;;  %v3240_v42 = vmul.f32 %v4312_v16, %v6816_v46  ;;  %v6836_v55 = vrot.slane %v6818_v44, 6  ;;  %v6843_v4 = vld [vmem:[#allocation42_spill] sm:$0xff] }
 0x576   : > { %v3207_v1 = vadd.f32 %v6835_v13, %v3201_v20  ;;  %v2967_v10 = vadd.f32 %v6291_v15, %v2953_v31  ;;  %v3686_v61 = vadd.f32 %v3684_v7, %v3680_v51  ;;  %v6838_v24 = vmov %v6834_v26  ;;  %v6403_v50 = vpop.permute.xlu0 %3741  ;;  %v6848_v26 = vld [vmem:[#allocation26_spill] sm:$0xff] }
 0x577   : > { %v3657_v39 = vadd.f32 %v6836_v55, %v3651_v27  ;;  %v3216_v25 = vadd.f32 %v6837_v28, %v3208_v2  ;;  %v3501_v22 = vadd.f32 %v6838_v24, %v3495_v40  ;;  %v3508_v60 = vadd.f32 %v3505_v11, %v3502_v17  ;;  %v4314_v55 = vld [vmem:[#allocation2 + $0x21] sm:$0xff] }
 0x578   : > { %v3215_v33 = vadd.f32 %v6837_v28, %v3207_v1  ;;  %v2992_v49 = vmul.f32 %v4313_v30, %v6216_v6  ;;  %v2966_v32 = vadd.f32 %v6291_v15, %v2952_v63  ;;  %v6841_v31 = vrot.slane %v6840_v41, 6  ;;  %v3025_v15 = vpop.permute.xlu1 %3024  ;;  %v6849_v28 = vld [vmem:[#allocation41_spill] sm:$0xff] }
 0x579   : > { %v3665_v46 = vadd.f32 %v6823_v23, %v3657_v39  ;;  %v3228_v44 = vadd.f32 %v6839_v29, %v3216_v25  ;;  %v3507_v48 = vadd.f32 %v3505_v11, %v3501_v22  ;;  %v3516_v36 = vadd.f32 %v6304_v19, %v3508_v60 }
 0x57a   : > { %v3692_v3 = vadd.f32 %v6841_v31, %v3686_v61  ;;  %v3227_v52 = vadd.f32 %v6839_v29, %v3215_v33  ;;  %v3242_v5 = vrot.slane %v3240_v42, 7  ;;  %v6391_v6 = vmul.f32 %v6233_v45, %v6842_v62 }
 0x57b   : > { %v3673_v23 = vadd.f32 %v6827_v59, %v3665_v46  ;;  %v3236_v54 = vadd.f32 %v6843_v4, %v3228_v44  ;;  %v6845_v27 = vrot.slane %v6844_v21, 7  ;;  %v3515_v11 = vadd.f32 %v6304_v19, %v3507_v48  ;;  %v6847_v59 = vld [vmem:[#allocation14_spill] sm:$0xff] }
 0x57c   : > { %v3700_v20 = vadd.f32 %v6204_v18, %v3692_v3  ;;  %v3235_v63 = vadd.f32 %v6843_v4, %v3227_v52  ;;  %v6407_v17 = vmul.f32 %v6848_v26, %v6847_v59  ;;  %v2994_v13 = vrot.slane %v2992_v49, 7  ;;  %v6415_v61 = vpop.permute.xlu1 %3749 }
 0x57d   : > { %v2982_v58 = vadd.f32 %v6845_v27, %v2967_v10  ;;  %v3681_v12 = vadd.f32 %v6832_v14, %v3673_v23  ;;  %v3245_v2 = vadd.f32 %v3242_v5, %v3236_v54  ;;  %v6846_v51 = vmov %v6845_v27 }
 0x57e   : > { %v2981_v40 = vadd.f32 %v6846_v51, %v2966_v32  ;;  %v3708_v1 = vadd.f32 %v6250_v38, %v3700_v20  ;;  %v3244_v16 = vadd.f32 %v3242_v5, %v3235_v63  ;;  %v3525_v42 = vadd.f32 %v6340_v35, %v3516_v36 }
 0x57f   : > { %v3283_v19 = vmul.f32 %v4314_v55, %v6233_v45  ;;  %v3720_v14 = vrot.slane %v6391_v6, 6  ;;  %v3687_v39 = vadd.f32 %v3684_v7, %v3681_v12  ;;  %v6850_v25 = vrot.slane %v6849_v28, 7  ;;  %v3299_v7 = vpop.permute.xlu0 %3298  ;;  %v6853_v6 = vld [vmem:[#allocation45_spill] sm:$0xff] }
 0x580   : > { %v3716_v24 = vadd.f32 %v6258_v8, %v3708_v1  ;;  %v3524_v60 = vadd.f32 %v6340_v35, %v3515_v11  ;;  %v2997_v30 = vadd.f32 %v2994_v13, %v2982_v58  ;;  %v6852_v49 = vmov %v6841_v31  ;;  %v3311_v5 = vpop.permute.xlu1 %3310  ;;  %v6856_v11 = vld [vmem:[#allocation49_spill] sm:$0xff] }
 0x581   : > { %v3251_v10 = vadd.f32 %v6850_v25, %v3245_v2  ;;  %v6851_v22 = vmov %v6850_v25  ;;  %v3693_v46 = vadd.f32 %v6852_v49, %v3687_v39  ;;  %v2996_v29 = vadd.f32 %v2994_v13, %v2981_v40  ;;  %v6859_v39 = vld [vmem:[#allocation57_spill] sm:$0xff] }
 0x582   : > { %v3250_v33 = vadd.f32 %v6851_v22, %v3244_v16  ;;  %v6426_v44 = vmul.f32 %v6847_v59, %v6821_v9  ;;  %v3722_v32 = vadd.f32 %v3720_v14, %v3716_v24  ;;  %v3533_v3 = vadd.f32 %v3531_v43, %v3524_v60 }
 0x583   : > { %v3259_v45 = vadd.f32 %v6270_v53, %v3251_v10  ;;  %v3534_v52 = vadd.f32 %v3531_v43, %v3525_v42  ;;  %v3285_v48 = vrot.slane %v3283_v19, 7  ;;  %v3701_v35 = vadd.f32 %v6204_v18, %v3693_v46  ;;  %v6855_v18 = vld [vmem:[#allocation16_spill] sm:$0xff]  ;;  %v3039_v27 = vpop.permute.xlu0 %3038  ;;  %v6863_v46 = vld [vmem:[#allocation59_spill] sm:$0xff] }
 0x584   : > { %v3258_v31 = vadd.f32 %v6270_v53, %v3250_v33  ;;  %v3013_v41 = vadd.f32 %v6363_v56, %v2996_v29  ;;  %v6854_v23 = vrot.slane %v6853_v6, 6  ;;  %v3541_v54 = vmul.f32 %v6848_v26, %v6351_v0  ;;  %v3551_v13 = vpop.permute.xlu1 %3550 }
 0x585   : > { %v3271_v36 = vadd.f32 %v6281_v37, %v3259_v45  ;;  %v3014_v53 = vadd.f32 %v6363_v56, %v2997_v30  ;;  %v3709_v43 = vadd.f32 %v6250_v38, %v3701_v35  ;;  %v6442_v63 = vmul.f32 %v6855_v18, %v6383_v34  ;;  %v4315_v30 = vld [vmem:[#allocation2 + $0x2] sm:$0xff] }
 0x586   : > { %v3270_v62 = vadd.f32 %v6281_v37, %v3258_v31  ;;  %v3728_v4 = vadd.f32 %v6854_v23, %v3722_v32  ;;  %v3027_v21 = vadd.f32 %v3025_v15, %v3013_v41  ;;  %v6857_v12 = vrot.slane %v6856_v11, 6 }
 0x587   : > { %v3279_v20 = vadd.f32 %v6315_v47, %v3271_v36  ;;  %v3717_v38 = vadd.f32 %v6258_v8, %v3709_v43  ;;  %v3028_v59 = vadd.f32 %v3025_v15, %v3014_v53  ;;  %v3067_v16 = vmul.f32 %v6351_v0, %v6821_v9  ;;  %v3319_v24 = vpop.permute.xlu0 %3318 }
 0x588   : > { %v3278_v37 = vadd.f32 %v6315_v47, %v3270_v62  ;;  %v3736_v58 = vadd.f32 %v6329_v57, %v3728_v4  ;;  %v3539_v2 = vadd.f32 %v6857_v12, %v3533_v3  ;;  %v6858_v51 = vmov %v6857_v12  ;;  %v3339_v32 = vpop.permute.xlu1 %3338 }
 0x589   : > { %v3540_v56 = vadd.f32 %v6858_v51, %v3534_v52  ;;  %v3288_v40 = vadd.f32 %v3285_v48, %v3279_v20  ;;  %v3041_v26 = vadd.f32 %v3039_v27, %v3027_v21  ;;  %v3543_v42 = vrot.slane %v3541_v54, 6 }
 0x58a   : > { %v3287_v1 = vadd.f32 %v3285_v48, %v3278_v37  ;;  %v3744_v47 = vadd.f32 %v6403_v50, %v3736_v58  ;;  %v3723_v55 = vadd.f32 %v3720_v14, %v3717_v38  ;;  %v3756_v19 = vrot.slane %v6442_v63, 6 }
 0x58b   : > { %v6860_v28 = vrot.slane %v6859_v39, 7  ;;  %v3042_v10 = vadd.f32 %v3039_v27, %v3028_v59  ;;  %v3545_v33 = vadd.f32 %v3543_v42, %v3539_v2  ;;  %v3546_v60 = vadd.f32 %v3543_v42, %v3540_v56  ;;  %v3097_v6 = vpop.permute.xlu0 %3096 }
 0x58c   : > { %v3752_v8 = vadd.f32 %v6415_v61, %v3744_v47  ;;  %v6862_v9 = vmov %v6854_v23  ;;  %v3326_v14 = vmul.f32 %v4315_v30, %v6383_v34  ;;  %v6864_v45 = vrot.slane %v6863_v46, 7 }
 0x58d   : > { %v3294_v25 = vadd.f32 %v6860_v28, %v3288_v40  ;;  %v6861_v15 = vmov %v6860_v28  ;;  %v3729_v0 = vadd.f32 %v6862_v9, %v3723_v55  ;;  %v3553_v52 = vadd.f32 %v3551_v13, %v3545_v33 }
 0x58e   : > { %v3293_v22 = vadd.f32 %v6861_v15, %v3287_v1  ;;  %v3056_v29 = vadd.f32 %v6864_v45, %v3041_v26  ;;  %v3758_v31 = vadd.f32 %v3756_v19, %v3752_v8  ;;  %v3554_v48 = vadd.f32 %v3551_v13, %v3546_v60 }
 0x58f   : > { %v3302_v49 = vadd.f32 %v3299_v7, %v3294_v25  ;;  %v3737_v35 = vadd.f32 %v6329_v57, %v3729_v0  ;;  %v6865_v41 = vmov %v6864_v45  ;;  %v3762_v23 = vrot.slane %v6407_v17, 6  ;;  %v3086_v2 = vpop.permute.xlu0 %3085 }
 0x590   : > { %v3301_v3 = vadd.f32 %v3299_v7, %v3293_v22  ;;  %v3057_v62 = vadd.f32 %v6865_v41, %v3042_v10  ;;  %v3069_v4 = vrot.slane %v3067_v16, 7  ;;  %v3555_v54 = vadd.f32 %v3553_v52, %v3097_v6  ;;  %v3561_v7 = vpop.permute.xlu1 %3560 }
 0x591   : > { %v3314_v36 = vadd.f32 %v3311_v5, %v3302_v49  ;;  %v3556_v53 = vadd.f32 %v3554_v48, %v3097_v6  ;;  %v3328_v43 = vrot.slane %v3326_v14, 7  ;;  %v3745_v20 = vadd.f32 %v6403_v50, %v3737_v35 }
 0x592   : > { %v3313_v34 = vadd.f32 %v3311_v5, %v3301_v3  ;;  %v3764_v63 = vadd.f32 %v3762_v23, %v3758_v31  ;;  %v3563_v27 = vadd.f32 %v3561_v7, %v3555_v54  ;;  %v3071_v37 = vadd.f32 %v3069_v4, %v3056_v29 }
 0x593   : > { %v3322_v18 = vadd.f32 %v3319_v24, %v3314_v36  ;;  %v3564_v57 = vadd.f32 %v3561_v7, %v3556_v53  ;;  %v3753_v58 = vadd.f32 %v6415_v61, %v3745_v20  ;;  %v3072_v12 = vadd.f32 %v3069_v4, %v3057_v62  ;;  %v3772_v55 = vpop.permute.xlu0 %3771 }
 0x594   : > { %v3321_v21 = vadd.f32 %v3319_v24, %v3313_v34  ;;  %v3334_v17 = vrot.slane %v6426_v44, 7  ;;  %v3794_v51 = vrot.slane %v3563_v27, 1  ;;  %v3088_v38 = vadd.f32 %v3086_v2, %v3071_v37  ;;  %v3105_v59 = vpop.permute.xlu1 %3104 }
 0x595   : > { %v3331_v11 = vadd.f32 %v3328_v43, %v3322_v18  ;;  %v3795_v56 = vrot.slane %v3564_v57, 1  ;;  %v3759_v40 = vadd.f32 %v3756_v19, %v3753_v58  ;;  %v3089_v50 = vadd.f32 %v3086_v2, %v3072_v12 }
 0x596   : > { %v3330_v5 = vadd.f32 %v3328_v43, %v3321_v21  ;;  %v3766_v26 = vadd.f32 %v3764_v63, %v3339_v32  ;;  %v3099_v13 = vadd.f32 %v3097_v6, %v3088_v38 }
 0x597   : > { %v3337_v16 = vadd.f32 %v3334_v17, %v3331_v11  ;;  %v3796_v42 = vsel %vm1061_vm6, %v3794_v51, %v3795_v56  ;;  %v3100_v47 = vadd.f32 %v3097_v6, %v3089_v50  ;;  %v3765_v61 = vadd.f32 %v3762_v23, %v3759_v40  ;;  %v3347_v15 = vpop.permute.xlu0 %3346 }
 0x598   : > { %v3336_v1 = vadd.f32 %v3334_v17, %v3330_v5  ;;  %v3107_v39 = vadd.f32 %v3105_v59, %v3099_v13  ;;  %v3774_v28 = vadd.f32 %v3772_v55, %v3766_v26 }
 0x599   : > { %v3108_v25 = vadd.f32 %v3105_v59, %v3100_v47  ;;  %v3767_v44 = vadd.f32 %v3765_v61, %v3339_v32  ;;  %v3342_v24 = vadd.f32 %v3339_v32, %v3337_v16 }
 0x59a   : > { %3778 = vrot.lane.b32.xlu1 %v3107_v39, %s4418_s14  ;;  %v3341_v10 = vadd.f32 %v3339_v32, %v3336_v1  ;;  %v3805_v8 = vrot.slane %v3774_v28, 1 }
 0x59b   : > { %v3775_v19 = vadd.f32 %v3772_v55, %v3767_v44  ;;  %3780 = vrot.lane.b32.xlu0 %v3108_v25, %s4418_s14  ;;  %v3350_v33 = vadd.f32 %v3347_v15, %v3342_v24 }
 0x59c   : > { %v3349_v22 = vadd.f32 %v3347_v15, %v3341_v10 }
 0x59d   : > { %v3806_v60 = vrot.slane %v3775_v19, 1 }
 0x59e   : > { %3786 = vrot.lane.b32.xlu1 %v3349_v22, %s4422_s8 }
 0x59f   : > { %3788 = vrot.lane.b32.xlu0 %v3350_v33, %s4422_s8  ;;  %v3807_v9 = vsel %vm1061_vm6, %v3805_v8, %v3806_v60 }
 0x5a2   : > { %3797 = vrot.lane.b32.xlu1 %v3796_v42, %s4418_s14 }
 0x5a3   : > { %3799 = vrot.lane.b32.xlu0 %v3795_v56, %s4418_s14  ;;  %s286_s14 = scalar_lea.vmem [#allocation8], %s3924_s22 }
 0x5a4   : > { %s3847_s29 = sshll.u32 %s286_s14, 4  ;;  %s3848_s29 = int_to_ptr.vmem [resolvable:$true] %s3847_s29 }
 0x5a5   : > { %s4342_s19 = scalar_lea.vmem %s3848_s29, 256  ;;  %p4349_p11 = scmp.lt.s32.totalorder %s3848_s29, %s4347_s21 }
 0x5a6   : > { %3808 = vrot.lane.b32.xlu1 %v3807_v9, %s4422_s8  ;;  %p4343_p6 = scmp.ne.s32.totalorder %s3848_s29, %s4342_s19  ;;  %p4350_p12 = scmp.lt.s32.totalorder %s4348_s17, %s4342_s19 }
 0x5a7   : > { %3810 = vrot.lane.b32.xlu0 %v3806_v60, %s4422_s8 }
 0x5a8   : > { %p4344_p9 = pnand %p4343_p6, %p4502_p5  ;;  %p4351_p13 = por %p4350_p12, %p4349_p11 }
 0x5aa   : > { %p4345_p10 = pneg %p4344_p9 }
 0x5ac   : > { %p4352_p0 = pnand %p4351_p13, %p4345_p10 }
 0x60c   : > { %v3779_v0 = vpop.permute.xlu1 %3778 }
 0x60d   : > { %v3781_v30 = vpop.permute.xlu0 %3780 }
 0x610   : > { %v3787_v14 = vpop.permute.xlu1 %3786 }
 0x611   : > { %v3814_v49 = vsel %vm351_vm0, %v3779_v0, %v3787_v14  ;;  %v3789_v46 = vpop.permute.xlu0 %3788 }
 0x612   : > { %v3822_v45 = vrot.slane %v3814_v49, 1  ;;  %v3815_v29 = vsel %vm351_vm0, %v3781_v30, %v3789_v46 }
 0x613   : > { %v3823_v32 = vrot.slane %v3815_v29, 1 }
 0x614   : > { %v3798_v31 = vpop.permute.xlu1 %3797 }
 0x615   : > { %v3824_v3 = vsel %vm1061_vm6, %v3822_v45, %v3823_v32  ;;  %v3800_v52 = vpop.permute.xlu0 %3799 }
 0x616   : > { %3830 = vst [vmem:[%s286_s14] sm:$0xff] %v3824_v3 }
 0x618   : > { %v3809_v48 = vpop.permute.xlu1 %3808 }
 0x619   : > { %v3816_v35 = vsel %vm351_vm0, %v3798_v31, %v3809_v48  ;;  %v3811_v36 = vpop.permute.xlu0 %3810 }
 0x61a   : > { %v3825_v41 = vrot.slane %v3816_v35, 1  ;;  %v3817_v62 = vsel %vm351_vm0, %v3800_v52, %v3811_v36 }
 0x61b   : > { %v3826_v6 = vrot.slane %v3817_v62, 1 }
 0x61d   : > { %v3827_v23 = vsel %vm1061_vm6, %v3825_v41, %v3826_v6 }
 0x61e   : > { %3831 = vst [vmem:[%s286_s14 + $0x8] sm:$0xff] %v3827_v23 }
 0x61f   : > { %4355 = shalt.err (!%p4352_p0)
}
 0x620   : > { %s4356_s23 = scalar_lea.hbm %s6488_s20, 256  ;;  %s4360_s22 = scalar_lea.hbm %s6531_s7, 512 }
 0x621   : > { %p4357_p1 = scmp.ne.s32.totalorder %s6488_s20, %s4356_s23  ;;  %p4361_p4 = scmp.lt.s32.totalorder %s6488_s20, %s6531_s7 }
 0x622   : > { %p4362_p7 = scmp.lt.s32.totalorder %s4360_s22, %s4356_s23 }
 0x623   : > { %p4358_p2 = pnand %p4357_p1, %p4502_p5 }
 0x624   : > { %p4363_p8 = por %p4362_p7, %p4361_p4 }
 0x625   : > { %p4359_p3 = pneg %p4358_p2 }
 0x627   : > { %p4364_p6 = pnand %p4363_p8, %p4359_p3 }
 0x629   : > { %4367 = shalt.err (!%p4364_p6)
}
 0x62a   : > { %4137 = dma.vmem_to_hbm [thread:$0]  (%p4502_p5), %s3848_s29, 256, %s6488_s20, %s3833_s16  }
 0x62b PF: > { %p4149_p9 = scmp.ge.s32.totalorder %s4406_s27, 2  ;;  %s3859_s9 = sand.u32 1, %s4394_s24  }
 0x62c   : > { %p6866_p10 = scmp.ne.s32.totalorder %s6605_s12, 0  ;;  %s3860_s13 = scalar_lea.sflag [#allocation7], %s3859_s9 }
 0x62e   : > { %p4144_p11 = pnand %p4149_p9, %p6866_p10 }
 0x630   : > { %p4145_p12 = pneg %p4144_p11 }
 0x632   : > { %4389 = dma.done.wait (%p4145_p12), %s3860_s13, 256  }
 0x633   : > { %4391 = vsyncadd (%p4145_p12), %s3860_s13, 4294967040  ;;  %p18_p13 = scmp.ge.s32.totalorder %s4489_s30, 4   ;;  %s6867_s24 = smov %s4398_s25 }
 0x634   : > { %s6868_s25 = smov %s4402_s26  ;;  %s6869_s26 = smov %s4500_s10 }
 0x635   : > { %s6870_s27 = smov %s4489_s30  ;;  %20 = sbr.rel (!%p18_p13) target bundleno = 4 (0x4), region = 100 }
 0x63a   :  { %3865 = vsyncpa [#allocation6], 1 }
 0x63b   :  { %3867 = vsyncpa [#allocation6 + $0x1], 1 }
 0x63c   :  { %3868 = vsyncpa [#allocation7], 1 }
 0x63d   :  { %3870 = vsyncpa [#allocation7 + $0x1], 1 }

</bundles_post_ra>
